<compile_context>
chip_gen: v5e
topology: v5e:2x2
jax: 0.10.0
libtpu: 0.0.40
codegen_flags: <defaults>
</compile_context>

<pallas_src>
import functools
import numpy as np
import jax
import jax.numpy as jnp
from jax import lax
from jax.experimental import pallas as pl
from jax.experimental.pallas import tpu as pltpu


# ----------------------------------------------------------------------------
# Pallas kernels
# ----------------------------------------------------------------------------
def _conv1_qkv_kernel(x_ref, w1_ref, s1_ref, b1_ref, wq_ref, wkv_ref, q_ref, kv_ref):
    """relu(bn1(conv1_1x1(x)))  ->  q = h @ (Wq*scale),  kv = h @ Wkv   (fused)."""
    h = jnp.dot(x_ref[...], w1_ref[...], preferred_element_type=jnp.float32)
    h = jnp.maximum(h * s1_ref[...] + b1_ref[...], 0.0).astype(jnp.bfloat16)
    q_ref[...] = jnp.dot(h, wq_ref[...],
                         preferred_element_type=jnp.float32).astype(q_ref.dtype)
    kv_ref[...] = jnp.dot(h, wkv_ref[...],
                          preferred_element_type=jnp.float32).astype(kv_ref.dtype)


def _halo_attn_kernel(q_ref, kv00_ref, kv01_ref, kv10_ref, kv11_ref, qext_ref,
                      mask_ref, onehot_ref, wo_ref, bo_ref, o_ref,
                      *, heads, dim_head, block):
    """One (batch, block-row, block-col) query block, all heads.

    K/V arrive as the 4 aligned 8x8 quadrants of the halo'd window (halo==block/2).
    Relative-position bias = qext @ onehot^T (bias absorbed into an extra matmul).
    to_out (+bias) + ReLU fused; output written as an (8,8,width) spatial tile.
    """
    Lq = block * block
    inner = heads * dim_head
    ext = qext_ref.shape[-1] // heads
    width = wo_ref.shape[-1]

    q2d = q_ref[...].reshape(Lq, inner)                                 # (64,128) bf16
    kv2d = jnp.concatenate(
        [kv00_ref[...].reshape(Lq, 2 * inner),
         kv01_ref[...].reshape(Lq, 2 * inner),
         kv10_ref[...].reshape(Lq, 2 * inner),
         kv11_ref[...].reshape(Lq, 2 * inner)], axis=0)                 # (256,256) bf16
    qext2d = qext_ref[...]                                              # (64,128) bf16
    onehot = onehot_ref[...]                                            # (256,32) bf16
    mask = mask_ref[...]                                                # (1,256)  f32 additive

    acc = jnp.zeros((Lq, width), jnp.float32)
    for h in range(heads):
        qh = q2d[:, h * dim_head:(h + 1) * dim_head]                    # (64,32)
        kh = kv2d[:, h * dim_head:(h + 1) * dim_head]                   # (256,32)
        vh = kv2d[:, inner + h * dim_head: inner + (h + 1) * dim_head]  # (256,32)
        qe = qext2d[:, h * ext:(h + 1) * ext]                           # (64,32)

        sim = lax.dot_general(qh, kh, (((1,), (1,)), ((), ())),
                              preferred_element_type=jnp.float32)
        sim = sim + lax.dot_general(qe, onehot, (((1,), (1,)), ((), ())),
                                    preferred_element_type=jnp.float32)
        sim = sim + mask
        m = jnp.max(sim, axis=-1, keepdims=True)
        p = jnp.exp(sim - m)
        l = jnp.sum(p, axis=-1, keepdims=True)
        p = p * pl.reciprocal(l, approx=True)
        oh = jnp.dot(p.astype(jnp.bfloat16), vh,
                     preferred_element_type=jnp.float32)                # (64,32)
        acc = acc + jnp.dot(oh.astype(jnp.bfloat16),
                            wo_ref[h * dim_head:(h + 1) * dim_head, :],
                            preferred_element_type=jnp.float32)
    out = jnp.maximum(acc + bo_ref[...], 0.0)
    o_ref[...] = out.reshape(block, block, width).astype(o_ref.dtype)


def _conv3_kernel(a0_ref, a1_ref, w3_ref, s3_ref, b3_ref, res_ref, o_ref, rows_ref,
                  *, block):
    """3x3 conv (pad=1) + bn3 + residual + relu over one 8-row band.

    The band plus the 2 extra rows it needs live in a VMEM scratch; the nine taps
    are accumulated as small channel-contraction matmuls (no HBM im2col)."""
    Wp2 = a0_ref.shape[1]
    W = Wp2 - 2
    C = a0_ref.shape[2]
    Cout = o_ref.shape[2]

    rows_ref[0:block] = a0_ref[...]
    rows_ref[block:block + 2] = a1_ref[0:2]

    acc = jnp.zeros((block * W, Cout), jnp.float32)
    for di in range(3):
        for dj in range(3):
            win = rows_ref[di:di + block, dj:dj + W, :]                 # (8, W, C) bf16
            acc = acc + jnp.dot(win.reshape(block * W, C), w3_ref[di * 3 + dj],
                                preferred_element_type=jnp.float32)
    out = acc * s3_ref[...] + b3_ref[...] + res_ref[...].reshape(block * W, -1)
    o_ref[...] = jnp.maximum(out, 0.0).reshape(block, W, Cout).astype(o_ref.dtype)


# ----------------------------------------------------------------------------
# Helpers (constants / BN folding)
# ----------------------------------------------------------------------------
def bn_fold(gamma, beta, mean, var, eps=1e-5):
    s = gamma / jnp.sqrt(var + eps)
    return s, beta - mean * s


def _pick_tm(m):
    for tm in (1024, 512, 256, 128, 64, 32, 16, 8):
        if m % tm == 0 and m // tm >= 2:
            return tm
    return m


def _window_coords(block):
    """kp ordering used by the kernel: quadrant-major, row-major inside quadrant."""
    quads = [(0, 0), (0, 1), (1, 0), (1, 1)]
    wr = np.concatenate([di * block + np.repeat(np.arange(block), block) for di, _ in quads])
    wc = np.concatenate([dj * block + np.tile(np.arange(block), block) for _, dj in quads])
    return wr, wc


def build_mask_bias(H, W, block, halo):
    """(nb, Lk) additive mask: 0 for valid key positions, -1e9 for padded halo."""
    wr, wc = _window_coords(block)
    rows = []
    for bi in range(H // block):
        for bj in range(W // block):
            r = bi * block - halo + wr
            c = bj * block - halo + wc
            valid = (r >= 0) & (r < H) & (c >= 0) & (c < W)
            rows.append(np.where(valid, 0.0, -1e9).astype(np.float32))
    return jnp.asarray(np.stack(rows))


def build_onehot(block, halo):
    """(Lk, 2*rel) one-hot [onehot(window row) | onehot(window col)]."""
    rel = block + 2 * halo
    wr, wc = _window_coords(block)
    Lk = wr.shape[0]
    m = np.zeros((Lk, 2 * rel), np.float32)
    m[np.arange(Lk), wr] = 1.0
    m[np.arange(Lk), rel + wc] = 1.0
    return jnp.asarray(m)


# ----------------------------------------------------------------------------
# Optimized Pallas forward
# ----------------------------------------------------------------------------
def bottleneck_forward_pallas(x_nchw, p, *, block=8, halo=4, heads=4, dim_head=32):
    B, Cin, H, W = x_nchw.shape
    assert H % block == 0 and W % block == 0
    assert block == 2 * halo, "quadrant K/V gather assumes halo == block/2 (module default)"

    width = p['conv1_w'].shape[0]
    Cout = p['conv3_w'].shape[0]
    assert Cin == Cout, "residual add without downsample requires inplanes == planes"
    inner = heads * dim_head
    dh = dim_head
    Hb, Wb = H // block, W // block
    nb = Hb * Wb
    Lq = block * block
    rel = block + 2 * halo
    Lk = rel * rel
    ext = 2 * rel
    scale = dim_head ** -0.5

    x_nhwc = jnp.transpose(x_nchw, (0, 2, 3, 1)).astype(jnp.float32)     # (B,H,W,Cin)

    # ---- stage 1: fused conv1 + bn1 + relu + q/kv projections ---------------
    s1, b1 = bn_fold(p['bn1_g'], p['bn1_b'], p['bn1_m'], p['bn1_v'])
    w1 = p['conv1_w'][:, :, 0, 0].T.astype(jnp.bfloat16)                  # (Cin,width)
    wq = (p['to_q_w'].T * scale).astype(jnp.bfloat16)                     # (width,inner)
    wkv = p['to_kv_w'].T.astype(jnp.bfloat16)                             # (width,2*inner)

    M = B * H * W
    tm = _pick_tm(M)
    q_flat, kv_flat = pl.pallas_call(
        _conv1_qkv_kernel,
        out_shape=(jax.ShapeDtypeStruct((M, inner), jnp.bfloat16),
                   jax.ShapeDtypeStruct((M, 2 * inner), jnp.bfloat16)),
        grid=(M // tm,),
        in_specs=[
            pl.BlockSpec((tm, Cin), lambda i: (i, 0)),
            pl.BlockSpec((Cin, width), lambda i: (0, 0)),
            pl.BlockSpec((1, width), lambda i: (0, 0)),
            pl.BlockSpec((1, width), lambda i: (0, 0)),
            pl.BlockSpec((width, inner), lambda i: (0, 0)),
            pl.BlockSpec((width, 2 * inner), lambda i: (0, 0)),
        ],
        out_specs=(pl.BlockSpec((tm, inner), lambda i: (i, 0)),
                   pl.BlockSpec((tm, 2 * inner), lambda i: (i, 0))),
        compiler_params=pltpu.CompilerParams(dimension_semantics=("parallel",)),
    )(x_nhwc.reshape(M, Cin).astype(jnp.bfloat16), w1,
      s1.reshape(1, width).astype(jnp.float32), b1.reshape(1, width).astype(jnp.float32),
      wq, wkv)

    # ---- stage 2: HaloAttention + to_out + relu ------------------------------
    # compact relative-position q-extension (replaces the (n,heads,Lq,Lk) bias tensor)
    idx = (rel - 1) + np.arange(rel)[None, :] - np.arange(block)[:, None]   # (block, rel)
    relh_x = p['rel_h'][idx].astype(jnp.float32)                            # (block, rel, dh)
    relw_y = p['rel_w'][idx].astype(jnp.float32)
    q5 = q_flat.astype(jnp.float32).reshape(B, Hb, block, Wb, block, heads, dh)
    A = jnp.einsum('bixjyhd,xkd->bijxyhk', q5, relh_x)
    Bw = jnp.einsum('bixjyhd,ykd->bijxyhk', q5, relw_y)
    qext = jnp.concatenate([A, Bw], axis=-1).reshape(B * nb, Lq, heads * ext)
    qext = qext.astype(jnp.bfloat16)

    q_spat = q_flat.reshape(B, H, W, inner)
    kv_pad = jnp.pad(kv_flat.reshape(B, H, W, 2 * inner),
                     ((0, 0), (halo, halo), (halo, halo), (0, 0)))
    kvpb = kv_pad.reshape(B, Hb + 1, block, Wb + 1, block, 2 * inner)

    mask_bias = build_mask_bias(H, W, block, halo).reshape(nb, 1, Lk)       # f32 additive
    onehot = build_onehot(block, halo).astype(jnp.bfloat16)                 # (Lk, ext)
    wo = p['to_out_w'].T.astype(jnp.bfloat16)                               # (inner, width)
    bo = p['to_out_b'].reshape(1, width).astype(jnp.float32)

    kv_spec = pl.BlockSpec((None, None, block, None, block, 2 * inner),
                           lambda b, i, j: (b, i, 0, j, 0, 0))
    kv_spec_r = pl.BlockSpec((None, None, block, None, block, 2 * inner),
                             lambda b, i, j: (b, i, 0, j + 1, 0, 0))
    kv_spec_d = pl.BlockSpec((None, None, block, None, block, 2 * inner),
                             lambda b, i, j: (b, i + 1, 0, j, 0, 0))
    kv_spec_dr = pl.BlockSpec((None, None, block, None, block, 2 * inner),
                              lambda b, i, j: (b, i + 1, 0, j + 1, 0, 0))

    attn_out = pl.pallas_call(
        functools.partial(_halo_attn_kernel, heads=heads, dim_head=dh, block=block),
        out_shape=jax.ShapeDtypeStruct((B, H, W, width), jnp.bfloat16),
        grid=(B, Hb, Wb),
        in_specs=[
            pl.BlockSpec((None, block, block, inner), lambda b, i, j: (b, i, j, 0)),
            kv_spec, kv_spec_r, kv_spec_d, kv_spec_dr,
            pl.BlockSpec((None, Lq, heads * ext),
                         lambda b, i, j: (b * Hb * Wb + i * Wb + j, 0, 0)),
            pl.BlockSpec((None, 1, Lk), lambda b, i, j: (i * Wb + j, 0, 0)),
            pl.BlockSpec((Lk, ext), lambda b, i, j: (0, 0)),
            pl.BlockSpec((inner, width), lambda b, i, j: (0, 0)),
            pl.BlockSpec((1, width), lambda b, i, j: (0, 0)),
        ],
        out_specs=pl.BlockSpec((None, block, block, width), lambda b, i, j: (b, i, j, 0)),
        compiler_params=pltpu.CompilerParams(
            dimension_semantics=("parallel", "parallel", "parallel")),
    )(q_spat, kvpb, kvpb, kvpb, kvpb, qext, mask_bias, onehot, wo, bo)

    # ---- stage 3: conv3 (3x3, pad 1) + bn3 + residual + relu -----------------
    a_pad = jnp.pad(attn_out, ((0, 0), (1, block - 1), (1, 1), (0, 0)))  # (B,H+block,W+2,width)
    w3r = p['conv3_w'].transpose(2, 3, 1, 0).reshape(9, width, Cout).astype(jnp.bfloat16)
    s3, b3 = bn_fold(p['bn3_g'], p['bn3_b'], p['bn3_m'], p['bn3_v'])

    out_nhwc = pl.pallas_call(
        functools.partial(_conv3_kernel, block=block),
        out_shape=jax.ShapeDtypeStruct((B, H, W, Cout), jnp.float32),
        grid=(B, Hb),
        in_specs=[
            pl.BlockSpec((None, block, W + 2, width), lambda b, i: (b, i, 0, 0)),
            pl.BlockSpec((None, block, W + 2, width), lambda b, i: (b, i + 1, 0, 0)),
            pl.BlockSpec((9, width, Cout), lambda b, i: (0, 0, 0)),
            pl.BlockSpec((1, Cout), lambda b, i: (0, 0)),
            pl.BlockSpec((1, Cout), lambda b, i: (0, 0)),
            pl.BlockSpec((None, block, W, Cin), lambda b, i: (b, i, 0, 0)),
        ],
        out_specs=pl.BlockSpec((None, block, W, Cout), lambda b, i: (b, i, 0, 0)),
        scratch_shapes=[pltpu.VMEM((block + 2, W + 2, width), jnp.bfloat16)],
        compiler_params=pltpu.CompilerParams(
            dimension_semantics=("parallel", "parallel")),
    )(a_pad, a_pad, w3r,
      s3.reshape(1, Cout).astype(jnp.float32), b3.reshape(1, Cout).astype(jnp.float32),
      x_nhwc)

    return out_nhwc.transpose(0, 3, 1, 2)                                # back to NCHW


# ----------------------------------------------------------------------------
# Pure-JAX f32 reference (module semantics, used only for the correctness check)
# ----------------------------------------------------------------------------
def build_rel_E(rel_height, rel_width, block, halo):
    rel = block + 2 * halo
    y = jnp.arange(block)
    kk = jnp.arange(rel)
    iw = (rel - 1) + kk[None, :] - y[:, None]
    ih = (rel - 1) + kk[None, :] - y[:, None]
    RW = rel_width[iw]
    RH = rel_height[ih]
    E = RH[:, None, :, None, :] + RW[None, :, None, :, :]
    return E.reshape(block * block, rel * rel, -1)


def build_mask_ref(H, W, block, halo):
    rel = block + 2 * halo
    rows = []
    for bi in range(H // block):
        for bj in range(W // block):
            r = bi * block - halo + np.arange(rel)
            c = bj * block - halo + np.arange(rel)
            m = ((r >= 0) & (r < H))[:, None] & ((c >= 0) & (c < W))[None, :]
            rows.append(m.reshape(-1))
    return jnp.asarray(np.stack(rows).astype(np.float32))


def bottleneck_forward_ref(x_nchw, p, *, block=8, halo=4, heads=4, dim_head=32):
    B, Cin, H, W = x_nchw.shape
    x = jnp.transpose(x_nchw, (0, 2, 3, 1)).astype(jnp.float32)
    width = p['conv1_w'].shape[0]
    Cout = p['conv3_w'].shape[0]
    inner = heads * dim_head
    Hb, Wb = H // block, W // block
    nb = Hb * Wb
    Lq = block * block
    rel = block + 2 * halo
    Lk = rel * rel

    w1 = p['conv1_w'][:, :, 0, 0].T
    s1, b1 = bn_fold(p['bn1_g'], p['bn1_b'], p['bn1_m'], p['bn1_v'])
    h1 = jnp.maximum(x.reshape(-1, Cin) @ w1 * s1[None] + b1[None], 0.0)
    h1 = h1.reshape(B, H, W, width)

    qi = h1.reshape(B, Hb, block, Wb, block, width).transpose(0, 1, 3, 2, 4, 5)
    qi = qi.reshape(B * nb, Lq, width)
    hp = jnp.pad(h1, ((0, 0), (halo, halo), (halo, halo), (0, 0)))
    wins = []
    for bi in range(Hb):
        for bj in range(Wb):
            wins.append(hp[:, bi * block:bi * block + rel, bj * block:bj * block + rel, :])
    kvi = jnp.stack(wins, axis=1).reshape(B * nb, Lk, width)

    scale = dim_head ** -0.5
    q = (qi @ (p['to_q_w'].T * scale)).reshape(B * nb, Lq, heads, dim_head)
    kv = kvi @ p['to_kv_w'].T
    k = kv[..., :inner].reshape(B * nb, Lk, heads, dim_head)
    v = kv[..., inner:].reshape(B * nb, Lk, heads, dim_head)

    E = build_rel_E(p['rel_h'], p['rel_w'], block, halo)
    bias = jnp.einsum('nqhd,qkd->nhqk', q, E)
    sim = jnp.einsum('nqhd,nkhd->nhqk', q, k) + bias
    maskb = build_mask_ref(H, W, block, halo)
    mask = jnp.tile(maskb, (B, 1))[:, None, None, :]
    sim = jnp.where(mask > 0.5, sim, -jnp.finfo(jnp.float32).max)
    sim = sim - sim.max(-1, keepdims=True)
    pr = jnp.exp(sim)
    pr = pr / pr.sum(-1, keepdims=True)
    ao = jnp.einsum('nhqk,nkhd->nqhd', pr, v).reshape(B * nb * Lq, inner)

    a = jnp.maximum(ao @ p['to_out_w'].T + p['to_out_b'][None, :], 0.0)
    a = a.reshape(B, Hb, Wb, block, block, width).transpose(0, 1, 3, 2, 4, 5)
    a = a.reshape(B, H, W, width)

    ap = jnp.pad(a, ((0, 0), (1, 1), (1, 1), (0, 0)))
    cols = [ap[:, di:di + H, dj:dj + W, :] for di in range(3) for dj in range(3)]
    patches = jnp.concatenate(cols, axis=-1).reshape(-1, 9 * width)
    w3 = p['conv3_w'].transpose(2, 3, 1, 0).reshape(9 * width, Cout)
    s3, b3 = bn_fold(p['bn3_g'], p['bn3_b'], p['bn3_m'], p['bn3_v'])
    out = (patches @ w3) * s3[None] + b3[None] + x.reshape(-1, Cin)
    out = jnp.maximum(out, 0.0)
    return out.reshape(B, H, W, Cout).transpose(0, 3, 1, 2)


# ----------------------------------------------------------------------------
# Deterministic parameter initialization (shapes from Bottleneck.__init__)
# ----------------------------------------------------------------------------
def init_params(key, inplanes, planes, *, heads, dim_head, block, halo):
    width = int(planes * (64 / 64.0)) * 1          # groups=1, base_width=64
    inner = heads * dim_head
    rel_size = block + 2 * halo
    out_planes = planes                            # expansion=1, rb=1
    ks = list(jax.random.split(key, 16))
    n = lambda k, shape, s: jax.random.normal(k, shape, jnp.float32) * s
    return dict(
        conv1_w=n(ks[0], (width, inplanes, 1, 1), 0.2),
        bn1_g=1.0 + n(ks[1], (width,), 0.1),
        bn1_b=n(ks[2], (width,), 0.1),
        bn1_m=n(ks[3], (width,), 0.1),
        bn1_v=0.5 + jax.random.uniform(ks[4], (width,), jnp.float32),
        to_q_w=n(ks[5], (inner, width), 0.1),
        to_kv_w=n(ks[6], (2 * inner, width), 0.1),
        to_out_w=n(ks[7], (width, inner), 0.1),
        to_out_b=n(ks[8], (width,), 0.1),
        rel_h=n(ks[9], (2 * rel_size - 1, dim_head), dim_head ** -0.5),
        rel_w=n(ks[10], (2 * rel_size - 1, dim_head), dim_head ** -0.5),
        conv3_w=n(ks[11], (out_planes, width, 3, 3), 0.08),
        bn3_g=1.0 + n(ks[12], (out_planes,), 0.1),
        bn3_b=n(ks[13], (out_planes,), 0.1),
        bn3_m=n(ks[14], (out_planes,), 0.1),
        bn3_v=0.5 + jax.random.uniform(ks[15], (out_planes,), jnp.float32),
    )


if __name__ == "__main__":
    key = jax.random.PRNGKey(0)
    kx, kp = jax.random.split(key)
    B, C, H, W = 2, 32, 16, 16          # inplanes == planes so the residual add is valid
    x = jax.random.normal(kx, (B, C, H, W), jnp.float32)
    params = init_params(kp, inplanes=C, planes=C, heads=4, dim_head=32, block=8, halo=4)

    fwd = jax.jit(functools.partial(bottleneck_forward_pallas,
                                    block=8, halo=4, heads=4, dim_head=32))
    out = jax.block_until_ready(fwd(x, params))
    assert out.shape == (B, C, H, W)

    with jax.default_matmul_precision("highest"):
        ref = bottleneck_forward_ref(x, params, block=8, halo=4, heads=4, dim_head=32)
    ref = jax.block_until_ready(ref)

    # bf16 operands + approx reciprocal inside the kernels -> relaxed tolerance
    np.testing.assert_allclose(np.asarray(out), np.asarray(ref), rtol=3e-2, atol=3e-2)
    print("KERNEL_OK")
</pallas_src>

<mosaic_0001>
module attributes {stable_mosaic.version = 11 : i64} {
  func.func @_conv1_qkv_kernel(%arg0: i32, %arg1: memref<256x32xbf16, #tpu.memory_space<vmem>>, %arg2: memref<32x32xbf16, #tpu.memory_space<vmem>>, %arg3: memref<1x32xf32, #tpu.memory_space<vmem>>, %arg4: memref<1x32xf32, #tpu.memory_space<vmem>>, %arg5: memref<32x128xbf16, #tpu.memory_space<vmem>>, %arg6: memref<32x256xbf16, #tpu.memory_space<vmem>>, %arg7: memref<256x128xbf16, #tpu.memory_space<vmem>>, %arg8: memref<256x256xbf16, #tpu.memory_space<vmem>>) attributes {dimension_semantics = [#tpu.dimension_semantics<parallel>], iteration_bounds = array<i64: 2>, scalar_prefetch = 0 : i64, scratch_operands = 0 : i64, tpu.core_type = #tpu.core_type<tc>, window_params = [{transform_indices = @transform_0, window_bounds = array<i64: 256, 32>}, {pipeline_mode = #tpu.pipeline_mode<synchronous>, transform_indices = @transform_1, window_bounds = array<i64: 32, 32>}, {pipeline_mode = #tpu.pipeline_mode<synchronous>, transform_indices = @transform_2, window_bounds = array<i64: 1, 32>}, {pipeline_mode = #tpu.pipeline_mode<synchronous>, transform_indices = @transform_3, window_bounds = array<i64: 1, 32>}, {pipeline_mode = #tpu.pipeline_mode<synchronous>, transform_indices = @transform_4, window_bounds = array<i64: 32, 128>}, {pipeline_mode = #tpu.pipeline_mode<synchronous>, transform_indices = @transform_5, window_bounds = array<i64: 32, 256>}, {transform_indices = @transform_6, window_bounds = array<i64: 256, 128>}, {transform_indices = @transform_7, window_bounds = array<i64: 256, 256>}]} {
    %c0 = arith.constant 0 : index
    %c0_0 = arith.constant 0 : index
    %0 = vector.load %arg1[%c0, %c0_0] : memref<256x32xbf16, #tpu.memory_space<vmem>>, vector<256x32xbf16>
    %c0_1 = arith.constant 0 : index
    %c0_2 = arith.constant 0 : index
    %1 = vector.load %arg2[%c0_1, %c0_2] : memref<32x32xbf16, #tpu.memory_space<vmem>>, vector<32x32xbf16>
    %cst = arith.constant dense<0.000000e+00> : vector<256x32xf32>
    %2 = tpu.matmul %0, %1, %cst {dimension_numbers = #tpu.dot_dimension_numbers<[1], [0], [0], [1], [0, 0, 1, 1], [], []>} : vector<256x32xbf16>, vector<32x32xbf16>, vector<256x32xf32> -> vector<256x32xf32>
    %c0_3 = arith.constant 0 : index
    %c0_4 = arith.constant 0 : index
    %3 = vector.load %arg3[%c0_3, %c0_4] : memref<1x32xf32, #tpu.memory_space<vmem>>, vector<1x32xf32>
    %4 = vector.broadcast %3 : vector<1x32xf32> to vector<256x32xf32>
    %5 = arith.mulf %2, %4 : vector<256x32xf32>
    %c0_5 = arith.constant 0 : index
    %c0_6 = arith.constant 0 : index
    %6 = vector.load %arg4[%c0_5, %c0_6] : memref<1x32xf32, #tpu.memory_space<vmem>>, vector<1x32xf32>
    %7 = vector.broadcast %6 : vector<1x32xf32> to vector<256x32xf32>
    %8 = arith.addf %5, %7 : vector<256x32xf32>
    %cst_7 = arith.constant 0.000000e+00 : f32
    %9 = vector.broadcast %cst_7 : f32 to vector<256x32xf32>
    %10 = arith.maximumf %8, %9 : vector<256x32xf32>
    %11 = arith.truncf %10 : vector<256x32xf32> to vector<256x32xbf16>
    %c0_8 = arith.constant 0 : index
    %c0_9 = arith.constant 0 : index
    %12 = vector.load %arg5[%c0_8, %c0_9] : memref<32x128xbf16, #tpu.memory_space<vmem>>, vector<32x128xbf16>
    %cst_10 = arith.constant dense<0.000000e+00> : vector<256x128xf32>
    %13 = tpu.matmul %11, %12, %cst_10 {dimension_numbers = #tpu.dot_dimension_numbers<[1], [0], [0], [1], [0, 0, 1, 1], [], []>} : vector<256x32xbf16>, vector<32x128xbf16>, vector<256x128xf32> -> vector<256x128xf32>
    %14 = arith.truncf %13 : vector<256x128xf32> to vector<256x128xbf16>
    %c0_11 = arith.constant 0 : index
    %c0_12 = arith.constant 0 : index
    %15 = vector.load %arg7[%c0_11, %c0_12] : memref<256x128xbf16, #tpu.memory_space<vmem>>, vector<256x128xbf16>
    tpu.vector_store %arg7[%c0_11, %c0_12], %14 {strides = array<i32>} : memref<256x128xbf16, #tpu.memory_space<vmem>>, vector<256x128xbf16>,
    %c0_13 = arith.constant 0 : index
    %c0_14 = arith.constant 0 : index
    %16 = vector.load %arg6[%c0_13, %c0_14] : memref<32x256xbf16, #tpu.memory_space<vmem>>, vector<32x256xbf16>
    %cst_15 = arith.constant dense<0.000000e+00> : vector<256x256xf32>
    %17 = tpu.matmul %11, %16, %cst_15 {dimension_numbers = #tpu.dot_dimension_numbers<[1], [0], [0], [1], [0, 0, 1, 1], [], []>} : vector<256x32xbf16>, vector<32x256xbf16>, vector<256x256xf32> -> vector<256x256xf32>
    %18 = arith.truncf %17 : vector<256x256xf32> to vector<256x256xbf16>
    %c0_16 = arith.constant 0 : index
    %c0_17 = arith.constant 0 : index
    %19 = vector.load %arg8[%c0_16, %c0_17] : memref<256x256xbf16, #tpu.memory_space<vmem>>, vector<256x256xbf16>
    tpu.vector_store %arg8[%c0_16, %c0_17], %18 {strides = array<i32>} : memref<256x256xbf16, #tpu.memory_space<vmem>>, vector<256x256xbf16>,
    return
  }
  func.func @transform_0(%arg0: i32) -> (i32, i32) {
    %c0_i32 = arith.constant 0 : i32
    %c0_i32_0 = arith.constant 0 : i32
    return %arg0, %c0_i32 : i32, i32
  }
  func.func @transform_1(%arg0: i32) -> (i32, i32) {
    %c0_i32 = arith.constant 0 : i32
    %c0_i32_0 = arith.constant 0 : i32
    %c0_i32_1 = arith.constant 0 : i32
    return %c0_i32, %c0_i32_0 : i32, i32
  }
  func.func @transform_2(%arg0: i32) -> (i32, i32) {
    %c0_i32 = arith.constant 0 : i32
    %c0_i32_0 = arith.constant 0 : i32
    %c0_i32_1 = arith.constant 0 : i32
    return %c0_i32, %c0_i32_0 : i32, i32
  }
  func.func @transform_3(%arg0: i32) -> (i32, i32) {
    %c0_i32 = arith.constant 0 : i32
    %c0_i32_0 = arith.constant 0 : i32
    %c0_i32_1 = arith.constant 0 : i32
    return %c0_i32, %c0_i32_0 : i32, i32
  }
  func.func @transform_4(%arg0: i32) -> (i32, i32) {
    %c0_i32 = arith.constant 0 : i32
    %c0_i32_0 = arith.constant 0 : i32
    %c0_i32_1 = arith.constant 0 : i32
    return %c0_i32, %c0_i32_0 : i32, i32
  }
  func.func @transform_5(%arg0: i32) -> (i32, i32) {
    %c0_i32 = arith.constant 0 : i32
    %c0_i32_0 = arith.constant 0 : i32
    %c0_i32_1 = arith.constant 0 : i32
    return %c0_i32, %c0_i32_0 : i32, i32
  }
  func.func @transform_6(%arg0: i32) -> (i32, i32) {
    %c0_i32 = arith.constant 0 : i32
    %c0_i32_0 = arith.constant 0 : i32
    return %arg0, %c0_i32 : i32, i32
  }
  func.func @transform_7(%arg0: i32) -> (i32, i32) {
    %c0_i32 = arith.constant 0 : i32
    %c0_i32_0 = arith.constant 0 : i32
    return %arg0, %c0_i32 : i32, i32
  }
}

module attributes {stable_mosaic.version = 11 : i64} {
  func.func @_halo_attn_kernel(%arg0: i32, %arg1: i32, %arg2: i32, %arg3: memref<1x8x8x128xbf16, #tpu.memory_space<vmem>>, %arg4: memref<1x1x8x1x8x256xbf16, #tpu.memory_space<vmem>>, %arg5: memref<1x1x8x1x8x256xbf16, #tpu.memory_space<vmem>>, %arg6: memref<1x1x8x1x8x256xbf16, #tpu.memory_space<vmem>>, %arg7: memref<1x1x8x1x8x256xbf16, #tpu.memory_space<vmem>>, %arg8: memref<1x64x128xbf16, #tpu.memory_space<vmem>>, %arg9: memref<1x1x256xf32, #tpu.memory_space<vmem>>, %arg10: memref<256x32xbf16, #tpu.memory_space<vmem>>, %arg11: memref<128x32xbf16, #tpu.memory_space<vmem>>, %arg12: memref<1x32xf32, #tpu.memory_space<vmem>>, %arg13: memref<1x8x8x32xbf16, #tpu.memory_space<vmem>>) attributes {dimension_semantics = [#tpu.dimension_semantics<parallel>, #tpu.dimension_semantics<parallel>, #tpu.dimension_semantics<parallel>], iteration_bounds = array<i64: 2, 2, 2>, scalar_prefetch = 0 : i64, scratch_operands = 0 : i64, tpu.core_type = #tpu.core_type<tc>, window_params = [{transform_indices = @transform_0, window_bounds = array<i64: 1, 8, 8, 128>}, {transform_indices = @transform_1, window_bounds = array<i64: 1, 1, 8, 1, 8, 256>}, {transform_indices = @transform_2, window_bounds = array<i64: 1, 1, 8, 1, 8, 256>}, {transform_indices = @transform_3, window_bounds = array<i64: 1, 1, 8, 1, 8, 256>}, {transform_indices = @transform_4, window_bounds = array<i64: 1, 1, 8, 1, 8, 256>}, {transform_indices = @transform_5, window_bounds = array<i64: 1, 64, 128>}, {transform_indices = @transform_6, window_bounds = array<i64: 1, 1, 256>}, {pipeline_mode = #tpu.pipeline_mode<synchronous>, transform_indices = @transform_7, window_bounds = array<i64: 256, 32>}, {pipeline_mode = #tpu.pipeline_mode<synchronous>, transform_indices = @transform_8, window_bounds = array<i64: 128, 32>}, {pipeline_mode = #tpu.pipeline_mode<synchronous>, transform_indices = @transform_9, window_bounds = array<i64: 1, 32>}, {transform_indices = @transform_10, window_bounds = array<i64: 1, 8, 8, 32>}]} {
    %c0 = arith.constant 0 : index
    %c0_0 = arith.constant 0 : index
    %c0_1 = arith.constant 0 : index
    %c0_2 = arith.constant 0 : index
    %0 = vector.load %arg3[%c0, %c0_0, %c0_1, %c0_2] : memref<1x8x8x128xbf16, #tpu.memory_space<vmem>>, vector<1x8x8x128xbf16>
    %1 = vector.shape_cast %0 : vector<1x8x8x128xbf16> to vector<8x8x128xbf16>
    %2 = vector.shape_cast %1 : vector<8x8x128xbf16> to vector<64x128xbf16>
    %c0_3 = arith.constant 0 : index
    %c0_4 = arith.constant 0 : index
    %c0_5 = arith.constant 0 : index
    %c0_6 = arith.constant 0 : index
    %c0_7 = arith.constant 0 : index
    %c0_8 = arith.constant 0 : index
    %3 = vector.load %arg4[%c0_3, %c0_4, %c0_5, %c0_6, %c0_7, %c0_8] : memref<1x1x8x1x8x256xbf16, #tpu.memory_space<vmem>>, vector<1x1x8x1x8x256xbf16>
    %4 = vector.shape_cast %3 : vector<1x1x8x1x8x256xbf16> to vector<8x8x256xbf16>
    %5 = vector.shape_cast %4 : vector<8x8x256xbf16> to vector<64x256xbf16>
    %c0_9 = arith.constant 0 : index
    %c0_10 = arith.constant 0 : index
    %c0_11 = arith.constant 0 : index
    %c0_12 = arith.constant 0 : index
    %c0_13 = arith.constant 0 : index
    %c0_14 = arith.constant 0 : index
    %6 = vector.load %arg5[%c0_9, %c0_10, %c0_11, %c0_12, %c0_13, %c0_14] : memref<1x1x8x1x8x256xbf16, #tpu.memory_space<vmem>>, vector<1x1x8x1x8x256xbf16>
    %7 = vector.shape_cast %6 : vector<1x1x8x1x8x256xbf16> to vector<8x8x256xbf16>
    %8 = vector.shape_cast %7 : vector<8x8x256xbf16> to vector<64x256xbf16>
    %c0_15 = arith.constant 0 : index
    %c0_16 = arith.constant 0 : index
    %c0_17 = arith.constant 0 : index
    %c0_18 = arith.constant 0 : index
    %c0_19 = arith.constant 0 : index
    %c0_20 = arith.constant 0 : index
    %9 = vector.load %arg6[%c0_15, %c0_16, %c0_17, %c0_18, %c0_19, %c0_20] : memref<1x1x8x1x8x256xbf16, #tpu.memory_space<vmem>>, vector<1x1x8x1x8x256xbf16>
    %10 = vector.shape_cast %9 : vector<1x1x8x1x8x256xbf16> to vector<8x8x256xbf16>
    %11 = vector.shape_cast %10 : vector<8x8x256xbf16> to vector<64x256xbf16>
    %c0_21 = arith.constant 0 : index
    %c0_22 = arith.constant 0 : index
    %c0_23 = arith.constant 0 : index
    %c0_24 = arith.constant 0 : index
    %c0_25 = arith.constant 0 : index
    %c0_26 = arith.constant 0 : index
    %12 = vector.load %arg7[%c0_21, %c0_22, %c0_23, %c0_24, %c0_25, %c0_26] : memref<1x1x8x1x8x256xbf16, #tpu.memory_space<vmem>>, vector<1x1x8x1x8x256xbf16>
    %13 = vector.shape_cast %12 : vector<1x1x8x1x8x256xbf16> to vector<8x8x256xbf16>
    %14 = vector.shape_cast %13 : vector<8x8x256xbf16> to vector<64x256xbf16>
    %15 = tpu.concatenate %5, %8, %11, %14 in 0 : vector<64x256xbf16>, vector<64x256xbf16>, vector<64x256xbf16>, vector<64x256xbf16> -> vector<256x256xbf16>
    %c0_27 = arith.constant 0 : index
    %c0_28 = arith.constant 0 : index
    %c0_29 = arith.constant 0 : index
    %16 = vector.load %arg8[%c0_27, %c0_28, %c0_29] : memref<1x64x128xbf16, #tpu.memory_space<vmem>>, vector<1x64x128xbf16>
    %17 = vector.shape_cast %16 : vector<1x64x128xbf16> to vector<64x128xbf16>
    %c0_30 = arith.constant 0 : index
    %c0_31 = arith.constant 0 : index
    %18 = vector.load %arg10[%c0_30, %c0_31] : memref<256x32xbf16, #tpu.memory_space<vmem>>, vector<256x32xbf16>
    %c0_32 = arith.constant 0 : index
    %c0_33 = arith.constant 0 : index
    %c0_34 = arith.constant 0 : index
    %19 = vector.load %arg9[%c0_32, %c0_33, %c0_34] : memref<1x1x256xf32, #tpu.memory_space<vmem>>, vector<1x1x256xf32>
    %20 = vector.shape_cast %19 : vector<1x1x256xf32> to vector<1x256xf32>
    %cst = arith.constant 0.000000e+00 : f32
    %21 = vector.broadcast %cst : f32 to vector<64x32xf32>
    %22 = vector.extract_strided_slice %2 {offsets = [0, 0], sizes = [64, 32], strides = [1, 1]} : vector<64x128xbf16> to vector<64x32xbf16>
    %23 = vector.extract_strided_slice %15 {offsets = [0, 0], sizes = [256, 32], strides = [1, 1]} : vector<256x256xbf16> to vector<256x32xbf16>
    %24 = vector.extract_strided_slice %15 {offsets = [0, 128], sizes = [256, 32], strides = [1, 1]} : vector<256x256xbf16> to vector<256x32xbf16>
    %25 = vector.extract_strided_slice %17 {offsets = [0, 0], sizes = [64, 32], strides = [1, 1]} : vector<64x128xbf16> to vector<64x32xbf16>
    %cst_35 = arith.constant dense<0.000000e+00> : vector<64x256xf32>
    %26 = tpu.matmul %22, %23, %cst_35 {dimension_numbers = #tpu.dot_dimension_numbers<[1], [1], [0], [0], [0, 0, 1, 0], [], []>} : vector<64x32xbf16>, vector<256x32xbf16>, vector<64x256xf32> -> vector<64x256xf32>
    %cst_36 = arith.constant dense<0.000000e+00> : vector<64x256xf32>
    %27 = tpu.matmul %25, %18, %cst_36 {dimension_numbers = #tpu.dot_dimension_numbers<[1], [1], [0], [0], [0, 0, 1, 0], [], []>} : vector<64x32xbf16>, vector<256x32xbf16>, vector<64x256xf32> -> vector<64x256xf32>
    %28 = arith.addf %26, %27 : vector<64x256xf32>
    %29 = vector.broadcast %20 : vector<1x256xf32> to vector<64x256xf32>
    %30 = arith.addf %28, %29 : vector<64x256xf32>
    %cst_37 = arith.constant dense<0xFF800000> : vector<64xf32>
    %31 = vector.multi_reduction <maximumf>, %30, %cst_37 [1] : vector<64x256xf32> to vector<64xf32>
    %32 = vector.shape_cast %31 : vector<64xf32> to vector<64x1xf32>
    %33 = vector.broadcast %32 : vector<64x1xf32> to vector<64x256xf32>
    %34 = arith.subf %30, %33 : vector<64x256xf32>
    %35 = math.exp %34 : vector<64x256xf32>
    %cst_38 = arith.constant dense<0.000000e+00> : vector<64xf32>
    %36 = vector.multi_reduction <add>, %35, %cst_38 [1] : vector<64x256xf32> to vector<64xf32>
    %37 = vector.shape_cast %36 : vector<64xf32> to vector<64x1xf32>
    %38 = tpu.reciprocal %37 {approx = true} : vector<64x1xf32> -> vector<64x1xf32>
    %39 = vector.broadcast %38 : vector<64x1xf32> to vector<64x256xf32>
    %40 = arith.mulf %35, %39 : vector<64x256xf32>
    %41 = arith.truncf %40 : vector<64x256xf32> to vector<64x256xbf16>
    %cst_39 = arith.constant dense<0.000000e+00> : vector<64x32xf32>
    %42 = tpu.matmul %41, %24, %cst_39 {dimension_numbers = #tpu.dot_dimension_numbers<[1], [0], [0], [1], [0, 0, 1, 1], [], []>} : vector<64x256xbf16>, vector<256x32xbf16>, vector<64x32xf32> -> vector<64x32xf32>
    %43 = arith.truncf %42 : vector<64x32xf32> to vector<64x32xbf16>
    %c0_40 = arith.constant 0 : index
    %c0_41 = arith.constant 0 : index
    %44 = vector.load %arg11[%c0_40, %c0_41] : memref<128x32xbf16, #tpu.memory_space<vmem>>, vector<32x32xbf16>
    %cst_42 = arith.constant dense<0.000000e+00> : vector<64x32xf32>
    %45 = tpu.matmul %43, %44, %cst_42 {dimension_numbers = #tpu.dot_dimension_numbers<[1], [0], [0], [1], [0, 0, 1, 1], [], []>} : vector<64x32xbf16>, vector<32x32xbf16>, vector<64x32xf32> -> vector<64x32xf32>
    %46 = arith.addf %21, %45 : vector<64x32xf32>
    %47 = vector.extract_strided_slice %2 {offsets = [0, 32], sizes = [64, 32], strides = [1, 1]} : vector<64x128xbf16> to vector<64x32xbf16>
    %48 = vector.extract_strided_slice %15 {offsets = [0, 32], sizes = [256, 32], strides = [1, 1]} : vector<256x256xbf16> to vector<256x32xbf16>
    %49 = vector.extract_strided_slice %15 {offsets = [0, 160], sizes = [256, 32], strides = [1, 1]} : vector<256x256xbf16> to vector<256x32xbf16>
    %50 = vector.extract_strided_slice %17 {offsets = [0, 32], sizes = [64, 32], strides = [1, 1]} : vector<64x128xbf16> to vector<64x32xbf16>
    %cst_43 = arith.constant dense<0.000000e+00> : vector<64x256xf32>
    %51 = tpu.matmul %47, %48, %cst_43 {dimension_numbers = #tpu.dot_dimension_numbers<[1], [1], [0], [0], [0, 0, 1, 0], [], []>} : vector<64x32xbf16>, vector<256x32xbf16>, vector<64x256xf32> -> vector<64x256xf32>
    %cst_44 = arith.constant dense<0.000000e+00> : vector<64x256xf32>
    %52 = tpu.matmul %50, %18, %cst_44 {dimension_numbers = #tpu.dot_dimension_numbers<[1], [1], [0], [0], [0, 0, 1, 0], [], []>} : vector<64x32xbf16>, vector<256x32xbf16>, vector<64x256xf32> -> vector<64x256xf32>
    %53 = arith.addf %51, %52 : vector<64x256xf32>
    %54 = vector.broadcast %20 : vector<1x256xf32> to vector<64x256xf32>
    %55 = arith.addf %53, %54 : vector<64x256xf32>
    %cst_45 = arith.constant dense<0xFF800000> : vector<64xf32>
    %56 = vector.multi_reduction <maximumf>, %55, %cst_45 [1] : vector<64x256xf32> to vector<64xf32>
    %57 = vector.shape_cast %56 : vector<64xf32> to vector<64x1xf32>
    %58 = vector.broadcast %57 : vector<64x1xf32> to vector<64x256xf32>
    %59 = arith.subf %55, %58 : vector<64x256xf32>
    %60 = math.exp %59 : vector<64x256xf32>
    %cst_46 = arith.constant dense<0.000000e+00> : vector<64xf32>
    %61 = vector.multi_reduction <add>, %60, %cst_46 [1] : vector<64x256xf32> to vector<64xf32>
    %62 = vector.shape_cast %61 : vector<64xf32> to vector<64x1xf32>
    %63 = tpu.reciprocal %62 {approx = true} : vector<64x1xf32> -> vector<64x1xf32>
    %64 = vector.broadcast %63 : vector<64x1xf32> to vector<64x256xf32>
    %65 = arith.mulf %60, %64 : vector<64x256xf32>
    %66 = arith.truncf %65 : vector<64x256xf32> to vector<64x256xbf16>
    %cst_47 = arith.constant dense<0.000000e+00> : vector<64x32xf32>
    %67 = tpu.matmul %66, %49, %cst_47 {dimension_numbers = #tpu.dot_dimension_numbers<[1], [0], [0], [1], [0, 0, 1, 1], [], []>} : vector<64x256xbf16>, vector<256x32xbf16>, vector<64x32xf32> -> vector<64x32xf32>
    %68 = arith.truncf %67 : vector<64x32xf32> to vector<64x32xbf16>
    %c32 = arith.constant 32 : index
    %c0_48 = arith.constant 0 : index
    %69 = vector.load %arg11[%c32, %c0_48] : memref<128x32xbf16, #tpu.memory_space<vmem>>, vector<32x32xbf16>
    %cst_49 = arith.constant dense<0.000000e+00> : vector<64x32xf32>
    %70 = tpu.matmul %68, %69, %cst_49 {dimension_numbers = #tpu.dot_dimension_numbers<[1], [0], [0], [1], [0, 0, 1, 1], [], []>} : vector<64x32xbf16>, vector<32x32xbf16>, vector<64x32xf32> -> vector<64x32xf32>
    %71 = arith.addf %46, %70 : vector<64x32xf32>
    %72 = vector.extract_strided_slice %2 {offsets = [0, 64], sizes = [64, 32], strides = [1, 1]} : vector<64x128xbf16> to vector<64x32xbf16>
    %73 = vector.extract_strided_slice %15 {offsets = [0, 64], sizes = [256, 32], strides = [1, 1]} : vector<256x256xbf16> to vector<256x32xbf16>
    %74 = vector.extract_strided_slice %15 {offsets = [0, 192], sizes = [256, 32], strides = [1, 1]} : vector<256x256xbf16> to vector<256x32xbf16>
    %75 = vector.extract_strided_slice %17 {offsets = [0, 64], sizes = [64, 32], strides = [1, 1]} : vector<64x128xbf16> to vector<64x32xbf16>
    %cst_50 = arith.constant dense<0.000000e+00> : vector<64x256xf32>
    %76 = tpu.matmul %72, %73, %cst_50 {dimension_numbers = #tpu.dot_dimension_numbers<[1], [1], [0], [0], [0, 0, 1, 0], [], []>} : vector<64x32xbf16>, vector<256x32xbf16>, vector<64x256xf32> -> vector<64x256xf32>
    %cst_51 = arith.constant dense<0.000000e+00> : vector<64x256xf32>
    %77 = tpu.matmul %75, %18, %cst_51 {dimension_numbers = #tpu.dot_dimension_numbers<[1], [1], [0], [0], [0, 0, 1, 0], [], []>} : vector<64x32xbf16>, vector<256x32xbf16>, vector<64x256xf32> -> vector<64x256xf32>
    %78 = arith.addf %76, %77 : vector<64x256xf32>
    %79 = vector.broadcast %20 : vector<1x256xf32> to vector<64x256xf32>
    %80 = arith.addf %78, %79 : vector<64x256xf32>
    %cst_52 = arith.constant dense<0xFF800000> : vector<64xf32>
    %81 = vector.multi_reduction <maximumf>, %80, %cst_52 [1] : vector<64x256xf32> to vector<64xf32>
    %82 = vector.shape_cast %81 : vector<64xf32> to vector<64x1xf32>
    %83 = vector.broadcast %82 : vector<64x1xf32> to vector<64x256xf32>
    %84 = arith.subf %80, %83 : vector<64x256xf32>
    %85 = math.exp %84 : vector<64x256xf32>
    %cst_53 = arith.constant dense<0.000000e+00> : vector<64xf32>
    %86 = vector.multi_reduction <add>, %85, %cst_53 [1] : vector<64x256xf32> to vector<64xf32>
    %87 = vector.shape_cast %86 : vector<64xf32> to vector<64x1xf32>
    %88 = tpu.reciprocal %87 {approx = true} : vector<64x1xf32> -> vector<64x1xf32>
    %89 = vector.broadcast %88 : vector<64x1xf32> to vector<64x256xf32>
    %90 = arith.mulf %85, %89 : vector<64x256xf32>
    %91 = arith.truncf %90 : vector<64x256xf32> to vector<64x256xbf16>
    %cst_54 = arith.constant dense<0.000000e+00> : vector<64x32xf32>
    %92 = tpu.matmul %91, %74, %cst_54 {dimension_numbers = #tpu.dot_dimension_numbers<[1], [0], [0], [1], [0, 0, 1, 1], [], []>} : vector<64x256xbf16>, vector<256x32xbf16>, vector<64x32xf32> -> vector<64x32xf32>
    %93 = arith.truncf %92 : vector<64x32xf32> to vector<64x32xbf16>
    %c64 = arith.constant 64 : index
    %c0_55 = arith.constant 0 : index
    %94 = vector.load %arg11[%c64, %c0_55] : memref<128x32xbf16, #tpu.memory_space<vmem>>, vector<32x32xbf16>
    %cst_56 = arith.constant dense<0.000000e+00> : vector<64x32xf32>
    %95 = tpu.matmul %93, %94, %cst_56 {dimension_numbers = #tpu.dot_dimension_numbers<[1], [0], [0], [1], [0, 0, 1, 1], [], []>} : vector<64x32xbf16>, vector<32x32xbf16>, vector<64x32xf32> -> vector<64x32xf32>
    %96 = arith.addf %71, %95 : vector<64x32xf32>
    %97 = vector.extract_strided_slice %2 {offsets = [0, 96], sizes = [64, 32], strides = [1, 1]} : vector<64x128xbf16> to vector<64x32xbf16>
    %98 = vector.extract_strided_slice %15 {offsets = [0, 96], sizes = [256, 32], strides = [1, 1]} : vector<256x256xbf16> to vector<256x32xbf16>
    %99 = vector.extract_strided_slice %15 {offsets = [0, 224], sizes = [256, 32], strides = [1, 1]} : vector<256x256xbf16> to vector<256x32xbf16>
    %100 = vector.extract_strided_slice %17 {offsets = [0, 96], sizes = [64, 32], strides = [1, 1]} : vector<64x128xbf16> to vector<64x32xbf16>
    %cst_57 = arith.constant dense<0.000000e+00> : vector<64x256xf32>
    %101 = tpu.matmul %97, %98, %cst_57 {dimension_numbers = #tpu.dot_dimension_numbers<[1], [1], [0], [0], [0, 0, 1, 0], [], []>} : vector<64x32xbf16>, vector<256x32xbf16>, vector<64x256xf32> -> vector<64x256xf32>
    %cst_58 = arith.constant dense<0.000000e+00> : vector<64x256xf32>
    %102 = tpu.matmul %100, %18, %cst_58 {dimension_numbers = #tpu.dot_dimension_numbers<[1], [1], [0], [0], [0, 0, 1, 0], [], []>} : vector<64x32xbf16>, vector<256x32xbf16>, vector<64x256xf32> -> vector<64x256xf32>
    %103 = arith.addf %101, %102 : vector<64x256xf32>
    %104 = vector.broadcast %20 : vector<1x256xf32> to vector<64x256xf32>
    %105 = arith.addf %103, %104 : vector<64x256xf32>
    %cst_59 = arith.constant dense<0xFF800000> : vector<64xf32>
    %106 = vector.multi_reduction <maximumf>, %105, %cst_59 [1] : vector<64x256xf32> to vector<64xf32>
    %107 = vector.shape_cast %106 : vector<64xf32> to vector<64x1xf32>
    %108 = vector.broadcast %107 : vector<64x1xf32> to vector<64x256xf32>
    %109 = arith.subf %105, %108 : vector<64x256xf32>
    %110 = math.exp %109 : vector<64x256xf32>
    %cst_60 = arith.constant dense<0.000000e+00> : vector<64xf32>
    %111 = vector.multi_reduction <add>, %110, %cst_60 [1] : vector<64x256xf32> to vector<64xf32>
    %112 = vector.shape_cast %111 : vector<64xf32> to vector<64x1xf32>
    %113 = tpu.reciprocal %112 {approx = true} : vector<64x1xf32> -> vector<64x1xf32>
    %114 = vector.broadcast %113 : vector<64x1xf32> to vector<64x256xf32>
    %115 = arith.mulf %110, %114 : vector<64x256xf32>
    %116 = arith.truncf %115 : vector<64x256xf32> to vector<64x256xbf16>
    %cst_61 = arith.constant dense<0.000000e+00> : vector<64x32xf32>
    %117 = tpu.matmul %116, %99, %cst_61 {dimension_numbers = #tpu.dot_dimension_numbers<[1], [0], [0], [1], [0, 0, 1, 1], [], []>} : vector<64x256xbf16>, vector<256x32xbf16>, vector<64x32xf32> -> vector<64x32xf32>
    %118 = arith.truncf %117 : vector<64x32xf32> to vector<64x32xbf16>
    %c96 = arith.constant 96 : index
    %c0_62 = arith.constant 0 : index
    %119 = vector.load %arg11[%c96, %c0_62] : memref<128x32xbf16, #tpu.memory_space<vmem>>, vector<32x32xbf16>
    %cst_63 = arith.constant dense<0.000000e+00> : vector<64x32xf32>
    %120 = tpu.matmul %118, %119, %cst_63 {dimension_numbers = #tpu.dot_dimension_numbers<[1], [0], [0], [1], [0, 0, 1, 1], [], []>} : vector<64x32xbf16>, vector<32x32xbf16>, vector<64x32xf32> -> vector<64x32xf32>
    %121 = arith.addf %96, %120 : vector<64x32xf32>
    %c0_64 = arith.constant 0 : index
    %c0_65 = arith.constant 0 : index
    %122 = vector.load %arg12[%c0_64, %c0_65] : memref<1x32xf32, #tpu.memory_space<vmem>>, vector<1x32xf32>
    %123 = vector.broadcast %122 : vector<1x32xf32> to vector<64x32xf32>
    %124 = arith.addf %121, %123 : vector<64x32xf32>
    %cst_66 = arith.constant 0.000000e+00 : f32
    %125 = vector.broadcast %cst_66 : f32 to vector<64x32xf32>
    %126 = arith.maximumf %124, %125 : vector<64x32xf32>
    %127 = vector.shape_cast %126 : vector<64x32xf32> to vector<8x8x32xf32>
    %128 = arith.truncf %127 : vector<8x8x32xf32> to vector<8x8x32xbf16>
    %c0_67 = arith.constant 0 : index
    %c0_68 = arith.constant 0 : index
    %c0_69 = arith.constant 0 : index
    %c0_70 = arith.constant 0 : index
    %129 = vector.load %arg13[%c0_67, %c0_68, %c0_69, %c0_70] : memref<1x8x8x32xbf16, #tpu.memory_space<vmem>>, vector<1x8x8x32xbf16>
    %130 = vector.shape_cast %129 : vector<1x8x8x32xbf16> to vector<8x8x32xbf16>
    %131 = vector.shape_cast %128 : vector<8x8x32xbf16> to vector<1x8x8x32xbf16>
    tpu.vector_store %arg13[%c0_67, %c0_68, %c0_69, %c0_70], %131 {strides = array<i32>} : memref<1x8x8x32xbf16, #tpu.memory_space<vmem>>, vector<1x8x8x32xbf16>,
    return
  }
  func.func @transform_0(%arg0: i32, %arg1: i32, %arg2: i32) -> (i32, i32, i32, i32) {
    %c0_i32 = arith.constant 0 : i32
    %c0_i32_0 = arith.constant 0 : i32
    return %arg0, %arg1, %arg2, %c0_i32 : i32, i32, i32, i32
  }
  func.func @transform_1(%arg0: i32, %arg1: i32, %arg2: i32) -> (i32, i32, i32, i32, i32, i32) {
    %c0_i32 = arith.constant 0 : i32
    %c0_i32_0 = arith.constant 0 : i32
    %c0_i32_1 = arith.constant 0 : i32
    %c0_i32_2 = arith.constant 0 : i32
    return %arg0, %arg1, %c0_i32, %arg2, %c0_i32_0, %c0_i32_1 : i32, i32, i32, i32, i32, i32
  }
  func.func @transform_2(%arg0: i32, %arg1: i32, %arg2: i32) -> (i32, i32, i32, i32, i32, i32) {
    %c1_i32 = arith.constant 1 : i32
    %0 = arith.addi %arg2, %c1_i32 : i32
    %c0_i32 = arith.constant 0 : i32
    %c0_i32_0 = arith.constant 0 : i32
    %c0_i32_1 = arith.constant 0 : i32
    %c0_i32_2 = arith.constant 0 : i32
    return %arg0, %arg1, %c0_i32, %0, %c0_i32_0, %c0_i32_1 : i32, i32, i32, i32, i32, i32
  }
  func.func @transform_3(%arg0: i32, %arg1: i32, %arg2: i32) -> (i32, i32, i32, i32, i32, i32) {
    %c1_i32 = arith.constant 1 : i32
    %0 = arith.addi %arg1, %c1_i32 : i32
    %c0_i32 = arith.constant 0 : i32
    %c0_i32_0 = arith.constant 0 : i32
    %c0_i32_1 = arith.constant 0 : i32
    %c0_i32_2 = arith.constant 0 : i32
    return %arg0, %0, %c0_i32, %arg2, %c0_i32_0, %c0_i32_1 : i32, i32, i32, i32, i32, i32
  }
  func.func @transform_4(%arg0: i32, %arg1: i32, %arg2: i32) -> (i32, i32, i32, i32, i32, i32) {
    %c1_i32 = arith.constant 1 : i32
    %0 = arith.addi %arg1, %c1_i32 : i32
    %c1_i32_0 = arith.constant 1 : i32
    %1 = arith.addi %arg2, %c1_i32_0 : i32
    %c0_i32 = arith.constant 0 : i32
    %c0_i32_1 = arith.constant 0 : i32
    %c0_i32_2 = arith.constant 0 : i32
    %c0_i32_3 = arith.constant 0 : i32
    return %arg0, %0, %c0_i32, %1, %c0_i32_1, %c0_i32_2 : i32, i32, i32, i32, i32, i32
  }
  func.func @transform_5(%arg0: i32, %arg1: i32, %arg2: i32) -> (i32, i32, i32) {
    %c2_i32 = arith.constant 2 : i32
    %0 = arith.muli %arg0, %c2_i32 : i32
    %c2_i32_0 = arith.constant 2 : i32
    %1 = arith.muli %0, %c2_i32_0 : i32
    %c2_i32_1 = arith.constant 2 : i32
    %2 = arith.muli %arg1, %c2_i32_1 : i32
    %3 = arith.addi %1, %2 : i32
    %4 = arith.addi %3, %arg2 : i32
    %c0_i32 = arith.constant 0 : i32
    %c0_i32_2 = arith.constant 0 : i32
    %c0_i32_3 = arith.constant 0 : i32
    return %4, %c0_i32, %c0_i32_2 : i32, i32, i32
  }
  func.func @transform_6(%arg0: i32, %arg1: i32, %arg2: i32) -> (i32, i32, i32) {
    %c2_i32 = arith.constant 2 : i32
    %0 = arith.muli %arg1, %c2_i32 : i32
    %1 = arith.addi %0, %arg2 : i32
    %c0_i32 = arith.constant 0 : i32
    %c0_i32_0 = arith.constant 0 : i32
    %c0_i32_1 = arith.constant 0 : i32
    return %1, %c0_i32, %c0_i32_0 : i32, i32, i32
  }
  func.func @transform_7(%arg0: i32, %arg1: i32, %arg2: i32) -> (i32, i32) {
    %c0_i32 = arith.constant 0 : i32
    %c0_i32_0 = arith.constant 0 : i32
    %c0_i32_1 = arith.constant 0 : i32
    return %c0_i32, %c0_i32_0 : i32, i32
  }
  func.func @transform_8(%arg0: i32, %arg1: i32, %arg2: i32) -> (i32, i32) {
    %c0_i32 = arith.constant 0 : i32
    %c0_i32_0 = arith.constant 0 : i32
    %c0_i32_1 = arith.constant 0 : i32
    return %c0_i32, %c0_i32_0 : i32, i32
  }
  func.func @transform_9(%arg0: i32, %arg1: i32, %arg2: i32) -> (i32, i32) {
    %c0_i32 = arith.constant 0 : i32
    %c0_i32_0 = arith.constant 0 : i32
    %c0_i32_1 = arith.constant 0 : i32
    return %c0_i32, %c0_i32_0 : i32, i32
  }
  func.func @transform_10(%arg0: i32, %arg1: i32, %arg2: i32) -> (i32, i32, i32, i32) {
    %c0_i32 = arith.constant 0 : i32
    %c0_i32_0 = arith.constant 0 : i32
    return %arg0, %arg1, %arg2, %c0_i32 : i32, i32, i32, i32
  }
}

module attributes {stable_mosaic.version = 11 : i64} {
  func.func @_conv3_kernel(%arg0: i32, %arg1: i32, %arg2: memref<1x8x18x32xbf16, #tpu.memory_space<vmem>>, %arg3: memref<1x8x18x32xbf16, #tpu.memory_space<vmem>>, %arg4: memref<9x32x32xbf16, #tpu.memory_space<vmem>>, %arg5: memref<1x32xf32, #tpu.memory_space<vmem>>, %arg6: memref<1x32xf32, #tpu.memory_space<vmem>>, %arg7: memref<1x8x16x32xf32, #tpu.memory_space<vmem>>, %arg8: memref<1x8x16x32xf32, #tpu.memory_space<vmem>>, %arg9: memref<10x18x32xbf16, #tpu.memory_space<vmem>>) attributes {dimension_semantics = [#tpu.dimension_semantics<parallel>, #tpu.dimension_semantics<parallel>], iteration_bounds = array<i64: 2, 2>, scalar_prefetch = 0 : i64, scratch_operands = 1 : i64, tpu.core_type = #tpu.core_type<tc>, window_params = [{transform_indices = @transform_0, window_bounds = array<i64: 1, 8, 18, 32>}, {transform_indices = @transform_1, window_bounds = array<i64: 1, 8, 18, 32>}, {pipeline_mode = #tpu.pipeline_mode<synchronous>, transform_indices = @transform_2, window_bounds = array<i64: 9, 32, 32>}, {pipeline_mode = #tpu.pipeline_mode<synchronous>, transform_indices = @transform_3, window_bounds = array<i64: 1, 32>}, {pipeline_mode = #tpu.pipeline_mode<synchronous>, transform_indices = @transform_4, window_bounds = array<i64: 1, 32>}, {transform_indices = @transform_5, window_bounds = array<i64: 1, 8, 16, 32>}, {transform_indices = @transform_6, window_bounds = array<i64: 1, 8, 16, 32>}]} {
    %c0 = arith.constant 0 : index
    %c0_0 = arith.constant 0 : index
    %c0_1 = arith.constant 0 : index
    %c0_2 = arith.constant 0 : index
    %0 = vector.load %arg2[%c0, %c0_0, %c0_1, %c0_2] : memref<1x8x18x32xbf16, #tpu.memory_space<vmem>>, vector<1x8x18x32xbf16>
    %1 = vector.shape_cast %0 : vector<1x8x18x32xbf16> to vector<8x18x32xbf16>
    %c0_3 = arith.constant 0 : index
    %c0_4 = arith.constant 0 : index
    %c0_5 = arith.constant 0 : index
    %2 = vector.load %arg9[%c0_3, %c0_4, %c0_5] : memref<10x18x32xbf16, #tpu.memory_space<vmem>>, vector<8x18x32xbf16>
    tpu.vector_store %arg9[%c0_3, %c0_4, %c0_5], %1 {strides = array<i32>} : memref<10x18x32xbf16, #tpu.memory_space<vmem>>, vector<8x18x32xbf16>,
    %c0_6 = arith.constant 0 : index
    %c0_7 = arith.constant 0 : index
    %c0_8 = arith.constant 0 : index
    %c0_9 = arith.constant 0 : index
    %3 = vector.load %arg3[%c0_6, %c0_7, %c0_8, %c0_9] : memref<1x8x18x32xbf16, #tpu.memory_space<vmem>>, vector<1x2x18x32xbf16>
    %4 = vector.shape_cast %3 : vector<1x2x18x32xbf16> to vector<2x18x32xbf16>
    %c8 = arith.constant 8 : index
    %c0_10 = arith.constant 0 : index
    %c0_11 = arith.constant 0 : index
    %5 = vector.load %arg9[%c8, %c0_10, %c0_11] : memref<10x18x32xbf16, #tpu.memory_space<vmem>>, vector<2x18x32xbf16>
    tpu.vector_store %arg9[%c8, %c0_10, %c0_11], %4 {strides = array<i32>} : memref<10x18x32xbf16, #tpu.memory_space<vmem>>, vector<2x18x32xbf16>,
    %cst = arith.constant 0.000000e+00 : f32
    %6 = vector.broadcast %cst : f32 to vector<128x32xf32>
    %c0_12 = arith.constant 0 : index
    %c0_13 = arith.constant 0 : index
    %c0_14 = arith.constant 0 : index
    %7 = vector.load %arg9[%c0_12, %c0_13, %c0_14] : memref<10x18x32xbf16, #tpu.memory_space<vmem>>, vector<8x16x32xbf16>
    %8 = vector.shape_cast %7 : vector<8x16x32xbf16> to vector<128x32xbf16>
    %c0_15 = arith.constant 0 : index
    %c0_16 = arith.constant 0 : index
    %c0_17 = arith.constant 0 : index
    %9 = vector.load %arg4[%c0_15, %c0_16, %c0_17] : memref<9x32x32xbf16, #tpu.memory_space<vmem>>, vector<1x32x32xbf16>
    %10 = vector.shape_cast %9 : vector<1x32x32xbf16> to vector<32x32xbf16>
    %cst_18 = arith.constant dense<0.000000e+00> : vector<128x32xf32>
    %11 = tpu.matmul %8, %10, %cst_18 {dimension_numbers = #tpu.dot_dimension_numbers<[1], [0], [0], [1], [0, 0, 1, 1], [], []>} : vector<128x32xbf16>, vector<32x32xbf16>, vector<128x32xf32> -> vector<128x32xf32>
    %12 = arith.addf %6, %11 : vector<128x32xf32>
    %c0_19 = arith.constant 0 : index
    %c1 = arith.constant 1 : index
    %c0_20 = arith.constant 0 : index
    %13 = vector.load %arg9[%c0_19, %c1, %c0_20] : memref<10x18x32xbf16, #tpu.memory_space<vmem>>, vector<8x16x32xbf16>
    %14 = vector.shape_cast %13 : vector<8x16x32xbf16> to vector<128x32xbf16>
    %c1_21 = arith.constant 1 : index
    %c0_22 = arith.constant 0 : index
    %c0_23 = arith.constant 0 : index
    %15 = vector.load %arg4[%c1_21, %c0_22, %c0_23] : memref<9x32x32xbf16, #tpu.memory_space<vmem>>, vector<1x32x32xbf16>
    %16 = vector.shape_cast %15 : vector<1x32x32xbf16> to vector<32x32xbf16>
    %cst_24 = arith.constant dense<0.000000e+00> : vector<128x32xf32>
    %17 = tpu.matmul %14, %16, %cst_24 {dimension_numbers = #tpu.dot_dimension_numbers<[1], [0], [0], [1], [0, 0, 1, 1], [], []>} : vector<128x32xbf16>, vector<32x32xbf16>, vector<128x32xf32> -> vector<128x32xf32>
    %18 = arith.addf %12, %17 : vector<128x32xf32>
    %c0_25 = arith.constant 0 : index
    %c2 = arith.constant 2 : index
    %c0_26 = arith.constant 0 : index
    %19 = vector.load %arg9[%c0_25, %c2, %c0_26] : memref<10x18x32xbf16, #tpu.memory_space<vmem>>, vector<8x16x32xbf16>
    %20 = vector.shape_cast %19 : vector<8x16x32xbf16> to vector<128x32xbf16>
    %c2_27 = arith.constant 2 : index
    %c0_28 = arith.constant 0 : index
    %c0_29 = arith.constant 0 : index
    %21 = vector.load %arg4[%c2_27, %c0_28, %c0_29] : memref<9x32x32xbf16, #tpu.memory_space<vmem>>, vector<1x32x32xbf16>
    %22 = vector.shape_cast %21 : vector<1x32x32xbf16> to vector<32x32xbf16>
    %cst_30 = arith.constant dense<0.000000e+00> : vector<128x32xf32>
    %23 = tpu.matmul %20, %22, %cst_30 {dimension_numbers = #tpu.dot_dimension_numbers<[1], [0], [0], [1], [0, 0, 1, 1], [], []>} : vector<128x32xbf16>, vector<32x32xbf16>, vector<128x32xf32> -> vector<128x32xf32>
    %24 = arith.addf %18, %23 : vector<128x32xf32>
    %c1_31 = arith.constant 1 : index
    %c0_32 = arith.constant 0 : index
    %c0_33 = arith.constant 0 : index
    %25 = vector.load %arg9[%c1_31, %c0_32, %c0_33] : memref<10x18x32xbf16, #tpu.memory_space<vmem>>, vector<8x16x32xbf16>
    %26 = vector.shape_cast %25 : vector<8x16x32xbf16> to vector<128x32xbf16>
    %c3 = arith.constant 3 : index
    %c0_34 = arith.constant 0 : index
    %c0_35 = arith.constant 0 : index
    %27 = vector.load %arg4[%c3, %c0_34, %c0_35] : memref<9x32x32xbf16, #tpu.memory_space<vmem>>, vector<1x32x32xbf16>
    %28 = vector.shape_cast %27 : vector<1x32x32xbf16> to vector<32x32xbf16>
    %cst_36 = arith.constant dense<0.000000e+00> : vector<128x32xf32>
    %29 = tpu.matmul %26, %28, %cst_36 {dimension_numbers = #tpu.dot_dimension_numbers<[1], [0], [0], [1], [0, 0, 1, 1], [], []>} : vector<128x32xbf16>, vector<32x32xbf16>, vector<128x32xf32> -> vector<128x32xf32>
    %30 = arith.addf %24, %29 : vector<128x32xf32>
    %c1_37 = arith.constant 1 : index
    %c1_38 = arith.constant 1 : index
    %c0_39 = arith.constant 0 : index
    %31 = vector.load %arg9[%c1_37, %c1_38, %c0_39] : memref<10x18x32xbf16, #tpu.memory_space<vmem>>, vector<8x16x32xbf16>
    %32 = vector.shape_cast %31 : vector<8x16x32xbf16> to vector<128x32xbf16>
    %c4 = arith.constant 4 : index
    %c0_40 = arith.constant 0 : index
    %c0_41 = arith.constant 0 : index
    %33 = vector.load %arg4[%c4, %c0_40, %c0_41] : memref<9x32x32xbf16, #tpu.memory_space<vmem>>, vector<1x32x32xbf16>
    %34 = vector.shape_cast %33 : vector<1x32x32xbf16> to vector<32x32xbf16>
    %cst_42 = arith.constant dense<0.000000e+00> : vector<128x32xf32>
    %35 = tpu.matmul %32, %34, %cst_42 {dimension_numbers = #tpu.dot_dimension_numbers<[1], [0], [0], [1], [0, 0, 1, 1], [], []>} : vector<128x32xbf16>, vector<32x32xbf16>, vector<128x32xf32> -> vector<128x32xf32>
    %36 = arith.addf %30, %35 : vector<128x32xf32>
    %c1_43 = arith.constant 1 : index
    %c2_44 = arith.constant 2 : index
    %c0_45 = arith.constant 0 : index
    %37 = vector.load %arg9[%c1_43, %c2_44, %c0_45] : memref<10x18x32xbf16, #tpu.memory_space<vmem>>, vector<8x16x32xbf16>
    %38 = vector.shape_cast %37 : vector<8x16x32xbf16> to vector<128x32xbf16>
    %c5 = arith.constant 5 : index
    %c0_46 = arith.constant 0 : index
    %c0_47 = arith.constant 0 : index
    %39 = vector.load %arg4[%c5, %c0_46, %c0_47] : memref<9x32x32xbf16, #tpu.memory_space<vmem>>, vector<1x32x32xbf16>
    %40 = vector.shape_cast %39 : vector<1x32x32xbf16> to vector<32x32xbf16>
    %cst_48 = arith.constant dense<0.000000e+00> : vector<128x32xf32>
    %41 = tpu.matmul %38, %40, %cst_48 {dimension_numbers = #tpu.dot_dimension_numbers<[1], [0], [0], [1], [0, 0, 1, 1], [], []>} : vector<128x32xbf16>, vector<32x32xbf16>, vector<128x32xf32> -> vector<128x32xf32>
    %42 = arith.addf %36, %41 : vector<128x32xf32>
    %c2_49 = arith.constant 2 : index
    %c0_50 = arith.constant 0 : index
    %c0_51 = arith.constant 0 : index
    %43 = vector.load %arg9[%c2_49, %c0_50, %c0_51] : memref<10x18x32xbf16, #tpu.memory_space<vmem>>, vector<8x16x32xbf16>
    %44 = vector.shape_cast %43 : vector<8x16x32xbf16> to vector<128x32xbf16>
    %c6 = arith.constant 6 : index
    %c0_52 = arith.constant 0 : index
    %c0_53 = arith.constant 0 : index
    %45 = vector.load %arg4[%c6, %c0_52, %c0_53] : memref<9x32x32xbf16, #tpu.memory_space<vmem>>, vector<1x32x32xbf16>
    %46 = vector.shape_cast %45 : vector<1x32x32xbf16> to vector<32x32xbf16>
    %cst_54 = arith.constant dense<0.000000e+00> : vector<128x32xf32>
    %47 = tpu.matmul %44, %46, %cst_54 {dimension_numbers = #tpu.dot_dimension_numbers<[1], [0], [0], [1], [0, 0, 1, 1], [], []>} : vector<128x32xbf16>, vector<32x32xbf16>, vector<128x32xf32> -> vector<128x32xf32>
    %48 = arith.addf %42, %47 : vector<128x32xf32>
    %c2_55 = arith.constant 2 : index
    %c1_56 = arith.constant 1 : index
    %c0_57 = arith.constant 0 : index
    %49 = vector.load %arg9[%c2_55, %c1_56, %c0_57] : memref<10x18x32xbf16, #tpu.memory_space<vmem>>, vector<8x16x32xbf16>
    %50 = vector.shape_cast %49 : vector<8x16x32xbf16> to vector<128x32xbf16>
    %c7 = arith.constant 7 : index
    %c0_58 = arith.constant 0 : index
    %c0_59 = arith.constant 0 : index
    %51 = vector.load %arg4[%c7, %c0_58, %c0_59] : memref<9x32x32xbf16, #tpu.memory_space<vmem>>, vector<1x32x32xbf16>
    %52 = vector.shape_cast %51 : vector<1x32x32xbf16> to vector<32x32xbf16>
    %cst_60 = arith.constant dense<0.000000e+00> : vector<128x32xf32>
    %53 = tpu.matmul %50, %52, %cst_60 {dimension_numbers = #tpu.dot_dimension_numbers<[1], [0], [0], [1], [0, 0, 1, 1], [], []>} : vector<128x32xbf16>, vector<32x32xbf16>, vector<128x32xf32> -> vector<128x32xf32>
    %54 = arith.addf %48, %53 : vector<128x32xf32>
    %c2_61 = arith.constant 2 : index
    %c2_62 = arith.constant 2 : index
    %c0_63 = arith.constant 0 : index
    %55 = vector.load %arg9[%c2_61, %c2_62, %c0_63] : memref<10x18x32xbf16, #tpu.memory_space<vmem>>, vector<8x16x32xbf16>
    %56 = vector.shape_cast %55 : vector<8x16x32xbf16> to vector<128x32xbf16>
    %c8_64 = arith.constant 8 : index
    %c0_65 = arith.constant 0 : index
    %c0_66 = arith.constant 0 : index
    %57 = vector.load %arg4[%c8_64, %c0_65, %c0_66] : memref<9x32x32xbf16, #tpu.memory_space<vmem>>, vector<1x32x32xbf16>
    %58 = vector.shape_cast %57 : vector<1x32x32xbf16> to vector<32x32xbf16>
    %cst_67 = arith.constant dense<0.000000e+00> : vector<128x32xf32>
    %59 = tpu.matmul %56, %58, %cst_67 {dimension_numbers = #tpu.dot_dimension_numbers<[1], [0], [0], [1], [0, 0, 1, 1], [], []>} : vector<128x32xbf16>, vector<32x32xbf16>, vector<128x32xf32> -> vector<128x32xf32>
    %60 = arith.addf %54, %59 : vector<128x32xf32>
    %c0_68 = arith.constant 0 : index
    %c0_69 = arith.constant 0 : index
    %61 = vector.load %arg5[%c0_68, %c0_69] : memref<1x32xf32, #tpu.memory_space<vmem>>, vector<1x32xf32>
    %62 = vector.broadcast %61 : vector<1x32xf32> to vector<128x32xf32>
    %63 = arith.mulf %60, %62 : vector<128x32xf32>
    %c0_70 = arith.constant 0 : index
    %c0_71 = arith.constant 0 : index
    %64 = vector.load %arg6[%c0_70, %c0_71] : memref<1x32xf32, #tpu.memory_space<vmem>>, vector<1x32xf32>
    %65 = vector.broadcast %64 : vector<1x32xf32> to vector<128x32xf32>
    %66 = arith.addf %63, %65 : vector<128x32xf32>
    %c0_72 = arith.constant 0 : index
    %c0_73 = arith.constant 0 : index
    %c0_74 = arith.constant 0 : index
    %c0_75 = arith.constant 0 : index
    %67 = vector.load %arg7[%c0_72, %c0_73, %c0_74, %c0_75] : memref<1x8x16x32xf32, #tpu.memory_space<vmem>>, vector<1x8x16x32xf32>
    %68 = vector.shape_cast %67 : vector<1x8x16x32xf32> to vector<8x16x32xf32>
    %69 = vector.shape_cast %68 : vector<8x16x32xf32> to vector<128x32xf32>
    %70 = arith.addf %66, %69 : vector<128x32xf32>
    %cst_76 = arith.constant 0.000000e+00 : f32
    %71 = vector.broadcast %cst_76 : f32 to vector<128x32xf32>
    %72 = arith.maximumf %70, %71 : vector<128x32xf32>
    %73 = vector.shape_cast %72 : vector<128x32xf32> to vector<8x16x32xf32>
    %c0_77 = arith.constant 0 : index
    %c0_78 = arith.constant 0 : index
    %c0_79 = arith.constant 0 : index
    %c0_80 = arith.constant 0 : index
    %74 = vector.load %arg8[%c0_77, %c0_78, %c0_79, %c0_80] : memref<1x8x16x32xf32, #tpu.memory_space<vmem>>, vector<1x8x16x32xf32>
    %75 = vector.shape_cast %74 : vector<1x8x16x32xf32> to vector<8x16x32xf32>
    %76 = vector.shape_cast %73 : vector<8x16x32xf32> to vector<1x8x16x32xf32>
    tpu.vector_store %arg8[%c0_77, %c0_78, %c0_79, %c0_80], %76 {strides = array<i32>} : memref<1x8x16x32xf32, #tpu.memory_space<vmem>>, vector<1x8x16x32xf32>,
    return
  }
  func.func @transform_0(%arg0: i32, %arg1: i32) -> (i32, i32, i32, i32) {
    %c0_i32 = arith.constant 0 : i32
    %c0_i32_0 = arith.constant 0 : i32
    %c0_i32_1 = arith.constant 0 : i32
    return %arg0, %arg1, %c0_i32, %c0_i32_0 : i32, i32, i32, i32
  }
  func.func @transform_1(%arg0: i32, %arg1: i32) -> (i32, i32, i32, i32) {
    %c1_i32 = arith.constant 1 : i32
    %0 = arith.addi %arg1, %c1_i32 : i32
    %c0_i32 = arith.constant 0 : i32
    %c0_i32_0 = arith.constant 0 : i32
    %c0_i32_1 = arith.constant 0 : i32
    return %arg0, %0, %c0_i32, %c0_i32_0 : i32, i32, i32, i32
  }
  func.func @transform_2(%arg0: i32, %arg1: i32) -> (i32, i32, i32) {
    %c0_i32 = arith.constant 0 : i32
    %c0_i32_0 = arith.constant 0 : i32
    %c0_i32_1 = arith.constant 0 : i32
    %c0_i32_2 = arith.constant 0 : i32
    return %c0_i32, %c0_i32_0, %c0_i32_1 : i32, i32, i32
  }
  func.func @transform_3(%arg0: i32, %arg1: i32) -> (i32, i32) {
    %c0_i32 = arith.constant 0 : i32
    %c0_i32_0 = arith.constant 0 : i32
    %c0_i32_1 = arith.constant 0 : i32
    return %c0_i32, %c0_i32_0 : i32, i32
  }
  func.func @transform_4(%arg0: i32, %arg1: i32) -> (i32, i32) {
    %c0_i32 = arith.constant 0 : i32
    %c0_i32_0 = arith.constant 0 : i32
    %c0_i32_1 = arith.constant 0 : i32
    return %c0_i32, %c0_i32_0 : i32, i32
  }
  func.func @transform_5(%arg0: i32, %arg1: i32) -> (i32, i32, i32, i32) {
    %c0_i32 = arith.constant 0 : i32
    %c0_i32_0 = arith.constant 0 : i32
    %c0_i32_1 = arith.constant 0 : i32
    return %arg0, %arg1, %c0_i32, %c0_i32_0 : i32, i32, i32, i32
  }
  func.func @transform_6(%arg0: i32, %arg1: i32) -> (i32, i32, i32, i32) {
    %c0_i32 = arith.constant 0 : i32
    %c0_i32_0 = arith.constant 0 : i32
    %c0_i32_1 = arith.constant 0 : i32
    return %arg0, %arg1, %c0_i32, %c0_i32_0 : i32, i32, i32, i32
  }
}

</mosaic_0001>

<bundles_post_ra>
// kernel: bottleneck_forward_pallas.3
= control target key start
LH: loop header
LB: loop body
LE: loop exit
PB: predicated region body
PF: predicated region fallthrough
CT: control target
= control target key end

     0   :  { %s1612_s24 = smov 0   ;;  %s1884_s0 = inlined_call_operand.vmem [shape: bf16[512,32], index: 0, kind: input, shape index: {}]   ;;  %s1885_s1 = inlined_call_operand.vmem [shape: bf16[32,32], index: 1, kind: input, shape index: {}]   ;;  %s1886_s2 = inlined_call_operand.vmem [shape: f32[1,32], index: 2, kind: input, shape index: {}]   ;;  %s1887_s3 = inlined_call_operand.vmem [shape: f32[1,32], index: 3, kind: input, shape index: {}]   ;;  %s1888_s4 = inlined_call_operand.vmem [shape: bf16[32,128], index: 4, kind: input, shape index: {}]   ;;  %s1889_s5 = inlined_call_operand.vmem [shape: bf16[32,256], index: 5, kind: input, shape index: {}]   ;;  %s1890_s6 = inlined_call_operand.vmem [shape: bf16[512,128], index: 6, kind: output, shape index: {0}]   ;;  %s1891_s7 = inlined_call_operand.vmem [shape: bf16[512,256], index: 7, kind: output, shape index: {1}]  }
   0x1 LB: > { %s1260_s25 = sadd.s32 4294967295, %s1570_s24   ;;  %p1264_p0 = scmp.ge.s32.totalorder %s1570_s24, 1  ;;  %s1570_s24 = sphi %s1612_s24, %s18_s24  }
   0x2   : > { %p241_p1 = scmp.lt.s32.totalorder %s1570_s24, 3 }
   0x4   : > { %p242_p2 = pnand %p1264_p0, %p241_p1 }
   0x5   : > { %s1265_s28 = sshll.u32 (!%p242_p2), %s1260_s25, 5 }
   0x6   : > { %245 = sbr.rel (%p242_p2) target bundleno = 545 (0x221), region = 44  ;;  %p280_p3 = scmp.lt.s32.totalorder (!%p242_p2), %s1265_s28, 63 }
   0xb   : > { %v1452_v0 = vld [vmem:[%s1885_s1 + $0x8] sm:$0xff]  ;;  %v1451_v1 = vld [vmem:[%s1885_s1] sm:$0xff]  ;;  %s1893_s28 = smov (!%p280_p3, %s1265_s28), 63  ;;  %vm427_vm0 = vcmask 261120   ;;  %v1394_v9 = vld [vmem:[%s1889_s5 + $0x10] sm:$0xf] }
   0xc   : > { %482 = vmatpush.bf16.msra.mxu0 %v1452_v0  ;;  %s1266_s8 = sshll.u32 %s1893_s28, 2  ;;  %v1458_v10 = vld [vmem:[%s1889_s5 + $0x14] sm:$0xf0]  ;;  %v1457_v11 = vld [vmem:[%s1889_s5 + $0x14] sm:$0xf]  ;;  %v1454_v12 = vld [vmem:[%s1888_s4 + $0x8] sm:$0xff] }
   0xd   : > { %s1634_s11 = scalar_lea.vmem %s1884_s0, %s1266_s8  ;;  %v1395_v13 = vor.u32 %v1458_v10, %v1394_v9  ;;  %v1396_v14 = vld [vmem:[%s1889_s5 + $0x18] sm:$0xf0]  ;;  %755 = vmatpush.bf16.msra.mxu1 %v1454_v12  ;;  %v1386_v16 = vld [vmem:[%s1889_s5] sm:$0xf]  ;;  %v1456_v17 = vld [vmem:[%s1889_s5 + $0x4] sm:$0xf0]  ;;  %s1783_s22 = scalar_lea.vmem %s1890_s6, %s1266_s8 }
   0xe   : > { %v1435_v2 = vld [vmem:[%s1634_s11] sm:$0xff]  ;;  %v1436_v3 = vld [vmem:[%s1634_s11 + $0x8] sm:$0xff]  ;;  %v1437_v4 = vld [vmem:[%s1634_s11 + $0x10] sm:$0xff]  ;;  %v1399_v15 = vor.u32 %v1457_v11, %v1396_v14  ;;  %v1387_v20 = vor.u32 %v1456_v17, %v1386_v16 }
   0xf   : > { %v1438_v5 = vld [vmem:[%s1634_s11 + $0x18] sm:$0xff]  ;;  %v1439_v6 = vld [vmem:[%s1634_s11 + $0x20] sm:$0xff]  ;;  %v1440_v7 = vld [vmem:[%s1634_s11 + $0x28] sm:$0xff]  ;;  %932 = vmatpush.bf16.msra.mxu2 %v1395_v13 }
  0x10   : > { %483 = vmatpush.bf16.msra.mxu0 %v1451_v1  ;;  %v1441_v8 = vld [vmem:[%s1634_s11 + $0x30] sm:$0xff]  ;;  %1021 = vmatpush.bf16.msra.mxu3 %v1399_v15  ;;  %v1455_v18 = vld [vmem:[%s1889_s5 + $0x4] sm:$0xf]  ;;  %v1388_v21 = vld [vmem:[%s1889_s5 + $0x8] sm:$0xf0] }
  0x11   : > { %v1453_v19 = vld [vmem:[%s1888_s4] sm:$0xff]  ;;  %v1391_v22 = vor.u32 %v1455_v18, %v1388_v21  ;;  %v1442_v23 = vld [vmem:[%s1634_s11 + $0x38] sm:$0xff]  ;;  %v1444_v36 = vld [vmem:[%s1634_s11 + $0x48] sm:$0xff] }
  0x12   : > { %756 = vmatpush.bf16.msra.mxu1 %v1453_v19  ;;  %v1443_v24 = vld [vmem:[%s1634_s11 + $0x40] sm:$0xff]  ;;  %v1445_v46 = vld [vmem:[%s1634_s11 + $0x50] sm:$0xff]  ;;  %v1446_v56 = vld [vmem:[%s1634_s11 + $0x58] sm:$0xff] }
  0x13   : > { %1344 = vmatmul.msk.bf16.vlgmr.msra.gmra.mxu0 %vm427_vm0, %v1435_v2  ;;  %933 = vmatpush.bf16.msra.mxu2 %v1387_v20  ;;  %v1686_v26 = vld [vmem:[%s1886_s2] ss:$0 sm:$0xff]  ;;  %v1448_v12 = vld [vmem:[%s1634_s11 + $0x68] sm:$0xff] }
  0x14   : > { %1022 = vmatpush.bf16.msra.mxu3 %v1391_v22  ;;  %v1693_v28 = vld [vmem:[%s1887_s3] ss:$0 sm:$0xff]  ;;  %v1449_v22 = vld [vmem:[%s1634_s11 + $0x70] sm:$0xff] }
  0x15   : > { %v1447_v2 = vld [vmem:[%s1634_s11 + $0x60] sm:$0xff] }
  0x23   : > { %1345 = vmatmul.msk.bf16.gmra.mxu0 %vm427_vm0, %v1436_v3 }
  0x33   : > { %1346 = vmatmul.msk.bf16.gmra.mxu0 %vm427_vm0, %v1437_v4 }
  0x43   : > { %1347 = vmatmul.msk.bf16.gmra.mxu0 %vm427_vm0, %v1438_v5 }
  0x53   : > { %1348 = vmatmul.msk.bf16.gmra.mxu0 %vm427_vm0, %v1439_v6 }
  0x63   : > { %1349 = vmatmul.msk.bf16.gmra.mxu0 %vm427_vm0, %v1440_v7 }
  0x73   : > { %1350 = vmatmul.msk.bf16.gmra.mxu0 %vm427_vm0, %v1441_v8 }
  0x83   : > { %1351 = vmatmul.msk.bf16.gmra.mxu0 %vm427_vm0, %v1442_v23 }
  0x90   : > { %v485_v25 = vpop.f32.mrf.mxu0 }
  0x91   : > { %v569_v27 = vmul.f32 %v1686_v26, %v485_v25 }
  0x93   : > { %1352 = vmatmul.msk.bf16.gmra.mxu0 %vm427_vm0, %v1443_v24  ;;  %v605_v30 = vadd.f32 %v1693_v28, %v569_v27 }
  0x95   : > { %v637_v33 = vmax.f32 %v605_v30, 0.0 }
  0x98   : > { %v487_v29 = vpop.f32.mrf.mxu0 }
  0x99   : > { %v570_v31 = vmul.f32 %v1686_v26, %v487_v29 }
  0x9b   : > { %v606_v32 = vadd.f32 %v1693_v28, %v570_v31 }
  0x9d   : > { %v638_v34 = vmax.f32 %v606_v32, 0.0 }
  0x9f   : > { %v669_v35 = vpack.c.bf16 %v638_v34, %v637_v33  ;;  %v1450_v34 = vld [vmem:[%s1634_s11 + $0x78] sm:$0xff]  ;;  %s1434_s11 = sshll.u32 %s1893_s28, 3 }
  0xa0   : > { %v490_v37 = vpop.f32.mrf.mxu0  ;;  %s1776_s19 = scalar_lea.vmem %s1891_s7, %s1434_s11 }
  0xa1   : > { %1368 = vmatmul.msk.bf16.vlgmr.msra.gmra.mxu1 %vm427_vm0, %v669_v35  ;;  %1400 = vmatmul.msk.bf16.vlgmr.msra.gmra.mxu2 %vm427_vm0, %v669_v35  ;;  %v571_v38 = vmul.f32 %v1686_v26, %v490_v37 }
  0xa2   : > { %1416 = vmatmul.msk.bf16.vlgmr.msra.gmra.mxu3 %vm427_vm0, %v669_v35 }
  0xa3   : > { %1353 = vmatmul.msk.bf16.gmra.mxu0 %vm427_vm0, %v1444_v36  ;;  %v607_v40 = vadd.f32 %v1693_v28, %v571_v38 }
  0xa5   : > { %v639_v43 = vmax.f32 %v607_v40, 0.0 }
  0xa8   : > { %v492_v39 = vpop.f32.mrf.mxu0 }
  0xa9   : > { %v572_v41 = vmul.f32 %v1686_v26, %v492_v39 }
  0xab   : > { %v608_v42 = vadd.f32 %v1693_v28, %v572_v41 }
  0xad   : > { %v640_v44 = vmax.f32 %v608_v42, 0.0 }
  0xaf   : > { %v670_v45 = vpack.c.bf16 %v640_v44, %v639_v43 }
  0xb0   : > { %v495_v47 = vpop.f32.mrf.mxu0 }
  0xb1   : > { %1369 = vmatmul.msk.bf16.gmra.mxu1 %vm427_vm0, %v670_v45  ;;  %1401 = vmatmul.msk.bf16.gmra.mxu2 %vm427_vm0, %v670_v45  ;;  %v573_v48 = vmul.f32 %v1686_v26, %v495_v47 }
  0xb2   : > { %1417 = vmatmul.msk.bf16.gmra.mxu3 %vm427_vm0, %v670_v45 }
  0xb3   : > { %1354 = vmatmul.msk.bf16.gmra.mxu0 %vm427_vm0, %v1445_v46  ;;  %v609_v50 = vadd.f32 %v1693_v28, %v573_v48 }
  0xb5   : > { %v641_v53 = vmax.f32 %v609_v50, 0.0 }
  0xb8   : > { %v497_v49 = vpop.f32.mrf.mxu0 }
  0xb9   : > { %v574_v51 = vmul.f32 %v1686_v26, %v497_v49 }
  0xbb   : > { %v610_v52 = vadd.f32 %v1693_v28, %v574_v51 }
  0xbd   : > { %v642_v54 = vmax.f32 %v610_v52, 0.0 }
  0xbf   : > { %v671_v55 = vpack.c.bf16 %v642_v54, %v641_v53 }
  0xc0   : > { %v500_v57 = vpop.f32.mrf.mxu0 }
  0xc1   : > { %1370 = vmatmul.msk.bf16.gmra.mxu1 %vm427_vm0, %v671_v55  ;;  %1402 = vmatmul.msk.bf16.gmra.mxu2 %vm427_vm0, %v671_v55  ;;  %v575_v58 = vmul.f32 %v1686_v26, %v500_v57 }
  0xc2   : > { %1418 = vmatmul.msk.bf16.gmra.mxu3 %vm427_vm0, %v671_v55 }
  0xc3   : > { %1355 = vmatmul.msk.bf16.gmra.mxu0 %vm427_vm0, %v1446_v56  ;;  %v611_v60 = vadd.f32 %v1693_v28, %v575_v58 }
  0xc5   : > { %v643_v63 = vmax.f32 %v611_v60, 0.0 }
  0xc8   : > { %v502_v59 = vpop.f32.mrf.mxu0 }
  0xc9   : > { %v576_v61 = vmul.f32 %v1686_v26, %v502_v59 }
  0xcb   : > { %v612_v62 = vadd.f32 %v1693_v28, %v576_v61 }
  0xcd   : > { %v644_v0 = vmax.f32 %v612_v62, 0.0 }
  0xcf   : > { %v672_v1 = vpack.c.bf16 %v644_v0, %v643_v63 }
  0xd0   : > { %v505_v3 = vpop.f32.mrf.mxu0 }
  0xd1   : > { %1371 = vmatmul.msk.bf16.gmra.mxu1 %vm427_vm0, %v672_v1  ;;  %1403 = vmatmul.msk.bf16.gmra.mxu2 %vm427_vm0, %v672_v1  ;;  %v577_v4 = vmul.f32 %v1686_v26, %v505_v3 }
  0xd2   : > { %1419 = vmatmul.msk.bf16.gmra.mxu3 %vm427_vm0, %v672_v1 }
  0xd3   : > { %1356 = vmatmul.msk.bf16.gmra.mxu0 %vm427_vm0, %v1447_v2  ;;  %v613_v6 = vadd.f32 %v1693_v28, %v577_v4 }
  0xd5   : > { %v645_v9 = vmax.f32 %v613_v6, 0.0 }
  0xd8   : > { %v507_v5 = vpop.f32.mrf.mxu0 }
  0xd9   : > { %v578_v7 = vmul.f32 %v1686_v26, %v507_v5 }
  0xdb   : > { %v614_v8 = vadd.f32 %v1693_v28, %v578_v7 }
  0xdd   : > { %v646_v10 = vmax.f32 %v614_v8, 0.0 }
  0xdf   : > { %v673_v11 = vpack.c.bf16 %v646_v10, %v645_v9 }
  0xe0   : > { %v510_v13 = vpop.f32.mrf.mxu0 }
  0xe1   : > { %1372 = vmatmul.msk.bf16.gmra.mxu1 %vm427_vm0, %v673_v11  ;;  %1404 = vmatmul.msk.bf16.gmra.mxu2 %vm427_vm0, %v673_v11  ;;  %v579_v14 = vmul.f32 %v1686_v26, %v510_v13 }
  0xe2   : > { %1420 = vmatmul.msk.bf16.gmra.mxu3 %vm427_vm0, %v673_v11 }
  0xe3   : > { %1357 = vmatmul.msk.bf16.gmra.mxu0 %vm427_vm0, %v1448_v12  ;;  %v615_v16 = vadd.f32 %v1693_v28, %v579_v14 }
  0xe5   : > { %v647_v19 = vmax.f32 %v615_v16, 0.0 }
  0xe8   : > { %v512_v15 = vpop.f32.mrf.mxu0 }
  0xe9   : > { %v580_v17 = vmul.f32 %v1686_v26, %v512_v15 }
  0xeb   : > { %v616_v18 = vadd.f32 %v1693_v28, %v580_v17 }
  0xed   : > { %v648_v20 = vmax.f32 %v616_v18, 0.0 }
  0xef   : > { %v674_v21 = vpack.c.bf16 %v648_v20, %v647_v19 }
  0xf0   : > { %v515_v23 = vpop.f32.mrf.mxu0 }
  0xf1   : > { %1373 = vmatmul.msk.bf16.gmra.mxu1 %vm427_vm0, %v674_v21  ;;  %1405 = vmatmul.msk.bf16.gmra.mxu2 %vm427_vm0, %v674_v21  ;;  %v581_v24 = vmul.f32 %v1686_v26, %v515_v23 }
  0xf2   : > { %1421 = vmatmul.msk.bf16.gmra.mxu3 %vm427_vm0, %v674_v21 }
  0xf3   : > { %1358 = vmatmul.msk.bf16.gmra.mxu0 %vm427_vm0, %v1449_v22  ;;  %v617_v27 = vadd.f32 %v1693_v28, %v581_v24 }
  0xf5   : > { %v649_v31 = vmax.f32 %v617_v27, 0.0 }
  0xf8   : > { %v517_v25 = vpop.f32.mrf.mxu0 }
  0xf9   : > { %v582_v29 = vmul.f32 %v1686_v26, %v517_v25 }
  0xfb   : > { %v618_v30 = vadd.f32 %v1693_v28, %v582_v29 }
  0xfd   : > { %v650_v32 = vmax.f32 %v618_v30, 0.0 }
  0xff   : > { %v675_v33 = vpack.c.bf16 %v650_v32, %v649_v31 }
 0x100   : > { %v520_v35 = vpop.f32.mrf.mxu0 }
 0x101   : > { %1374 = vmatmul.msk.bf16.gmra.mxu1 %vm427_vm0, %v675_v33  ;;  %1406 = vmatmul.msk.bf16.gmra.mxu2 %vm427_vm0, %v675_v33  ;;  %v583_v36 = vmul.f32 %v1686_v26, %v520_v35 }
 0x102   : > { %1422 = vmatmul.msk.bf16.gmra.mxu3 %vm427_vm0, %v675_v33 }
 0x103   : > { %1359 = vmatmul.msk.bf16.gmra.mxu0 %vm427_vm0, %v1450_v34  ;;  %v619_v38 = vadd.f32 %v1693_v28, %v583_v36 }
 0x105   : > { %v651_v41 = vmax.f32 %v619_v38, 0.0 }
 0x108   : > { %v522_v37 = vpop.f32.mrf.mxu0 }
 0x109   : > { %v584_v39 = vmul.f32 %v1686_v26, %v522_v37 }
 0x10b   : > { %v620_v40 = vadd.f32 %v1693_v28, %v584_v39 }
 0x10d   : > { %v652_v42 = vmax.f32 %v620_v40, 0.0 }
 0x10f   : > { %v676_v43 = vpack.c.bf16 %v652_v42, %v651_v41 }
 0x110   : > { %v525_v44 = vpop.f32.mrf.mxu0 }
 0x111   : > { %1375 = vmatmul.msk.bf16.gmra.mxu1 %vm427_vm0, %v676_v43  ;;  %1407 = vmatmul.msk.bf16.gmra.mxu2 %vm427_vm0, %v676_v43  ;;  %v585_v45 = vmul.f32 %v1686_v26, %v525_v44 }
 0x112   : > { %1423 = vmatmul.msk.bf16.gmra.mxu3 %vm427_vm0, %v676_v43 }
 0x113   : > { %v621_v47 = vadd.f32 %v1693_v28, %v585_v45 }
 0x115   : > { %v653_v50 = vmax.f32 %v621_v47, 0.0 }
 0x118   : > { %v527_v46 = vpop.f32.mrf.mxu0 }
 0x119   : > { %v586_v48 = vmul.f32 %v1686_v26, %v527_v46 }
 0x11b   : > { %v622_v49 = vadd.f32 %v1693_v28, %v586_v48 }
 0x11d   : > { %v654_v51 = vmax.f32 %v622_v49, 0.0 }
 0x11e   : > { %v758_v52 = vpop.f32.mrf.mxu1 }
 0x11f   : > { %v677_v53 = vpack.c.bf16 %v654_v51, %v653_v50 }
 0x120   : > { %v530_v54 = vpop.f32.mrf.mxu0 }
 0x121   : > { %1376 = vmatmul.msk.bf16.gmra.mxu1 %vm427_vm0, %v677_v53  ;;  %1408 = vmatmul.msk.bf16.gmra.mxu2 %vm427_vm0, %v677_v53  ;;  %v587_v56 = vmul.f32 %v1686_v26, %v530_v54 }
 0x122   : > { %1424 = vmatmul.msk.bf16.gmra.mxu3 %vm427_vm0, %v677_v53 }
 0x123   : > { %v623_v62 = vadd.f32 %v1693_v28, %v587_v56 }
 0x124   : > { %v935_v55 = vpop.f32.mrf.mxu2 }
 0x125   : > { %v1024_v57 = vpop.f32.mrf.mxu3  ;;  %v655_v2 = vmax.f32 %v623_v62, 0.0 }
 0x126   : > { %v1104_v58 = vpack.c.bf16 %v1024_v57, %v935_v55  ;;  %v760_v59 = vpop.f32.mrf.mxu1 }
 0x127   : > { %v1462_v60 = vpack.c.bf16 %v760_v59, %v758_v52 }
 0x128   : > { %1136 = vst [vmem:[%s1776_s19] sm:$0xff] %v1104_v58  ;;  %v532_v61 = vpop.f32.mrf.mxu0 }
 0x129   : > { %1463 = vst [vmem:[%s1783_s22] sm:$0xff] %v1462_v60   ;;  %v588_v63 = vmul.f32 %v1686_v26, %v532_v61 }
 0x12b   : > { %v624_v0 = vadd.f32 %v1693_v28, %v588_v63 }
 0x12c   : > { %v937_v1 = vpop.f32.mrf.mxu2 }
 0x12d   : > { %v656_v3 = vmax.f32 %v624_v0, 0.0  ;;  %v1026_v4 = vpop.f32.mrf.mxu3 }
 0x12e   : > { %v1105_v5 = vpack.c.bf16 %v1026_v4, %v937_v1  ;;  %v763_v6 = vpop.f32.mrf.mxu1 }
 0x12f   : > { %v678_v7 = vpack.c.bf16 %v656_v3, %v655_v2 }
 0x130   : > { %1137 = vst [vmem:[%s1776_s19 + $0x8] sm:$0xff] %v1105_v5  ;;  %v535_v8 = vpop.f32.mrf.mxu0 }
 0x131   : > { %1377 = vmatmul.msk.bf16.gmra.mxu1 %vm427_vm0, %v678_v7  ;;  %1409 = vmatmul.msk.bf16.gmra.mxu2 %vm427_vm0, %v678_v7  ;;  %v589_v10 = vmul.f32 %v1686_v26, %v535_v8 }
 0x132   : > { %1425 = vmatmul.msk.bf16.gmra.mxu3 %vm427_vm0, %v678_v7 }
 0x133   : > { %v625_v16 = vadd.f32 %v1693_v28, %v589_v10 }
 0x134   : > { %v940_v9 = vpop.f32.mrf.mxu2 }
 0x135   : > { %v1029_v11 = vpop.f32.mrf.mxu3  ;;  %v657_v20 = vmax.f32 %v625_v16, 0.0 }
 0x136   : > { %v1106_v12 = vpack.c.bf16 %v1029_v11, %v940_v9  ;;  %v765_v13 = vpop.f32.mrf.mxu1 }
 0x137   : > { %v1467_v14 = vpack.c.bf16 %v765_v13, %v763_v6 }
 0x138   : > { %1138 = vst [vmem:[%s1776_s19 + $0x10] sm:$0xff] %v1106_v12  ;;  %v537_v15 = vpop.f32.mrf.mxu0 }
 0x139   : > { %1539 = vst [vmem:[%s1783_s22 + $0x8] sm:$0xff] %v1467_v14   ;;  %v590_v17 = vmul.f32 %v1686_v26, %v537_v15 }
 0x13b   : > { %v626_v18 = vadd.f32 %v1693_v28, %v590_v17 }
 0x13c   : > { %v942_v19 = vpop.f32.mrf.mxu2 }
 0x13d   : > { %v658_v21 = vmax.f32 %v626_v18, 0.0  ;;  %v1031_v22 = vpop.f32.mrf.mxu3 }
 0x13e   : > { %v1107_v23 = vpack.c.bf16 %v1031_v22, %v942_v19  ;;  %v768_v24 = vpop.f32.mrf.mxu1 }
 0x13f   : > { %v679_v25 = vpack.c.bf16 %v658_v21, %v657_v20 }
 0x140   : > { %1139 = vst [vmem:[%s1776_s19 + $0x18] sm:$0xff] %v1107_v23  ;;  %v540_v27 = vpop.f32.mrf.mxu0 }
 0x141   : > { %1378 = vmatmul.msk.bf16.gmra.mxu1 %vm427_vm0, %v679_v25  ;;  %1410 = vmatmul.msk.bf16.gmra.mxu2 %vm427_vm0, %v679_v25  ;;  %v591_v30 = vmul.f32 %v1686_v26, %v540_v27 }
 0x142   : > { %1426 = vmatmul.msk.bf16.gmra.mxu3 %vm427_vm0, %v679_v25 }
 0x143   : > { %v627_v36 = vadd.f32 %v1693_v28, %v591_v30 }
 0x144   : > { %v945_v29 = vpop.f32.mrf.mxu2 }
 0x145   : > { %v1034_v31 = vpop.f32.mrf.mxu3  ;;  %v659_v40 = vmax.f32 %v627_v36, 0.0 }
 0x146   : > { %v1108_v32 = vpack.c.bf16 %v1034_v31, %v945_v29  ;;  %v770_v33 = vpop.f32.mrf.mxu1 }
 0x147   : > { %v1472_v34 = vpack.c.bf16 %v770_v33, %v768_v24 }
 0x148   : > { %1140 = vst [vmem:[%s1776_s19 + $0x20] sm:$0xff] %v1108_v32  ;;  %v542_v35 = vpop.f32.mrf.mxu0 }
 0x149   : > { %1540 = vst [vmem:[%s1783_s22 + $0x10] sm:$0xff] %v1472_v34   ;;  %v592_v37 = vmul.f32 %v1686_v26, %v542_v35 }
 0x14b   : > { %v628_v38 = vadd.f32 %v1693_v28, %v592_v37 }
 0x14c   : > { %v947_v39 = vpop.f32.mrf.mxu2 }
 0x14d   : > { %v660_v41 = vmax.f32 %v628_v38, 0.0  ;;  %v1036_v42 = vpop.f32.mrf.mxu3 }
 0x14e   : > { %v1109_v43 = vpack.c.bf16 %v1036_v42, %v947_v39  ;;  %v773_v44 = vpop.f32.mrf.mxu1 }
 0x14f   : > { %v680_v45 = vpack.c.bf16 %v660_v41, %v659_v40 }
 0x150   : > { %1141 = vst [vmem:[%s1776_s19 + $0x28] sm:$0xff] %v1109_v43  ;;  %v545_v46 = vpop.f32.mrf.mxu0 }
 0x151   : > { %1379 = vmatmul.msk.bf16.gmra.mxu1 %vm427_vm0, %v680_v45  ;;  %1411 = vmatmul.msk.bf16.gmra.mxu2 %vm427_vm0, %v680_v45  ;;  %v593_v48 = vmul.f32 %v1686_v26, %v545_v46 }
 0x152   : > { %1427 = vmatmul.msk.bf16.gmra.mxu3 %vm427_vm0, %v680_v45 }
 0x153   : > { %v629_v54 = vadd.f32 %v1693_v28, %v593_v48 }
 0x154   : > { %v950_v47 = vpop.f32.mrf.mxu2 }
 0x155   : > { %v1039_v49 = vpop.f32.mrf.mxu3  ;;  %v661_v58 = vmax.f32 %v629_v54, 0.0 }
 0x156   : > { %v1110_v50 = vpack.c.bf16 %v1039_v49, %v950_v47  ;;  %v775_v51 = vpop.f32.mrf.mxu1 }
 0x157   : > { %v1477_v52 = vpack.c.bf16 %v775_v51, %v773_v44 }
 0x158   : > { %1142 = vst [vmem:[%s1776_s19 + $0x30] sm:$0xff] %v1110_v50  ;;  %v547_v53 = vpop.f32.mrf.mxu0 }
 0x159   : > { %1541 = vst [vmem:[%s1783_s22 + $0x18] sm:$0xff] %v1477_v52   ;;  %v594_v55 = vmul.f32 %v1686_v26, %v547_v53 }
 0x15b   : > { %v630_v56 = vadd.f32 %v1693_v28, %v594_v55 }
 0x15c   : > { %v952_v57 = vpop.f32.mrf.mxu2 }
 0x15d   : > { %v662_v59 = vmax.f32 %v630_v56, 0.0  ;;  %v1041_v60 = vpop.f32.mrf.mxu3 }
 0x15e   : > { %v1111_v61 = vpack.c.bf16 %v1041_v60, %v952_v57  ;;  %v778_v62 = vpop.f32.mrf.mxu1 }
 0x15f   : > { %v681_v63 = vpack.c.bf16 %v662_v59, %v661_v58 }
 0x160   : > { %1143 = vst [vmem:[%s1776_s19 + $0x38] sm:$0xff] %v1111_v61  ;;  %v550_v0 = vpop.f32.mrf.mxu0 }
 0x161   : > { %1380 = vmatmul.msk.bf16.gmra.mxu1 %vm427_vm0, %v681_v63  ;;  %1412 = vmatmul.msk.bf16.gmra.mxu2 %vm427_vm0, %v681_v63  ;;  %v595_v2 = vmul.f32 %v1686_v26, %v550_v0 }
 0x162   : > { %1428 = vmatmul.msk.bf16.gmra.mxu3 %vm427_vm0, %v681_v63 }
 0x163   : > { %v631_v8 = vadd.f32 %v1693_v28, %v595_v2 }
 0x164   : > { %v955_v1 = vpop.f32.mrf.mxu2 }
 0x165   : > { %v1044_v3 = vpop.f32.mrf.mxu3  ;;  %v663_v12 = vmax.f32 %v631_v8, 0.0 }
 0x166   : > { %v1112_v4 = vpack.c.bf16 %v1044_v3, %v955_v1  ;;  %v780_v5 = vpop.f32.mrf.mxu1 }
 0x167   : > { %v1482_v6 = vpack.c.bf16 %v780_v5, %v778_v62 }
 0x168   : > { %1144 = vst [vmem:[%s1776_s19 + $0x40] sm:$0xff] %v1112_v4  ;;  %v552_v7 = vpop.f32.mrf.mxu0 }
 0x169   : > { %1542 = vst [vmem:[%s1783_s22 + $0x20] sm:$0xff] %v1482_v6   ;;  %v596_v9 = vmul.f32 %v1686_v26, %v552_v7 }
 0x16b   : > { %v632_v10 = vadd.f32 %v1693_v28, %v596_v9 }
 0x16c   : > { %v957_v11 = vpop.f32.mrf.mxu2 }
 0x16d   : > { %v664_v13 = vmax.f32 %v632_v10, 0.0  ;;  %v1046_v14 = vpop.f32.mrf.mxu3 }
 0x16e   : > { %v1113_v15 = vpack.c.bf16 %v1046_v14, %v957_v11  ;;  %v783_v16 = vpop.f32.mrf.mxu1 }
 0x16f   : > { %v682_v17 = vpack.c.bf16 %v664_v13, %v663_v12 }
 0x170   : > { %1145 = vst [vmem:[%s1776_s19 + $0x48] sm:$0xff] %v1113_v15  ;;  %v555_v18 = vpop.f32.mrf.mxu0 }
 0x171   : > { %1381 = vmatmul.msk.bf16.gmra.mxu1 %vm427_vm0, %v682_v17  ;;  %1413 = vmatmul.msk.bf16.gmra.mxu2 %vm427_vm0, %v682_v17  ;;  %v597_v20 = vmul.f32 %v1686_v26, %v555_v18 }
 0x172   : > { %1429 = vmatmul.msk.bf16.gmra.mxu3 %vm427_vm0, %v682_v17 }
 0x173   : > { %v633_v27 = vadd.f32 %v1693_v28, %v597_v20 }
 0x174   : > { %v960_v19 = vpop.f32.mrf.mxu2 }
 0x175   : > { %v1049_v21 = vpop.f32.mrf.mxu3  ;;  %v665_v32 = vmax.f32 %v633_v27, 0.0 }
 0x176   : > { %v1114_v22 = vpack.c.bf16 %v1049_v21, %v960_v19  ;;  %v785_v23 = vpop.f32.mrf.mxu1 }
 0x177   : > { %v1487_v24 = vpack.c.bf16 %v785_v23, %v783_v16 }
 0x178   : > { %1146 = vst [vmem:[%s1776_s19 + $0x50] sm:$0xff] %v1114_v22  ;;  %v557_v25 = vpop.f32.mrf.mxu0 }
 0x179   : > { %1543 = vst [vmem:[%s1783_s22 + $0x28] sm:$0xff] %v1487_v24   ;;  %v598_v29 = vmul.f32 %v1686_v26, %v557_v25 }
 0x17b   : > { %v634_v30 = vadd.f32 %v1693_v28, %v598_v29 }
 0x17c   : > { %v962_v31 = vpop.f32.mrf.mxu2 }
 0x17d   : > { %v666_v33 = vmax.f32 %v634_v30, 0.0  ;;  %v1051_v34 = vpop.f32.mrf.mxu3 }
 0x17e   : > { %v1115_v35 = vpack.c.bf16 %v1051_v34, %v962_v31  ;;  %v788_v36 = vpop.f32.mrf.mxu1 }
 0x17f   : > { %v683_v37 = vpack.c.bf16 %v666_v33, %v665_v32 }
 0x180   : > { %1147 = vst [vmem:[%s1776_s19 + $0x58] sm:$0xff] %v1115_v35  ;;  %v560_v38 = vpop.f32.mrf.mxu0 }
 0x181   : > { %1382 = vmatmul.msk.bf16.gmra.mxu1 %vm427_vm0, %v683_v37  ;;  %1414 = vmatmul.msk.bf16.gmra.mxu2 %vm427_vm0, %v683_v37  ;;  %v599_v40 = vmul.f32 %v1686_v26, %v560_v38 }
 0x182   : > { %1430 = vmatmul.msk.bf16.gmra.mxu3 %vm427_vm0, %v683_v37 }
 0x183   : > { %v635_v46 = vadd.f32 %v1693_v28, %v599_v40 }
 0x184   : > { %v965_v39 = vpop.f32.mrf.mxu2 }
 0x185   : > { %v1054_v41 = vpop.f32.mrf.mxu3  ;;  %v667_v50 = vmax.f32 %v635_v46, 0.0 }
 0x186   : > { %v1116_v42 = vpack.c.bf16 %v1054_v41, %v965_v39  ;;  %v790_v43 = vpop.f32.mrf.mxu1 }
 0x187   : > { %v1492_v44 = vpack.c.bf16 %v790_v43, %v788_v36 }
 0x188   : > { %1148 = vst [vmem:[%s1776_s19 + $0x60] sm:$0xff] %v1116_v42  ;;  %v562_v45 = vpop.f32.mrf.mxu0 }
 0x189   : > { %1544 = vst [vmem:[%s1783_s22 + $0x30] sm:$0xff] %v1492_v44   ;;  %v600_v47 = vmul.f32 %v1686_v26, %v562_v45 }
 0x18b   : > { %v636_v48 = vadd.f32 %v1693_v28, %v600_v47 }
 0x18c   : > { %v967_v49 = vpop.f32.mrf.mxu2 }
 0x18d   : > { %v668_v51 = vmax.f32 %v636_v48, 0.0  ;;  %v1056_v52 = vpop.f32.mrf.mxu3 }
 0x18e   : > { %v1117_v53 = vpack.c.bf16 %v1056_v52, %v967_v49  ;;  %v793_v54 = vpop.f32.mrf.mxu1 }
 0x18f   : > { %v684_v55 = vpack.c.bf16 %v668_v51, %v667_v50 }
 0x190   : > { %1149 = vst [vmem:[%s1776_s19 + $0x68] sm:$0xff] %v1117_v53 }
 0x191   : > { %1383 = vmatmul.msk.bf16.gmra.mxu1 %vm427_vm0, %v684_v55  ;;  %1415 = vmatmul.msk.bf16.gmra.mxu2 %vm427_vm0, %v684_v55 }
 0x192   : > { %1431 = vmatmul.msk.bf16.gmra.mxu3 %vm427_vm0, %v684_v55 }
 0x194   : > { %v970_v26 = vpop.f32.mrf.mxu2 }
 0x195   : > { %v1059_v56 = vpop.f32.mrf.mxu3 }
 0x196   : > { %v1118_v28 = vpack.c.bf16 %v1059_v56, %v970_v26  ;;  %v795_v57 = vpop.f32.mrf.mxu1 }
 0x197   : > { %v1497_v58 = vpack.c.bf16 %v795_v57, %v793_v54 }
 0x198   : > { %1150 = vst [vmem:[%s1776_s19 + $0x70] sm:$0xff] %v1118_v28 }
 0x199   : > { %1545 = vst [vmem:[%s1783_s22 + $0x38] sm:$0xff] %v1497_v58  }
 0x19c   : > { %v972_v59 = vpop.f32.mrf.mxu2 }
 0x19d   : > { %v1061_v60 = vpop.f32.mrf.mxu3 }
 0x19e   : > { %v1119_v61 = vpack.c.bf16 %v1061_v60, %v972_v59  ;;  %v798_v62 = vpop.f32.mrf.mxu1 }
 0x1a0   : > { %1151 = vst [vmem:[%s1776_s19 + $0x78] sm:$0xff] %v1119_v61 }
 0x1a4   : > { %v975_v63 = vpop.f32.mrf.mxu2 }
 0x1a5   : > { %v1064_v0 = vpop.f32.mrf.mxu3 }
 0x1a6   : > { %v1120_v1 = vpack.c.bf16 %v1064_v0, %v975_v63  ;;  %v800_v2 = vpop.f32.mrf.mxu1 }
 0x1a7   : > { %v1502_v3 = vpack.c.bf16 %v800_v2, %v798_v62 }
 0x1a8   : > { %1152 = vst [vmem:[%s1776_s19 + $0x80] sm:$0xff] %v1120_v1 }
 0x1a9   : > { %1546 = vst [vmem:[%s1783_s22 + $0x40] sm:$0xff] %v1502_v3  }
 0x1ac   : > { %v977_v4 = vpop.f32.mrf.mxu2 }
 0x1ad   : > { %v1066_v5 = vpop.f32.mrf.mxu3 }
 0x1ae   : > { %v1121_v6 = vpack.c.bf16 %v1066_v5, %v977_v4  ;;  %v803_v7 = vpop.f32.mrf.mxu1 }
 0x1b0   : > { %1153 = vst [vmem:[%s1776_s19 + $0x88] sm:$0xff] %v1121_v6 }
 0x1b4   : > { %v980_v8 = vpop.f32.mrf.mxu2 }
 0x1b5   : > { %v1069_v9 = vpop.f32.mrf.mxu3 }
 0x1b6   : > { %v1122_v10 = vpack.c.bf16 %v1069_v9, %v980_v8  ;;  %v805_v11 = vpop.f32.mrf.mxu1 }
 0x1b7   : > { %v1507_v12 = vpack.c.bf16 %v805_v11, %v803_v7 }
 0x1b8   : > { %1154 = vst [vmem:[%s1776_s19 + $0x90] sm:$0xff] %v1122_v10 }
 0x1b9   : > { %1547 = vst [vmem:[%s1783_s22 + $0x48] sm:$0xff] %v1507_v12  }
 0x1bc   : > { %v982_v13 = vpop.f32.mrf.mxu2 }
 0x1bd   : > { %v1071_v14 = vpop.f32.mrf.mxu3 }
 0x1be   : > { %v1123_v15 = vpack.c.bf16 %v1071_v14, %v982_v13  ;;  %v808_v16 = vpop.f32.mrf.mxu1 }
 0x1c0   : > { %1155 = vst [vmem:[%s1776_s19 + $0x98] sm:$0xff] %v1123_v15 }
 0x1c4   : > { %v985_v17 = vpop.f32.mrf.mxu2 }
 0x1c5   : > { %v1074_v18 = vpop.f32.mrf.mxu3 }
 0x1c6   : > { %v1124_v19 = vpack.c.bf16 %v1074_v18, %v985_v17  ;;  %v810_v20 = vpop.f32.mrf.mxu1 }
 0x1c7   : > { %v1512_v21 = vpack.c.bf16 %v810_v20, %v808_v16 }
 0x1c8   : > { %1156 = vst [vmem:[%s1776_s19 + $0xa0] sm:$0xff] %v1124_v19 }
 0x1c9   : > { %1548 = vst [vmem:[%s1783_s22 + $0x50] sm:$0xff] %v1512_v21  }
 0x1cc   : > { %v987_v22 = vpop.f32.mrf.mxu2 }
 0x1cd   : > { %v1076_v23 = vpop.f32.mrf.mxu3 }
 0x1ce   : > { %v1125_v24 = vpack.c.bf16 %v1076_v23, %v987_v22  ;;  %v813_v25 = vpop.f32.mrf.mxu1 }
 0x1d0   : > { %1157 = vst [vmem:[%s1776_s19 + $0xa8] sm:$0xff] %v1125_v24 }
 0x1d4   : > { %v990_v27 = vpop.f32.mrf.mxu2 }
 0x1d5   : > { %v1079_v29 = vpop.f32.mrf.mxu3 }
 0x1d6   : > { %v1126_v30 = vpack.c.bf16 %v1079_v29, %v990_v27  ;;  %v815_v31 = vpop.f32.mrf.mxu1 }
 0x1d7   : > { %v1517_v32 = vpack.c.bf16 %v815_v31, %v813_v25 }
 0x1d8   : > { %1158 = vst [vmem:[%s1776_s19 + $0xb0] sm:$0xff] %v1126_v30 }
 0x1d9   : > { %1549 = vst [vmem:[%s1783_s22 + $0x58] sm:$0xff] %v1517_v32  }
 0x1dc   : > { %v992_v33 = vpop.f32.mrf.mxu2 }
 0x1dd   : > { %v1081_v34 = vpop.f32.mrf.mxu3 }
 0x1de   : > { %v1127_v35 = vpack.c.bf16 %v1081_v34, %v992_v33  ;;  %v818_v36 = vpop.f32.mrf.mxu1 }
 0x1e0   : > { %1159 = vst [vmem:[%s1776_s19 + $0xb8] sm:$0xff] %v1127_v35 }
 0x1e4   : > { %v995_v37 = vpop.f32.mrf.mxu2 }
 0x1e5   : > { %v1084_v38 = vpop.f32.mrf.mxu3 }
 0x1e6   : > { %v1128_v39 = vpack.c.bf16 %v1084_v38, %v995_v37  ;;  %v820_v40 = vpop.f32.mrf.mxu1 }
 0x1e7   : > { %v1522_v41 = vpack.c.bf16 %v820_v40, %v818_v36 }
 0x1e8   : > { %1160 = vst [vmem:[%s1776_s19 + $0xc0] sm:$0xff] %v1128_v39 }
 0x1e9   : > { %1550 = vst [vmem:[%s1783_s22 + $0x60] sm:$0xff] %v1522_v41  }
 0x1ec   : > { %v997_v42 = vpop.f32.mrf.mxu2 }
 0x1ed   : > { %v1086_v43 = vpop.f32.mrf.mxu3 }
 0x1ee   : > { %v1129_v44 = vpack.c.bf16 %v1086_v43, %v997_v42  ;;  %v823_v45 = vpop.f32.mrf.mxu1 }
 0x1f0   : > { %1161 = vst [vmem:[%s1776_s19 + $0xc8] sm:$0xff] %v1129_v44 }
 0x1f4   : > { %v1000_v46 = vpop.f32.mrf.mxu2 }
 0x1f5   : > { %v1089_v47 = vpop.f32.mrf.mxu3 }
 0x1f6   : > { %v1130_v48 = vpack.c.bf16 %v1089_v47, %v1000_v46  ;;  %v825_v49 = vpop.f32.mrf.mxu1 }
 0x1f7   : > { %v1527_v50 = vpack.c.bf16 %v825_v49, %v823_v45 }
 0x1f8   : > { %1162 = vst [vmem:[%s1776_s19 + $0xd0] sm:$0xff] %v1130_v48 }
 0x1f9   : > { %1551 = vst [vmem:[%s1783_s22 + $0x68] sm:$0xff] %v1527_v50  }
 0x1fc   : > { %v1002_v51 = vpop.f32.mrf.mxu2 }
 0x1fd   : > { %v1091_v52 = vpop.f32.mrf.mxu3 }
 0x1fe   : > { %v1131_v53 = vpack.c.bf16 %v1091_v52, %v1002_v51  ;;  %v828_v54 = vpop.f32.mrf.mxu1 }
 0x200   : > { %1163 = vst [vmem:[%s1776_s19 + $0xd8] sm:$0xff] %v1131_v53 }
 0x204   : > { %v1005_v55 = vpop.f32.mrf.mxu2 }
 0x205   : > { %v1094_v26 = vpop.f32.mrf.mxu3 }
 0x206   : > { %v1132_v56 = vpack.c.bf16 %v1094_v26, %v1005_v55  ;;  %v830_v28 = vpop.f32.mrf.mxu1 }
 0x207   : > { %v1532_v57 = vpack.c.bf16 %v830_v28, %v828_v54 }
 0x208   : > { %1164 = vst [vmem:[%s1776_s19 + $0xe0] sm:$0xff] %v1132_v56 }
 0x209   : > { %1552 = vst [vmem:[%s1783_s22 + $0x70] sm:$0xff] %v1532_v57  }
 0x20c   : > { %v1007_v58 = vpop.f32.mrf.mxu2 }
 0x20d   : > { %v1096_v59 = vpop.f32.mrf.mxu3 }
 0x20e   : > { %v1133_v60 = vpack.c.bf16 %v1096_v59, %v1007_v58  ;;  %v833_v61 = vpop.f32.mrf.mxu1 }
 0x210   : > { %1165 = vst [vmem:[%s1776_s19 + $0xe8] sm:$0xff] %v1133_v60 }
 0x214   : > { %v1010_v62 = vpop.f32.mrf.mxu2 }
 0x215   : > { %v1099_v63 = vpop.f32.mrf.mxu3 }
 0x216   : > { %v1134_v0 = vpack.c.bf16 %v1099_v63, %v1010_v62  ;;  %v835_v1 = vpop.f32.mrf.mxu1 }
 0x217   : > { %v1537_v2 = vpack.c.bf16 %v835_v1, %v833_v61 }
 0x218   : > { %1166 = vst [vmem:[%s1776_s19 + $0xf0] sm:$0xff] %v1134_v0 }
 0x219   : > { %1553 = vst [vmem:[%s1783_s22 + $0x78] sm:$0xff] %v1537_v2  }
 0x21c   : > { %v1012_v3 = vpop.f32.mrf.mxu2 }
 0x21d   : > { %v1101_v4 = vpop.f32.mrf.mxu3 }
 0x21e   : > { %v1135_v5 = vpack.c.bf16 %v1101_v4, %v1012_v3 }
 0x220   : > { %1167 = vst [vmem:[%s1776_s19 + $0xf8] sm:$0xff] %v1135_v5 }
 0x221 PF: > { %s18_s24 = sadd.s32 1, %s1570_s24  }
 0x222   : > { %p15_p4 = scmp.ge.s32.totalorder %s18_s24, 4  }
 0x224   :  { %17 = sbr.rel (!%p15_p4) target bundleno = 1 (0x1), region = 86 }

// kernel: bottleneck_forward_pallas.5
= control target key start
LH: loop header
LB: loop body
LE: loop exit
PB: predicated region body
PF: predicated region fallthrough
CT: control target
= control target key end

     0   :  { %11 = vsyncpa [#allocation4], 0  ;;  %s4341_s0 = inlined_call_operand.vmem [shape: bf16[2,24,18,32], index: 0, kind: input, shape index: {}, may-alias: {0,1}]   ;;  %s4342_s1 = inlined_call_operand.vmem [shape: bf16[2,24,18,32], index: 1, kind: input, shape index: {}, may-alias: {0,1}]   ;;  %s4343_s2 = inlined_call_operand.vmem [shape: bf16[9,32,32], index: 2, kind: input, shape index: {}]   ;;  %s4344_s3 = inlined_call_operand.vmem [shape: f32[1,32], index: 3, kind: input, shape index: {}]   ;;  %s4345_s4 = inlined_call_operand.vmem [shape: f32[1,32], index: 4, kind: input, shape index: {}]   ;;  %s4346_s5 = inlined_call_operand.vmem [shape: f32[2,16,16,32], index: 5, kind: input, shape index: {}]   ;;  %s4347_s6 = inlined_call_operand.hbm [shape: f32[2,16,16,32], index: 6, kind: output, shape index: {}]  }
   0x1   :  { %13 = vsyncpa [#allocation4 + $0x1], 0  ;;  %s3392_s21 = smov 0   ;;  %s3394_s22 = smov 0  }
   0x2   :  { %s3396_s23 = smov 0   ;;  %s3398_s24 = smov 0  }
   0x3   :  { %s3400_s25 = smov 0   ;;  %s3402_s26 = smov 0  }
   0x4   :  { %s3404_s27 = smov 0   ;;  %s3406_s28 = smov 0  }
   0x5 LB: > { %s2813_s29 = sadd.s32 4294967295, %s3353_s28   ;;  %s2814_s30 = sadd.s32 4294967294, %s3353_s28   ;;  %s3353_s28 = sphi %s3406_s28, %s19_s28   ;;  %s3349_s27 = sphi %s3404_s27, %s4360_s27   ;;  %s3345_s26 = sphi %s3402_s26, %s4359_s26   ;;  %s3341_s25 = sphi %s3400_s25, %s4358_s25   ;;  %s3337_s24 = sphi %s3398_s24, %s4357_s24   ;;  %s3333_s23 = sphi %s3396_s23, %s4356_s23   ;;  %s3329_s22 = sphi %s3394_s22, %s4355_s22   ;;  %s3325_s21 = sphi %s3392_s21, %s4354_s21  }
   0x6   : > { %s28_s7 = sadd.s32 1, %s3345_s26  ;;  %s31_s8 = sadd.s32 1, %s3349_s27 }
   0x7   : > { %p29_p0 = scmp.ge.s32.totalorder %s28_s7, 2  ;;  %p199_p1 = scmp.ne.s32.totalorder %s3333_s23, %s3329_s22 }
   0x8   : > { %p200_p2 = scmp.eq.s32.totalorder %s2813_s29, 3  ;;  %p205_p5 = scmp.ne.s32.totalorder %s3329_s22, %s3325_s21 }
   0x9   : > { %s4362_s7 = smov (%p29_p0, %s28_s7), 0  ;;  %s4364_s8 = smov (!%p29_p0, %s31_s8), %s3349_s27 }
   0xa   : > { %s185_s9 = ssub.s32 %s3345_s26, %s4362_s7  ;;  %p3443_p3 = por %p200_p2, %p199_p1 }
   0xb   : > { %p33_p4 = scmp.ge.s32.totalorder %s4364_s8, 2  ;;  %p206_p6 = scmp.eq.s32.totalorder %s2814_s30, 3 }
   0xc   : > { %p2817_p7 = scmp.ge.s32.totalorder %s3353_s28, 1  ;;  %p277_p9 = scmp.lt.s32.totalorder %s3353_s28, 5 }
   0xd   : > { %s4366_s8 = smov (%p33_p4, %s4364_s8), 0  ;;  %p3452_p8 = por %p206_p6, %p205_p5 }
   0xe   : > { %s184_s12 = ssub.s32 %s3349_s27, %s4366_s8  ;;  %s189_s13 = sadd.s32 1, %s3333_s23 }
   0xf   : > { %s186_s14 = sor.u32 %s185_s9, %s184_s12  ;;  %p278_p10 = pnand %p2817_p7, %p277_p9 }
  0x10   : > { %p187_p11 = scmp.eq.s32.totalorder %s186_s14, 0  ;;  %s3467_s18 = sshll.u32 (!%p278_p10), %s3337_s24, 3 }
  0x11   : > { %281 = sbr.rel (%p278_p10) target bundleno = 495 (0x1ef), region = 44  ;;  %p334_p12 = scmp.lt.s32.totalorder (!%p278_p10), %s3341_s25, 1 }
  0x12   : > { %s3461_s15 = scalar_select %p187_p11, %s3333_s23, %s189_s13  }
  0x13   : > { %p336_p13 = scmp.lt.s32.totalorder (!%p278_p10), %s3467_s18, 23  ;;  %p360_p1 = scmp.lt.s32.totalorder (!%p278_p10), %s3467_s18, 15 }
  0x16   : > { %v3143_v0 = vld [vmem:[%s4343_s2 + $0x18] sm:$0xff]  ;;  %v3142_v1 = vld [vmem:[%s4343_s2 + $0x10] sm:$0xff]  ;;  %s3475_s29 = scalar_select %p334_p12, %s3341_s25, 1  ;;  %vm394_vm0 = vcmask 257024   ;;  %vm397_vm1 = vcmask 253952   ;;  %v3145_v9 = vld [vmem:[%s4343_s2 + $0x28] sm:$0xff] }
  0x17   : > { %3175 = vmatpush.bf16.msra.mxu1 %v3143_v0  ;;  %3176 = vmatpush.bf16.msra.mxu2 %v3143_v0  ;;  %s337_s30 = scalar_select %p336_p13, %s3467_s18, 23  ;;  %vm461_vm2 = vsmask.f32 3328  ;;  %v3155_v13 = vld [vmem:[%s4343_s2 + $0x38] sm:$0xff]  ;;  %v3141_v14 = vld [vmem:[%s4343_s2 + $0x8] sm:$0xff]  ;;  %vm697_vm4 = vcmask 261120  }
  0x18   : > { %3177 = vmatpush.bf16.msra.mxu3 %v3143_v0  ;;  %728 = vmatpush.bf16.msra.mxu0 %v3143_v0  ;;  %s3182_s9 = smul.u32 72, %s3475_s29  ;;  %v3157_v15 = vld [vmem:[%s4343_s2 + $0x48] sm:$0xff]  ;;  %vm462_vm3 = vsmask.f32 7440  ;;  %vm920_vm6 = vcmask 1042432   ;;  %vm921_vm7 = vcmask 1046532  }
  0x19   : > { %s3181_s12 = smul.u32 3, %s337_s30  ;;  %vm3535_vm5 = vmor %vm461_vm2, %vm462_vm3  ;;  %s2825_s30 = sshll.u32 %s3475_s29, 5 }
  0x1a   : > { %vm3671_vm8 = vmor %vm920_vm6, %vm921_vm7 }
  0x1b   : > { %3178 = vmatpush.bf16.msra.mxu1 %v3142_v1  ;;  %3179 = vmatpush.bf16.msra.mxu2 %v3142_v1  ;;  %s340_s13 = sadd.s32 %s3182_s9, %s3181_s12 }
  0x1c   : > { %3180 = vmatpush.bf16.msra.mxu3 %v3142_v1  ;;  %729 = vmatpush.bf16.msra.mxu0 %v3142_v1  ;;  %s2820_s14 = sshll.u32 %s340_s13, 2 }
  0x1d   : > { %s3484_s19 = scalar_lea.vmem %s4341_s0, %s2820_s14 }
  0x1e   : > { %v376_v2 = vld [vmem:[%s3484_s19 + $0x18] sm:$0xf]  ;;  %v377_v3 = vld [vmem:[%s3484_s19 + $0x1c] sm:$0xf]  ;;  %v378_v4 = vld [vmem:[%s3484_s19 + $0x20] sm:$0x1] }
  0x1f   : > { %402 = vst.msk [vmem:[#allocation2 + $0x18] sm:$0xf] %vm394_vm0, %v376_v2  ;;  %v382_v5 = vld [vmem:[%s3484_s19 + $0x30] sm:$0xf]  ;;  %v383_v6 = vld [vmem:[%s3484_s19 + $0x34] sm:$0xf]  ;;  %1050 = vmatpush.bf16.msrb.mxu2 %v3145_v9  ;;  %853 = vmatpush.bf16.msrb.mxu1 %v3141_v14 }
  0x20   : > { %403 = vst.msk [vmem:[#allocation2 + $0x1c] sm:$0xf] %vm394_vm0, %v377_v3  ;;  %v384_v7 = vld [vmem:[%s3484_s19 + $0x38] sm:$0x1]  ;;  %v388_v8 = vld [vmem:[%s3484_s19 + $0x48] sm:$0xf]  ;;  %1213 = vmatpush.bf16.msrb.mxu3 %v3155_v13  ;;  %1559 = vmatpush.bf16.msrb.mxu0 %v3157_v15 }
  0x21   : > { %404 = vst.msk [vmem:[#allocation2 + $0x20] sm:$0x1] %vm397_vm1, %v378_v4  ;;  %v389_v10 = vld [vmem:[%s3484_s19 + $0x4c] sm:$0xf]  ;;  %v390_v11 = vld [vmem:[%s3484_s19 + $0x50] sm:$0x1] }
  0x22   : > { %408 = vst.msk [vmem:[#allocation2 + $0x30] sm:$0xf] %vm394_vm0, %v382_v5  ;;  %v370_v12 = vld [vmem:[%s3484_s19] sm:$0xf]  ;;  %v371_v32 = vld [vmem:[%s3484_s19 + $0x4] sm:$0xf] }
  0x23   : > { %409 = vst.msk [vmem:[#allocation2 + $0x34] sm:$0xf] %vm394_vm0, %v383_v6  ;;  %v372_v38 = vld [vmem:[%s3484_s19 + $0x8] sm:$0x1]  ;;  %v379_v45 = vld [vmem:[%s3484_s19 + $0x24] sm:$0xf] }
  0x24   : > { %410 = vst.msk [vmem:[#allocation2 + $0x38] sm:$0x1] %vm397_vm1, %v384_v7  ;;  %v380_v51 = vld [vmem:[%s3484_s19 + $0x28] sm:$0xf]  ;;  %v381_v57 = vld [vmem:[%s3484_s19 + $0x2c] sm:$0x1] }
  0x25   : > { %414 = vst.msk [vmem:[#allocation2 + $0x48] sm:$0xf] %vm394_vm0, %v388_v8  ;;  %v385_v3 = vld [vmem:[%s3484_s19 + $0x3c] sm:$0xf] }
  0x26   : > { %v437_v16 = vld [vmem:[#allocation2 + $0x18] sm:$0xf]  ;;  %415 = vst.msk [vmem:[#allocation2 + $0x4c] sm:$0xf] %vm394_vm0, %v389_v10 }
  0x27   : > { %v3516_v17 = vld [vmem:[#allocation2 + $0x1c] sm:$0xf]  ;;  %v513_v18 = vshrl.u32 %v437_v16, 16  ;;  %v516_v19 = vshll.u32 %v437_v16, 16  ;;  %416 = vst.msk [vmem:[#allocation2 + $0x50] sm:$0x1] %vm397_vm1, %v390_v11 }
  0x28   : > { %v3519_v20 = vld [vmem:[#allocation2 + $0x20] sm:$0x1]  ;;  %v522_v21 = vshll.u32 %v3516_v17, 16  ;;  %v526_v22 = vshrl.u32 %v3516_v17, 16  ;;  %395 = vst.msk [vmem:[#allocation2] sm:$0xf] %vm394_vm0, %v370_v12 }
  0x29   : > { %v515_v23 = vrot.slane %v513_v18, 4  ;;  %v518_v24 = vrot.slane %v516_v19, 5  ;;  %v532_v25 = vshll.u32 %v3519_v20, 16  ;;  %v441_v26 = vld [vmem:[#allocation2 + $0x30] sm:$0xf] }
  0x2a   : > { %v524_v27 = vrot.slane %v522_v21, 5  ;;  %v528_v28 = vrot.slane %v526_v22, 4  ;;  %v3525_v29 = vld [vmem:[#allocation2 + $0x34] sm:$0xf]  ;;  %v561_v30 = vshrl.u32 %v441_v26, 16  ;;  %v564_v31 = vshll.u32 %v441_v26, 16 }
  0x2b   : > { %v519_v33 = vor.u32 %v518_v24, %v515_v23  ;;  %v534_v34 = vrot.slane %v532_v25, 5  ;;  %v3528_v35 = vld [vmem:[#allocation2 + $0x38] sm:$0x1]  ;;  %v570_v36 = vshll.u32 %v3525_v29, 16  ;;  %v574_v37 = vshrl.u32 %v3525_v29, 16  ;;  %v3144_v22 = vld [vmem:[%s4343_s2 + $0x20] sm:$0xff] }
  0x2c   : > { %v529_v40 = vor.u32 %v528_v28, %v524_v27  ;;  %v563_v41 = vrot.slane %v561_v30, 4  ;;  %v566_v42 = vrot.slane %v564_v31, 5  ;;  %v580_v43 = vshll.u32 %v3528_v35, 16  ;;  %v445_v44 = vld [vmem:[#allocation2 + $0x48] sm:$0xf]  ;;  %1051 = vmatpush.bf16.msrb.mxu2 %v3144_v22 }
  0x2d   : > { %v520_v46 = vrot.slane %v519_v33, 4  ;;  %v572_v47 = vrot.slane %v570_v36, 5  ;;  %v576_v48 = vrot.slane %v574_v37, 4  ;;  %v3541_v49 = vld [vmem:[#allocation2 + $0x4c] sm:$0xf]  ;;  %v609_v50 = vshrl.u32 %v445_v44, 16 }
  0x2e   : > { %v530_v52 = vrot.slane %v529_v40, 4  ;;  %v567_v53 = vor.u32 %v566_v42, %v563_v41  ;;  %v582_v54 = vrot.slane %v580_v43, 5  ;;  %v3544_v55 = vld [vmem:[#allocation2 + $0x50] sm:$0x1]  ;;  %v612_v56 = vshll.u32 %v445_v44, 16 }
  0x2f   : > { %v525_v58 = vsel %vm3535_vm5, %v520_v46, %v524_v27  ;;  %v577_v59 = vor.u32 %v576_v48, %v572_v47  ;;  %v611_v60 = vrot.slane %v609_v50, 4  ;;  %v618_v61 = vshll.u32 %v3541_v49, 16  ;;  %396 = vst.msk [vmem:[#allocation2 + $0x4] sm:$0xf] %vm394_vm0, %v371_v32  ;;  %v433_v62 = vld [vmem:[#allocation2] sm:$0xf] }
  0x30   : > { %v535_v63 = vsel %vm3535_vm5, %v530_v52, %v534_v34  ;;  %v665_v0 = vunpack.c.l.b16 %v525_v58  ;;  %v568_v1 = vrot.slane %v567_v53, 4  ;;  %v614_v2 = vrot.slane %v612_v56, 5  ;;  %398 = vst.msk [vmem:[#allocation2 + $0x8] sm:$0x1] %vm397_vm1, %v372_v38  ;;  %v386_v12 = vld [vmem:[%s3484_s19 + $0x40] sm:$0xf] }
  0x31   : > { %v666_v4 = vunpack.c.l.b16 %v535_v63  ;;  %v578_v5 = vrot.slane %v577_v59, 4  ;;  %v620_v6 = vrot.slane %v618_v61, 5  ;;  %v622_v7 = vshrl.u32 %v3541_v49, 16  ;;  %405 = vst.msk [vmem:[#allocation2 + $0x24] sm:$0xf] %vm394_vm0, %v379_v45  ;;  %v3154_v42 = vld [vmem:[%s4343_s2 + $0x30] sm:$0xff] }
  0x32   : > { %v573_v8 = vsel %vm3535_vm5, %v568_v1, %v572_v47  ;;  %v615_v9 = vor.u32 %v614_v2, %v611_v60  ;;  %v628_v10 = vshll.u32 %v3544_v55, 16  ;;  %v465_v11 = vshrl.u32 %v433_v62, 16  ;;  %406 = vst.msk [vmem:[#allocation2 + $0x28] sm:$0xf] %vm394_vm0, %v380_v51  ;;  %v387_v18 = vld [vmem:[%s3484_s19 + $0x44] sm:$0x1]  ;;  %1214 = vmatpush.bf16.msrb.mxu3 %v3154_v42 }
  0x33   : > { %v679_v13 = vpack.c.b16 %v666_v4, %v665_v0  ;;  %v583_v14 = vsel %vm3535_vm5, %v578_v5, %v582_v54  ;;  %v669_v15 = vunpack.c.l.b16 %v573_v8  ;;  %v624_v16 = vrot.slane %v622_v7, 4  ;;  %407 = vst.msk [vmem:[#allocation2 + $0x2c] sm:$0x1] %vm397_vm1, %v381_v57  ;;  %v391_v36 = vld [vmem:[%s3484_s19 + $0x54] sm:$0xf]  ;;  %v3140_v57 = vld [vmem:[%s4343_s2] sm:$0xff] }
  0x34   : > { %v670_v19 = vunpack.c.l.b16 %v583_v14  ;;  %v616_v21 = vrot.slane %v615_v9, 4  ;;  %411 = vst.msk [vmem:[#allocation2 + $0x3c] sm:$0xf] %vm394_vm0, %v385_v3  ;;  %v630_v24 = vrot.slane %v628_v10, 5  ;;  %v467_v25 = vrot.slane %v465_v11, 4  ;;  %854 = vmatpush.bf16.msrb.mxu1 %v3140_v57  ;;  %v3156_v9 = vld [vmem:[%s4343_s2 + $0x40] sm:$0xff] }
  0x35   : > { %2841 = vmatmul.msk.bf16.vlgmr.msra.gmra.mxu1 %vm697_vm4, %v679_v13  ;;  %v625_v23 = vor.u32 %v624_v16, %v620_v6  ;;  %v468_v26 = vshll.u32 %v433_v62, 16  ;;  %412 = vst.msk [vmem:[#allocation2 + $0x40] sm:$0xf] %vm394_vm0, %v386_v12  ;;  %v392_v48 = vld [vmem:[%s3484_s19 + $0x58] sm:$0xf]  ;;  %1560 = vmatpush.bf16.msrb.mxu0 %v3156_v9  ;;  %v3173_v9 = vld [vmem:[%s4343_s2 + $0x88] sm:$0xff] }
  0x36   : > { %v681_v27 = vpack.c.b16 %v670_v19, %v669_v15  ;;  %v621_v28 = vsel %vm3535_vm5, %v616_v21, %v620_v6  ;;  %v3574_v30 = vld [vmem:[#allocation2 + $0x4] sm:$0xf]  ;;  %413 = vst.msk [vmem:[#allocation2 + $0x44] sm:$0x1] %vm397_vm1, %v387_v18  ;;  %v393_v56 = vld [vmem:[%s3484_s19 + $0x5c] sm:$0x1] }
  0x37   : > { %v626_v31 = vrot.slane %v625_v23, 4  ;;  %v3577_v32 = vld [vmem:[#allocation2 + $0x8] sm:$0x1]  ;;  %v470_v33 = vrot.slane %v468_v26, 5  ;;  %v474_v34 = vshll.u32 %v3574_v30, 16  ;;  %v673_v37 = vunpack.c.l.b16 %v621_v28 }
  0x38   : > { %2843 = vmatmul.msk.bf16.vlgmr.msra.gmra.mxu2 %vm697_vm4, %v681_v27  ;;  %v478_v38 = vshrl.u32 %v3574_v30, 16  ;;  %v484_v40 = vshll.u32 %v3577_v32, 16  ;;  %v439_v41 = vld [vmem:[#allocation2 + $0x24] sm:$0xf]  ;;  %417 = vst.msk [vmem:[#allocation2 + $0x54] sm:$0xf] %vm394_vm0, %v391_v36 }
  0x39   : > { %v631_v43 = vsel %vm3535_vm5, %v626_v31, %v630_v24  ;;  %v471_v44 = vor.u32 %v470_v33, %v467_v25  ;;  %v476_v45 = vrot.slane %v474_v34, 5  ;;  %v3589_v46 = vld [vmem:[#allocation2 + $0x28] sm:$0xf]  ;;  %v537_v47 = vshrl.u32 %v439_v41, 16  ;;  %418 = vst.msk [vmem:[#allocation2 + $0x58] sm:$0xf] %vm394_vm0, %v392_v48 }
  0x3a   : > { %v674_v50 = vunpack.c.l.b16 %v631_v43  ;;  %v480_v51 = vrot.slane %v478_v38, 4  ;;  %v486_v52 = vrot.slane %v484_v40, 5  ;;  %v3592_v53 = vld [vmem:[#allocation2 + $0x2c] sm:$0x1]  ;;  %v540_v54 = vshll.u32 %v439_v41, 16 }
  0x3b   : > { %v472_v58 = vrot.slane %v471_v44, 4  ;;  %v539_v59 = vrot.slane %v537_v47, 4  ;;  %v546_v60 = vshll.u32 %v3589_v46, 16  ;;  %v550_v61 = vshrl.u32 %v3589_v46, 16  ;;  %v443_v62 = vld [vmem:[#allocation2 + $0x3c] sm:$0xf] }
  0x3c   : > { %v683_v63 = vpack.c.b16 %v674_v50, %v673_v37  ;;  %v481_v0 = vor.u32 %v480_v51, %v476_v45  ;;  %v542_v1 = vrot.slane %v540_v54, 5  ;;  %v556_v2 = vshll.u32 %v3592_v53, 16  ;;  %v3601_v3 = vld [vmem:[#allocation2 + $0x40] sm:$0xf]  ;;  %v373_v14 = vld [vmem:[%s3484_s19 + $0xc] sm:$0xf] }
  0x3d   : > { %v477_v4 = vsel %vm3535_vm5, %v472_v58, %v476_v45  ;;  %v548_v5 = vrot.slane %v546_v60, 5  ;;  %v552_v6 = vrot.slane %v550_v61, 4  ;;  %v3606_v7 = vld [vmem:[#allocation2 + $0x44] sm:$0x1]  ;;  %v585_v8 = vshrl.u32 %v443_v62, 16  ;;  %v3169_v51 = vld [vmem:[%s4343_s2 + $0x68] sm:$0xff] }
  0x3e   : > { %2845 = vmatmul.msk.bf16.vlgmr.msra.gmra.mxu3 %vm697_vm4, %v683_v63  ;;  %v482_v10 = vrot.slane %v481_v0, 4  ;;  %v661_v11 = vunpack.c.l.b16 %v477_v4  ;;  %v543_v12 = vor.u32 %v542_v1, %v539_v59  ;;  %v558_v13 = vrot.slane %v556_v2, 5  ;;  %419 = vst.msk [vmem:[#allocation2 + $0x5c] sm:$0x1] %vm397_vm1, %v393_v56  ;;  %v374_v25 = vld [vmem:[%s3484_s19 + $0x10] sm:$0xf]  ;;  %1940 = vmatpush.bf16.msra.mxu2 %v3169_v51 }
  0x3f   : > { %v553_v15 = vor.u32 %v552_v6, %v548_v5  ;;  %v587_v16 = vrot.slane %v585_v8, 4  ;;  %v588_v18 = vshll.u32 %v443_v62, 16  ;;  %v594_v19 = vshll.u32 %v3601_v3, 16  ;;  %v375_v33 = vld [vmem:[%s3484_s19 + $0x14] sm:$0x1]  ;;  %v3171_v6 = vld [vmem:[%s4343_s2 + $0x78] sm:$0xff] }
  0x40   : > { %v487_v21 = vsel %vm3535_vm5, %v482_v10, %v486_v52  ;;  %v544_v22 = vrot.slane %v543_v12, 4  ;;  %v598_v23 = vshrl.u32 %v3601_v3, 16  ;;  %v604_v24 = vshll.u32 %v3606_v7, 16  ;;  %399 = vst.msk [vmem:[#allocation2 + $0xc] sm:$0xf] %vm394_vm0, %v373_v14  ;;  %v3159_v8 = vld [vmem:[%s4343_s2 + $0x58] sm:$0xff]  ;;  %2286 = vmatpush.bf16.msra.mxu3 %v3171_v6 }
  0x41   : > { %v662_v26 = vunpack.c.l.b16 %v487_v21  ;;  %v554_v27 = vrot.slane %v553_v15, 4  ;;  %v590_v28 = vrot.slane %v588_v18, 5  ;;  %v596_v31 = vrot.slane %v594_v19, 5  ;;  %v447_v43 = vld [vmem:[#allocation2 + $0x54] sm:$0xf]  ;;  %1777 = vmatpush.bf16.msra.mxu1 %v3159_v8  ;;  %s3131_s19 = sadd.s32 8, %s3467_s18 }
  0x42   : > { %v549_v34 = vsel %vm3535_vm5, %v544_v22, %v548_v5  ;;  %v600_v36 = vrot.slane %v598_v23, 4  ;;  %v606_v37 = vrot.slane %v604_v24, 5  ;;  %400 = vst.msk [vmem:[#allocation2 + $0x10] sm:$0xf] %vm394_vm0, %v374_v25  ;;  %v3628_v44 = vld [vmem:[#allocation2] sm:$0xe] }
  0x43   : > { %v677_v38 = vpack.c.b16 %v662_v26, %v661_v11  ;;  %v559_v40 = vsel %vm3535_vm5, %v554_v27, %v558_v13  ;;  %v667_v41 = vunpack.c.l.b16 %v549_v34  ;;  %v591_v42 = vor.u32 %v590_v28, %v587_v16  ;;  %401 = vst.msk [vmem:[#allocation2 + $0x14] sm:$0x1] %vm397_vm1, %v375_v33  ;;  %v3635_v54 = vld [vmem:[#allocation2 + $0x58] sm:$0xf]  ;;  %p348_p0 = scmp.lt.s32.totalorder %s3131_s19, 23  ;;  %s4370_s18 = smov (!%p360_p1, %s3467_s18), 15 }
  0x44   : > { %v668_v45 = vunpack.c.l.b16 %v559_v40  ;;  %v601_v47 = vor.u32 %v600_v36, %v596_v31  ;;  %v633_v48 = vshrl.u32 %v447_v43, 16  ;;  %v636_v50 = vshll.u32 %v447_v43, 16  ;;  %s2824_s20 = sshll.u32 %s4370_s18, 1 }
  0x45   : > { %2839 = vmatmul.msk.bf16.vlgmr.msra.gmra.mxu0 %vm697_vm4, %v677_v38  ;;  %v592_v52 = vrot.slane %v591_v42, 4  ;;  %v3637_v58 = vld [vmem:[#allocation2 + $0x5c] sm:$0x1]  ;;  %v642_v62 = vshll.u32 %v3635_v54, 16  ;;  %v646_v63 = vshrl.u32 %v3635_v54, 16  ;;  %v2895_v5 = vrot.slane %v3628_v44, 9 }
  0x46   : > { %v680_v56 = vpack.c.b16 %v668_v45, %v667_v41  ;;  %v602_v57 = vrot.slane %v601_v47, 4  ;;  %v635_v59 = vrot.slane %v633_v48, 4  ;;  %v638_v60 = vrot.slane %v636_v50, 5  ;;  %2504 = vmatpush.bf16.msra.mxu0 %v3173_v9  ;;  %v3132_v9 = vld [vmem:[#allocation2] sm:$0xff]  ;;  %s4368_s19 = smov (!%p348_p0, %s3131_s19), 23 }
  0x47   : > { %v597_v61 = vsel %vm3535_vm5, %v592_v52, %v596_v31  ;;  %v652_v0 = vshll.u32 %v3637_v58, 16  ;;  %v644_v11 = vrot.slane %v642_v62, 5  ;;  %v648_v12 = vrot.slane %v646_v63, 4  ;;  %v435_v13 = vld [vmem:[#allocation2 + $0xc] sm:$0xf]  ;;  %s3183_s12 = smul.u32 3, %s4368_s19  ;;  %s364_s19 = sadd.s32 %s2825_s30, %s2824_s20 }
  0x48   : > { %2842 = vmatmul.msk.bf16.gmra.mxu1 %vm697_vm4, %v680_v56  ;;  %v607_v1 = vsel %vm3535_vm5, %v602_v57, %v606_v37  ;;  %v671_v2 = vunpack.c.l.b16 %v597_v61  ;;  %v639_v4 = vor.u32 %v638_v60, %v635_v59  ;;  %v925_v14 = vrot.slane %v3574_v30, 5  ;;  %v1272_v33 = vld [vmem:[#allocation2 + $0xc] sm:$0xf]  ;;  %s330_s20 = sand.u32 1, %s3329_s22  }
  0x49   : > { %v672_v10 = vunpack.c.l.b16 %v607_v1  ;;  %v654_v16 = vrot.slane %v652_v0, 5  ;;  %v3658_v18 = vld [vmem:[#allocation2 + $0x10] sm:$0xf]  ;;  %v489_v19 = vshrl.u32 %v435_v13, 16  ;;  %v492_v21 = vshll.u32 %v435_v13, 16  ;;  %s352_s13 = sadd.s32 %s3183_s12, %s3182_s9  ;;  %s2826_s12 = sshll.u32 %s364_s19, 3 }
  0x4a   : > { %v640_v15 = vrot.slane %v639_v4, 4  ;;  %v649_v23 = vor.u32 %v648_v12, %v644_v11  ;;  %v3660_v24 = vld [vmem:[#allocation2 + $0x14] sm:$0x1]  ;;  %v498_v25 = vshll.u32 %v3658_v18, 16  ;;  %v502_v26 = vshrl.u32 %v3658_v18, 16  ;;  %s2822_s14 = sshll.u32 %s352_s13, 2  ;;  %s4188_s9 = scalar_lea.vmem %s4346_s5, %s2826_s12 }
  0x4b   : > { %v682_v22 = vpack.c.b16 %v672_v10, %v671_v2  ;;  %v491_v27 = vrot.slane %v489_v19, 4  ;;  %v494_v28 = vrot.slane %v492_v21, 5  ;;  %v508_v31 = vshll.u32 %v3660_v24, 16  ;;  %v3675_v41 = vld [vmem:[#allocation2 + $0x10] sm:$0xf]  ;;  %s3811_s17 = scalar_lea.vmem %s4342_s1, %s2822_s14  ;;  %s2818_s30 = sshll.u32 %s330_s20, 7 }
  0x4c   : > { %v645_v30 = vsel %vm3535_vm5, %v640_v15, %v644_v11  ;;  %v928_v34 = vrot.slane %v3577_v32, 5  ;;  %v650_v36 = vrot.slane %v649_v23, 4  ;;  %v500_v37 = vrot.slane %v498_v25, 5  ;;  %v3686_v1 = vld [vmem:[#allocation2 + $0x14] sm:$0x1]  ;;  %s4203_s19 = scalar_lea.vmem [#allocation3], %s2818_s30 }
  0x4d   : > { %2844 = vmatmul.msk.bf16.gmra.mxu2 %vm697_vm4, %v682_v22  ;;  %v504_v38 = vrot.slane %v502_v26, 4  ;;  %v675_v42 = vunpack.c.l.b16 %v645_v30  ;;  %v495_v43 = vor.u32 %v494_v28, %v491_v27  ;;  %v510_v44 = vrot.slane %v508_v31, 5  ;;  %v897_v19 = vld [vmem:[#allocation2 + $0xc] sm:$0xe]  ;;  %v1275_v23 = vld [vmem:[#allocation2 + $0x18] sm:$0xf] }
  0x4e   : > { %v927_v45 = vrot.slane %v925_v14, 4  ;;  %v655_v32 = vsel %vm3535_vm5, %v650_v36, %v654_v16  ;;  %v1297_v48 = vshrl.u32 %v1272_v33, 16  ;;  %v1300_v50 = vshll.u32 %v1272_v33, 16  ;;  %v898_v25 = vld [vmem:[#allocation2 + $0x18] sm:$0xe]  ;;  %s3174_s12 = sshll.u32 %s3337_s24, 4 }
  0x4f   : > { %v505_v47 = vor.u32 %v504_v38, %v500_v37  ;;  %v676_v51 = vunpack.c.l.b16 %v655_v32  ;;  %v496_v52 = vrot.slane %v495_v43, 4  ;;  %v926_v56 = vsel %vm3671_vm8, %v2895_v5, %v925_v14  ;;  %v3696_v28 = vld [vmem:[#allocation2 + $0x1c] sm:$0xf]  ;;  %s3126_s13 = sshll.u32 %s3341_s25, 5  ;;  %s2683_s16 = sshll.u32 %s4203_s19, 4  ;;  %s2684_s16 = int_to_ptr.vmem [resolvable:$true] %s2683_s16 }
  0x50   : > { %v1306_v57 = vshll.u32 %v3675_v41, 16  ;;  %v929_v60 = vsel %vm3671_vm8, %v927_v45, %v928_v34  ;;  %v1299_v61 = vrot.slane %v1297_v48, 4  ;;  %v1302_v62 = vrot.slane %v1300_v50, 5  ;;  %s2680_s14 = sadd.s32 %s3174_s12, %s3126_s13  ;;  %s2668_s30 = scalar_lea.sflag [#allocation4], %s330_s20 }
  0x51   : > { %v506_v59 = vrot.slane %v505_v47, 4  ;;  %v684_v63 = vpack.c.b16 %v676_v51, %v675_v42  ;;  %v501_v0 = vsel %vm3535_vm5, %v496_v52, %v500_v37  ;;  %v1310_v4 = vshrl.u32 %v3675_v41, 16  ;;  %s3127_s18 = sshll.u32 %s2680_s14, 3 }
  0x52   : > { %v1308_v2 = vrot.slane %v1306_v57, 5  ;;  %v663_v6 = vunpack.c.l.b16 %v501_v0  ;;  %v1303_v10 = vor.u32 %v1302_v62, %v1299_v61  ;;  %v984_v12 = vunpack.c.l.b16 %v926_v56  ;;  %s2682_s29 = scalar_lea.hbm %s4347_s6, %s3127_s18  ;;  %s3279_s18 = scalar_lea.hbm %s4347_s6, 512 }
  0x53   : > { %v511_v5 = vsel %vm3535_vm5, %v506_v59, %v510_v44  ;;  %2846 = vmatmul.msk.bf16.gmra.mxu3 %vm697_vm4, %v684_v63  ;;  %v1312_v11 = vrot.slane %v1310_v4, 4  ;;  %v985_v13 = vunpack.c.l.b16 %v929_v60  ;;  %v1316_v14 = vshll.u32 %v3686_v1, 16  ;;  %v3716_v63 = vld [vmem:[#allocation2 + $0x20] sm:$0x1]  ;;  %v3133_v4 = vld [vmem:[#allocation2 + $0xc] sm:$0xff] }
  0x54   : > { %v664_v8 = vunpack.c.l.b16 %v511_v5  ;;  %v1304_v21 = vrot.slane %v1303_v10, 4  ;;  %v932_v22 = vrot.slane %v3658_v18, 5  ;;  %v2897_v31 = vrot.slane %v898_v25, 9 }
  0x55   : > { %v1313_v16 = vor.u32 %v1312_v11, %v1308_v2  ;;  %v1000_v26 = vpack.c.b16 %v985_v13, %v984_v12  ;;  %v1318_v27 = vrot.slane %v1316_v14, 5  ;;  %v2896_v33 = vrot.slane %v897_v19, 9  ;;  %v1278_v12 = vld [vmem:[#allocation2 + $0x24] sm:$0xf] }
  0x56   : > { %v678_v15 = vpack.c.b16 %v664_v8, %v663_v6  ;;  %v935_v34 = vrot.slane %v3660_v24, 5  ;;  %v1321_v36 = vshrl.u32 %v1275_v23, 16  ;;  %v1309_v37 = vsel %vm3535_vm5, %v1304_v21, %v1308_v2  ;;  %v899_v13 = vld [vmem:[#allocation2 + $0x24] sm:$0xe] }
  0x57   : > { %v1314_v30 = vrot.slane %v1313_v16, 4  ;;  %v934_v38 = vrot.slane %v932_v22, 4  ;;  %v939_v42 = vrot.slane %v3516_v17, 5  ;;  %v942_v18 = vrot.slane %v3519_v20, 5  ;;  %v3146_v20 = vld [vmem:[#allocation2 + $0xc] sm:$0xff] }
  0x58   : > { %2840 = vmatmul.msk.bf16.gmra.mxu0 %vm697_vm4, %v678_v15  ;;  %2887 = vmatmul.msk.bf16.vlgmr.msrb.gmra.mxu1 %vm697_vm4, %v3132_v9  ;;  %v1324_v44 = vshll.u32 %v1275_v23, 16  ;;  %v1330_v45 = vshll.u32 %v3696_v28, 16  ;;  %v1334_v32 = vshrl.u32 %v3696_v28, 16  ;;  %v1493_v48 = vunpack.c.l.b16 %v1309_v37 }
  0x59   : > { %v1319_v43 = vsel %vm3535_vm5, %v1314_v30, %v1318_v27  ;;  %v940_v24 = vsel %vm3671_vm8, %v2897_v31, %v939_v42  ;;  %v941_v47 = vrot.slane %v939_v42, 4  ;;  %v933_v17 = vsel %vm3671_vm8, %v2896_v33, %v932_v22  ;;  %v3724_v22 = vld [vmem:[#allocation2 + $0x28] sm:$0xf]  ;;  %v3147_v42 = vld [vmem:[#allocation2 + $0x18] sm:$0xff] }
  0x5a   : > { %v988_v50 = vunpack.c.l.b16 %v940_v24  ;;  %v1494_v51 = vunpack.c.l.b16 %v1319_v43  ;;  %v936_v52 = vsel %vm3671_vm8, %v934_v38, %v935_v34  ;;  %v1323_v56 = vrot.slane %v1321_v36, 4 }
  0x5b   : > { %v943_v57 = vsel %vm3671_vm8, %v941_v47, %v942_v18  ;;  %v1326_v59 = vrot.slane %v1324_v44, 5  ;;  %v1332_v60 = vrot.slane %v1330_v45, 5  ;;  %v1336_v61 = vrot.slane %v1334_v32, 4  ;;  %v3739_v47 = vld [vmem:[#allocation2 + $0x2c] sm:$0x1] }
  0x5c   : > { %v989_v62 = vunpack.c.l.b16 %v943_v57  ;;  %v1509_v2 = vpack.c.b16 %v1494_v51, %v1493_v48  ;;  %v986_v5 = vunpack.c.l.b16 %v933_v17  ;;  %v987_v6 = vunpack.c.l.b16 %v936_v52  ;;  %v3134_v17 = vld [vmem:[#allocation2 + $0x18] sm:$0xff]  ;;  %v1281_v52 = vld [vmem:[#allocation2 + $0x30] sm:$0xf] }
  0x5d   : > { %2915 = vmatmul.msk.bf16.vlgmr.msrb.gmra.mxu2 %vm697_vm4, %v1000_v26  ;;  %v1327_v8 = vor.u32 %v1326_v59, %v1323_v56  ;;  %v1337_v9 = vor.u32 %v1336_v61, %v1332_v60  ;;  %v1340_v10 = vshll.u32 %v3716_v63, 16  ;;  %v946_v14 = vrot.slane %v3589_v46, 5  ;;  %v3745_v56 = vld [vmem:[#allocation2 + $0x34] sm:$0xf] }
  0x5e   : > { %v1002_v0 = vpack.c.b16 %v989_v62, %v988_v50  ;;  %v1001_v11 = vpack.c.b16 %v987_v6, %v986_v5  ;;  %v949_v15 = vrot.slane %v3592_v53, 5  ;;  %v2898_v23 = vrot.slane %v899_v13, 9 }
  0x5f   : > { %v1328_v16 = vrot.slane %v1327_v8, 4  ;;  %v1338_v19 = vrot.slane %v1337_v9, 4  ;;  %v1342_v21 = vrot.slane %v1340_v10, 5  ;;  %v948_v25 = vrot.slane %v946_v14, 4 }
  0x60   : > { %v1345_v26 = vshrl.u32 %v1278_v12, 16  ;;  %v947_v30 = vsel %vm3671_vm8, %v2898_v23, %v946_v14  ;;  %v1348_v27 = vshll.u32 %v1278_v12, 16  ;;  %v1354_v31 = vshll.u32 %v3724_v22, 16  ;;  %v3148_v12 = vld [vmem:[#allocation2 + $0x24] sm:$0xff] }
  0x61   : > { %v950_v33 = vsel %vm3671_vm8, %v948_v25, %v949_v15  ;;  %v990_v46 = vunpack.c.l.b16 %v947_v30  ;;  %v1333_v53 = vsel %vm3535_vm5, %v1328_v16, %v1332_v60  ;;  %v1343_v34 = vsel %vm3535_vm5, %v1338_v19, %v1342_v21  ;;  %v3754_v15 = vld [vmem:[#allocation2 + $0x38] sm:$0x1]  ;;  %v3135_v23 = vld [vmem:[#allocation2 + $0x24] sm:$0xff] }
  0x62   : > { %v1358_v36 = vshrl.u32 %v3724_v22, 16  ;;  %v991_v37 = vunpack.c.l.b16 %v950_v33  ;;  %v1495_v18 = vunpack.c.l.b16 %v1333_v53  ;;  %v1496_v43 = vunpack.c.l.b16 %v1343_v34  ;;  %v3168_v25 = vld [vmem:[%s4343_s2 + $0x60] sm:$0xff]  ;;  %v3158_v33 = vld [vmem:[%s4343_s2 + $0x50] sm:$0xff]  ;;  %v1284_v53 = vld [vmem:[#allocation2 + $0x3c] sm:$0xf] }
  0x63   : > { %2967 = vmatmul.msk.bf16.vlgmr.msrb.gmra.mxu3 %vm697_vm4, %v3146_v20  ;;  %v1347_v44 = vrot.slane %v1345_v26, 4  ;;  %v1350_v45 = vrot.slane %v1348_v27, 5  ;;  %v1356_v32 = vrot.slane %v1354_v31, 5  ;;  %v1364_v51 = vshll.u32 %v3739_v47, 16  ;;  %1941 = vmatpush.bf16.msra.mxu2 %v3168_v25  ;;  %v3170_v31 = vld [vmem:[%s4343_s2 + $0x70] sm:$0xff] }
  0x64   : > { %v3737_v38 = vpack.c.b16 %v991_v37, %v990_v46  ;;  %v1360_v24 = vrot.slane %v1358_v36, 4  ;;  %v1510_v48 = vpack.c.b16 %v1496_v43, %v1495_v18  ;;  %v1369_v61 = vshrl.u32 %v1281_v52, 16  ;;  %v3172_v46 = vld [vmem:[%s4343_s2 + $0x80] sm:$0xff]  ;;  %2287 = vmatpush.bf16.msra.mxu3 %v3170_v31  ;;  %1778 = vmatpush.bf16.msra.mxu1 %v3158_v33  ;;  %v900_v18 = vld [vmem:[#allocation2 + $0x30] sm:$0xe] }
  0x65   : > { %v1351_v50 = vor.u32 %v1350_v45, %v1347_v44  ;;  %v1366_v60 = vrot.slane %v1364_v51, 5  ;;  %v1372_v62 = vshll.u32 %v1281_v52, 16  ;;  %v1388_v21 = vshll.u32 %v3754_v15, 16  ;;  %v3772_v34 = vld [vmem:[#allocation2 + $0x40] sm:$0xf]  ;;  %2505 = vmatpush.bf16.msra.mxu0 %v3172_v46 }
  0x66   : > { %v1361_v20 = vor.u32 %v1360_v24, %v1356_v32  ;;  %v1371_v8 = vrot.slane %v1369_v61, 4  ;;  %v953_v36 = vrot.slane %v3525_v29, 5  ;;  %v1393_v43 = vshrl.u32 %v1284_v53, 16  ;;  %v3150_v33 = vld [vmem:[#allocation2 + $0x3c] sm:$0xff] }
  0x67   : > { %v1352_v57 = vrot.slane %v1351_v50, 4  ;;  %v1374_v9 = vrot.slane %v1372_v62, 5  ;;  %v1390_v27 = vrot.slane %v1388_v21, 5  ;;  %v1396_v44 = vshll.u32 %v1284_v53, 16  ;;  %v3136_v62 = vld [vmem:[#allocation2 + $0x30] sm:$0xff] }
  0x68   : > { %2987 = vmatmul.msk.bf16.vlgmr.msrb.gmra.mxu0 %vm697_vm4, %v1509_v2  ;;  %2888 = vmatmul.msk.bf16.gmra.mxu1 %vm697_vm4, %v3133_v4  ;;  %v1362_v59 = vrot.slane %v1361_v20, 4  ;;  %v1378_v2 = vshll.u32 %v3745_v56, 16  ;;  %v1382_v4 = vshrl.u32 %v3745_v56, 16  ;;  %v1402_v45 = vshll.u32 %v3772_v34, 16  ;;  %v3149_v20 = vld [vmem:[#allocation2 + $0x30] sm:$0xff] }
  0x69   : > { %v1357_v5 = vsel %vm3535_vm5, %v1352_v57, %v1356_v32  ;;  %v1375_v16 = vor.u32 %v1374_v9, %v1371_v8  ;;  %v1406_v32 = vshrl.u32 %v3772_v34, 16  ;;  %v2899_v29 = vrot.slane %v900_v18, 9 }
  0x6a   : > { %v1367_v6 = vsel %vm3535_vm5, %v1362_v59, %v1366_v60  ;;  %v1380_v10 = vrot.slane %v1378_v2, 5  ;;  %v1497_v13 = vunpack.c.l.b16 %v1357_v5  ;;  %v955_v24 = vrot.slane %v953_v36, 4  ;;  %v3785_v60 = vld [vmem:[#allocation2 + $0x44] sm:$0x1] }
  0x6b   : > { %v1498_v14 = vunpack.c.l.b16 %v1367_v6  ;;  %v1376_v26 = vrot.slane %v1375_v16, 4  ;;  %v1395_v51 = vrot.slane %v1393_v43, 4  ;;  %v1398_v52 = vrot.slane %v1396_v44, 5  ;;  %v1287_v16 = vld [vmem:[#allocation2 + $0x48] sm:$0xf] }
  0x6c   : > { %v1404_v57 = vrot.slane %v1402_v45, 5  ;;  %v1408_v59 = vrot.slane %v1406_v32, 4  ;;  %v954_v61 = vsel %vm3671_vm8, %v2899_v29, %v953_v36  ;;  %v1412_v5 = vshll.u32 %v3785_v60, 16  ;;  %v3817_v44 = vld [vmem:[#allocation2 + $0x50] sm:$0x1] }
  0x6d   : > { %2916 = vmatmul.msk.bf16.gmra.mxu2 %vm697_vm4, %v1001_v11  ;;  %v1384_v11 = vrot.slane %v1382_v4, 4  ;;  %v1381_v37 = vsel %vm3535_vm5, %v1376_v26, %v1380_v10  ;;  %v1399_v2 = vor.u32 %v1398_v52, %v1395_v51  ;;  %v992_v6 = vunpack.c.l.b16 %v954_v61  ;;  %v420_v45 = vld [vmem:[%s3811_s17] sm:$0xf]  ;;  %v421_v32 = vld [vmem:[%s3811_s17 + $0x4] sm:$0xf] }
  0x6e   : > { %v1409_v4 = vor.u32 %v1408_v59, %v1404_v57  ;;  %v1417_v25 = vshrl.u32 %v1287_v16, 16  ;;  %v1420_v26 = vshll.u32 %v1287_v16, 16  ;;  %v963_v31 = vrot.slane %v3606_v7, 5  ;;  %427 = vst.msk [vmem:[#allocation2 + $0x60] sm:$0xf] %vm394_vm0, %v420_v45 }
  0x6f   : > { %v1385_v19 = vor.u32 %v1384_v11, %v1380_v10  ;;  %v1400_v9 = vrot.slane %v1399_v2, 4  ;;  %v1414_v11 = vrot.slane %v1412_v5, 5  ;;  %428 = vst.msk [vmem:[#allocation2 + $0x64] sm:$0xf] %vm394_vm0, %v421_v32  ;;  %v1436_v51 = vshll.u32 %v3817_v44, 16 }
  0x70   : > { %v1410_v10 = vrot.slane %v1409_v4, 4  ;;  %v422_v52 = vld [vmem:[%s3811_s17 + $0x8] sm:$0x1]  ;;  %v3829_v59 = vld [vmem:[#allocation2 + $0x58] sm:$0xf]  ;;  %v967_v2 = vrot.slane %v3541_v49, 5 }
  0x71   : > { %v1386_v30 = vrot.slane %v1385_v19, 4  ;;  %v3798_v19 = vld [vmem:[#allocation2 + $0x4c] sm:$0xf]  ;;  %v1405_v21 = vsel %vm3535_vm5, %v1400_v9, %v1404_v57  ;;  %429 = vst.msk [vmem:[#allocation2 + $0x68] sm:$0x1] %vm397_vm1, %v422_v52  ;;  %v1454_v9 = vshrl.u32 %v3829_v59, 16 }
  0x72   : > { %v1501_v46 = vunpack.c.l.b16 %v1405_v21  ;;  %v1290_v57 = vld [vmem:[#allocation2 + $0x54] sm:$0xf]  ;;  %v902_v4 = vld [vmem:[#allocation2 + $0x48] sm:$0xe] }
  0x73   : > { %2968 = vmatmul.msk.bf16.gmra.mxu3 %vm697_vm4, %v3147_v42  ;;  %v1391_v42 = vsel %vm3535_vm5, %v1386_v30, %v1390_v27  ;;  %v1426_v30 = vshll.u32 %v3798_v19, 16  ;;  %v1430_v27 = vshrl.u32 %v3798_v19, 16  ;;  %v1441_v5 = vshrl.u32 %v1290_v57, 16 }
  0x74   : > { %v1500_v50 = vunpack.c.l.b16 %v1391_v42  ;;  %v1422_v42 = vrot.slane %v1420_v26, 5 }
  0x75   : > { %v1428_v18 = vrot.slane %v1426_v30, 5  ;;  %v1432_v43 = vrot.slane %v1430_v27, 4  ;;  %v1443_v49 = vrot.slane %v1441_v5, 4  ;;  %v3840_v30 = vld [vmem:[#allocation2 + $0x5c] sm:$0x1]  ;;  %v3152_v5 = vld [vmem:[#allocation2 + $0x54] sm:$0xff] }
  0x76   : > { %v1293_v32 = vld [vmem:[#allocation2 + $0x60] sm:$0xf] }
  0x77   : > { %v1465_v52 = vshrl.u32 %v1293_v32, 16 }
  0x78   : > { %2988 = vmatmul.msk.bf16.gmra.mxu0 %vm697_vm4, %v1510_v48  ;;  %2889 = vmatmul.msk.bf16.gmra.mxu1 %vm697_vm4, %v3134_v17  ;;  %v956_v48 = vrot.slane %v3528_v35, 5  ;;  %v1499_v17 = vunpack.c.l.b16 %v1381_v37  ;;  %v1419_v37 = vrot.slane %v1417_v25, 4 }
  0x7a   : > { %v1512_v35 = vpack.c.b16 %v1500_v50, %v1499_v17  ;;  %v1423_v50 = vor.u32 %v1422_v42, %v1419_v37 }
  0x7d   : > { %2917 = vmatmul.msk.bf16.gmra.mxu2 %vm697_vm4, %v1002_v0  ;;  %v1511_v0 = vpack.c.b16 %v1498_v14, %v1497_v13  ;;  %v901_v13 = vld [vmem:[#allocation2 + $0x3c] sm:$0xe]  ;;  %v960_v14 = vrot.slane %v3601_v3, 5 }
  0x7f   : > { %v962_v3 = vrot.slane %v960_v14, 4 }
  0x81   : > { %v964_v7 = vsel %vm3671_vm8, %v962_v3, %v963_v31 }
  0x82   : > { %v995_v17 = vunpack.c.l.b16 %v964_v7 }
  0x83   : > { %2969 = vmatmul.msk.bf16.gmra.mxu3 %vm697_vm4, %v3148_v12 }
  0x88   : > { %2989 = vmatmul.msk.bf16.gmra.mxu0 %vm697_vm4, %v1511_v0  ;;  %2890 = vmatmul.msk.bf16.gmra.mxu1 %vm697_vm4, %v3135_v23  ;;  %v1415_v0 = vsel %vm3535_vm5, %v1410_v10, %v1414_v11  ;;  %v2900_v23 = vrot.slane %v901_v13, 9  ;;  %v969_v13 = vrot.slane %v967_v2, 4 }
  0x89   : > { %v1502_v53 = vunpack.c.l.b16 %v1415_v0  ;;  %v1456_v0 = vrot.slane %v1454_v9, 4 }
  0x8a   : > { %v961_v36 = vsel %vm3671_vm8, %v2900_v23, %v960_v14  ;;  %v970_v14 = vrot.slane %v3544_v55, 5  ;;  %v3151_v23 = vld [vmem:[#allocation2 + $0x48] sm:$0xff]  ;;  %v1460_v55 = vshll.u32 %v3840_v30, 16 }
  0x8b   : > { %v1513_v29 = vpack.c.b16 %v1502_v53, %v1501_v46 }
  0x8c   : > { %v971_v31 = vsel %vm3671_vm8, %v969_v13, %v970_v14  ;;  %v1462_v7 = vrot.slane %v1460_v55, 5  ;;  %v3873_v14 = vld [vmem:[#allocation2 + $0x68] sm:$0x1] }
  0x8d   : > { %2918 = vmatmul.msk.bf16.gmra.mxu2 %vm697_vm4, %v3737_v38  ;;  %v957_v38 = vsel %vm3671_vm8, %v955_v24, %v956_v48  ;;  %v3137_v24 = vld [vmem:[#allocation2 + $0x3c] sm:$0xff]  ;;  %v994_v48 = vunpack.c.l.b16 %v961_v36  ;;  %v3138_v36 = vld [vmem:[#allocation2 + $0x48] sm:$0xff]  ;;  %v997_v42 = vunpack.c.l.b16 %v971_v31 }
  0x8e   : > { %v993_v8 = vunpack.c.l.b16 %v957_v38  ;;  %v1424_v38 = vrot.slane %v1423_v50, 4 }
  0x8f   : > { %v1005_v61 = vpack.c.b16 %v995_v17, %v994_v48 }
  0x90   : > { %v1004_v12 = vpack.c.b16 %v993_v8, %v992_v6  ;;  %v1444_v6 = vshll.u32 %v1290_v57, 16  ;;  %v1450_v8 = vshll.u32 %v3829_v59, 16  ;;  %v1429_v10 = vsel %vm3535_vm5, %v1424_v38, %v1428_v18 }
  0x91   : > { %v1503_v25 = vunpack.c.l.b16 %v1429_v10  ;;  %v1468_v57 = vshll.u32 %v1293_v32, 16 }
  0x92   : > { %v1446_v16 = vrot.slane %v1444_v6, 5  ;;  %v1452_v21 = vrot.slane %v1450_v8, 5  ;;  %v1467_v6 = vrot.slane %v1465_v52, 4 }
  0x93   : > { %2970 = vmatmul.msk.bf16.gmra.mxu3 %vm697_vm4, %v3149_v20  ;;  %v1433_v20 = vor.u32 %v1432_v43, %v1428_v18  ;;  %v1470_v8 = vrot.slane %v1468_v57, 5 }
  0x94   : > { %v1457_v46 = vor.u32 %v1456_v0, %v1452_v21 }
  0x95   : > { %v1471_v0 = vor.u32 %v1470_v8, %v1467_v6 }
  0x96   : > { %v1458_v43 = vrot.slane %v1457_v46, 4  ;;  %v1652_v46 = vrot.slane %v3675_v41, 5 }
  0x98   : > { %2990 = vmatmul.msk.bf16.gmra.mxu0 %vm697_vm4, %v1512_v35  ;;  %2891 = vmatmul.msk.bf16.gmra.mxu1 %vm697_vm4, %v3136_v62  ;;  %v1434_v35 = vrot.slane %v1433_v20, 4  ;;  %v1438_v62 = vrot.slane %v1436_v51, 5  ;;  %v1463_v17 = vsel %vm3535_vm5, %v1458_v43, %v1462_v7  ;;  %v903_v20 = vld [vmem:[#allocation2 + $0x54] sm:$0xe]  ;;  %v1655_v43 = vrot.slane %v3686_v1, 5 }
  0x99   : > { %v1472_v7 = vrot.slane %v1471_v0, 4 }
  0x9a   : > { %v1439_v11 = vsel %vm3535_vm5, %v1434_v35, %v1438_v62  ;;  %v977_v62 = vrot.slane %v3637_v58, 5  ;;  %v1999_v58 = vld [vmem:[#allocation2 + $0x18] sm:$0xf] }
  0x9b   : > { %v1504_v26 = vunpack.c.l.b16 %v1439_v11 }
  0x9d   : > { %2919 = vmatmul.msk.bf16.gmra.mxu2 %vm697_vm4, %v1004_v12  ;;  %v2901_v12 = vrot.slane %v902_v4, 9  ;;  %v1514_v53 = vpack.c.b16 %v1504_v26, %v1503_v25  ;;  %v1506_v4 = vunpack.c.l.b16 %v1463_v17  ;;  %v3878_v25 = vld [vmem:[#allocation2 + $0x1c] sm:$0xf] }
  0x9f   : > { %v968_v3 = vsel %vm3671_vm8, %v2901_v12, %v967_v2 }
  0xa0   : > { %v996_v37 = vunpack.c.l.b16 %v968_v3 }
  0xa2   : > { %v1006_v45 = vpack.c.b16 %v997_v42, %v996_v37  ;;  %v2027_v37 = vshll.u32 %v1999_v58, 16  ;;  %v2033_v42 = vshll.u32 %v3878_v25, 16 }
  0xa3   : > { %2971 = vmatmul.msk.bf16.gmra.mxu3 %vm697_vm4, %v3150_v33  ;;  %v1447_v33 = vor.u32 %v1446_v16, %v1443_v49 }
  0xa4   : > { %v2035_v57 = vrot.slane %v2033_v42, 5  ;;  %v1659_v42 = vrot.slane %v3696_v28, 5 }
  0xa5   : > { %v1448_v18 = vrot.slane %v1447_v33, 4  ;;  %v1484_v33 = vshll.u32 %v3873_v14, 16 }
  0xa7   : > { %v1453_v48 = vsel %vm3535_vm5, %v1448_v18, %v1452_v21  ;;  %v3139_v21 = vld [vmem:[#allocation2 + $0x54] sm:$0xff]  ;;  %v2037_v18 = vshrl.u32 %v3878_v25, 16 }
  0xa8   : > { %2991 = vmatmul.msk.bf16.gmra.mxu0 %vm697_vm4, %v1513_v29  ;;  %2892 = vmatmul.msk.bf16.gmra.mxu1 %vm697_vm4, %v3137_v24  ;;  %v3852_v29 = vld [vmem:[#allocation2 + $0x64] sm:$0xf]  ;;  %v974_v24 = vrot.slane %v3635_v54, 5  ;;  %v2902_v54 = vrot.slane %v903_v20, 9  ;;  %v1505_v2 = vunpack.c.l.b16 %v1453_v48  ;;  %v1654_v48 = vrot.slane %v1652_v46, 4 }
  0xa9   : > { %v1478_v38 = vshrl.u32 %v3852_v29, 16  ;;  %v2029_v20 = vrot.slane %v2027_v37, 5 }
  0xaa   : > { %v976_v35 = vrot.slane %v974_v24, 4  ;;  %v975_v12 = vsel %vm3671_vm8, %v2902_v54, %v974_v24  ;;  %v1515_v16 = vpack.c.b16 %v1506_v4, %v1505_v2  ;;  %v1486_v24 = vrot.slane %v1484_v33, 5  ;;  %v2345_v33 = vld [vmem:[#allocation2 + $0x18] sm:$0xe] }
  0xab   : > { %v1480_v10 = vrot.slane %v1478_v38, 4  ;;  %v998_v3 = vunpack.c.l.b16 %v975_v12  ;;  %v2001_v38 = vld [vmem:[#allocation2 + $0x20] sm:$0x1]  ;;  %v1656_v4 = vsel %vm3671_vm8, %v1654_v48, %v1655_v43 }
  0xac   : > { %v978_v13 = vsel %vm3671_vm8, %v976_v35, %v977_v62  ;;  %v2043_v8 = vshll.u32 %v2001_v38, 16 }
  0xad   : > { %2920 = vmatmul.msk.bf16.gmra.mxu2 %vm697_vm4, %v1005_v61  ;;  %v1474_v61 = vshll.u32 %v3852_v29, 16  ;;  %v999_v31 = vunpack.c.l.b16 %v978_v13 }
  0xaf   : > { %v1476_v9 = vrot.slane %v1474_v61, 5  ;;  %v1007_v32 = vpack.c.b16 %v999_v31, %v998_v3  ;;  %v2039_v61 = vrot.slane %v2037_v18, 4  ;;  %v3913_v18 = vld [vmem:[#allocation2 + $0x28] sm:$0xf] }
  0xb1   : > { %v1477_v1 = vsel %vm3535_vm5, %v1472_v7, %v1476_v9  ;;  %v2040_v6 = vor.u32 %v2039_v61, %v2035_v57  ;;  %v3160_v61 = vld [vmem:[#allocation2 + $0x18] sm:$0xff] }
  0xb2   : > { %v3842_v27 = vpop.f32.mrf.mxu1  ;;  %v1507_v12 = vunpack.c.l.b16 %v1477_v1 }
  0xb3   : > { %2972 = vmatmul.msk.bf16.gmra.mxu3 %vm697_vm4, %v3151_v23  ;;  %v1481_v23 = vor.u32 %v1480_v10, %v1476_v9  ;;  %v3153_v10 = vld [vmem:[#allocation2 + $0x60] sm:$0xff]  ;;  %v2041_v0 = vrot.slane %v2040_v6, 4 }
  0xb8   : > { %2992 = vmatmul.msk.bf16.gmra.mxu0 %vm697_vm4, %v1514_v53  ;;  %2893 = vmatmul.msk.bf16.gmra.mxu1 %vm697_vm4, %v3138_v36  ;;  %v1618_v53 = vld [vmem:[#allocation2 + $0xc] sm:$0xe]  ;;  %v2024_v36 = vshrl.u32 %v1999_v58, 16 }
  0xb9   : > { %v2995_v41 = vrot.slane %v1618_v53, 9  ;;  %v2002_v53 = vld [vmem:[#allocation2 + $0x24] sm:$0xf] }
  0xba   : > { %v3859_v50 = vpop.f32.mrf.mxu1  ;;  %v2026_v17 = vrot.slane %v2024_v36, 4  ;;  %v2051_v48 = vshll.u32 %v2002_v53, 16 }
  0xbb   : > { %v3861_v51 = vpop.f32.mrf.mxu2  ;;  %v1653_v2 = vsel %vm3671_vm8, %v2995_v41, %v1652_v46  ;;  %v2379_v46 = vrot.slane %v3878_v25, 5  ;;  %v3095_v25 = vrot.slane %v2345_v33, 9  ;;  %v2048_v41 = vshrl.u32 %v2002_v53, 16 }
  0xbc   : > { %v1711_v9 = vunpack.c.l.b16 %v1653_v2  ;;  %v1662_v2 = vrot.slane %v3716_v63, 5 }
  0xbd   : > { %2921 = vmatmul.msk.bf16.gmra.mxu2 %vm697_vm4, %v1006_v45  ;;  %v1482_v45 = vrot.slane %v1481_v23, 4  ;;  %v2045_v23 = vrot.slane %v2043_v8, 5  ;;  %v2381_v28 = vrot.slane %v2379_v46, 4  ;;  %v2050_v6 = vrot.slane %v2048_v41, 4 }
  0xbe   : > { %v2053_v8 = vrot.slane %v2051_v48, 5  ;;  %v2005_v48 = vld [vmem:[#allocation2 + $0x30] sm:$0xf] }
  0xbf   : > { %v1487_v35 = vsel %vm3535_vm5, %v1482_v45, %v1486_v24  ;;  %v1619_v45 = vld [vmem:[#allocation2 + $0x18] sm:$0xe]  ;;  %v2046_v24 = vsel %vm3535_vm5, %v2041_v0, %v2045_v23  ;;  %v2004_v0 = vld [vmem:[#allocation2 + $0x2c] sm:$0x1] }
  0xc0   : > { %v1508_v13 = vunpack.c.l.b16 %v1487_v35  ;;  %v2996_v1 = vrot.slane %v1619_v45, 9  ;;  %v1661_v35 = vrot.slane %v1659_v42, 4  ;;  %v2054_v53 = vor.u32 %v2053_v8, %v2050_v6  ;;  %v1620_v6 = vld [vmem:[#allocation2 + $0x24] sm:$0xe] }
  0xc1   : > { %v3875_v49 = vpop.f32.mrf.mxu3  ;;  %v2075_v8 = vshll.u32 %v2005_v48, 16 }
  0xc2   : > { %v3867_v11 = vpop.f32.mrf.mxu0  ;;  %v1516_v3 = vpack.c.b16 %v1508_v13, %v1507_v12  ;;  %v1660_v63 = vsel %vm3671_vm8, %v2996_v1, %v1659_v42  ;;  %v2386_v1 = vrot.slane %v3913_v18, 5 }
  0xc3   : > { %2973 = vmatmul.msk.bf16.gmra.mxu3 %vm697_vm4, %v3152_v5  ;;  %v3884_v55 = vpop.f32.mrf.mxu2  ;;  %v2030_v5 = vor.u32 %v2029_v20, %v2026_v17  ;;  %v2057_v20 = vshll.u32 %v3913_v18, 16 }
  0xc5   : > { %v3880_v26 = vpop.f32.mrf.mxu1 }
  0xc8   : > { %2993 = vmatmul.msk.bf16.gmra.mxu0 %vm697_vm4, %v1515_v16  ;;  %2894 = vmatmul.msk.bf16.gmra.mxu1 %vm697_vm4, %v3139_v21  ;;  %v1712_v16 = vunpack.c.l.b16 %v1656_v4  ;;  %v2031_v21 = vrot.slane %v2030_v5, 4  ;;  %v2221_v5 = vunpack.c.l.b16 %v2046_v24 }
  0xc9   : > { %v3893_v54 = vpop.f32.mrf.mxu3 }
  0xca   : > { %v3891_v52 = vpop.f32.mrf.mxu0  ;;  %v1727_v31 = vpack.c.b16 %v1712_v16, %v1711_v9  ;;  %v2036_v7 = vsel %vm3535_vm5, %v2031_v21, %v2035_v57  ;;  %v2061_v57 = vshrl.u32 %v3913_v18, 16  ;;  %v1663_v21 = vsel %vm3671_vm8, %v1661_v35, %v1662_v2 }
  0xcb   : > { %v2220_v4 = vunpack.c.l.b16 %v2036_v7  ;;  %v1713_v7 = vunpack.c.l.b16 %v1660_v63  ;;  %v1714_v45 = vunpack.c.l.b16 %v1663_v21 }
  0xcc   : > { %v2063_v13 = vrot.slane %v2061_v57, 4 }
  0xcd   : > { %2922 = vmatmul.msk.bf16.gmra.mxu2 %vm697_vm4, %v1007_v32  ;;  %v3900_v62 = vpop.f32.mrf.mxu1 }
  0xd0   : > { %v3906_v58 = vpop.f32.mrf.mxu2 }
  0xd3   : > { %2974 = vmatmul.msk.bf16.gmra.mxu3 %vm697_vm4, %v3153_v10  ;;  %v2380_v10 = vsel %vm3671_vm8, %v3095_v25, %v2379_v46  ;;  %v2067_v25 = vshll.u32 %v2004_v0, 16 }
  0xd4   : > { %v2438_v33 = vunpack.c.l.b16 %v2380_v10 }
  0xd5   : > { %v3910_v36 = vpop.f32.mrf.mxu0  ;;  %v856_v37 = vpop.f32.mrf.mxu1  ;;  %v2069_v57 = vrot.slane %v2067_v25, 5 }
  0xd6   : > { %v857_v43 = vadd.f32 %v856_v37, %v3867_v11  ;;  %v3918_v32 = vpop.f32.mrf.mxu3  ;;  %v2382_v11 = vrot.slane %v2001_v38, 5  ;;  %v2059_v38 = vrot.slane %v2057_v20, 5 }
  0xd8   : > { %2994 = vmatmul.msk.bf16.gmra.mxu0 %vm697_vm4, %v1516_v3  ;;  %v3923_v17 = vpop.f32.mrf.mxu2  ;;  %3015 = vmatmul.msk.bf16.vlgmr.msra.gmra.mxu1 %vm697_vm4, %v1727_v31  ;;  %v2383_v12 = vsel %vm3671_vm8, %v2381_v28, %v2382_v11  ;;  %v2236_v31 = vpack.c.b16 %v2221_v5, %v2220_v4  ;;  %v2064_v24 = vor.u32 %v2063_v13, %v2059_v38  ;;  %v2055_v28 = vrot.slane %v2054_v53, 4  ;;  %v3943_v11 = vld [vmem:[#allocation2 + $0x34] sm:$0xf]  ;;  %v3161_v53 = vld [vmem:[#allocation2 + $0x24] sm:$0xff] }
  0xd9   : > { %v2439_v46 = vunpack.c.l.b16 %v2383_v12  ;;  %v1666_v4 = vrot.slane %v3724_v22, 5  ;;  %v2072_v5 = vshrl.u32 %v2005_v48, 16  ;;  %v2081_v10 = vshll.u32 %v3943_v11, 16 }
  0xda   : > { %v2065_v20 = vrot.slane %v2064_v24, 4  ;;  %v2085_v12 = vshrl.u32 %v3943_v11, 16  ;;  %v1669_v13 = vrot.slane %v3739_v47, 5  ;;  %v2060_v63 = vsel %vm3535_vm5, %v2055_v28, %v2059_v38 }
  0xdb   : > { %v2454_v42 = vpack.c.b16 %v2439_v46, %v2438_v33  ;;  %v2389_v33 = vrot.slane %v2004_v0, 5  ;;  %v1668_v47 = vrot.slane %v1666_v4, 4  ;;  %v2083_v24 = vrot.slane %v2081_v10, 5 }
  0xdc   : > { %v2087_v38 = vrot.slane %v2085_v12, 4  ;;  %v2222_v48 = vunpack.c.l.b16 %v2060_v63 }
  0xdd   : > { %v3933_v9 = vpop.f32.mrf.mxu0  ;;  %3067 = vmatmul.msk.bf16.vlgmr.msra.gmra.mxu2 %vm697_vm4, %v3160_v61  ;;  %v858_v16 = vpop.f32.mrf.mxu1  ;;  %v2346_v61 = vld [vmem:[#allocation2 + $0x24] sm:$0xe] }
  0xde   : > { %v859_v23 = vadd.f32 %v858_v16, %v3891_v52  ;;  %v3941_v3 = vpop.f32.mrf.mxu3  ;;  %v1728_v52 = vpack.c.b16 %v1714_v45, %v1713_v7  ;;  %v3096_v18 = vrot.slane %v2346_v61, 9  ;;  %v2074_v7 = vrot.slane %v2072_v5, 4 }
  0xdf   : > { %v2077_v45 = vrot.slane %v2075_v8, 5 }
  0xe0   : > { %v1053_v37 = vpop.f32.mrf.mxu2  ;;  %v2387_v28 = vsel %vm3671_vm8, %v3096_v18, %v2386_v1 }
  0xe1   : > { %v1093_v41 = vadd.f32 %v1053_v37, %v857_v43  ;;  %v2997_v37 = vrot.slane %v1620_v6, 9  ;;  %v2440_v8 = vunpack.c.l.b16 %v2387_v28 }
  0xe3   : > { %3087 = vmatmul.msk.bf16.vlgmr.msra.gmra.mxu3 %vm697_vm4, %v2236_v31  ;;  %v2388_v31 = vrot.slane %v2386_v1, 4 }
  0xe5   : > { %v1562_v35 = vpop.f32.mrf.mxu0  ;;  %v861_v2 = vpop.f32.mrf.mxu1  ;;  %v2390_v0 = vsel %vm3671_vm8, %v2388_v31, %v2389_v33  ;;  %v2393_v31 = vrot.slane %v3943_v11, 5  ;;  %v2008_v33 = vld [vmem:[#allocation2 + $0x3c] sm:$0xf] }
  0xe6   : > { %v862_v43 = vadd.f32 %v861_v2, %v3910_v36  ;;  %v1216_v16 = vpop.f32.mrf.mxu3  ;;  %v2070_v36 = vsel %vm3535_vm5, %v2065_v20, %v2069_v57  ;;  %v1667_v20 = vsel %vm3671_vm8, %v2997_v37, %v1666_v4  ;;  %v1670_v57 = vsel %vm3671_vm8, %v1668_v47, %v1669_v13 }
  0xe7   : > { %v1256_v21 = vadd.f32 %v1216_v16, %v1093_v41  ;;  %v2223_v41 = vunpack.c.l.b16 %v2070_v36  ;;  %v2088_v2 = vor.u32 %v2087_v38, %v2083_v24  ;;  %v2441_v12 = vunpack.c.l.b16 %v2390_v0 }
  0xe8   : > { %3115 = vmatmul.msk.bf16.vlgmr.msra.gmra.mxu0 %vm697_vm4, %v2454_v42  ;;  %v1055_v22 = vpop.f32.mrf.mxu2  ;;  %3016 = vmatmul.msk.bf16.gmra.mxu1 %vm697_vm4, %v1728_v52  ;;  %v3960_v42 = vld [vmem:[#allocation2 + $0x38] sm:$0x1]  ;;  %v1715_v63 = vunpack.c.l.b16 %v1667_v20  ;;  %v1716_v18 = vunpack.c.l.b16 %v1670_v57  ;;  %v2096_v28 = vshrl.u32 %v2008_v33, 16  ;;  %v2099_v0 = vshll.u32 %v2008_v33, 16 }
  0xe9   : > { %v1094_v46 = vadd.f32 %v1055_v22, %v859_v23  ;;  %v3958_v25 = vadd.f32 %v1562_v35, %v1256_v21  ;;  %v2078_v35 = vor.u32 %v2077_v45, %v2074_v7  ;;  %v2091_v5 = vshll.u32 %v3960_v42, 16  ;;  %v2347_v7 = vld [vmem:[#allocation2 + $0x30] sm:$0xe] }
  0xea   : > { %v2237_v6 = vpack.c.b16 %v2223_v41, %v2222_v48  ;;  %v2089_v4 = vrot.slane %v2088_v2, 4  ;;  %v2455_v13 = vpack.c.b16 %v2441_v12, %v2440_v8  ;;  %v1673_v45 = vrot.slane %v3745_v56, 5  ;;  %v1621_v41 = vld [vmem:[#allocation2 + $0x30] sm:$0xe] }
  0xeb   : > { %v2079_v22 = vrot.slane %v2078_v35, 4  ;;  %v2093_v36 = vrot.slane %v2091_v5, 5  ;;  %v1676_v20 = vrot.slane %v3754_v15, 5  ;;  %v2395_v57 = vrot.slane %v2393_v31, 4  ;;  %v3162_v2 = vld [vmem:[#allocation2 + $0x30] sm:$0xff] }
  0xec   : > { %v2396_v5 = vrot.slane %v3960_v42, 5  ;;  %v2101_v15 = vrot.slane %v2099_v0, 5 }
  0xed   : > { %v1564_v52 = vpop.f32.mrf.mxu0  ;;  %3068 = vmatmul.msk.bf16.gmra.mxu2 %vm697_vm4, %v3161_v53  ;;  %v863_v23 = vpop.f32.mrf.mxu1  ;;  %v3975_v53 = vld [vmem:[#allocation2 + $0x40] sm:$0xf]  ;;  %v2084_v38 = vsel %vm3535_vm5, %v2079_v22, %v2083_v24  ;;  %v2094_v48 = vsel %vm3535_vm5, %v2089_v4, %v2093_v36  ;;  %v3097_v24 = vrot.slane %v2347_v7, 9  ;;  %v3997_v22 = vld [vmem:[#allocation2 + $0x44] sm:$0x1] }
  0xee   : > { %v864_v61 = vadd.f32 %v863_v23, %v3933_v9  ;;  %v1218_v1 = vpop.f32.mrf.mxu3  ;;  %v1729_v9 = vpack.c.b16 %v1716_v18, %v1715_v63  ;;  %v2109_v23 = vshrl.u32 %v3975_v53, 16  ;;  %v2224_v8 = vunpack.c.l.b16 %v2084_v38 }
  0xef   : > { %v1257_v10 = vadd.f32 %v1218_v1, %v1094_v46  ;;  %v2998_v1 = vrot.slane %v1621_v41, 9  ;;  %v2397_v42 = vsel %vm3671_vm8, %v2395_v57, %v2396_v5  ;;  %v2115_v38 = vshll.u32 %v3997_v22, 16 }
  0xf0   : > { %v1058_v16 = vpop.f32.mrf.mxu2  ;;  %v2111_v18 = vrot.slane %v2109_v23, 4  ;;  %v2443_v41 = vunpack.c.l.b16 %v2397_v42  ;;  %v2400_v57 = vrot.slane %v3975_v53, 5 }
  0xf1   : > { %v1095_v21 = vadd.f32 %v1058_v16, %v862_v43  ;;  %v3977_v37 = vadd.f32 %v1564_v52, %v1257_v10  ;;  %v2105_v52 = vshll.u32 %v3975_v53, 16  ;;  %v2225_v10 = vunpack.c.l.b16 %v2094_v48 }
  0xf2   : > { %v2098_v16 = vrot.slane %v2096_v28, 4  ;;  %v1674_v36 = vsel %vm3671_vm8, %v2998_v1, %v1673_v45  ;;  %v2348_v1 = vld [vmem:[#allocation2 + $0x3c] sm:$0xe] }
  0xf3   : > { %3088 = vmatmul.msk.bf16.gmra.mxu3 %vm697_vm4, %v2237_v6  ;;  %v1675_v6 = vrot.slane %v1673_v45, 4  ;;  %v3993_v63 = vrot.slane %v2105_v52, 5  ;;  %v1717_v28 = vunpack.c.l.b16 %v1674_v36  ;;  %v2011_v45 = vld [vmem:[#allocation2 + $0x48] sm:$0xf]  ;;  %v2402_v36 = vrot.slane %v2400_v57, 4 }
  0xf5   : > { %v1567_v46 = vpop.f32.mrf.mxu0  ;;  %v866_v47 = vpop.f32.mrf.mxu1  ;;  %v2112_v7 = vor.u32 %v2111_v18, %v3993_v63 }
  0xf6   : > { %v867_v43 = vadd.f32 %v866_v47, %v3842_v27  ;;  %v1221_v11 = vpop.f32.mrf.mxu3  ;;  %v2102_v47 = vor.u32 %v2101_v15, %v2098_v16  ;;  %v2123_v16 = vshll.u32 %v2011_v45, 16 }
  0xf7   : > { %v1258_v56 = vadd.f32 %v1221_v11, %v1095_v21  ;;  %v2394_v21 = vsel %vm3671_vm8, %v3097_v24, %v2393_v31 }
  0xf8   : > { %3116 = vmatmul.msk.bf16.gmra.mxu0 %vm697_vm4, %v2455_v13  ;;  %v1060_v27 = vpop.f32.mrf.mxu2  ;;  %3017 = vmatmul.msk.bf16.gmra.mxu1 %vm697_vm4, %v1729_v9  ;;  %v1677_v13 = vsel %vm3671_vm8, %v1675_v6, %v1676_v20  ;;  %v2238_v9 = vpack.c.b16 %v2225_v10, %v2224_v8  ;;  %v2442_v31 = vunpack.c.l.b16 %v2394_v21  ;;  %v2103_v23 = vrot.slane %v2102_v47, 4  ;;  %v1622_v10 = vld [vmem:[#allocation2 + $0x3c] sm:$0xe] }
  0xf9   : > { %v1096_v35 = vadd.f32 %v1060_v27, %v864_v61  ;;  %v3991_v12 = vadd.f32 %v1567_v46, %v1258_v56  ;;  %v1718_v0 = vunpack.c.l.b16 %v1677_v13  ;;  %v2113_v56 = vrot.slane %v2112_v7, 4  ;;  %v4009_v27 = vld [vmem:[#allocation2 + $0x4c] sm:$0xf] }
  0xfa   : > { %v2117_v20 = vrot.slane %v2115_v38, 5  ;;  %v1680_v6 = vrot.slane %v3772_v34, 5  ;;  %v2129_v15 = vshll.u32 %v4009_v27, 16  ;;  %v2133_v18 = vshrl.u32 %v4009_v27, 16 }
  0xfb   : > { %v1730_v24 = vpack.c.b16 %v1718_v0, %v1717_v28  ;;  %v1683_v21 = vrot.slane %v3785_v60, 5  ;;  %v2108_v53 = vsel %vm3535_vm5, %v2103_v23, %v3993_v63  ;;  %v2403_v13 = vrot.slane %v3997_v22, 5  ;;  %v3163_v60 = vld [vmem:[#allocation2 + $0x3c] sm:$0xff]  ;;  %v4030_v28 = vld [vmem:[#allocation2 + $0x50] sm:$0x1] }
  0xfc   : > { %v2125_v7 = vrot.slane %v2123_v16, 5  ;;  %v2131_v63 = vrot.slane %v2129_v15, 5  ;;  %v2135_v38 = vrot.slane %v2133_v18, 4 }
  0xfd   : > { %v1569_v61 = vpop.f32.mrf.mxu0  ;;  %3069 = vmatmul.msk.bf16.gmra.mxu2 %vm697_vm4, %v3162_v2  ;;  %v868_v4 = vpop.f32.mrf.mxu1  ;;  %v2404_v22 = vsel %vm3671_vm8, %v2402_v36, %v2403_v13 }
  0xfe   : > { %v869_v33 = vadd.f32 %v868_v4, %v3859_v50  ;;  %v1223_v46 = vpop.f32.mrf.mxu3  ;;  %v2456_v50 = vpack.c.b16 %v2443_v41, %v2442_v31  ;;  %v3098_v4 = vrot.slane %v2348_v1, 9  ;;  %v1682_v31 = vrot.slane %v1680_v6, 4 }
  0xff   : > { %v1259_v48 = vadd.f32 %v1223_v46, %v1096_v35  ;;  %v2999_v46 = vrot.slane %v1622_v10, 9  ;;  %v2226_v41 = vunpack.c.l.b16 %v2108_v53 }
 0x100   : > { %v1063_v11 = vpop.f32.mrf.mxu2  ;;  %v2401_v0 = vsel %vm3671_vm8, %v3098_v4, %v2400_v57  ;;  %v1684_v23 = vsel %vm3671_vm8, %v1682_v31, %v1683_v21  ;;  %v4045_v4 = vld [vmem:[#allocation2 + $0x58] sm:$0xf] }
 0x101   : > { %v1097_v52 = vadd.f32 %v1063_v11, %v867_v43  ;;  %v4013_v2 = vadd.f32 %v1569_v61, %v1259_v48  ;;  %v2120_v43 = vshrl.u32 %v2011_v45, 16  ;;  %v2118_v61 = vsel %vm3535_vm5, %v2113_v56, %v2117_v20 }
 0x102   : > { %v2227_v11 = vunpack.c.l.b16 %v2118_v61  ;;  %v1681_v45 = vsel %vm3671_vm8, %v2999_v46, %v1680_v6  ;;  %v1720_v15 = vunpack.c.l.b16 %v1684_v23  ;;  %v2349_v61 = vld [vmem:[#allocation2 + $0x48] sm:$0xe] }
 0x103   : > { %3089 = vmatmul.msk.bf16.gmra.mxu3 %vm697_vm4, %v2238_v9  ;;  %v2122_v47 = vrot.slane %v2120_v43, 4  ;;  %v2445_v43 = vunpack.c.l.b16 %v2404_v22  ;;  %v1719_v16 = vunpack.c.l.b16 %v1681_v45  ;;  %v3099_v31 = vrot.slane %v2349_v61, 9 }
 0x104   : > { %v2410_v45 = vrot.slane %v4030_v28, 5 }
 0x105   : > { %v1572_v35 = vpop.f32.mrf.mxu0  ;;  %v871_v5 = vpop.f32.mrf.mxu1  ;;  %v2126_v20 = vor.u32 %v2125_v7, %v2122_v47  ;;  %v1731_v21 = vpack.c.b16 %v1720_v15, %v1719_v16  ;;  %v1623_v47 = vld [vmem:[#allocation2 + $0x48] sm:$0xe] }
 0x106   : > { %v872_v8 = vadd.f32 %v871_v5, %v3880_v26  ;;  %v1226_v42 = vpop.f32.mrf.mxu3  ;;  %v2444_v5 = vunpack.c.l.b16 %v2401_v0  ;;  %v1690_v0 = vrot.slane %v3817_v44, 5  ;;  %v3000_v23 = vrot.slane %v1623_v47, 9 }
 0x107   : > { %v1260_v34 = vadd.f32 %v1226_v42, %v1097_v52  ;;  %v2127_v42 = vrot.slane %v2126_v20, 4 }
 0x108   : > { %3117 = vmatmul.msk.bf16.gmra.mxu0 %vm697_vm4, %v2456_v50  ;;  %v1065_v26 = vpop.f32.mrf.mxu2  ;;  %3018 = vmatmul.msk.bf16.gmra.mxu1 %vm697_vm4, %v1730_v24  ;;  %v2136_v50 = vor.u32 %v2135_v38, %v2131_v63  ;;  %v2139_v24 = vshll.u32 %v4030_v28, 16 }
 0x109   : > { %v1098_v9 = vadd.f32 %v1065_v26, %v869_v33  ;;  %v4028_v48 = vadd.f32 %v1572_v35, %v1260_v34  ;;  %v2239_v35 = vpack.c.b16 %v2227_v11, %v2226_v41  ;;  %v2407_v34 = vrot.slane %v4009_v27, 5  ;;  %v2014_v26 = vld [vmem:[#allocation2 + $0x54] sm:$0xf] }
 0x10a   : > { %v2137_v6 = vrot.slane %v2136_v50, 4  ;;  %v2141_v53 = vrot.slane %v2139_v24, 5  ;;  %v2144_v38 = vshrl.u32 %v2014_v26, 16  ;;  %v2147_v27 = vshll.u32 %v2014_v26, 16 }
 0x10b   : > { %v2153_v41 = vshll.u32 %v4045_v4, 16  ;;  %v2157_v11 = vshrl.u32 %v4045_v4, 16 }
 0x10c   : > { %v2142_v46 = vsel %vm3535_vm5, %v2137_v6, %v2141_v53  ;;  %v2146_v44 = vrot.slane %v2144_v38, 4  ;;  %v2017_v38 = vld [vmem:[#allocation2 + $0x60] sm:$0xf] }
 0x10d   : > { %v1574_v52 = vpop.f32.mrf.mxu0  ;;  %3070 = vmatmul.msk.bf16.gmra.mxu2 %vm697_vm4, %v3163_v60  ;;  %v873_v33 = vpop.f32.mrf.mxu1  ;;  %v1687_v60 = vrot.slane %v3798_v19, 5  ;;  %v2229_v24 = vunpack.c.l.b16 %v2142_v46 }
 0x10e   : > { %v874_v56 = vadd.f32 %v873_v33, %v3900_v62  ;;  %v1228_v57 = vpop.f32.mrf.mxu3  ;;  %v2457_v62 = vpack.c.b16 %v2445_v43, %v2444_v5  ;;  %v3164_v33 = vld [vmem:[#allocation2 + $0x48] sm:$0xff]  ;;  %v2149_v5 = vrot.slane %v2147_v27, 5  ;;  %v2159_v43 = vrot.slane %v2157_v11, 4 }
 0x10f   : > { %v1261_v1 = vadd.f32 %v1228_v57, %v1098_v9  ;;  %v1689_v20 = vrot.slane %v1687_v60, 4  ;;  %v2408_v57 = vsel %vm3671_vm8, %v3099_v31, %v2407_v34  ;;  %v1688_v15 = vsel %vm3671_vm8, %v3000_v23, %v1687_v60  ;;  %v423_v31 = vld [vmem:[%s3811_s17 + $0xc] sm:$0xf] }
 0x110   : > { %v1068_v10 = vpop.f32.mrf.mxu2  ;;  %v2446_v6 = vunpack.c.l.b16 %v2408_v57  ;;  %v1721_v46 = vunpack.c.l.b16 %v1688_v15  ;;  %430 = vst.msk [vmem:[#allocation2 + $0x6c] sm:$0xf] %vm394_vm0, %v423_v31  ;;  %v1694_v23 = vrot.slane %v3829_v59, 5 }
 0x111   : > { %v1099_v18 = vadd.f32 %v1068_v10, %v872_v8  ;;  %v4047_v36 = vadd.f32 %v1574_v52, %v1261_v1  ;;  %v2132_v8 = vsel %vm3535_vm5, %v2127_v42, %v2131_v63  ;;  %v2409_v63 = vrot.slane %v2407_v34, 4  ;;  %v4066_v10 = vld [vmem:[#allocation2 + $0x5c] sm:$0x1] }
 0x112   : > { %v2228_v50 = vunpack.c.l.b16 %v2132_v8  ;;  %v4064_v1 = vrot.slane %v2153_v41, 5  ;;  %v2163_v34 = vshll.u32 %v4066_v10, 16  ;;  %v4082_v41 = vld [vmem:[#allocation2 + $0x64] sm:$0xf] }
 0x113   : > { %3090 = vmatmul.msk.bf16.gmra.mxu3 %vm697_vm4, %v2239_v35  ;;  %v2411_v28 = vsel %vm3671_vm8, %v2409_v63, %v2410_v45  ;;  %v2350_v45 = vld [vmem:[#allocation2 + $0x54] sm:$0xe]  ;;  %v2177_v57 = vshll.u32 %v4082_v41, 16 }
 0x114   : > { %v2240_v42 = vpack.c.b16 %v2229_v24, %v2228_v50  ;;  %v2165_v27 = vrot.slane %v2163_v34, 5  ;;  %v1624_v50 = vld [vmem:[#allocation2 + $0x54] sm:$0xe]  ;;  %v2171_v24 = vshll.u32 %v2017_v38, 16 }
 0x115   : > { %v1577_v13 = vpop.f32.mrf.mxu0  ;;  %v876_v9 = vpop.f32.mrf.mxu1 }
 0x116   : > { %v1231_v7 = vpop.f32.mrf.mxu3  ;;  %v877_v61 = vadd.f32 %v876_v9, %v3861_v51 }
 0x117   : > { %v1262_v19 = vadd.f32 %v1231_v7, %v1099_v18  ;;  %v1691_v18 = vsel %vm3671_vm8, %v1689_v20, %v1690_v0  ;;  %v424_v7 = vld [vmem:[%s3811_s17 + $0x10] sm:$0xf]  ;;  %v2168_v20 = vshrl.u32 %v2017_v38, 16 }
 0x118   : > { %3118 = vmatmul.msk.bf16.gmra.mxu0 %vm697_vm4, %v2457_v62  ;;  %v1070_v52 = vpop.f32.mrf.mxu2  ;;  %3019 = vmatmul.msk.bf16.gmra.mxu1 %vm697_vm4, %v1731_v21  ;;  %v2150_v62 = vor.u32 %v2149_v5, %v2146_v44  ;;  %v2160_v21 = vor.u32 %v2159_v43, %v4064_v1  ;;  %v1722_v60 = vunpack.c.l.b16 %v1691_v18  ;;  %431 = vst.msk [vmem:[#allocation2 + $0x70] sm:$0xf] %vm394_vm0, %v424_v7  ;;  %v2181_v44 = vshrl.u32 %v4082_v41, 16 }
 0x119   : > { %v1100_v22 = vadd.f32 %v1070_v52, %v874_v56  ;;  %v4062_v35 = vadd.f32 %v1577_v13, %v1262_v19  ;;  %v2447_v13 = vunpack.c.l.b16 %v2411_v28  ;;  %v2414_v19 = vrot.slane %v4045_v4, 5  ;;  %v425_v52 = vld [vmem:[%s3811_s17 + $0x14] sm:$0x1]  ;;  %s2685_s17 = sshll.u32 %s2682_s29, 4  ;;  %s2686_s17 = int_to_ptr.hbm [resolvable:$true] %s2685_s17 }
 0x11a   : > { %v2151_v51 = vrot.slane %v2150_v62, 4  ;;  %v2161_v9 = vrot.slane %v2160_v21, 4  ;;  %v1732_v0 = vpack.c.b16 %v1722_v60, %v1721_v46  ;;  %432 = vst.msk [vmem:[#allocation2 + $0x74] sm:$0x1] %vm397_vm1, %v425_v52  ;;  %v1697_v5 = vrot.slane %v3840_v30, 5  ;;  %s3273_s12 = sshra.s32 %s2686_s17, 4  ;;  %s3274_s12 = int_to_ptr.hbm [resolvable:$true] %s3273_s12 }
 0x11b   : > { %v2458_v11 = vpack.c.b16 %v2447_v13, %v2446_v6  ;;  %v3100_v18 = vrot.slane %v2350_v45, 9  ;;  %v2417_v30 = vrot.slane %v4066_v10, 5  ;;  %v2173_v62 = vrot.slane %v2171_v24, 5  ;;  %s3275_s13 = scalar_lea.hbm %s3274_s12, 128  ;;  %p3280_p6 = scmp.lt.s32.totalorder %s3274_s12, %s4347_s6 }
 0x11c   : > { %v2166_v59 = vsel %vm3535_vm5, %v2161_v9, %v2165_v27  ;;  %v2183_v21 = vrot.slane %v2181_v44, 4  ;;  %p3276_p2 = scmp.ne.s32.totalorder %s3274_s12, %s3275_s13  ;;  %p3281_p7 = scmp.lt.s32.totalorder %s3279_s18, %s3275_s13 }
 0x11d   : > { %v1579_v56 = vpop.f32.mrf.mxu0  ;;  %3071 = vmatmul.msk.bf16.gmra.mxu2 %vm697_vm4, %v3164_v33  ;;  %v878_v16 = vpop.f32.mrf.mxu1  ;;  %v2231_v13 = vunpack.c.l.b16 %v2166_v59  ;;  %v2415_v46 = vsel %vm3671_vm8, %v3100_v18, %v2414_v19  ;;  %v2020_v59 = vld [vmem:[#allocation2 + $0x6c] sm:$0xf] }
 0x11e   : > { %v1233_v53 = vpop.f32.mrf.mxu3  ;;  %v879_v43 = vadd.f32 %v878_v16, %v3884_v55  ;;  %v3001_v55 = vrot.slane %v1624_v50, 9  ;;  %v1696_v16 = vrot.slane %v1694_v23, 4  ;;  %p3277_p4 = pnand %p3276_p2, %p3443_p3  ;;  %p3282_p9 = por %p3281_p7, %p3280_p6 }
 0x11f   : > { %v1263_v26 = vadd.f32 %v1233_v53, %v1100_v22  ;;  %v3165_v53 = vld [vmem:[#allocation2 + $0x54] sm:$0xff]  ;;  %v4123_v18 = vld [vmem:[#allocation2 + $0x70] sm:$0xf] }
 0x120   : > { %v1073_v8 = vpop.f32.mrf.mxu2  ;;  %v1698_v7 = vsel %vm3671_vm8, %v1696_v16, %v1697_v5  ;;  %v2421_v5 = vrot.slane %v4082_v41, 5  ;;  %p3278_p5 = pneg %p3277_p4 }
 0x121   : > { %v1101_v47 = vadd.f32 %v1073_v8, %v877_v61  ;;  %v4087_v63 = vadd.f32 %v1579_v56, %v1263_v26  ;;  %v2156_v56 = vsel %vm3535_vm5, %v2151_v51, %v4064_v1  ;;  %v2170_v61 = vrot.slane %v2168_v20, 4  ;;  %v4105_v8 = vld [vmem:[#allocation2 + $0x68] sm:$0x1] }
 0x122   : > { %v2179_v1 = vrot.slane %v2177_v57, 5  ;;  %v2230_v26 = vunpack.c.l.b16 %v2156_v56  ;;  %v2187_v9 = vshll.u32 %v4105_v8, 16  ;;  %v1724_v50 = vunpack.c.l.b16 %v1698_v7  ;;  %p3283_p10 = pnand %p3282_p9, %p3278_p5 }
 0x123   : > { %3091 = vmatmul.msk.bf16.gmra.mxu3 %vm697_vm4, %v2240_v42  ;;  %v2416_v42 = vrot.slane %v2414_v19, 4  ;;  %v2174_v38 = vor.u32 %v2173_v62, %v2170_v61  ;;  %v2448_v19 = vunpack.c.l.b16 %v2415_v46  ;;  %v2423_v16 = vrot.slane %v2421_v5, 4 }
 0x124   : > { %v2184_v51 = vor.u32 %v2183_v21, %v2179_v1  ;;  %v2189_v44 = vrot.slane %v2187_v9, 5  ;;  %v2192_v61 = vshrl.u32 %v2020_v59, 16  ;;  %v2195_v62 = vshll.u32 %v2020_v59, 16 }
 0x125   : > { %v1582_v22 = vpop.f32.mrf.mxu0  ;;  %v881_v33 = vpop.f32.mrf.mxu1  ;;  %v2418_v10 = vsel %vm3671_vm8, %v2416_v42, %v2417_v30  ;;  %v2175_v57 = vrot.slane %v2174_v38, 4  ;;  %v1704_v46 = vrot.slane %v3873_v14, 5 }
 0x126   : > { %v1236_v4 = vpop.f32.mrf.mxu3  ;;  %v2194_v9 = vrot.slane %v2192_v61, 4  ;;  %v2352_v61 = vld [vmem:[#allocation2 + $0x6c] sm:$0xe] }
 0x127   : > { %v1264_v28 = vadd.f32 %v1236_v4, %v1101_v47  ;;  %v1695_v47 = vsel %vm3671_vm8, %v3001_v55, %v1694_v23  ;;  %v2185_v23 = vrot.slane %v2184_v51, 4  ;;  %v2351_v4 = vld [vmem:[#allocation2 + $0x60] sm:$0xe]  ;;  %v2180_v42 = vsel %vm3535_vm5, %v2175_v57, %v2179_v1 }
 0x128   : > { %3119 = vmatmul.msk.bf16.gmra.mxu0 %vm697_vm4, %v2458_v11  ;;  %v1075_v15 = vpop.f32.mrf.mxu2  ;;  %3020 = vmatmul.msk.bf16.gmra.mxu1 %vm697_vm4, %v1732_v0  ;;  %v882_v11 = vadd.f32 %v881_v33, %v3906_v58  ;;  %v2241_v0 = vpack.c.b16 %v2231_v13, %v2230_v26  ;;  %v1723_v20 = vunpack.c.l.b16 %v1695_v47  ;;  %v3101_v41 = vrot.slane %v2351_v4, 9 }
 0x129   : > { %v1102_v6 = vadd.f32 %v1075_v15, %v879_v43  ;;  %v4103_v34 = vadd.f32 %v1582_v22, %v1264_v28  ;;  %v2449_v22 = vunpack.c.l.b16 %v2418_v10  ;;  %v1701_v15 = vrot.slane %v3852_v29, 5  ;;  %v3166_v10 = vld [vmem:[#allocation2 + $0x60] sm:$0xff] }
 0x12a   : > { %v1733_v56 = vpack.c.b16 %v1724_v50, %v1723_v20  ;;  %v2190_v30 = vsel %vm3535_vm5, %v2185_v23, %v2189_v44  ;;  %v2424_v26 = vrot.slane %v4105_v8, 5  ;;  %v2201_v1 = vshll.u32 %v4123_v18, 16 }
 0x12b   : > { %v2459_v43 = vpack.c.b16 %v2449_v22, %v2448_v19  ;;  %v2205_v13 = vshrl.u32 %v4123_v18, 16  ;;  %v2232_v47 = vunpack.c.l.b16 %v2180_v42  ;;  %v2233_v7 = vunpack.c.l.b16 %v2190_v30 }
 0x12c   : > { %v2422_v51 = vsel %vm3671_vm8, %v3101_v41, %v2421_v5  ;;  %v2425_v8 = vsel %vm3671_vm8, %v2423_v16, %v2424_v26 }
 0x12d   : > { %v1584_v60 = vpop.f32.mrf.mxu0  ;;  %3072 = vmatmul.msk.bf16.gmra.mxu2 %vm697_vm4, %v3165_v53  ;;  %v883_v31 = vpop.f32.mrf.mxu1  ;;  %v2207_v19 = vrot.slane %v2205_v13, 4  ;;  %v2242_v20 = vpack.c.b16 %v2233_v7, %v2232_v47  ;;  %v2450_v50 = vunpack.c.l.b16 %v2422_v51  ;;  %v2451_v23 = vunpack.c.l.b16 %v2425_v8 }
 0x12e   : > { %v1238_v27 = vpop.f32.mrf.mxu3  ;;  %v884_v55 = vadd.f32 %v883_v31, %v3923_v17  ;;  %v1703_v31 = vrot.slane %v1701_v15, 4 }
 0x12f   : > { %v1265_v52 = vadd.f32 %v1238_v27, %v1102_v6  ;;  %v1625_v6 = vld [vmem:[#allocation2 + $0x60] sm:$0xe]  ;;  %v2197_v27 = vrot.slane %v2195_v62, 5 }
 0x130   : > { %v1078_v45 = vpop.f32.mrf.mxu2  ;;  %v3002_v17 = vrot.slane %v1625_v6, 9 }
 0x131   : > { %v1103_v24 = vadd.f32 %v1078_v45, %v882_v11  ;;  %v4120_v58 = vadd.f32 %v1584_v60, %v1265_v52  ;;  %v2022_v11 = vld [vmem:[#allocation2 + $0x74] sm:$0x1]  ;;  %v1705_v45 = vsel %vm3671_vm8, %v1703_v31, %v1704_v46  ;;  %v2198_v44 = vor.u32 %v2197_v27, %v2194_v9 }
 0x132   : > { %v1702_v22 = vsel %vm3671_vm8, %v3002_v17, %v1701_v15  ;;  %v2211_v4 = vshll.u32 %v2022_v11, 16  ;;  %v1726_v59 = vunpack.c.l.b16 %v1705_v45  ;;  %v2460_v15 = vpack.c.b16 %v2451_v23, %v2450_v50 }
 0x133   : > { %3092 = vmatmul.msk.bf16.gmra.mxu3 %vm697_vm4, %v2241_v0  ;;  %v2203_v0 = vrot.slane %v2201_v1, 5  ;;  %v2199_v6 = vrot.slane %v2198_v44, 4  ;;  %v2431_v17 = vrot.slane %v2022_v11, 5 }
 0x135   : > { %v1587_v33 = vpop.f32.mrf.mxu0  ;;  %v886_v28 = vpop.f32.mrf.mxu1  ;;  %v2204_v1 = vsel %vm3535_vm5, %v2199_v6, %v2203_v0 }
 0x136   : > { %v1241_v53 = vpop.f32.mrf.mxu3  ;;  %v887_v57 = vadd.f32 %v886_v28, %v3875_v49  ;;  %v2428_v28 = vrot.slane %v4123_v18, 5 }
 0x137   : > { %v1266_v21 = vadd.f32 %v1241_v53, %v1103_v24 }
 0x138   : > { %3120 = vmatmul.msk.bf16.gmra.mxu0 %vm697_vm4, %v2459_v43  ;;  %v1080_v29 = vpop.f32.mrf.mxu2  ;;  %3021 = vmatmul.msk.bf16.gmra.mxu1 %vm697_vm4, %v1733_v56  ;;  %v1725_v56 = vunpack.c.l.b16 %v1702_v22  ;;  %v2430_v18 = vrot.slane %v2428_v28, 4 }
 0x139   : > { %v1104_v60 = vadd.f32 %v1080_v29, %v884_v55  ;;  %v4136_v38 = vadd.f32 %v1587_v33, %v1266_v21  ;;  %v2208_v33 = vor.u32 %v2207_v19, %v2203_v0  ;;  %v2213_v55 = vrot.slane %v2211_v4, 5 }
 0x13a   : > { %v1734_v41 = vpack.c.b16 %v1726_v59, %v1725_v56  ;;  %v2432_v9 = vsel %vm3671_vm8, %v2430_v18, %v2431_v17 }
 0x13b   : > { %v2209_v53 = vrot.slane %v2208_v33, 4 }
 0x13d   : > { %v1589_v14 = vpop.f32.mrf.mxu0  ;;  %3073 = vmatmul.msk.bf16.gmra.mxu2 %vm697_vm4, %v3166_v10  ;;  %v888_v52 = vpop.f32.mrf.mxu1  ;;  %v2214_v13 = vsel %vm3535_vm5, %v2209_v53, %v2213_v55  ;;  %v3102_v10 = vrot.slane %v2352_v61, 9 }
 0x13e   : > { %v1243_v24 = vpop.f32.mrf.mxu3  ;;  %v889_v21 = vadd.f32 %v888_v52, %v3893_v54  ;;  %v2234_v54 = vunpack.c.l.b16 %v2204_v1  ;;  %v2235_v47 = vunpack.c.l.b16 %v2214_v13 }
 0x13f   : > { %v1267_v5 = vadd.f32 %v1243_v24, %v1104_v60  ;;  %v3167_v60 = vld [vmem:[#allocation2 + $0x6c] sm:$0xff]  ;;  %v2429_v51 = vsel %vm3671_vm8, %v3102_v10, %v2428_v28  ;;  %v4193_v28 = vld [vmem:[%s4345_s4] ss:$0 sm:$0xff] }
 0x140   : > { %v1083_v43 = vpop.f32.mrf.mxu2  ;;  %v2243_v19 = vpack.c.b16 %v2235_v47, %v2234_v54  ;;  %v2452_v11 = vunpack.c.l.b16 %v2429_v51  ;;  %v2604_v51 = vld [vmem:[%s4188_s9 + $0x8] sm:$0xff] }
 0x141   : > { %v1105_v42 = vadd.f32 %v1083_v43, %v887_v57  ;;  %v4148_v30 = vadd.f32 %v1589_v14, %v1267_v5  ;;  %v2453_v14 = vunpack.c.l.b16 %v2432_v9 }
 0x143   : > { %3093 = vmatmul.msk.bf16.gmra.mxu3 %vm697_vm4, %v2242_v20  ;;  %v2461_v20 = vpack.c.b16 %v2453_v14, %v2452_v11 }
 0x145   : > { %v1592_v16 = vpop.f32.mrf.mxu0  ;;  %v891_v49 = vpop.f32.mrf.mxu1 }
 0x146   : > { %v1246_v62 = vpop.f32.mrf.mxu3  ;;  %v892_v8 = vadd.f32 %v891_v49, %v3918_v32 }
 0x147   : > { %v1268_v29 = vadd.f32 %v1246_v62, %v1105_v42 }
 0x148   : > { %3121 = vmatmul.msk.bf16.gmra.mxu0 %vm697_vm4, %v2460_v15  ;;  %v1085_v26 = vpop.f32.mrf.mxu2  ;;  %3022 = vmatmul.msk.bf16.gmra.mxu1 %vm697_vm4, %v1734_v41 }
 0x149   : > { %v1106_v46 = vadd.f32 %v1085_v26, %v889_v21  ;;  %v4159_v31 = vadd.f32 %v1592_v16, %v1268_v29  ;;  %v4183_v16 = vld [vmem:[%s4344_s3] ss:$0 sm:$0xff] }
 0x14a   : > { %v2603_v29 = vld [vmem:[%s4188_s9] sm:$0xff] }
 0x14d   : > { %v1594_v7 = vpop.f32.mrf.mxu0  ;;  %3074 = vmatmul.msk.bf16.gmra.mxu2 %vm697_vm4, %v3167_v60  ;;  %v893_v39 = vpop.f32.mrf.mxu1 }
 0x14e   : > { %v1248_v27 = vpop.f32.mrf.mxu3  ;;  %v894_v57 = vadd.f32 %v893_v39, %v3941_v3 }
 0x14f   : > { %v1269_v0 = vadd.f32 %v1248_v27, %v1106_v46 }
 0x150   : > { %v1088_v52 = vpop.f32.mrf.mxu2 }
 0x151   : > { %v1107_v22 = vadd.f32 %v1088_v52, %v892_v8  ;;  %v4167_v45 = vadd.f32 %v1594_v7, %v1269_v0 }
 0x153   : > { %3094 = vmatmul.msk.bf16.gmra.mxu3 %vm697_vm4, %v2243_v19 }
 0x155   : > { %v1597_v50 = vpop.f32.mrf.mxu0  ;;  %v1780_v40 = vpop.f32.mrf.mxu1 }
 0x156   : > { %v1251_v24 = vpop.f32.mrf.mxu3  ;;  %v1820_v42 = vadd.f32 %v1780_v40, %v3958_v25 }
 0x157   : > { %v1270_v32 = vadd.f32 %v1251_v24, %v1107_v22 }
 0x158   : > { %3122 = vmatmul.msk.bf16.gmra.mxu0 %vm697_vm4, %v2461_v20  ;;  %v1090_v23 = vpop.f32.mrf.mxu2 }
 0x159   : > { %v1108_v44 = vadd.f32 %v1090_v23, %v894_v57  ;;  %v4173_v4 = vadd.f32 %v1597_v50, %v1270_v32  ;;  %v2605_v50 = vld [vmem:[%s4188_s9 + $0x10] sm:$0xff] }
 0x15d   : > { %v1599_v5 = vpop.f32.mrf.mxu0  ;;  %v1782_v43 = vpop.f32.mrf.mxu1 }
 0x15e   : > { %v1253_v56 = vpop.f32.mrf.mxu3  ;;  %v1821_v61 = vadd.f32 %v1782_v43, %v3977_v37 }
 0x15f   : > { %v1271_v59 = vadd.f32 %v1253_v56, %v1108_v44 }
 0x160   : > { %v1943_v33 = vpop.f32.mrf.mxu2 }
 0x161   : > { %v4178_v3 = vadd.f32 %v1599_v5, %v1271_v59  ;;  %v1983_v15 = vadd.f32 %v1943_v33, %v1820_v42  ;;  %v2606_v42 = vld [vmem:[%s4188_s9 + $0x18] sm:$0xff] }
 0x165   : > { %v2507_v41 = vpop.f32.mrf.mxu0  ;;  %v1785_v6 = vpop.f32.mrf.mxu1 }
 0x166   : > { %v2289_v53 = vpop.f32.mrf.mxu3  ;;  %v1822_v37 = vadd.f32 %v1785_v6, %v3991_v12 }
 0x167   : > { %v2329_v55 = vadd.f32 %v2289_v53, %v1983_v15 }
 0x168   : > { %v1945_v49 = vpop.f32.mrf.mxu2 }
 0x169   : > { %v2547_v25 = vadd.f32 %v2507_v41, %v2329_v55  ;;  %v1984_v21 = vadd.f32 %v1945_v49, %v1821_v61 }
 0x16b   : > { %v2567_v62 = vmul.f32 %v4183_v16, %v2547_v25 }
 0x16d   : > { %v2509_v26 = vpop.f32.mrf.mxu0  ;;  %v1787_v1 = vpop.f32.mrf.mxu1  ;;  %v2587_v13 = vadd.f32 %v4193_v28, %v2567_v62 }
 0x16e   : > { %v2291_v46 = vpop.f32.mrf.mxu3  ;;  %v1823_v52 = vadd.f32 %v1787_v1, %v4013_v2 }
 0x16f   : > { %v2619_v60 = vadd.f32 %v2603_v29, %v2587_v13  ;;  %v2330_v10 = vadd.f32 %v2291_v46, %v1984_v21 }
 0x170   : > { %v1948_v18 = vpop.f32.mrf.mxu2 }
 0x171   : > { %v2635_v17 = vmax.f32 %v2619_v60, 0.0  ;;  %v2548_v54 = vadd.f32 %v2509_v26, %v2330_v10  ;;  %v1985_v7 = vadd.f32 %v1948_v18, %v1822_v37  ;;  %v2607_v26 = vld [vmem:[%s4188_s9 + $0x20] sm:$0xff] }
 0x173   : > { %2651 = vst.msk [vmem:[%s4203_s19] sm:$0xff] %vm697_vm4, %v2635_v17  ;;  %v2568_v47 = vmul.f32 %v4183_v16, %v2548_v54 }
 0x175   : > { %v2512_v9 = vpop.f32.mrf.mxu0  ;;  %v1790_v39 = vpop.f32.mrf.mxu1  ;;  %v2588_v27 = vadd.f32 %v4193_v28, %v2568_v47 }
 0x176   : > { %v2294_v8 = vpop.f32.mrf.mxu3  ;;  %v1824_v2 = vadd.f32 %v1790_v39, %v4028_v48 }
 0x177   : > { %v2620_v0 = vadd.f32 %v2604_v51, %v2588_v27  ;;  %v2331_v19 = vadd.f32 %v2294_v8, %v1985_v7  ;;  %v2608_v51 = vld [vmem:[%s4188_s9 + $0x28] sm:$0xff] }
 0x178   : > { %v1950_v11 = vpop.f32.mrf.mxu2 }
 0x179   : > { %v2636_v12 = vmax.f32 %v2620_v0, 0.0  ;;  %v2549_v14 = vadd.f32 %v2512_v9, %v2331_v19  ;;  %v1986_v20 = vadd.f32 %v1950_v11, %v1823_v52 }
 0x17b   : > { %2652 = vst.msk [vmem:[%s4203_s19 + $0x8] sm:$0xff] %vm697_vm4, %v2636_v12  ;;  %v2569_v22 = vmul.f32 %v4183_v16, %v2549_v14 }
 0x17d   : > { %v2514_v40 = vpop.f32.mrf.mxu0  ;;  %v1792_v24 = vpop.f32.mrf.mxu1  ;;  %v2589_v57 = vadd.f32 %v4193_v28, %v2569_v22 }
 0x17e   : > { %v2296_v32 = vpop.f32.mrf.mxu3  ;;  %v1825_v48 = vadd.f32 %v1792_v24, %v4047_v36 }
 0x17f   : > { %v2621_v23 = vadd.f32 %v2605_v50, %v2589_v57  ;;  %v2332_v44 = vadd.f32 %v2296_v32, %v1986_v20  ;;  %v2609_v20 = vld [vmem:[%s4188_s9 + $0x30] sm:$0xff] }
 0x180   : > { %v1953_v5 = vpop.f32.mrf.mxu2 }
 0x181   : > { %v2637_v43 = vmax.f32 %v2621_v23, 0.0  ;;  %v2550_v56 = vadd.f32 %v2514_v40, %v2332_v44  ;;  %v1987_v33 = vadd.f32 %v1953_v5, %v1824_v2 }
 0x183   : > { %2653 = vst.msk [vmem:[%s4203_s19 + $0x10] sm:$0xff] %vm697_vm4, %v2637_v43  ;;  %v2570_v59 = vmul.f32 %v4183_v16, %v2550_v56 }
 0x185   : > { %v2517_v15 = vpop.f32.mrf.mxu0  ;;  %v1795_v41 = vpop.f32.mrf.mxu1  ;;  %v2590_v6 = vadd.f32 %v4193_v28, %v2570_v59  ;;  %v2610_v59 = vld [vmem:[%s4188_s9 + $0x38] sm:$0xff] }
 0x186   : > { %v2299_v53 = vpop.f32.mrf.mxu3  ;;  %v1826_v36 = vadd.f32 %v1795_v41, %v4062_v35 }
 0x187   : > { %v2622_v55 = vadd.f32 %v2606_v42, %v2590_v6  ;;  %v2333_v49 = vadd.f32 %v2299_v53, %v1987_v33 }
 0x188   : > { %v1955_v25 = vpop.f32.mrf.mxu2 }
 0x189   : > { %v2638_v61 = vmax.f32 %v2622_v55, 0.0  ;;  %v2551_v62 = vadd.f32 %v2517_v15, %v2333_v49  ;;  %v1988_v29 = vadd.f32 %v1955_v25, %v1825_v48  ;;  %v2611_v48 = vld [vmem:[%s4188_s9 + $0x40] sm:$0xff] }
 0x18b   : > { %2654 = vst.msk [vmem:[%s4203_s19 + $0x18] sm:$0xff] %vm697_vm4, %v2638_v61  ;;  %v2571_v21 = vmul.f32 %v4183_v16, %v2551_v62 }
 0x18d   : > { %v2519_v1 = vpop.f32.mrf.mxu0  ;;  %v1797_v13 = vpop.f32.mrf.mxu1  ;;  %v2591_v46 = vadd.f32 %v4193_v28, %v2571_v21 }
 0x18e   : > { %v2301_v60 = vpop.f32.mrf.mxu3  ;;  %v1827_v35 = vadd.f32 %v1797_v13, %v4087_v63 }
 0x18f   : > { %v2623_v10 = vadd.f32 %v2607_v26, %v2591_v46  ;;  %v2334_v18 = vadd.f32 %v2301_v60, %v1988_v29 }
 0x190   : > { %v1958_v17 = vpop.f32.mrf.mxu2 }
 0x191   : > { %v2639_v54 = vmax.f32 %v2623_v10, 0.0  ;;  %v2552_v37 = vadd.f32 %v2519_v1, %v2334_v18  ;;  %v1989_v7 = vadd.f32 %v1958_v17, %v1826_v36 }
 0x193   : > { %2655 = vst.msk [vmem:[%s4203_s19 + $0x20] sm:$0xff] %vm697_vm4, %v2639_v54  ;;  %v2572_v47 = vmul.f32 %v4183_v16, %v2552_v37  ;;  %v2612_v37 = vld [vmem:[%s4188_s9 + $0x48] sm:$0xff] }
 0x195   : > { %v2522_v9 = vpop.f32.mrf.mxu0  ;;  %v1800_v39 = vpop.f32.mrf.mxu1  ;;  %v2592_v27 = vadd.f32 %v4193_v28, %v2572_v47 }
 0x196   : > { %v2304_v8 = vpop.f32.mrf.mxu3  ;;  %v1828_v63 = vadd.f32 %v1800_v39, %v4103_v34 }
 0x197   : > { %v2624_v0 = vadd.f32 %v2608_v51, %v2592_v27  ;;  %v2335_v19 = vadd.f32 %v2304_v8, %v1989_v7 }
 0x198   : > { %v1960_v11 = vpop.f32.mrf.mxu2 }
 0x199   : > { %v2640_v12 = vmax.f32 %v2624_v0, 0.0  ;;  %v2553_v14 = vadd.f32 %v2522_v9, %v2335_v19  ;;  %v1990_v22 = vadd.f32 %v1960_v11, %v1827_v35 }
 0x19b   : > { %2656 = vst.msk [vmem:[%s4203_s19 + $0x28] sm:$0xff] %vm697_vm4, %v2640_v12  ;;  %v2573_v52 = vmul.f32 %v4183_v16, %v2553_v14  ;;  %v2613_v12 = vld [vmem:[%s4188_s9 + $0x50] sm:$0xff] }
 0x19d   : > { %v2524_v50 = vpop.f32.mrf.mxu0  ;;  %v1802_v40 = vpop.f32.mrf.mxu1  ;;  %v2593_v24 = vadd.f32 %v4193_v28, %v2573_v52 }
 0x19e   : > { %v2306_v57 = vpop.f32.mrf.mxu3  ;;  %v1829_v34 = vadd.f32 %v1802_v40, %v4120_v58 }
 0x19f   : > { %v2625_v32 = vadd.f32 %v2609_v20, %v2593_v24  ;;  %v2336_v23 = vadd.f32 %v2306_v57, %v1990_v22 }
 0x1a0   : > { %v1963_v44 = vpop.f32.mrf.mxu2 }
 0x1a1   : > { %v2641_v5 = vmax.f32 %v2625_v32, 0.0  ;;  %v2554_v43 = vadd.f32 %v2524_v50, %v2336_v23  ;;  %v1991_v2 = vadd.f32 %v1963_v44, %v1828_v63  ;;  %v2614_v44 = vld [vmem:[%s4188_s9 + $0x58] sm:$0xff] }
 0x1a3   : > { %2657 = vst.msk [vmem:[%s4203_s19 + $0x30] sm:$0xff] %vm697_vm4, %v2641_v5  ;;  %v2574_v56 = vmul.f32 %v4183_v16, %v2554_v43 }
 0x1a5   : > { %v2527_v33 = vpop.f32.mrf.mxu0  ;;  %v1805_v42 = vpop.f32.mrf.mxu1  ;;  %v2594_v15 = vadd.f32 %v4193_v28, %v2574_v56 }
 0x1a6   : > { %v2309_v41 = vpop.f32.mrf.mxu3  ;;  %v1830_v58 = vadd.f32 %v1805_v42, %v4136_v38 }
 0x1a7   : > { %v2626_v6 = vadd.f32 %v2610_v59, %v2594_v15  ;;  %v2337_v53 = vadd.f32 %v2309_v41, %v1991_v2 }
 0x1a8   : > { %v1965_v55 = vpop.f32.mrf.mxu2 }
 0x1a9   : > { %v2642_v49 = vmax.f32 %v2626_v6, 0.0  ;;  %v2555_v25 = vadd.f32 %v2527_v33, %v2337_v53  ;;  %v1992_v62 = vadd.f32 %v1965_v55, %v1829_v34  ;;  %v2615_v53 = vld [vmem:[%s4188_s9 + $0x60] sm:$0xff] }
 0x1ab   : > { %2658 = vst.msk [vmem:[%s4203_s19 + $0x38] sm:$0xff] %vm697_vm4, %v2642_v49  ;;  %v2575_v61 = vmul.f32 %v4183_v16, %v2555_v25 }
 0x1ad   : > { %v2529_v21 = vpop.f32.mrf.mxu0  ;;  %v2595_v29 = vadd.f32 %v4193_v28, %v2575_v61  ;;  %v1807_v26 = vpop.f32.mrf.mxu1 }
 0x1ae   : > { %v2311_v1 = vpop.f32.mrf.mxu3  ;;  %v1831_v38 = vadd.f32 %v1807_v26, %v4148_v30 }
 0x1af   : > { %v2627_v13 = vadd.f32 %v2611_v48, %v2595_v29  ;;  %v2338_v46 = vadd.f32 %v2311_v1, %v1992_v62  ;;  %v2616_v1 = vld [vmem:[%s4188_s9 + $0x68] sm:$0xff] }
 0x1b0   : > { %v1968_v60 = vpop.f32.mrf.mxu2 }
 0x1b1   : > { %v2643_v10 = vmax.f32 %v2627_v13, 0.0  ;;  %v2556_v18 = vadd.f32 %v2529_v21, %v2338_v46  ;;  %v1993_v54 = vadd.f32 %v1968_v60, %v1830_v58 }
 0x1b3   : > { %2659 = vst.msk [vmem:[%s4203_s19 + $0x40] sm:$0xff] %vm697_vm4, %v2643_v10  ;;  %v2576_v17 = vmul.f32 %v4183_v16, %v2556_v18 }
 0x1b5   : > { %v2532_v36 = vpop.f32.mrf.mxu0  ;;  %v2596_v47 = vadd.f32 %v4193_v28, %v2576_v17  ;;  %v1810_v27 = vpop.f32.mrf.mxu1 }
 0x1b6   : > { %v2314_v7 = vpop.f32.mrf.mxu3  ;;  %v1832_v57 = vadd.f32 %v1810_v27, %v4159_v31 }
 0x1b7   : > { %v2628_v51 = vadd.f32 %v2612_v37, %v2596_v47  ;;  %v2339_v9 = vadd.f32 %v2314_v7, %v1993_v54  ;;  %v2617_v7 = vld [vmem:[%s4188_s9 + $0x70] sm:$0xff] }
 0x1b8   : > { %v1970_v39 = vpop.f32.mrf.mxu2 }
 0x1b9   : > { %v2644_v8 = vmax.f32 %v2628_v51, 0.0  ;;  %v2557_v0 = vadd.f32 %v2532_v36, %v2339_v9  ;;  %v1994_v11 = vadd.f32 %v1970_v39, %v1831_v38 }
 0x1bb   : > { %2660 = vst.msk [vmem:[%s4203_s19 + $0x48] sm:$0xff] %vm697_vm4, %v2644_v8  ;;  %v2577_v19 = vmul.f32 %v4183_v16, %v2557_v0 }
 0x1bd   : > { %v2534_v14 = vpop.f32.mrf.mxu0  ;;  %v2597_v35 = vadd.f32 %v4193_v28, %v2577_v19  ;;  %v1812_v30 = vpop.f32.mrf.mxu1  ;;  %v2618_v19 = vld [vmem:[%s4188_s9 + $0x78] sm:$0xff] }
 0x1be   : > { %v2316_v52 = vpop.f32.mrf.mxu3  ;;  %v1833_v31 = vadd.f32 %v1812_v30, %v4167_v45 }
 0x1bf   : > { %v2629_v22 = vadd.f32 %v2613_v12, %v2597_v35  ;;  %v2340_v20 = vadd.f32 %v2316_v52, %v1994_v11 }
 0x1c0   : > { %v1973_v50 = vpop.f32.mrf.mxu2 }
 0x1c1   : > { %v2645_v40 = vmax.f32 %v2629_v22, 0.0  ;;  %v2558_v24 = vadd.f32 %v2534_v14, %v2340_v20  ;;  %v1995_v23 = vadd.f32 %v1973_v50, %v1832_v57 }
 0x1c3   : > { %2661 = vst.msk [vmem:[%s4203_s19 + $0x50] sm:$0xff] %vm697_vm4, %v2645_v40  ;;  %v2578_v32 = vmul.f32 %v4183_v16, %v2558_v24 }
 0x1c5   : > { %v2537_v5 = vpop.f32.mrf.mxu0  ;;  %v2598_v43 = vadd.f32 %v4193_v28, %v2578_v32  ;;  %v1815_v6 = vpop.f32.mrf.mxu1 }
 0x1c6   : > { %v2319_v63 = vpop.f32.mrf.mxu3  ;;  %v1834_v45 = vadd.f32 %v1815_v6, %v4173_v4 }
 0x1c7   : > { %v2630_v56 = vadd.f32 %v2614_v44, %v2598_v43  ;;  %v2341_v2 = vadd.f32 %v2319_v63, %v1995_v23 }
 0x1c8   : > { %v1975_v59 = vpop.f32.mrf.mxu2 }
 0x1c9   : > { %v2646_v33 = vmax.f32 %v2630_v56, 0.0  ;;  %v2559_v42 = vadd.f32 %v2537_v5, %v2341_v2  ;;  %v1996_v41 = vadd.f32 %v1975_v59, %v1833_v31 }
 0x1cb   : > { %2662 = vst.msk [vmem:[%s4203_s19 + $0x58] sm:$0xff] %vm697_vm4, %v2646_v33  ;;  %v2579_v15 = vmul.f32 %v4183_v16, %v2559_v42 }
 0x1cd   : > { %v2539_v55 = vpop.f32.mrf.mxu0  ;;  %v2599_v49 = vadd.f32 %v4193_v28, %v2579_v15  ;;  %v1817_v46 = vpop.f32.mrf.mxu1 }
 0x1ce   : > { %v2321_v25 = vpop.f32.mrf.mxu3  ;;  %v1835_v4 = vadd.f32 %v1817_v46, %v4178_v3 }
 0x1cf   : > { %v2631_v34 = vadd.f32 %v2615_v53, %v2599_v49  ;;  %v2342_v61 = vadd.f32 %v2321_v25, %v1996_v41 }
 0x1d0   : > { %v1978_v62 = vpop.f32.mrf.mxu2 }
 0x1d1   : > { %v2647_v48 = vmax.f32 %v2631_v34, 0.0  ;;  %v2560_v21 = vadd.f32 %v2539_v55, %v2342_v61  ;;  %v1997_v26 = vadd.f32 %v1978_v62, %v1834_v45 }
 0x1d3   : > { %2663 = vst.msk [vmem:[%s4203_s19 + $0x60] sm:$0xff] %vm697_vm4, %v2647_v48  ;;  %v2580_v29 = vmul.f32 %v4183_v16, %v2560_v21 }
 0x1d5   : > { %v2600_v13 = vadd.f32 %v4193_v28, %v2580_v29  ;;  %v2542_v60 = vpop.f32.mrf.mxu0 }
 0x1d6   : > { %v2324_v10 = vpop.f32.mrf.mxu3 }
 0x1d7   : > { %v2632_v18 = vadd.f32 %v2616_v1, %v2600_v13  ;;  %v2343_v58 = vadd.f32 %v2324_v10, %v1997_v26 }
 0x1d8   : > { %v1980_v17 = vpop.f32.mrf.mxu2 }
 0x1d9   : > { %v2648_v54 = vmax.f32 %v2632_v18, 0.0  ;;  %v2561_v37 = vadd.f32 %v2542_v60, %v2343_v58  ;;  %v1998_v47 = vadd.f32 %v1980_v17, %v1835_v4 }
 0x1db   : > { %2664 = vst.msk [vmem:[%s4203_s19 + $0x68] sm:$0xff] %vm697_vm4, %v2648_v54  ;;  %v2581_v36 = vmul.f32 %v4183_v16, %v2561_v37 }
 0x1dd   : > { %v2601_v51 = vadd.f32 %v4193_v28, %v2581_v36  ;;  %v2544_v8 = vpop.f32.mrf.mxu0 }
 0x1de   : > { %v2326_v9 = vpop.f32.mrf.mxu3 }
 0x1df   : > { %v2633_v39 = vadd.f32 %v2617_v7, %v2601_v51  ;;  %v2344_v27 = vadd.f32 %v2326_v9, %v1998_v47 }
 0x1e1   : > { %v2649_v3 = vmax.f32 %v2633_v39, 0.0  ;;  %v2562_v0 = vadd.f32 %v2544_v8, %v2344_v27 }
 0x1e3   : > { %2665 = vst.msk [vmem:[%s4203_s19 + $0x70] sm:$0xff] %vm697_vm4, %v2649_v3  ;;  %v2582_v38 = vmul.f32 %v4183_v16, %v2562_v0 }
 0x1e5   : > { %v2602_v11 = vadd.f32 %v4193_v28, %v2582_v38 }
 0x1e7   : > { %v2634_v12 = vadd.f32 %v2618_v19, %v2602_v11 }
 0x1e9   : > { %v2650_v14 = vmax.f32 %v2634_v12, 0.0 }
 0x1eb   : > { %2666 = vst.msk [vmem:[%s4203_s19 + $0x78] sm:$0xff] %vm697_vm4, %v2650_v14 }
 0x1ec   : > { %3286 = shalt.err (!%p3283_p10)
}
 0x1ed   : > { %s3355_s20 = smov 128   ;;  %s3356_s19 = smov 8  }
 0x1ee   : > { %3184 = dma.vmem_to_hbm [thread:$0]  (%p3443_p3), %s2684_s16, 2048, %s2686_s17, %s2668_s30, %s3355_s20, %s3355_s20, %s3356_s19  }
 0x1ef PF: > { %p3190_p11 = scmp.ge.s32.totalorder %s3353_s28, 2  ;;  %s2700_s29 = sand.u32 1, %s3325_s21  }
 0x1f0   : > { %s2701_s9 = scalar_lea.sflag [#allocation4], %s2700_s29 }
 0x1f1   : > { %p3187_p12 = pnand %p3190_p11, %p3452_p8 }
 0x1f3   : > { %p3188_p13 = pneg %p3187_p12 }
 0x1f5   : > { %3320 = dma.done.wait (%p3188_p13), %s2701_s9, 2048  }
 0x1f6   : > { %3322 = vsyncadd (%p3188_p13), %s2701_s9, 4294965248  ;;  %s19_s28 = sadd.s32 1, %s3353_s28   ;;  %s4354_s21 = smov %s3329_s22 }
 0x1f7   : > { %p16_p0 = scmp.ge.s32.totalorder %s19_s28, 6   ;;  %s4355_s22 = smov %s3333_s23 }
 0x1f8   : > { %s4356_s23 = smov %s3461_s15  ;;  %s4357_s24 = smov %s3345_s26 }
 0x1f9   : > { %s4358_s25 = smov %s3349_s27  ;;  %s4359_s26 = smov %s4362_s7 }
 0x1fa   : > { %s4360_s27 = smov %s4366_s8  ;;  %18 = sbr.rel (!%p16_p0) target bundleno = 5 (0x5), region = 96 }
 0x1ff   :  { %2707 = vsyncpa [#allocation4], 1 }
 0x200   :  { %2709 = vsyncpa [#allocation4 + $0x1], 1 }

// kernel: bottleneck_forward_pallas.4
= control target key start
LH: loop header
LB: loop body
LE: loop exit
PB: predicated region body
PF: predicated region fallthrough
CT: control target
= control target key end

     0   :  { %s6491_s0 = inlined_call_operand.vmem [shape: bf16[2,16,16,128], index: 0, kind: input, shape index: {}]   ;;  %s6492_s1 = inlined_call_operand.vmem [shape: bf16[2,3,8,3,8,256], index: 1, kind: input, shape index: {}, may-alias: {1,2,3,4}]   ;;  %s6493_s2 = inlined_call_operand.vmem [shape: bf16[2,3,8,3,8,256], index: 2, kind: input, shape index: {}, may-alias: {1,2,3,4}]   ;;  %s6494_s3 = inlined_call_operand.vmem [shape: bf16[2,3,8,3,8,256], index: 3, kind: input, shape index: {}, may-alias: {1,2,3,4}]   ;;  %s6495_s4 = inlined_call_operand.vmem [shape: bf16[2,3,8,3,8,256], index: 4, kind: input, shape index: {}, may-alias: {1,2,3,4}]   ;;  %s6496_s5 = inlined_call_operand.vmem [shape: bf16[8,64,128], index: 5, kind: input, shape index: {}]   ;;  %s6497_s6 = inlined_call_operand.vmem [shape: f32[4,1,256], index: 6, kind: input, shape index: {}]   ;;  %s6498_s7 = inlined_call_operand.vmem [shape: bf16[256,32], index: 7, kind: input, shape index: {}]   ;;  %s6499_s8 = inlined_call_operand.vmem [shape: bf16[128,32], index: 8, kind: input, shape index: {}]   ;;  %s6500_s9 = inlined_call_operand.vmem [shape: f32[1,32], index: 9, kind: input, shape index: {}]   ;;  %s6501_s10 = inlined_call_operand.vmem [shape: bf16[2,16,16,32], index: 10, kind: output, shape index: {}]  }
   0x1   :  { %6572 = sst [smem:[#allocation54_spill]] %s6494_s3 }
   0x2   :  { %6573 = sst [smem:[#allocation55_spill]] %s6495_s4 }
   0x3   :  { %6574 = sst [smem:[#allocation56_spill]] %s6496_s5 }
   0x4   :  { %6575 = sst [smem:[#allocation57_spill]] %s6497_s6 }
   0x5   :  { %6576 = sst [smem:[#allocation58_spill]] %s6498_s7 }
   0x6   :  { %6577 = sst [smem:[#allocation59_spill]] %s6499_s8 }
   0x7   :  { %6578 = sst [smem:[#allocation60_spill]] %s6500_s9 }
   0x8   :  { %6579 = sst [smem:[#allocation61_spill]] %s6501_s10 }
   0x9   :  { %s4729_s13 = smov 0   ;;  %s4731_s14 = smov 0  }
   0xa   :  { %s4733_s15 = smov 0   ;;  %s4735_s16 = smov 0  }
   0xb   :  { %s4737_s17 = smov 0   ;;  %s4739_s18 = smov 0  }
   0xc   :  { %s4741_s19 = smov 0   ;;  %s4743_s20 = smov 0  }
   0xd   :  { %s4745_s21 = smov 0   ;;  %s4747_s22 = smov 0  }
   0xe   :  { %s4749_s23 = smov 0   ;;  %s4751_s24 = smov 0  }
   0xf   :  { %s4753_s25 = smov 0   ;;  %s4755_s26 = smov 0  }
  0x10   :  { %s4757_s27 = smov 0  }
  0x11 LB: > { %6580 = sst [smem:[#allocation8_spill]] %s4629_s17  ;;  %s32_s29 = sadd.s32 1, %s4657_s24  ;;  %s4669_s27 = sphi %s4757_s27, %s20_s27   ;;  %s4665_s26 = sphi %s4755_s26, %s6739_s26   ;;  %s4661_s25 = sphi %s4753_s25, %s6738_s25   ;;  %s4657_s24 = sphi %s4751_s24, %s6737_s24   ;;  %s4653_s23 = sphi %s4749_s23, %s6736_s23   ;;  %s4649_s22 = sphi %s4747_s22, %s6735_s22   ;;  %s4645_s21 = sphi %s4745_s21, %s6734_s21   ;;  %s4641_s20 = sphi %s4743_s20, %s6733_s20   ;;  %s4637_s19 = sphi %s4741_s19, %s6732_s19   ;;  %s4633_s18 = sphi %s4739_s18, %s6731_s18   ;;  %s4629_s17 = sphi %s4737_s17, %s6730_s17   ;;  %s4625_s16 = sphi %s4735_s16, %s6729_s16   ;;  %s4621_s15 = sphi %s4733_s15, %s6728_s15   ;;  %s4617_s14 = sphi %s4731_s14, %s6727_s14   ;;  %s4613_s13 = sphi %s4729_s13, %s6726_s13  }
  0x12   : > { %6581 = sst [smem:[#allocation9_spill]] %s4645_s21  ;;  %p33_p0 = scmp.ge.s32.totalorder %s32_s29, 2 }
  0x13   : > { %6582 = sst [smem:[#allocation10_spill]] %s4649_s22  ;;  %s35_s30 = sadd.s32 1, %s4661_s25 }
  0x14   : > { %6583 = sst [smem:[#allocation11_spill]] %s4653_s23  ;;  %s39_s11 = sadd.s32 1, %s4665_s26 }
  0x15   : > { %s4809_s10 = scalar_select %p33_p0, 0, %s32_s29  }
  0x16   : > { %s36_s9 = scalar_select %p33_p0, %s35_s30, %s4661_s25 }
  0x17   : > { %6584 = sst [smem:[#allocation12_spill]] %s4809_s10  ;;  %s4814_s8 = ssub.s32 %s4657_s24, %s4809_s10 }
  0x18   : > { %p57_p1 = scmp.ne.s32.totalorder %s4641_s20, %s4637_s19  ;;  %p37_p2 = scmp.ge.s32.totalorder %s36_s9, 2 }
  0x19   : > { %p58_p3 = scmp.eq.s32.totalorder %s4669_s27, 0  ;;  %s104_s28 = sadd.s32 1, %s4809_s10 }
  0x1a   : > { %s112_s6 = sadd.s32 1, %s4633_s18  ;;  %s6741_s9 = smov (%p37_p2, %s36_s9), 0 }
  0x1b   : > { %6585 = sst [smem:[#allocation13_spill]] %s6741_s9  ;;  %s6743_s11 = smov (!%p37_p2, %s39_s11), %s4665_s26 }
  0x1c   : > { %s44_s12 = ssub.s32 %s4661_s25, %s6741_s9  ;;  %p4831_p4 = por %p58_p3, %p57_p1 }
  0x1d   : > { %p41_p5 = scmp.ge.s32.totalorder %s6743_s11, 2  ;;  %s108_s21 = ssub.s32 %s32_s29, %s104_s28 }
  0x1e   : > { %p119_p6 = scmp.ne.s32.totalorder %s4633_s18, %s4629_s17  ;;  %s136_s10 = sadd.s32 1, %s6741_s9 }
  0x1f   : > { %s6745_s11 = smov (%p41_p5, %s6743_s11), 0  ;;  %s138_s23 = ssub.s32 %s35_s30, %s136_s10 }
  0x20   : > { %6587 = sst [smem:[#allocation14_spill]] %s6745_s11  ;;  %p4842_p7 = por %p119_p6, %p58_p3 }
  0x21   : > { %s43_s7 = ssub.s32 %s4665_s26, %s6745_s11  ;;  %s144_s4 = sadd.s32 1, %s4625_s16 }
  0x22   : > { %s45_s28 = sor.u32 %s44_s12, %s43_s7  ;;  %s139_s29 = sor.u32 %s138_s23, %s43_s7 }
  0x23   : > { %s47_s9 = sor.u32 %s4814_s8, %s45_s28  ;;  %s109_s17 = sor.u32 %s108_s21, %s45_s28 }
  0x24   : > { %p48_p8 = scmp.eq.s32.totalorder %s47_s9, 0  ;;  %p110_p9 = scmp.eq.s32.totalorder %s109_s17, 0 }
  0x25   : > { %s141_s3 = sor.u32 %s139_s29, %s4814_s8  ;;  %p151_p10 = scmp.ne.s32.totalorder %s4625_s16, %s4621_s15 }
  0x26   : > { %s6589_s10 = sadd.s32 1, %s4641_s20  ;;  %p142_p11 = scmp.eq.s32.totalorder %s141_s3, 0 }
  0x27   : > { %s4856_s30 = scalar_select %p48_p8, %s4641_s20, %s6589_s10  }
  0x28   : > { %s4859_s11 = scalar_select %p110_p9, %s4633_s18, %s112_s6  }
  0x29   : > { %6590 = sst [smem:[#allocation15_spill]] %s4856_s30  ;;  %p4863_p12 = por %p151_p10, %p58_p3 }
  0x2a   : > { %6591 = sst [smem:[#allocation16_spill]] %s4859_s11  ;;  %s175_s23 = sor.u32 %s139_s29, %s108_s21 }
  0x2b   : > { %s178_s12 = sadd.s32 1, %s4617_s14  ;;  %p176_p13 = scmp.eq.s32.totalorder %s175_s23, 0 }
  0x2c   : > { %s4869_s28 = scalar_select %p142_p11, %s4625_s16, %s144_s4  }
  0x2d   : > { %p185_p0 = scmp.ne.s32.totalorder %s4617_s14, %s4613_s13  ;;  %s6594_s9 = sadd.s32 4294967295, %s4669_s27  }
  0x2e   : > { %6593 = sst [smem:[#allocation17_spill]] %s4869_s28  ;;  %p346_p2 = scmp.eq.s32.totalorder %s6594_s9, 7 }
  0x2f   : > { %s4876_s8 = scalar_select %p176_p13, %s4617_s14, %s178_s12  }
  0x30   : > { %p4880_p5 = por %p185_p0, %p58_p3  ;;  %p4887_p6 = por %p346_p2, %p57_p1 }
  0x31   : > { %p3760_p8 = scmp.ge.s32.totalorder %s4669_s27, 8 }
  0x33   : > { %377 = sbr.rel (%p3760_p8) target bundleno = 141 (0x8d), region = 28 }
  0x38   : > { %380 = sbr.rel (!%p4831_p4) target bundleno = 71 (0x47), region = 32  ;;  %s382_s4 = sand.u32 (%p4831_p4), 1, %s4641_s20  }
  0x39   : > { %s4158_s17 = sshll.u32 (%p4831_p4), %s4661_s25, 4  ;;  %s3761_s21 = sshll.u32 (%p4831_p4), %s382_s4, 5 }
  0x3a   : > { %s387_s29 = sadd.s32 (%p4831_p4), %s4657_s24, %s4158_s17  ;;  %s3764_s10 = sshll.u32 (%p4831_p4), %s4665_s26, 5 }
  0x3b   : > { %s389_s23 = sadd.s32 (%p4831_p4), %s3764_s10, %s387_s29  ;;  %s384_s28 = scalar_lea.vmem (%p4831_p4), [#allocation2], %s3761_s21 }
  0x3c   : > { %s3765_s12 = sshll.u32 (%p4831_p4), %s389_s23, 2 }
  0x3d   : > { %s391_s11 = scalar_lea.vmem %s6491_s0, %s3765_s12 }
  0x3e   : > { %v408_v0 = vld [vmem:[%s391_s11] sm:$0xf]  ;;  %v410_v1 = vld [vmem:[%s391_s11 + $0x8] sm:$0xf]  ;;  %v412_v2 = vld [vmem:[%s391_s11 + $0x10] sm:$0xf] }
  0x3f   : > { %409 = vst [vmem:[%s384_s28] sm:$0xf] %v408_v0  ;;  %v414_v3 = vld [vmem:[%s391_s11 + $0x18] sm:$0xf]  ;;  %v416_v4 = vld [vmem:[%s391_s11 + $0x20] sm:$0xf] }
  0x40   : > { %411 = vst [vmem:[%s384_s28 + $0x4] sm:$0xf] %v410_v1  ;;  %v418_v5 = vld [vmem:[%s391_s11 + $0x28] sm:$0xf]  ;;  %v420_v6 = vld [vmem:[%s391_s11 + $0x30] sm:$0xf] }
  0x41   : > { %413 = vst [vmem:[%s384_s28 + $0x8] sm:$0xf] %v412_v2  ;;  %v422_v7 = vld [vmem:[%s391_s11 + $0x38] sm:$0xf] }
  0x42   : > { %415 = vst [vmem:[%s384_s28 + $0xc] sm:$0xf] %v414_v3 }
  0x43   : > { %417 = vst [vmem:[%s384_s28 + $0x10] sm:$0xf] %v416_v4 }
  0x44   : > { %419 = vst [vmem:[%s384_s28 + $0x14] sm:$0xf] %v418_v5 }
  0x45   : > { %421 = vst [vmem:[%s384_s28 + $0x18] sm:$0xf] %v420_v6 }
  0x46   : > { %423 = vst [vmem:[%s384_s28 + $0x1c] sm:$0xf] %v422_v7 }
  0x47 PF: > { %463 = sbr.rel (!%p4831_p4) target bundleno = 87 (0x57), region = 73  ;;  %s465_s30 = sand.u32 (%p4831_p4), 1, %s4641_s20  }
  0x48   : > { %s3767_s4 = sshll.u32 (%p4831_p4), %s4657_s24, 1  ;;  %s4225_s17 = smul.u32 (%p4831_p4), 48, %s4661_s25 }
  0x49   : > { %s3766_s21 = sshll.u32 (%p4831_p4), %s465_s30, 6  ;;  %s4226_s29 = smul.u32 (%p4831_p4), 144, %s4665_s26 }
  0x4a   : > { %s470_s10 = sadd.s32 (%p4831_p4), %s4225_s17, %s3767_s4  ;;  %s467_s5 = scalar_lea.vmem (%p4831_p4), [#allocation3], %s3766_s21 }
  0x4b   : > { %s472_s23 = sadd.s32 (%p4831_p4), %s4226_s29, %s470_s10 }
  0x4c   : > { %s3768_s12 = sshll.u32 %s472_s23, 2 }
  0x4d   : > { %s474_s28 = scalar_lea.vmem %s6492_s1, %s3768_s12 }
  0x4e   : > { %v517_v8 = vld [vmem:[%s474_s28] sm:$0xff]  ;;  %v519_v9 = vld [vmem:[%s474_s28 + $0x18] sm:$0xff]  ;;  %v521_v10 = vld [vmem:[%s474_s28 + $0x30] sm:$0xff] }
  0x4f   : > { %518 = vst [vmem:[%s467_s5] sm:$0xff] %v517_v8  ;;  %v523_v11 = vld [vmem:[%s474_s28 + $0x48] sm:$0xff]  ;;  %v525_v12 = vld [vmem:[%s474_s28 + $0x60] sm:$0xff]  ;;  %v527_v13 = vld [vmem:[%s474_s28 + $0x78] sm:$0xff] }
  0x50   : > { %520 = vst [vmem:[%s467_s5 + $0x8] sm:$0xff] %v519_v9  ;;  %v529_v14 = vld [vmem:[%s474_s28 + $0x90] sm:$0xff]  ;;  %v531_v15 = vld [vmem:[%s474_s28 + $0xa8] sm:$0xff] }
  0x51   : > { %522 = vst [vmem:[%s467_s5 + $0x10] sm:$0xff] %v521_v10 }
  0x52   : > { %524 = vst [vmem:[%s467_s5 + $0x18] sm:$0xff] %v523_v11 }
  0x53   : > { %526 = vst [vmem:[%s467_s5 + $0x20] sm:$0xff] %v525_v12 }
  0x54   : > { %528 = vst [vmem:[%s467_s5 + $0x28] sm:$0xff] %v527_v13 }
  0x55   : > { %530 = vst [vmem:[%s467_s5 + $0x30] sm:$0xff] %v529_v14 }
  0x56   : > { %532 = vst [vmem:[%s467_s5 + $0x38] sm:$0xff] %v531_v15 }
  0x57 PF: > { %538 = sbr.rel (!%p4842_p7) target bundleno = 103 (0x67), region = 111  ;;  %s540_s30 = sand.u32 (%p4842_p7), 1, %s4633_s18  }
  0x58   : > { %s3770_s4 = sshll.u32 (%p4842_p7), %s4657_s24, 1  ;;  %s3582_s17 = smul.u32 (%p4842_p7), 48, %s4661_s25 }
  0x59   : > { %s3769_s21 = sshll.u32 (%p4842_p7), %s540_s30, 6  ;;  %s3584_s29 = smul.u32 (%p4842_p7), 144, %s4665_s26 }
  0x5a   : > { %s3583_s10 = sadd.s32 (%p4842_p7), %s3770_s4, %s3582_s17  ;;  %s542_s22 = scalar_lea.vmem (%p4842_p7), [#allocation4], %s3769_s21 }
  0x5b   : > { %s3585_s23 = sadd.s32 (%p4842_p7), %s3584_s29, %s3583_s10 }
  0x5c   : > { %s3771_s12 = sshll.u32 %s3585_s23, 2 }
  0x5d   : > { %s3587_s28 = scalar_lea.vmem %s6493_s2, %s3771_s12 }
  0x5e   : > { %v3772_v16 = vld [vmem:[%s3587_s28 + $0x8] sm:$0xff]  ;;  %v3773_v17 = vld [vmem:[%s3587_s28 + $0x20] sm:$0xff]  ;;  %v3774_v18 = vld [vmem:[%s3587_s28 + $0x38] sm:$0xff] }
  0x5f   : > { %594 = vst [vmem:[%s542_s22] sm:$0xff] %v3772_v16  ;;  %v3775_v19 = vld [vmem:[%s3587_s28 + $0x50] sm:$0xff]  ;;  %v3776_v20 = vld [vmem:[%s3587_s28 + $0x68] sm:$0xff]  ;;  %v3777_v21 = vld [vmem:[%s3587_s28 + $0x80] sm:$0xff] }
  0x60   : > { %596 = vst [vmem:[%s542_s22 + $0x8] sm:$0xff] %v3773_v17  ;;  %v3778_v22 = vld [vmem:[%s3587_s28 + $0x98] sm:$0xff]  ;;  %v3779_v23 = vld [vmem:[%s3587_s28 + $0xb0] sm:$0xff] }
  0x61   : > { %598 = vst [vmem:[%s542_s22 + $0x10] sm:$0xff] %v3774_v18 }
  0x62   : > { %600 = vst [vmem:[%s542_s22 + $0x18] sm:$0xff] %v3775_v19 }
  0x63   : > { %602 = vst [vmem:[%s542_s22 + $0x20] sm:$0xff] %v3776_v20 }
  0x64   : > { %604 = vst [vmem:[%s542_s22 + $0x28] sm:$0xff] %v3777_v21 }
  0x65   : > { %606 = vst [vmem:[%s542_s22 + $0x30] sm:$0xff] %v3778_v22 }
  0x66   : > { %608 = vst [vmem:[%s542_s22 + $0x38] sm:$0xff] %v3779_v23 }
  0x67 PF: > { %614 = sbr.rel (!%p4863_p12) target bundleno = 122 (0x7a), region = 149  ;;  %s616_s5 = sand.u32 (%p4863_p12), 1, %s4625_s16  }
  0x68   : > { %s3781_s30 = sshll.u32 (%p4863_p12), %s4657_s24, 1  ;;  %s3592_s4 = smul.u32 (%p4863_p12), 48, %s4661_s25 }
  0x69   : > { %s3780_s17 = sshll.u32 (%p4863_p12), %s616_s5, 6  ;;  %s3594_s21 = smul.u32 (%p4863_p12), 144, %s4665_s26 }
  0x6a   : > { %s3593_s29 = sadd.s32 (%p4863_p12), %s3781_s30, %s3592_s4  ;;  %s6597_s9 = sld [smem:[#allocation54_spill]] (%p4863_p12) }
  0x6b   : > { %s3595_s10 = sadd.s32 (%p4863_p12), %s3594_s21, %s3593_s29  ;;  %s618_s7 = scalar_lea.vmem (%p4863_p12), [#allocation5], %s3780_s17 }
  0x6c   : > { %s3782_s23 = sshll.u32 %s3595_s10, 2 }
  0x70   : > { %s3597_s28 = scalar_lea.vmem %s6597_s9, %s3782_s23 }
  0x71   : > { %v3783_v24 = vld [vmem:[%s3597_s28 + $0xc0] sm:$0xff]  ;;  %v3784_v25 = vld [vmem:[%s3597_s28 + $0xd8] sm:$0xff]  ;;  %v3785_v26 = vld [vmem:[%s3597_s28 + $0xf0] sm:$0xff] }
  0x72   : > { %670 = vst [vmem:[%s618_s7] sm:$0xff] %v3783_v24  ;;  %v3786_v27 = vld [vmem:[%s3597_s28 + $0x108] sm:$0xff]  ;;  %v3787_v28 = vld [vmem:[%s3597_s28 + $0x120] sm:$0xff]  ;;  %v3788_v29 = vld [vmem:[%s3597_s28 + $0x138] sm:$0xff] }
  0x73   : > { %672 = vst [vmem:[%s618_s7 + $0x8] sm:$0xff] %v3784_v25  ;;  %v3789_v30 = vld [vmem:[%s3597_s28 + $0x150] sm:$0xff]  ;;  %v3790_v31 = vld [vmem:[%s3597_s28 + $0x168] sm:$0xff] }
  0x74   : > { %674 = vst [vmem:[%s618_s7 + $0x10] sm:$0xff] %v3785_v26 }
  0x75   : > { %676 = vst [vmem:[%s618_s7 + $0x18] sm:$0xff] %v3786_v27 }
  0x76   : > { %678 = vst [vmem:[%s618_s7 + $0x20] sm:$0xff] %v3787_v28 }
  0x77   : > { %680 = vst [vmem:[%s618_s7 + $0x28] sm:$0xff] %v3788_v29 }
  0x78   : > { %682 = vst [vmem:[%s618_s7 + $0x30] sm:$0xff] %v3789_v30 }
  0x79   : > { %684 = vst [vmem:[%s618_s7 + $0x38] sm:$0xff] %v3790_v31 }
  0x7a PF: > { %690 = sbr.rel (!%p4880_p5) target bundleno = 141 (0x8d), region = 187  ;;  %s692_s22 = sand.u32 (%p4880_p5), 1, %s4617_s14  }
  0x7b   : > { %s3792_s5 = sshll.u32 (%p4880_p5), %s4657_s24, 1  ;;  %s3602_s30 = smul.u32 (%p4880_p5), 48, %s4661_s25 }
  0x7c   : > { %s3791_s4 = sshll.u32 (%p4880_p5), %s692_s22, 6  ;;  %s3604_s17 = smul.u32 (%p4880_p5), 144, %s4665_s26 }
  0x7d   : > { %s3603_s21 = sadd.s32 (%p4880_p5), %s3792_s5, %s3602_s30  ;;  %s6598_s11 = sld [smem:[#allocation55_spill]] (%p4880_p5) }
  0x7e   : > { %s3605_s29 = sadd.s32 (%p4880_p5), %s3604_s17, %s3603_s21  ;;  %s694_s6 = scalar_lea.vmem (%p4880_p5), [#allocation6], %s3791_s4 }
  0x7f   : > { %s3793_s10 = sshll.u32 %s3605_s29, 2 }
  0x83   : > { %s3607_s9 = scalar_lea.vmem %s6598_s11, %s3793_s10 }
  0x84   : > { %v3794_v32 = vld [vmem:[%s3607_s9 + $0xc8] sm:$0xff]  ;;  %v3795_v33 = vld [vmem:[%s3607_s9 + $0xe0] sm:$0xff]  ;;  %v3796_v34 = vld [vmem:[%s3607_s9 + $0xf8] sm:$0xff] }
  0x85   : > { %747 = vst [vmem:[%s694_s6] sm:$0xff] %v3794_v32  ;;  %v3797_v35 = vld [vmem:[%s3607_s9 + $0x110] sm:$0xff]  ;;  %v3798_v36 = vld [vmem:[%s3607_s9 + $0x128] sm:$0xff]  ;;  %v3799_v37 = vld [vmem:[%s3607_s9 + $0x140] sm:$0xff] }
  0x86   : > { %749 = vst [vmem:[%s694_s6 + $0x8] sm:$0xff] %v3795_v33  ;;  %v3800_v38 = vld [vmem:[%s3607_s9 + $0x158] sm:$0xff]  ;;  %v3801_v39 = vld [vmem:[%s3607_s9 + $0x170] sm:$0xff] }
  0x87   : > { %751 = vst [vmem:[%s694_s6 + $0x10] sm:$0xff] %v3796_v34 }
  0x88   : > { %753 = vst [vmem:[%s694_s6 + $0x18] sm:$0xff] %v3797_v35 }
  0x89   : > { %755 = vst [vmem:[%s694_s6 + $0x20] sm:$0xff] %v3798_v36 }
  0x8a   : > { %757 = vst [vmem:[%s694_s6 + $0x28] sm:$0xff] %v3799_v37 }
  0x8b   : > { %759 = vst [vmem:[%s694_s6 + $0x30] sm:$0xff] %v3800_v38 }
  0x8c   : > { %761 = vst [vmem:[%s694_s6 + $0x38] sm:$0xff] %v3801_v39 }
  0x8d PF: > { %p3802_p1 = scmp.ge.s32.totalorder %s4669_s27, 1  ;;  %p793_p3 = scmp.lt.s32.totalorder %s4669_s27, 9 }
  0x8f   : > { %p794_p4 = pnand %p3802_p1, %p793_p3 }
  0x91   : > { %797 = sbr.rel (%p794_p4) target bundleno = 2842 (0xb1a), region = 233 }
  0x96   : > { %s6599_s22 = sld [smem:[#allocation58_spill]]  ;;  %vm1248_vm0 = vcmask 261120   ;;  %s828_s29 = sand.u32 1, %s4613_s13   ;;  %vm3458_vm1 = vcmask 257024  }
  0x97   : > { %s6601_s30 = sld [smem:[#allocation8_spill]]  ;;  %s3807_s23 = sshll.u32 %s828_s29, 6 }
  0x98   : > { %s4959_s13 = scalar_lea.vmem [#allocation6], %s3807_s23  ;;  %s800_s23 = sand.u32 1, %s4637_s19  }
  0x99   : > { %v3937_v46 = vld [vmem:[%s4959_s13 + $0x30] sm:$0xf]  ;;  %v4195_v48 = vld [vmem:[%s4959_s13 + $0x34] sm:$0xf0]  ;;  %v3929_v55 = vld [vmem:[%s4959_s13 + $0x20] sm:$0xf] }
  0x9a   : > { %v4971_v51 = vor.u32 %v4195_v48, %v3937_v46  ;;  %v4193_v56 = vld [vmem:[%s4959_s13 + $0x24] sm:$0xf0]  ;;  %v3921_v4 = vld [vmem:[%s4959_s13 + $0x10] sm:$0xf]  ;;  %v4191_v5 = vld [vmem:[%s4959_s13 + $0x14] sm:$0xf0] }
  0x9b   : > { %v4989_v61 = vor.u32 %v4193_v56, %v3929_v55  ;;  %v5015_v9 = vor.u32 %v4191_v5, %v3921_v4  ;;  %s821_s11 = sand.u32 1, %s4621_s15   ;;  %v3913_v16 = vld [vmem:[%s4959_s13] sm:$0xf]  ;;  %v4189_v17 = vld [vmem:[%s4959_s13 + $0x4] sm:$0xf0]  ;;  %s3804_s9 = sshll.u32 %s800_s23, 6 }
  0x9c   : > { %s6600_s5 = smov %s6599_s22  ;;  %v4207_v40 = vld [vmem:[%s6599_s22 + $0x38] sm:$0xff]  ;;  %6604 = vst [vmem:[#allocation20_spill] sm:$0xff] %v4971_v51  ;;  %v1445_v57 = vsel %vm1248_vm0, %v4971_v51, 0  ;;  %s3806_s6 = sshll.u32 %s821_s11, 6  ;;  %v5045_v21 = vor.u32 %v4189_v17, %v3913_v16 }
  0x9d   : > { %v4215_v41 = vld [vmem:[%s6600_s5 + $0x78] sm:$0xff]  ;;  %s814_s21 = sand.u32 1, %s6601_s30   ;;  %v4948_v42 = vsel %vm1248_vm0, %v4207_v40, 0  ;;  %v4206_v49 = vld [vmem:[%s6600_s5 + $0x30] sm:$0xff]  ;;  %1476 = vmatpush.bf16.xpose.msra.mxu3 %v1445_v57  ;;  %v4205_v63 = vld [vmem:[%s6600_s5 + $0x28] sm:$0xff]  ;;  %v1442_v1 = vsel %vm1248_vm0, %v4989_v61, 0 }
  0x9e   : > { %s3805_s10 = sshll.u32 %s814_s21, 6  ;;  %6602 = vst [vmem:[#allocation18_spill] sm:$0xff] %v4948_v42  ;;  %v4951_v43 = vsel %vm1248_vm0, %v4215_v41, 0  ;;  %1309 = vmatpush.bf16.xpose.msra.mxu0 %v4948_v42  ;;  %v4214_v50 = vld [vmem:[%s6600_s5 + $0x70] sm:$0xff]  ;;  %v4982_v58 = vsel %vm1248_vm0, %v4206_v49, 0  ;;  %v4213_v0 = vld [vmem:[%s6600_s5 + $0x68] sm:$0xff] }
  0x9f   : > { %6603 = vst [vmem:[#allocation19_spill] sm:$0xff] %v4951_v43  ;;  %1338 = vmatpush.bf16.xpose.msra.mxu1 %v4951_v43  ;;  %s4955_s12 = scalar_lea.vmem [#allocation4], %s3805_s10  ;;  %v4985_v59 = vsel %vm1248_vm0, %v4214_v50, 0  ;;  %v5008_v6 = vsel %vm1248_vm0, %v4205_v63, 0  ;;  %v5011_v7 = vsel %vm1248_vm0, %v4213_v0, 0  ;;  %v4204_v11 = vld [vmem:[%s6600_s5 + $0x20] sm:$0xff] }
  0xa0   : > { %v3873_v44 = vld [vmem:[%s4955_s12 + $0x30] sm:$0xf]  ;;  %v4179_v45 = vld [vmem:[%s4955_s12 + $0x34] sm:$0xf0]  ;;  %v3865_v52 = vld [vmem:[%s4955_s12 + $0x20] sm:$0xf] }
  0xa1   : > { %v4962_v47 = vor.u32 %v4179_v45, %v3873_v44  ;;  %v4177_v53 = vld [vmem:[%s4955_s12 + $0x24] sm:$0xf0]  ;;  %6605 = vst [vmem:[#allocation21_spill] sm:$0xff] %v4982_v58  ;;  %v3857_v2 = vld [vmem:[%s4955_s12 + $0x10] sm:$0xf]  ;;  %v4212_v12 = vld [vmem:[%s6600_s5 + $0x60] sm:$0xff] }
  0xa2   : > { %6606 = vst [vmem:[#allocation22_spill] sm:$0xff] %v4985_v59  ;;  %v4987_v60 = vor.u32 %v4177_v53, %v3865_v52  ;;  %v4175_v3 = vld [vmem:[%s4955_s12 + $0x14] sm:$0xf0]  ;;  %v1439_v13 = vsel %vm1248_vm0, %v5015_v9, 0  ;;  %v3849_v14 = vld [vmem:[%s4955_s12] sm:$0xf] }
  0xa3   : > { %v1421_v54 = vsel %vm1248_vm0, %v4962_v47, 0  ;;  %6607 = vst [vmem:[#allocation23_spill] sm:$0xff] %v5008_v6  ;;  %v5013_v8 = vor.u32 %v4175_v3, %v3857_v2  ;;  %v4173_v15 = vld [vmem:[%s4955_s12 + $0x4] sm:$0xf0]  ;;  %v5038_v18 = vsel %vm1248_vm0, %v4204_v11, 0  ;;  %v5041_v19 = vsel %vm1248_vm0, %v4212_v12, 0 }
  0xa4   : > { %1447 = vmatpush.bf16.xpose.msra.mxu2 %v1421_v54  ;;  %v1418_v62 = vsel %vm1248_vm0, %v4987_v60, 0  ;;  %6608 = vst [vmem:[#allocation24_spill] sm:$0xff] %v5011_v7  ;;  %v5043_v20 = vor.u32 %v4173_v15, %v3849_v14  ;;  %s4671_s28 = smov 96   ;;  %v4203_v23 = vld [vmem:[%s6600_s5 + $0x18] sm:$0xff]  ;;  %v1436_v25 = vsel %vm1248_vm0, %v5045_v21, 0  ;;  %s5065_s4 = scalar_lea.vmem [#allocation3], %s3804_s9 }
  0xa5   : > { %1477 = vmatpush.bf16.xpose.msra.mxu3 %v1442_v1  ;;  %6609 = vst [vmem:[#allocation25_spill] sm:$0xff] %v5015_v9  ;;  %v1415_v10 = vsel %vm1248_vm0, %v5013_v8, 0  ;;  %1820 = vrot.lane.b32.xlu1 %v4962_v47, %s4671_s28  ;;  %v4211_v24 = vld [vmem:[%s6600_s5 + $0x58] sm:$0xff]  ;;  %v3841_v26 = vld [vmem:[%s5065_s4 + $0x30] sm:$0xf]  ;;  %s5069_s17 = scalar_lea.vmem [#allocation5], %s3806_s6 }
  0xa6   : > { %1310 = vmatpush.bf16.xpose.msra.mxu0 %v4982_v58  ;;  %6610 = vst [vmem:[#allocation26_spill] sm:$0xff] %v5038_v18  ;;  %1818 = vrot.lane.b32.xlu0 %v4987_v60, %s4671_s28  ;;  %v1412_v22 = vsel %vm1248_vm0, %v5043_v20, 0  ;;  %v4171_v27 = vld [vmem:[%s5065_s4 + $0x34] sm:$0xf0]  ;;  %v3905_v28 = vld [vmem:[%s5069_s17 + $0x30] sm:$0xf] }
  0xa7   : > { %1339 = vmatpush.bf16.xpose.msra.mxu1 %v4985_v59  ;;  %6611 = vst [vmem:[#allocation27_spill] sm:$0xff] %v5041_v19  ;;  %1836 = vrot.lane.b32.xlu2 %v4971_v51, %s4671_s28  ;;  %v4187_v29 = vld [vmem:[%s5069_s17 + $0x34] sm:$0xf0]  ;;  %v5074_v30 = vsel %vm1248_vm0, %v4203_v23, 0  ;;  %v5077_v31 = vsel %vm1248_vm0, %v4211_v24, 0  ;;  %v5079_v32 = vor.u32 %v4171_v27, %v3841_v26  ;;  %s6617_s21 = sld [smem:[#allocation11_spill]] }
  0xa8   : > { %6612 = vst [vmem:[#allocation28_spill] sm:$0xff] %v5043_v20  ;;  %v5081_v33 = vor.u32 %v4187_v29, %v3905_v28  ;;  %s6618_s29 = sld [smem:[#allocation10_spill]]  ;;  %v4202_v35 = vld [vmem:[%s6600_s5 + $0x10] sm:$0xff]  ;;  %v3833_v38 = vld [vmem:[%s5065_s4 + $0x20] sm:$0xf]  ;;  %v4201_v50 = vld [vmem:[%s6600_s5 + $0x8] sm:$0xff] }
  0xa9   : > { %6613 = vst [vmem:[#allocation29_spill] sm:$0xff] %v5045_v21  ;;  %v1409_v34 = vsel %vm1248_vm0, %v5079_v32, 0  ;;  %v4210_v36 = vld [vmem:[%s6600_s5 + $0x50] sm:$0xff]  ;;  %v4169_v39 = vld [vmem:[%s5065_s4 + $0x24] sm:$0xf0]  ;;  %s6619_s22 = sld [smem:[#allocation9_spill]] }
  0xaa   : > { %6614 = vst [vmem:[#allocation30_spill] sm:$0xff] %v5074_v30  ;;  %v1433_v37 = vsel %vm1248_vm0, %v5081_v33, 0  ;;  %v3897_v40 = vld [vmem:[%s5069_s17 + $0x20] sm:$0xf]  ;;  %v4185_v41 = vld [vmem:[%s5069_s17 + $0x24] sm:$0xf0]  ;;  %v5113_v46 = vor.u32 %v4169_v39, %v3833_v38 }
  0xab   : > { %6615 = vst [vmem:[#allocation31_spill] sm:$0xff] %v5077_v31  ;;  %v5108_v44 = vsel %vm1248_vm0, %v4202_v35, 0  ;;  %v5111_v45 = vsel %vm1248_vm0, %v4210_v36, 0  ;;  %v5115_v48 = vor.u32 %v4185_v41, %v3897_v40  ;;  %v4209_v52 = vld [vmem:[%s6600_s5 + $0x48] sm:$0xff]  ;;  %v3825_v54 = vld [vmem:[%s5065_s4 + $0x10] sm:$0xf] }
  0xac   : > { %1448 = vmatpush.bf16.xpose.msra.mxu2 %v1418_v62  ;;  %6616 = vst [vmem:[#allocation32_spill] sm:$0xff] %v5079_v32  ;;  %v1406_v49 = vsel %vm1248_vm0, %v5113_v46, 0  ;;  %v4167_v55 = vld [vmem:[%s5065_s4 + $0x14] sm:$0xf0]  ;;  %v3889_v56 = vld [vmem:[%s5069_s17 + $0x10] sm:$0xf] }
  0xad   : > { %1478 = vmatpush.bf16.xpose.msra.mxu3 %v1439_v13  ;;  %1816 = vrot.lane.b32.xlu1 %v5013_v8, %s4671_s28  ;;  %s3809_s15 = sshll.u32 %s6617_s21, 2  ;;  %6620 = vst [vmem:[#allocation33_spill] sm:$0xff] %v5108_v44  ;;  %v1430_v53 = vsel %vm1248_vm0, %v5115_v48, 0  ;;  %v4183_v57 = vld [vmem:[%s5069_s17 + $0x14] sm:$0xf0]  ;;  %v5141_v62 = vsel %vm1248_vm0, %v4201_v50, 0  ;;  %v5146_v0 = vor.u32 %v4167_v55, %v3825_v54 }
  0xae   : > { %1311 = vmatpush.bf16.xpose.msra.mxu0 %v5008_v6  ;;  %1814 = vrot.lane.b32.xlu0 %v5043_v20, %s4671_s28  ;;  %s3810_s7 = sshll.u32 %s6618_s29, 1  ;;  %6621 = vst [vmem:[#allocation34_spill] sm:$0xff] %v5111_v45  ;;  %v5144_v63 = vsel %vm1248_vm0, %v4209_v52, 0  ;;  %v5148_v1 = vor.u32 %v4183_v57, %v3889_v56  ;;  %v4200_v3 = vld [vmem:[%s6600_s5] sm:$0xff]  ;;  %v4165_v11 = vld [vmem:[%s5065_s4 + $0x4] sm:$0xf0] }
  0xaf   : > { %1340 = vmatpush.bf16.xpose.msra.mxu1 %v5011_v7  ;;  %1834 = vrot.lane.b32.xlu2 %v4989_v61, %s4671_s28  ;;  %6622 = vst [vmem:[#allocation35_spill] sm:$0xff] %v5115_v48  ;;  %s902_s30 = sadd.s32 %s3810_s7, %s3809_s15  ;;  %v1403_v2 = vsel %vm1248_vm0, %v5146_v0, 0  ;;  %v4208_v4 = vld [vmem:[%s6600_s5 + $0x40] sm:$0xff]  ;;  %v4181_v13 = vld [vmem:[%s5069_s17 + $0x4] sm:$0xf0]  ;;  %v5169_v14 = vsel %vm1248_vm0, %v4200_v3, 0 }
  0xb0   : > { %s903_s6 = sadd.s32 %s6619_s22, %s902_s30  ;;  %6623 = vst [vmem:[#allocation36_spill] sm:$0xff] %v5141_v62  ;;  %v1427_v5 = vsel %vm1248_vm0, %v5148_v1, 0  ;;  %v3881_v12 = vld [vmem:[%s5069_s17] sm:$0xf]  ;;  %v5172_v15 = vsel %vm1248_vm0, %v4208_v4, 0  ;;  %s6627_s30 = sld [smem:[#allocation56_spill]] }
  0xb1   : > { %6624 = vst [vmem:[#allocation37_spill] sm:$0xff] %v5144_v63  ;;  %p904_p7 = scmp.lt.s32.totalorder %s903_s6, 7  ;;  %v5176_v17 = vor.u32 %v4181_v13, %v3881_v12  ;;  %s5189_s10 = sshll.u32 %s800_s23, 5  ;;  %v4178_v36 = vld [vmem:[%s4955_s12 + $0x34] sm:$0xf] }
  0xb2   : > { %6625 = vst [vmem:[#allocation38_spill] sm:$0xff] %v5169_v14  ;;  %s5203_s19 = scalar_lea.vmem [#allocation2], %s5189_s10  ;;  %s914_s23 = sadd.s32 %s6619_s22, %s3810_s7  ;;  %v4176_v41 = vld [vmem:[%s4955_s12 + $0x24] sm:$0xf]  ;;  %v4174_v52 = vld [vmem:[%s4955_s12 + $0x14] sm:$0xf] }
  0xb3   : > { %s6747_s6 = smov (!%p904_p7, %s903_s6), 7  ;;  %6626 = vst [vmem:[#allocation39_spill] sm:$0xff] %v5172_v15  ;;  %v1424_v23 = vsel %vm1248_vm0, %v5176_v17, 0  ;;  %v5224_v27 = vld [vmem:[%s5203_s19 + $0x8] sm:$0xff]  ;;  %v5242_v29 = vld [vmem:[%s5203_s19 + $0x10] sm:$0xff]  ;;  %v5256_v35 = vld [vmem:[%s5203_s19 + $0x18] sm:$0xff] }
  0xb4   : > { %1449 = vmatpush.bf16.xpose.msra.mxu2 %v1415_v10  ;;  %v3817_v10 = vld [vmem:[%s5065_s4] sm:$0xf]  ;;  %s4159_s11 = sshll.u32 %s6747_s6, 5  ;;  %p915_p9 = scmp.lt.s32.totalorder %s914_s23, 3  ;;  %v4194_v54 = vld [vmem:[%s4959_s13 + $0x34] sm:$0xf] }
  0xb5   : > { %1479 = vmatpush.bf16.xpose.msra.mxu3 %v1436_v25  ;;  %v5174_v16 = vor.u32 %v4165_v11, %v3817_v10  ;;  %v5206_v25 = vld [vmem:[%s5203_s19] sm:$0xff]  ;;  %s6629_s29 = sld [smem:[#allocation57_spill]]  ;;  %v3939_v56 = vld [vmem:[%s4959_s13 + $0x38] sm:$0xf0]  ;;  %v3851_v13 = vld [vmem:[%s4955_s12 + $0x8] sm:$0xf0] }
  0xb6   : > { %1312 = vmatpush.bf16.xpose.msra.mxu0 %v5038_v18  ;;  %1830 = vrot.lane.b32.xlu0 %v5045_v21, %s4671_s28  ;;  %s5183_s21 = scalar_lea.vmem %s6627_s30, %s4159_s11  ;;  %s6749_s23 = smov (!%p915_p9, %s914_s23), 3  ;;  %v4172_v12 = vld [vmem:[%s4955_s12 + $0x4] sm:$0xf] }
  0xb7   : > { %1341 = vmatpush.bf16.xpose.msra.mxu1 %v5041_v19  ;;  %1832 = vrot.lane.b32.xlu2 %v5015_v9, %s4671_s28  ;;  %v5194_v24 = vld [vmem:[%s5183_s21] sm:$0xff]  ;;  %v5215_v26 = vld [vmem:[%s5183_s21 + $0x8] sm:$0xff]  ;;  %v5233_v28 = vld [vmem:[%s5183_s21 + $0x10] sm:$0xff]  ;;  %s3814_s6 = sshll.u32 %s6749_s23, 1  ;;  %s4673_s23 = smov 32  }
  0xb8   : > { %s6705_s22 = sld [smem:[#allocation60_spill]]  ;;  %s6394_s30 = scalar_lea.vmem [#allocation7], %s5189_s10 }
  0xb9   : > { %s6714_s10 = sld [smem:[#allocation10_spill]] (%p4887_p6) }
  0xbb   : > { %s918_s15 = scalar_lea.vmem %s6629_s29, %s3814_s6 }
  0xbc   : > { %1450 = vmatpush.bf16.xpose.msra.mxu2 %v1412_v22  ;;  %v1400_v22 = vsel %vm1248_vm0, %v5174_v16, 0  ;;  %v1147_v57 = vld [vmem:[%s918_s15] sm:$0x3] }
  0xbd   : > { %1480 = vmatpush.bf16.xpose.msra.mxu3 %v1433_v37  ;;  %v3875_v37 = vld [vmem:[%s4955_s12 + $0x38] sm:$0xf0]  ;;  %v5295_v10 = vperm.slane %v1147_v57, 1 }
  0xbe   : > { %1313 = vmatpush.bf16.xpose.msra.mxu0 %v5074_v30  ;;  %1812 = vrot.lane.b32.xlu0 %v5079_v32, %s4671_s28  ;;  %v5273_v38 = vor.u32 %v4178_v36, %v3875_v37  ;;  %v5301_v37 = vor.u32 %v4172_v12, %v3851_v13 }
  0xbf   : > { %1342 = vmatpush.bf16.xpose.msra.mxu1 %v5077_v31  ;;  %6631 = vst [vmem:[#allocation42_spill] sm:$0xff] %v5295_v10 }
  0xc0   : > { %6628 = vst [vmem:[#allocation40_spill] sm:$0xff] %v5273_v38 }
  0xc1   : > { %6632 = vst [vmem:[#allocation43_spill] sm:$0xff] %v5301_v37 }
  0xc4   : > { %1451 = vmatpush.bf16.xpose.msra.mxu2 %v1409_v34  ;;  %v5251_v34 = vld [vmem:[%s5183_s21 + $0x18] sm:$0xff] }
  0xc5   : > { %1481 = vmatpush.bf16.xpose.msra.mxu3 %v1430_v53  ;;  %v3859_v53 = vld [vmem:[%s4955_s12 + $0x18] sm:$0xf0] }
  0xc6   : > { %1314 = vmatpush.bf16.xpose.msra.mxu0 %v5108_v44  ;;  %v5287_v55 = vor.u32 %v4174_v52, %v3859_v53 }
  0xc7   : > { %1343 = vmatpush.bf16.xpose.msra.mxu1 %v5111_v45 }
  0xc8   : > { %6630 = vst [vmem:[#allocation41_spill] sm:$0xff] %v5287_v55 }
  0xcc   : > { %1452 = vmatpush.bf16.xpose.msra.mxu2 %v1406_v49  ;;  %v3867_v49 = vld [vmem:[%s4955_s12 + $0x28] sm:$0xf0]  ;;  %s6717_s12 = sld [smem:[#allocation61_spill]] (%p4887_p6) }
  0xcd   : > { %1482 = vmatpush.bf16.xpose.msra.mxu3 %v1427_v5  ;;  %v5281_v50 = vor.u32 %v4176_v41, %v3867_v49  ;;  %v5293_v5 = vperm.slane %v1147_v57, 0  ;;  %v3931_v41 = vld [vmem:[%s4959_s13 + $0x28] sm:$0xf0]  ;;  %v4190_v57 = vld [vmem:[%s4959_s13 + $0x14] sm:$0xf] }
  0xce   : > { %1315 = vmatpush.bf16.xpose.msra.mxu0 %v5141_v62 }
  0xcf   : > { %1344 = vmatpush.bf16.xpose.msra.mxu1 %v5144_v63 }
  0xd4   : > { %1453 = vmatpush.bf16.xpose.msra.mxu2 %v1403_v2  ;;  %v5290_v2 = vor.u32 %v4194_v54, %v3939_v56  ;;  %v3843_v56 = vld [vmem:[%s5065_s4 + $0x38] sm:$0xf0] }
  0xd5   : > { %1483 = vmatpush.bf16.xpose.msra.mxu3 %v1424_v23 }
  0xd6   : > { %1316 = vmatpush.bf16.xpose.msra.mxu0 %v5169_v14 }
  0xd7   : > { %1345 = vmatpush.bf16.xpose.msra.mxu1 %v5172_v15 }
  0xdc   : > { %1454 = vmatpush.bf16.xpose.msra.mxu2 %v1400_v22  ;;  %4051 = vmatmul.msk.bf16.vlgmr.msra.gmra.mxu3 %vm1248_vm0, %v5206_v25  ;;  %v4192_v22 = vld [vmem:[%s4959_s13 + $0x24] sm:$0xf] }
  0xdd   : > { %1769 = vmatpush.bf16.xpose.msrb.mxu3 %v4951_v43  ;;  %4023 = vmatmul.msk.bf16.vlgmr.msra.gmra.mxu0 %vm1248_vm0, %v5194_v24  ;;  %v5304_v52 = vor.u32 %v4192_v22, %v3931_v41  ;;  %v4168_v41 = vld [vmem:[%s5065_s4 + $0x24] sm:$0xf] }
  0xde   : > { %4027 = vmatmul.msk.bf16.vlgmr.msra.gmra.mxu1 %vm1248_vm0, %v5194_v24  ;;  %1654 = vmatpush.bf16.msrb.mxu0 %v5273_v38 }
  0xdf   : > { %1683 = vmatpush.bf16.msrb.mxu1 %v5290_v2  ;;  %6633 = vst [vmem:[#allocation44_spill] sm:$0xff] %v5304_v52 }
  0xe2   : > { %1655 = vmatpush.bf16.msrb.mxu0 %v5281_v50 }
  0xe3   : > { %4047 = vmatmul.msk.bf16.vlgmr.msra.gmra.mxu2 %vm1248_vm0, %v5206_v25  ;;  %1684 = vmatpush.bf16.msrb.mxu1 %v5304_v52 }
  0xe4   : > { %1740 = vmatpush.bf16.xpose.msrb.mxu2 %v4948_v42 }
  0xe5   : > { %1770 = vmatpush.bf16.xpose.msrb.mxu3 %v4985_v59 }
  0xe6   : > { %1656 = vmatpush.bf16.msrb.mxu0 %v5287_v55 }
  0xea   : > { %1657 = vmatpush.bf16.msrb.mxu0 %v5301_v37 }
  0xec   : > { %1741 = vmatpush.bf16.xpose.msrb.mxu2 %v4982_v58  ;;  %4052 = vmatmul.msk.bf16.gmra.mxu3 %vm1248_vm0, %v5224_v27 }
  0xed   : > { %1771 = vmatpush.bf16.xpose.msrb.mxu3 %v5011_v7  ;;  %4024 = vmatmul.msk.bf16.gmra.mxu0 %vm1248_vm0, %v5215_v26 }
  0xee   : > { %4028 = vmatmul.msk.bf16.gmra.mxu1 %vm1248_vm0, %v5215_v26 }
  0xf3   : > { %4048 = vmatmul.msk.bf16.gmra.mxu2 %vm1248_vm0, %v5224_v27 }
  0xf4   : > { %1742 = vmatpush.bf16.xpose.msrb.mxu2 %v5008_v6 }
  0xf5   : > { %1772 = vmatpush.bf16.xpose.msrb.mxu3 %v5041_v19 }
  0xfc   : > { %1743 = vmatpush.bf16.xpose.msrb.mxu2 %v5038_v18  ;;  %4053 = vmatmul.msk.bf16.gmra.mxu3 %vm1248_vm0, %v5242_v29 }
  0xfd   : > { %1773 = vmatpush.bf16.xpose.msrb.mxu3 %v5077_v31  ;;  %4025 = vmatmul.msk.bf16.gmra.mxu0 %vm1248_vm0, %v5233_v28  ;;  %v3827_v31 = vld [vmem:[%s5065_s4 + $0x18] sm:$0xf0] }
  0xfe   : > { %4029 = vmatmul.msk.bf16.gmra.mxu1 %vm1248_vm0, %v5233_v28 }
 0x103   : > { %4049 = vmatmul.msk.bf16.gmra.mxu2 %vm1248_vm0, %v5242_v29 }
 0x104   : > { %1744 = vmatpush.bf16.xpose.msrb.mxu2 %v5074_v30 }
 0x105   : > { %1774 = vmatpush.bf16.xpose.msrb.mxu3 %v5111_v45  ;;  %v3915_v45 = vld [vmem:[%s4959_s13 + $0x8] sm:$0xf0] }
 0x10c   : > { %1745 = vmatpush.bf16.xpose.msrb.mxu2 %v5108_v44  ;;  %4054 = vmatmul.msk.bf16.gmra.mxu3 %vm1248_vm0, %v5256_v35 }
 0x10d   : > { %1775 = vmatpush.bf16.xpose.msrb.mxu3 %v5144_v63  ;;  %4026 = vmatmul.msk.bf16.gmra.mxu0 %vm1248_vm0, %v5251_v34 }
 0x10e   : > { %4030 = vmatmul.msk.bf16.gmra.mxu1 %vm1248_vm0, %v5251_v34 }
 0x113   : > { %4050 = vmatmul.msk.bf16.gmra.mxu2 %vm1248_vm0, %v5256_v35 }
 0x114   : > { %1746 = vmatpush.bf16.xpose.msrb.mxu2 %v5141_v62 }
 0x115   : > { %1776 = vmatpush.bf16.xpose.msrb.mxu3 %v5172_v15 }
 0x117   : > { %v1821_v7 = vpop.permute.xlu1 %1820 }
 0x118   : > { %v1872_v59 = vsel %vm1248_vm0, %v1821_v7, 0  ;;  %v4180_v7 = vld [vmem:[%s5069_s17 + $0x4] sm:$0xf]  ;;  %v1819_v6 = vpop.permute.xlu0 %1818 }
 0x11c   : > { %1747 = vmatpush.bf16.xpose.msrb.mxu2 %v5169_v14  ;;  %v4166_v14 = vld [vmem:[%s5065_s4 + $0x14] sm:$0xf] }
 0x11d   : > { %v5341_v19 = vor.u32 %v4166_v14, %v3827_v31  ;;  %v4164_v31 = vld [vmem:[%s5065_s4 + $0x4] sm:$0xf]  ;;  %v3819_v14 = vld [vmem:[%s5065_s4 + $0x8] sm:$0xf0] }
 0x11f   : > { %6638 = vst [vmem:[#allocation49_spill] sm:$0xff] %v5341_v19 }
 0x15a   : > { %v1318_v39 = vpop.f32.mrf.mxu0 }
 0x15b   : > { %v1347_v40 = vpop.f32.mrf.mxu1 }
 0x15f   : > { %v1485_v36 = vpop.f32.mrf.mxu3 }
 0x160   : > { %v1486_v49 = vadd.f32 %v1485_v36, %v1347_v40  ;;  %v3923_v40 = vld [vmem:[%s4959_s13 + $0x18] sm:$0xf0] }
 0x161   : > { %v5322_v22 = vor.u32 %v4190_v57, %v3923_v40 }
 0x162   : > { %v1320_v3 = vpop.f32.mrf.mxu0  ;;  %v5311_v54 = vadd.f32 %v5295_v10, %v1486_v49  ;;  %v3835_v49 = vld [vmem:[%s5065_s4 + $0x28] sm:$0xf0] }
 0x163   : > { %v1349_v4 = vpop.f32.mrf.mxu1  ;;  %6635 = vst [vmem:[#allocation46_spill] sm:$0xff] %v5322_v22  ;;  %1685 = vmatpush.bf16.msrb.mxu1 %v5322_v22  ;;  %v5329_v63 = vor.u32 %v4168_v41, %v3835_v49  ;;  %v4184_v49 = vld [vmem:[%s5069_s17 + $0x24] sm:$0xf] }
 0x165   : > { %6636 = vst [vmem:[#allocation47_spill] sm:$0xff] %v5329_v63 }
 0x166   : > { %v1456_v11 = vpop.f32.mrf.mxu2 }
 0x167   : > { %v1457_v23 = vadd.f32 %v1456_v11, %v1318_v39  ;;  %v4170_v39 = vld [vmem:[%s5065_s4 + $0x34] sm:$0xf]  ;;  %v1487_v15 = vpop.f32.mrf.mxu3  ;;  %s6643_s4 = sld [smem:[#allocation59_spill]] }
 0x168   : > { %v5317_v11 = vor.u32 %v4170_v39, %v3843_v56  ;;  %v4188_v39 = vld [vmem:[%s4959_s13 + $0x4] sm:$0xf]  ;;  %v1488_v57 = vadd.f32 %v1487_v15, %v1349_v4 }
 0x169   : > { %v5307_v53 = vadd.f32 %v5293_v5, %v1457_v23  ;;  %v5332_v40 = vor.u32 %v4188_v39, %v3915_v45 }
 0x16a   : > { %6634 = vst [vmem:[#allocation45_spill] sm:$0xff] %v5317_v11  ;;  %v1323_v13 = vpop.f32.mrf.mxu0  ;;  %1658 = vmatpush.bf16.msrb.mxu0 %v5317_v11 }
 0x16b   : > { %v1526_v12 = vmax.f32 %v5307_v53, %v5311_v54  ;;  %v1352_v23 = vpop.f32.mrf.mxu1  ;;  %6637 = vst [vmem:[#allocation48_spill] sm:$0xff] %v5332_v40  ;;  %1686 = vmatpush.bf16.msrb.mxu1 %v5332_v40 }
 0x16d   : > { %1527 = vmax.xlane.f32.xlu0 %v1526_v12  ;;  %v4186_v12 = vld [vmem:[%s5069_s17 + $0x34] sm:$0xf] }
 0x16e   : > { %v1458_v36 = vpop.f32.mrf.mxu2  ;;  %1659 = vmatpush.bf16.msrb.mxu0 %v5329_v63 }
 0x16f   : > { %v1459_v56 = vadd.f32 %v1458_v36, %v1320_v3  ;;  %v3907_v3 = vld [vmem:[%s5069_s17 + $0x38] sm:$0xf0]  ;;  %v5345_v36 = vadd.f32 %v5295_v10, %v1488_v57  ;;  %v1490_v57 = vpop.f32.mrf.mxu3 }
 0x170   : > { %v5348_v45 = vor.u32 %v4186_v12, %v3907_v3  ;;  %v5357_v12 = vor.u32 %v4164_v31, %v3819_v14  ;;  %v3899_v3 = vld [vmem:[%s5069_s17 + $0x28] sm:$0xf0]  ;;  %v1491_v44 = vadd.f32 %v1490_v57, %v1352_v23  ;;  %v3891_v23 = vld [vmem:[%s5069_s17 + $0x18] sm:$0xf0] }
 0x171   : > { %v5338_v62 = vadd.f32 %v5293_v5, %v1459_v56  ;;  %v5360_v30 = vor.u32 %v4184_v49, %v3899_v3  ;;  %v3883_v49 = vld [vmem:[%s5069_s17 + $0x8] sm:$0xf0] }
 0x172   : > { %6639 = vst [vmem:[#allocation50_spill] sm:$0xff] %v5348_v45  ;;  %v1325_v4 = vpop.f32.mrf.mxu0  ;;  %1660 = vmatpush.bf16.msrb.mxu0 %v5341_v19  ;;  %1687 = vmatpush.bf16.msrb.mxu1 %v5348_v45  ;;  %v5368_v18 = vadd.f32 %v5295_v10, %v1491_v44  ;;  %v5380_v3 = vor.u32 %v4180_v7, %v3883_v49 }
 0x173   : > { %v1529_v15 = vmax.f32 %v5338_v62, %v5345_v36  ;;  %v1354_v39 = vpop.f32.mrf.mxu1  ;;  %6640 = vst [vmem:[#allocation51_spill] sm:$0xff] %v5357_v12 }
 0x174   : > { %6641 = vst [vmem:[#allocation52_spill] sm:$0xff] %v5360_v30 }
 0x175   : > { %1530 = vmax.xlane.f32.xlu0 %v1529_v15  ;;  %6642 = vst [vmem:[#allocation53_spill] sm:$0xff] %v5380_v3 }
 0x176   : > { %v1461_v41 = vpop.f32.mrf.mxu2  ;;  %1661 = vmatpush.bf16.msrb.mxu0 %v5357_v12  ;;  %1688 = vmatpush.bf16.msrb.mxu1 %v5360_v30 }
 0x177   : > { %v1462_v56 = vadd.f32 %v1461_v41, %v1323_v13  ;;  %v4182_v13 = vld [vmem:[%s5069_s17 + $0x14] sm:$0xf]  ;;  %v1492_v44 = vpop.f32.mrf.mxu3 }
 0x178   : > { %v5373_v41 = vor.u32 %v4182_v13, %v3891_v23  ;;  %v1493_v43 = vadd.f32 %v1492_v44, %v1354_v39 }
 0x179   : > { %v5363_v15 = vadd.f32 %v5293_v5, %v1462_v56 }
 0x17a   : > { %1898 = vmatpush.bf16.xpose.msra.mxu0 %v1872_v59  ;;  %1689 = vmatpush.bf16.msrb.mxu1 %v5373_v41  ;;  %v1328_v56 = vpop.f32.mrf.mxu0  ;;  %v1837_v59 = vpop.permute.xlu2 %1836  ;;  %v5388_v42 = vadd.f32 %v5295_v10, %v1493_v43 }
 0x17b   : > { %v1532_v31 = vmax.f32 %v5363_v15, %v5368_v18  ;;  %v1357_v58 = vpop.f32.mrf.mxu1  ;;  %v1896_v23 = vsel %vm1248_vm0, %v1837_v59, 0 }
 0x17d   : > { %1533 = vmax.xlane.f32.xlu1 %v1532_v31  ;;  %v1869_v31 = vsel %vm1248_vm0, %v1819_v6, 0  ;;  %v1815_v6 = vpop.permute.xlu0 %1814 }
 0x17e   : > { %v1463_v14 = vpop.f32.mrf.mxu2  ;;  %1690 = vmatpush.bf16.msrb.mxu1 %v5380_v3 }
 0x17f   : > { %v1464_v57 = vadd.f32 %v1463_v14, %v1325_v4  ;;  %v1817_v14 = vpop.permute.xlu1 %1816  ;;  %v1495_v49 = vpop.f32.mrf.mxu3 }
 0x180   : > { %v1496_v44 = vadd.f32 %v1495_v49, %v1357_v58  ;;  %v1863_v49 = vsel %vm1248_vm0, %v1815_v6, 0 }
 0x181   : > { %v5383_v13 = vadd.f32 %v5293_v5, %v1464_v57  ;;  %v1866_v57 = vsel %vm1248_vm0, %v1817_v14, 0 }
 0x182   : > { %1899 = vmatpush.bf16.xpose.msra.mxu0 %v1869_v31  ;;  %1927 = vmatpush.bf16.xpose.msra.mxu1 %v1896_v23  ;;  %v1835_v59 = vpop.permute.xlu2 %1834  ;;  %v1330_v31 = vpop.f32.mrf.mxu0  ;;  %v5399_v23 = vadd.f32 %v5295_v10, %v1496_v44 }
 0x183   : > { %v1535_v4 = vmax.f32 %v5383_v13, %v5388_v42  ;;  %v1893_v20 = vsel %vm1248_vm0, %v1835_v59, 0 }
 0x185   : > { %1536 = vmax.xlane.f32.xlu1 %v1535_v4  ;;  %v1359_v4 = vpop.f32.mrf.mxu1  ;;  %v1831_v51 = vpop.permute.xlu0 %1830 }
 0x186   : > { %v1466_v39 = vpop.f32.mrf.mxu2 }
 0x187   : > { %v1467_v7 = vadd.f32 %v1466_v39, %v1328_v56  ;;  %v1497_v14 = vpop.f32.mrf.mxu3 }
 0x189   : > { %v5395_v43 = vadd.f32 %v5293_v5, %v1467_v7  ;;  %v1498_v7 = vadd.f32 %v1497_v14, %v1359_v4 }
 0x18a   : > { %1900 = vmatpush.bf16.xpose.msra.mxu0 %v1866_v57  ;;  %1928 = vmatpush.bf16.xpose.msra.mxu1 %v1893_v20  ;;  %v1833_v32 = vpop.permute.xlu2 %1832  ;;  %v1333_v20 = vpop.f32.mrf.mxu0 }
 0x18b   : > { %v1538_v56 = vmax.f32 %v5395_v43, %v5399_v23  ;;  %v1890_v44 = vsel %vm1248_vm0, %v1833_v32, 0  ;;  %v5409_v57 = vadd.f32 %v5295_v10, %v1498_v7 }
 0x18d   : > { %1539 = vmax.xlane.f32.xlu2 %v1538_v56  ;;  %v1362_v9 = vpop.f32.mrf.mxu1  ;;  %v1813_v14 = vpop.permute.xlu0 %1812 }
 0x18e   : > { %v1468_v39 = vpop.f32.mrf.mxu2  ;;  %v1860_v7 = vsel %vm1248_vm0, %v1813_v14, 0 }
 0x18f   : > { %v1469_v58 = vadd.f32 %v1468_v39, %v1330_v31  ;;  %v1500_v56 = vpop.f32.mrf.mxu3 }
 0x190   : > { %v1501_v39 = vadd.f32 %v1500_v56, %v1362_v9 }
 0x191   : > { %v5405_v59 = vadd.f32 %v5293_v5, %v1469_v58  ;;  %v1887_v58 = vsel %vm1248_vm0, %v1831_v51, 0 }
 0x192   : > { %1901 = vmatpush.bf16.xpose.msra.mxu0 %v1863_v49  ;;  %1929 = vmatpush.bf16.xpose.msra.mxu1 %v1890_v44  ;;  %v5419_v49 = vadd.f32 %v5295_v10, %v1501_v39 }
 0x193   : > { %v1541_v31 = vmax.f32 %v5405_v59, %v5409_v57 }
 0x195   : > { %1542 = vmax.xlane.f32.xlu2 %v1541_v31  ;;  %v1335_v31 = vpop.f32.mrf.mxu0 }
 0x196   : > { %v1471_v6 = vpop.f32.mrf.mxu2 }
 0x197   : > { %v1472_v4 = vadd.f32 %v1471_v6, %v1333_v20  ;;  %v1364_v20 = vpop.f32.mrf.mxu1  ;;  %v1502_v51 = vpop.f32.mrf.mxu3 }
 0x198   : > { %v1503_v56 = vadd.f32 %v1502_v51, %v1364_v20 }
 0x199   : > { %v5415_v32 = vadd.f32 %v5293_v5, %v1472_v4 }
 0x19a   : > { %1902 = vmatpush.bf16.xpose.msra.mxu0 %v1860_v7  ;;  %1930 = vmatpush.bf16.xpose.msra.mxu1 %v1887_v58  ;;  %v5427_v14 = vadd.f32 %v5295_v10, %v1503_v56 }
 0x19b   : > { %v1544_v44 = vmax.f32 %v5415_v32, %v5419_v49 }
 0x19d   : > { %1545 = vmax.xlane.f32.xlu0 %v1544_v44 }
 0x19e   : > { %v1473_v9 = vpop.f32.mrf.mxu2 }
 0x19f   : > { %v1474_v6 = vadd.f32 %v1473_v9, %v1335_v31 }
 0x1a1   : > { %v5424_v4 = vadd.f32 %v5293_v5, %v1474_v6 }
 0x1a3   : > { %v1547_v39 = vmax.f32 %v5424_v4, %v5427_v14 }
 0x1a5   : > { %1548 = vmax.xlane.f32.xlu1 %v1547_v39 }
 0x1be   : > { %1826 = vrot.lane.b32.xlu1 %v5115_v48, %s4671_s28 }
 0x1c6   : > { %1824 = vrot.lane.b32.xlu1 %v5148_v1, %s4671_s28 }
 0x1e0   : > { %v1528_v58 = vpop.xlane.xlu0 %1527 }
 0x1e1   : > { %v1550_v7 = vsub.f32 %v5307_v53, %v1528_v58  ;;  %v1551_v44 = vsub.f32 %v5311_v54, %v1528_v58 }
 0x1e3   : > { %v1566_v31 = vmul.f32 1.442695, %v1550_v7  ;;  %v1568_v20 = vmul.f32 1.442695, %v1551_v44 }
 0x1e5   : > { %4351 = vpow2.f32 %v1566_v31 }
 0x1e6   : > { %4353 = vpow2.f32 %v1568_v20 }
 0x1e8   : > { %v1531_v9 = vpop.xlane.xlu0 %1530 }
 0x1e9   : > { %v1552_v6 = vsub.f32 %v5338_v62, %v1531_v9  ;;  %v1553_v51 = vsub.f32 %v5345_v36, %v1531_v9 }
 0x1eb   : > { %v5439_v56 = vpop.eup %4351  ;;  %v1570_v39 = vmul.f32 1.442695, %v1552_v6  ;;  %v1572_v48 = vmul.f32 1.442695, %v1553_v51 }
 0x1ec   : > { %v5441_v21 = vpop.eup %4353 }
 0x1ed   : > { %4355 = vpow2.f32 %v1570_v39  ;;  %v1598_v53 = vadd.f32 %v5441_v21, %v5439_v56 }
 0x1ee   : > { %4357 = vpow2.f32 %v1572_v48 }
 0x1ef   : > { %1599 = vadd.xlane.f32.xlu2 %v1598_v53 }
 0x1f0   : > { %v1534_v54 = vpop.xlane.xlu1 %1533 }
 0x1f1   : > { %v1554_v58 = vsub.f32 %v5363_v15, %v1534_v54  ;;  %v1555_v7 = vsub.f32 %v5368_v18, %v1534_v54 }
 0x1f3   : > { %v5447_v62 = vpop.eup %4355  ;;  %v1574_v36 = vmul.f32 1.442695, %v1554_v58  ;;  %v1576_v44 = vmul.f32 1.442695, %v1555_v7 }
 0x1f4   : > { %v5449_v31 = vpop.eup %4357 }
 0x1f5   : > { %4359 = vpow2.f32 %v1574_v36  ;;  %v1601_v20 = vadd.f32 %v5449_v31, %v5447_v62 }
 0x1f6   : > { %4361 = vpow2.f32 %v1576_v44 }
 0x1f7   : > { %1602 = vadd.xlane.f32.xlu0 %v1601_v20 }
 0x1f8   : > { %v1537_v9 = vpop.xlane.xlu1 %1536 }
 0x1f9   : > { %v1556_v48 = vsub.f32 %v5383_v13, %v1537_v9  ;;  %v1557_v6 = vsub.f32 %v5388_v42, %v1537_v9 }
 0x1fb   : > { %v5455_v15 = vpop.eup %4359  ;;  %v1578_v18 = vmul.f32 1.442695, %v1556_v48  ;;  %v1580_v51 = vmul.f32 1.442695, %v1557_v6 }
 0x1fc   : > { %v5457_v39 = vpop.eup %4361 }
 0x1fd   : > { %4363 = vpow2.f32 %v1578_v18  ;;  %v1604_v53 = vadd.f32 %v5457_v39, %v5455_v15 }
 0x1fe   : > { %4365 = vpow2.f32 %v1580_v51 }
 0x1ff   : > { %1605 = vadd.xlane.f32.xlu0 %v1604_v53 }
 0x200   : > { %v1540_v54 = vpop.xlane.xlu2 %1539 }
 0x201   : > { %v1558_v58 = vsub.f32 %v5395_v43, %v1540_v54  ;;  %v1559_v7 = vsub.f32 %v5399_v23, %v1540_v54 }
 0x203   : > { %v5463_v13 = vpop.eup %4363  ;;  %v1582_v42 = vmul.f32 1.442695, %v1558_v58  ;;  %v1584_v36 = vmul.f32 1.442695, %v1559_v7 }
 0x204   : > { %v5465_v44 = vpop.eup %4365 }
 0x205   : > { %4367 = vpow2.f32 %v1582_v42  ;;  %v1607_v20 = vadd.f32 %v5465_v44, %v5463_v13 }
 0x206   : > { %4369 = vpow2.f32 %v1584_v36 }
 0x207   : > { %1810 = vrot.lane.b32.xlu2 %v5113_v46, %s4671_s28  ;;  %1608 = vadd.xlane.f32.xlu0 %v1607_v20 }
 0x208   : > { %v1543_v48 = vpop.xlane.xlu2 %1542 }
 0x209   : > { %v1560_v6 = vsub.f32 %v5405_v59, %v1543_v48  ;;  %v1561_v18 = vsub.f32 %v5409_v57, %v1543_v48 }
 0x20b   : > { %v5471_v9 = vpop.eup %4367  ;;  %v1586_v51 = vmul.f32 1.442695, %v1560_v6  ;;  %v1588_v53 = vmul.f32 1.442695, %v1561_v18 }
 0x20c   : > { %v5473_v43 = vpop.eup %4369 }
 0x20d   : > { %v1610_v23 = vadd.f32 %v5473_v43, %v5471_v9  ;;  %4371 = vpow2.f32 %v1586_v51 }
 0x20e   : > { %4373 = vpow2.f32 %v1588_v53 }
 0x20f   : > { %1611 = vadd.xlane.f32.xlu1 %v1610_v23  ;;  %1808 = vrot.lane.b32.xlu2 %v5146_v0, %s4671_s28 }
 0x210   : > { %v1546_v23 = vpop.xlane.xlu0 %1545 }
 0x211   : > { %v1562_v48 = vsub.f32 %v5415_v32, %v1546_v23 }
 0x213   : > { %v5486_v7 = vpop.eup %4371 }
 0x214   : > { %v5489_v36 = vpop.eup %4373 }
 0x215   : > { %v1613_v57 = vadd.f32 %v5489_v36, %v5486_v7 }
 0x218   : > { %v1549_v54 = vpop.xlane.xlu1 %1548 }
 0x219   : > { %v1564_v58 = vsub.f32 %v5424_v4, %v1549_v54  ;;  %v1565_v42 = vsub.f32 %v5427_v14, %v1549_v54  ;;  %v1563_v4 = vsub.f32 %v5419_v49, %v1546_v23  ;;  %v1590_v14 = vmul.f32 1.442695, %v1562_v48 }
 0x21b   : > { %1828 = vrot.lane.b32.xlu0 %v5081_v33, %s4671_s28  ;;  %v1594_v20 = vmul.f32 1.442695, %v1564_v58  ;;  %v1596_v59 = vmul.f32 1.442695, %v1565_v42  ;;  %v1592_v51 = vmul.f32 1.442695, %v1563_v4 }
 0x21d   : > { %4375 = vpow2.f32 %v1594_v20 }
 0x21e   : > { %4377 = vpow2.f32 %v1596_v59 }
 0x21f   : > { %4379 = vpow2.f32 %v1590_v14 }
 0x220   : > { %4381 = vpow2.f32 %v1592_v51 }
 0x223   : > { %v5494_v6 = vpop.eup %4375 }
 0x224   : > { %v5497_v18 = vpop.eup %4377 }
 0x225   : > { %v1619_v53 = vadd.f32 %v5497_v18, %v5494_v6  ;;  %v5501_v54 = vpop.eup %4379 }
 0x226   : > { %v5503_v58 = vpop.eup %4381 }
 0x227   : > { %v1616_v32 = vadd.f32 %v5503_v58, %v5501_v54 }
 0x228   : > { %1822 = vrot.lane.b32.xlu1 %v5176_v17, %s4671_s28 }
 0x238   : > { %1614 = vadd.xlane.f32.xlu2 %v1613_v57 }
 0x245   : > { %1620 = vadd.xlane.f32.xlu0 %v1619_v53 }
 0x250   : > { %1806 = vrot.lane.b32.xlu2 %v5174_v16, %s4671_s28 }
 0x252   : > { %1617 = vadd.xlane.f32.xlu1 %v1616_v32 }
 0x258   : > { %1798 = vrot.lane.b32.xlu2 %v5206_v25, %s4671_s28 }
 0x259   : > { %1720 = vrot.lane.b32.xlu0 %v5194_v24, %s4671_s28 }
 0x260   : > { %1800 = vrot.lane.b32.xlu2 %v5224_v27, %s4671_s28 }
 0x261   : > { %1726 = vrot.lane.b32.xlu0 %v5251_v34, %s4671_s28 }
 0x262   : > { %v1600_v49 = vpop.xlane.xlu2 %1599 }
 0x263   : > { %4383 = vrcp.f32 %v1600_v49  ;;  %v1827_v49 = vpop.permute.xlu1 %1826 }
 0x268   : > { %1802 = vrot.lane.b32.xlu2 %v5242_v29, %s4671_s28 }
 0x269   : > { %2130 = vrot.lane.b32.xlu0 %v5290_v2, %s4671_s28  ;;  %v4384_v24 = vpop.eup %4383 }
 0x26a   : > { %v1603_v42 = vpop.xlane.xlu0 %1602  ;;  %v1811_v20 = vpop.permute.xlu2 %1810  ;;  %v1630_v59 = vmul.f32 %v4384_v24, %v5439_v56  ;;  %v1631_v23 = vmul.f32 %v4384_v24, %v5441_v21 }
 0x26b   : > { %4385 = vrcp.f32 %v1603_v42  ;;  %v1857_v25 = vsel %vm1248_vm0, %v1811_v20, 0  ;;  %1722 = vrot.lane.b32.xlu1 %v5215_v26, %s4671_s28 }
 0x26c   : > { %1903 = vmatpush.bf16.xpose.msra.mxu0 %v1857_v25 }
 0x270   : > { %2114 = vrot.lane.b32.xlu2 %v5273_v38, %s4671_s28 }
 0x271   : > { %v4386_v27 = vpop.eup %4385  ;;  %2128 = vrot.lane.b32.xlu0 %v5304_v52, %s4671_s28 }
 0x272   : > { %v1606_v29 = vpop.xlane.xlu0 %1605  ;;  %v1809_v34 = vpop.permute.xlu2 %1808  ;;  %v1632_v57 = vmul.f32 %v4386_v27, %v5447_v62  ;;  %v1633_v48 = vmul.f32 %v4386_v27, %v5449_v31 }
 0x273   : > { %v1854_v26 = vsel %vm1248_vm0, %v1809_v34, 0  ;;  %1724 = vrot.lane.b32.xlu1 %v5233_v28, %s4671_s28  ;;  %4387 = vrcp.f32 %v1606_v29 }
 0x274   : > { %1904 = vmatpush.bf16.xpose.msra.mxu0 %v1854_v26  ;;  %v1646_v4 = vpack.c.bf16 %v1632_v57, %v1630_v59  ;;  %v1647_v14 = vpack.c.bf16 %v1633_v48, %v1631_v23 }
 0x276   : > { %1662 = vmatmul.bf16.vlgmr.msrb.gmra.mxu0 %v1646_v4  ;;  %1691 = vmatmul.bf16.vlgmr.msrb.gmra.mxu1 %v1647_v14 }
 0x278   : > { %2110 = vrot.lane.b32.xlu2 %v5287_v55, %s4671_s28 }
 0x279   : > { %2108 = vrot.lane.b32.xlu0 %v5301_v37, %s4671_s28  ;;  %v4388_v56 = vpop.eup %4387 }
 0x27a   : > { %v1609_v21 = vpop.xlane.xlu0 %1608  ;;  %v1634_v62 = vmul.f32 %v4388_v56, %v5455_v15  ;;  %v1635_v51 = vmul.f32 %v4388_v56, %v5457_v39  ;;  %v1825_v39 = vpop.permute.xlu1 %1824 }
 0x27b   : > { %4389 = vrcp.f32 %v1609_v21  ;;  %1804 = vrot.lane.b32.xlu1 %v5256_v35, %s4671_s28  ;;  %v1878_v20 = vsel %vm1248_vm0, %v1825_v39, 0 }
 0x280   : > { %2124 = vrot.lane.b32.xlu2 %v5332_v40, %s4671_s28 }
 0x281   : > { %v4390_v28 = vpop.eup %4389  ;;  %2104 = vrot.lane.b32.xlu0 %v5329_v63, %s4671_s28 }
 0x282   : > { %v1636_v31 = vmul.f32 %v4390_v28, %v5463_v13  ;;  %v1637_v53 = vmul.f32 %v4390_v28, %v5465_v44  ;;  %v1881_v44 = vsel %vm1248_vm0, %v1827_v49, 0  ;;  %v1612_v42 = vpop.xlane.xlu1 %1611 }
 0x283   : > { %2112 = vrot.lane.b32.xlu1 %v5281_v50, %s4671_s28  ;;  %4391 = vrcp.f32 %v1612_v42 }
 0x284   : > { %v1648_v35 = vpack.c.bf16 %v1636_v31, %v1634_v62  ;;  %v1649_v32 = vpack.c.bf16 %v1637_v53, %v1635_v51 }
 0x286   : > { %1667 = vmatmul.bf16.gmra.mxu0 %v1648_v35  ;;  %1696 = vmatmul.bf16.gmra.mxu1 %v1649_v32 }
 0x288   : > { %2106 = vrot.lane.b32.xlu2 %v5317_v11, %s4671_s28 }
 0x289   : > { %v4392_v29 = vpop.eup %4391 }
 0x28a   : > { %v1638_v59 = vmul.f32 %v4392_v29, %v5471_v9  ;;  %v1639_v23 = vmul.f32 %v4392_v29, %v5473_v43 }
 0x28b   : > { %2126 = vrot.lane.b32.xlu1 %v5322_v22, %s4671_s28 }
 0x28d   : > { %v1829_v15 = vpop.permute.xlu0 %1828 }
 0x28e   : > { %v1884_v13 = vsel %vm1248_vm0, %v1829_v15, 0 }
 0x28f   : > { %1931 = vmatpush.bf16.xpose.msra.mxu1 %v1884_v13 }
 0x293   : > { %2120 = vrot.lane.b32.xlu1 %v5360_v30, %s4671_s28 }
 0x297   : > { %1932 = vmatpush.bf16.xpose.msra.mxu1 %v1881_v44 }
 0x29a   : > { %v1823_v25 = vpop.permute.xlu1 %1822 }
 0x29b   : > { %v1875_v24 = vsel %vm1248_vm0, %v1823_v25, 0 }
 0x29f   : > { %1933 = vmatpush.bf16.xpose.msra.mxu1 %v1878_v20 }
 0x2a7   : > { %1934 = vmatpush.bf16.xpose.msra.mxu1 %v1875_v24 }
 0x2ab   : > { %v1615_v27 = vpop.xlane.xlu2 %1614 }
 0x2ac   : > { %4393 = vrcp.f32 %v1615_v27 }
 0x2b2   : > { %v4394_v34 = vpop.eup %4393 }
 0x2b3   : > { %v1640_v57 = vmul.f32 %v4394_v34, %v5486_v7  ;;  %v1641_v48 = vmul.f32 %v4394_v34, %v5489_v36  ;;  %v1807_v26 = vpop.permute.xlu2 %1806 }
 0x2b4   : > { %v1851_v4 = vsel %vm1248_vm0, %v1807_v26, 0 }
 0x2b5   : > { %v1650_v14 = vpack.c.bf16 %v1640_v57, %v1638_v59  ;;  %v1651_v21 = vpack.c.bf16 %v1641_v48, %v1639_v23  ;;  %1905 = vmatpush.bf16.xpose.msra.mxu0 %v1851_v4 }
 0x2b7   : > { %1672 = vmatmul.bf16.gmra.mxu0 %v1650_v14  ;;  %1701 = vmatmul.bf16.gmra.mxu1 %v1651_v21 }
 0x2b8   : > { %v1621_v56 = vpop.xlane.xlu0 %1620 }
 0x2b9   : > { %4395 = vrcp.f32 %v1621_v56 }
 0x2bb   : > { %v1799_v49 = vpop.permute.xlu2 %1798 }
 0x2bf   : > { %v4396_v62 = vpop.eup %4395 }
 0x2c0   : > { %v1644_v7 = vmul.f32 %v4396_v62, %v5494_v6  ;;  %v1645_v51 = vmul.f32 %v4396_v62, %v5497_v18  ;;  %v4217_v18 = vld [vmem:[%s6643_s4 + $0x8] sm:$0xff] }
 0x2c1   : > { %2297 = vmatpush.bf16.msrb.mxu1 %v4217_v18 }
 0x2c3   : > { %v1801_v6 = vpop.permute.xlu2 %1800 }
 0x2c5   : > { %v1618_v28 = vpop.xlane.xlu1 %1617 }
 0x2c6   : > { %4397 = vrcp.f32 %v1618_v28 }
 0x2cb   : > { %v1721_v9 = vpop.permute.xlu0 %1720  ;;  %v1803_v13 = vpop.permute.xlu2 %1802 }
 0x2cc   : > { %v4398_v31 = vpop.eup %4397  ;;  %4055 = vmatmul.msk.bf16.vlgmr.msrb.gmra.mxu2 %vm1248_vm0, %v1721_v9  ;;  %4059 = vmatmul.msk.bf16.vlgmr.msrb.gmra.mxu3 %vm1248_vm0, %v1721_v9 }
 0x2cd   : > { %v1642_v43 = vmul.f32 %v4398_v31, %v5501_v54  ;;  %v1643_v36 = vmul.f32 %v4398_v31, %v5503_v58  ;;  %v4216_v58 = vld [vmem:[%s6643_s4] sm:$0xff] }
 0x2ce   : > { %2298 = vmatpush.bf16.msrb.mxu1 %v4216_v58 }
 0x2cf   : > { %v1652_v53 = vpack.c.bf16 %v1644_v7, %v1642_v43  ;;  %v1653_v35 = vpack.c.bf16 %v1645_v51, %v1643_v36 }
 0x2d1   : > { %1677 = vmatmul.bf16.gmra.mxu0 %v1652_v53  ;;  %1706 = vmatmul.bf16.gmra.mxu1 %v1653_v35 }
 0x2d3   : > { %v1727_v15 = vpop.permute.xlu0 %1726 }
 0x2dd   : > { %v1723_v32 = vpop.permute.xlu1 %1722 }
 0x2de   : > { %4056 = vmatmul.msk.bf16.gmra.mxu2 %vm1248_vm0, %v1723_v32  ;;  %4060 = vmatmul.msk.bf16.gmra.mxu3 %vm1248_vm0, %v1723_v32 }
 0x2e1   : > { %4063 = vmatmul.msk.bf16.vlgmr.msra.gmra.mxu0 %vm1248_vm0, %v1799_v49  ;;  %4067 = vmatmul.msk.bf16.vlgmr.msra.gmra.mxu1 %vm1248_vm0, %v1799_v49 }
 0x2e5   : > { %v1725_v54 = vpop.permute.xlu1 %1724 }
 0x2ed   : > { %v1805_v42 = vpop.permute.xlu1 %1804 }
 0x2ee   : > { %4057 = vmatmul.msk.bf16.gmra.mxu2 %vm1248_vm0, %v1725_v54  ;;  %4061 = vmatmul.msk.bf16.gmra.mxu3 %vm1248_vm0, %v1725_v54 }
 0x2f1   : > { %4064 = vmatmul.msk.bf16.gmra.mxu0 %vm1248_vm0, %v1801_v6  ;;  %4068 = vmatmul.msk.bf16.gmra.mxu1 %vm1248_vm0, %v1801_v6 }
 0x2f3   : > { %v1663_v39 = vpop.f32.mrf.mxu0  ;;  %v1692_v44 = vpop.f32.mrf.mxu1 }
 0x2f4   : > { %v1693_v27 = vadd.f32 %v1692_v44, %v1663_v39 }
 0x2fb   : > { %v1665_v20 = vpop.f32.mrf.mxu0  ;;  %v1694_v25 = vpop.f32.mrf.mxu1 }
 0x2fc   : > { %v1695_v24 = vadd.f32 %v1694_v25, %v1665_v20 }
 0x2fe   : > { %4058 = vmatmul.msk.bf16.gmra.mxu2 %vm1248_vm0, %v1727_v15  ;;  %4062 = vmatmul.msk.bf16.gmra.mxu3 %vm1248_vm0, %v1727_v15  ;;  %v1712_v59 = vpack.c.bf16 %v1695_v24, %v1693_v27 }
 0x301   : > { %4065 = vmatmul.msk.bf16.gmra.mxu0 %vm1248_vm0, %v1803_v13  ;;  %4069 = vmatmul.msk.bf16.gmra.mxu1 %vm1248_vm0, %v1803_v13 }
 0x303   : > { %v1668_v29 = vpop.f32.mrf.mxu0  ;;  %v1697_v34 = vpop.f32.mrf.mxu1 }
 0x304   : > { %v1698_v26 = vadd.f32 %v1697_v34, %v1668_v29 }
 0x30b   : > { %v1670_v57 = vpop.f32.mrf.mxu0  ;;  %v1699_v23 = vpop.f32.mrf.mxu1 }
 0x30c   : > { %v1700_v48 = vadd.f32 %v1699_v23, %v1670_v57  ;;  %v2115_v57 = vpop.permute.xlu2 %2114  ;;  %v2131_v23 = vpop.permute.xlu0 %2130 }
 0x30d   : > { %2148 = vmatpush.bf16.msra.mxu2 %v2115_v57  ;;  %2177 = vmatpush.bf16.msra.mxu3 %v2131_v23 }
 0x30e   : > { %v1713_v4 = vpack.c.bf16 %v1700_v48, %v1698_v26  ;;  %v2113_v48 = vpop.permute.xlu1 %2112 }
 0x311   : > { %4066 = vmatmul.msk.bf16.gmra.mxu0 %vm1248_vm0, %v1805_v42  ;;  %4070 = vmatmul.msk.bf16.gmra.mxu1 %vm1248_vm0, %v1805_v42 }
 0x312   : > { %2149 = vmatpush.bf16.msra.mxu2 %v2113_v48 }
 0x321   : > { %4091 = vmatmul.msk.bf16.vlgmr.msrb.gmra.mxu1 %vm1248_vm0, %v1712_v59 }
 0x331   : > { %4092 = vmatmul.msk.bf16.gmra.mxu1 %vm1248_vm0, %v1713_v4 }
 0x334   : > { %v1673_v14 = vpop.f32.mrf.mxu0  ;;  %v1702_v21 = vpop.f32.mrf.mxu1 }
 0x335   : > { %v1703_v62 = vadd.f32 %v1702_v21, %v1673_v14 }
 0x33c   : > { %v1675_v56 = vpop.f32.mrf.mxu0  ;;  %v1704_v28 = vpop.f32.mrf.mxu1 }
 0x33d   : > { %v1705_v9 = vadd.f32 %v1704_v28, %v1675_v56 }
 0x33f   : > { %v1714_v31 = vpack.c.bf16 %v1705_v9, %v1703_v62 }
 0x341   : > { %4093 = vmatmul.msk.bf16.gmra.mxu1 %vm1248_vm0, %v1714_v31 }
 0x34e   : > { %v1678_v43 = vpop.f32.mrf.mxu0  ;;  %v1707_v7 = vpop.f32.mrf.mxu1 }
 0x34f   : > { %v1749_v36 = vpop.f32.mrf.mxu2  ;;  %v1778_v51 = vpop.f32.mrf.mxu3  ;;  %v1708_v32 = vadd.f32 %v1707_v7, %v1678_v43 }
 0x350   : > { %v2111_v43 = vpop.permute.xlu2 %2110  ;;  %v2129_v7 = vpop.permute.xlu0 %2128 }
 0x351   : > { %2150 = vmatpush.bf16.msra.mxu2 %v2111_v43  ;;  %2178 = vmatpush.bf16.msra.mxu3 %v2129_v7 }
 0x356   : > { %v1680_v53 = vpop.f32.mrf.mxu0  ;;  %v1709_v35 = vpop.f32.mrf.mxu1 }
 0x357   : > { %v1710_v49 = vadd.f32 %v1709_v35, %v1680_v53  ;;  %v1751_v6 = vpop.f32.mrf.mxu2  ;;  %v1780_v18 = vpop.f32.mrf.mxu3 }
 0x358   : > { %v2127_v53 = vpop.permute.xlu1 %2126 }
 0x359   : > { %v1715_v54 = vpack.c.bf16 %v1710_v49, %v1708_v32  ;;  %2179 = vmatpush.bf16.msra.mxu3 %v2127_v53 }
 0x35b   : > { %4094 = vmatmul.msk.bf16.gmra.mxu1 %vm1248_vm0, %v1715_v54 }
 0x35e   : > { %v1907_v58 = vpop.f32.mrf.mxu0  ;;  %v1936_v15 = vpop.f32.mrf.mxu1 }
 0x35f   : > { %v1908_v13 = vadd.f32 %v1907_v58, %v1749_v36  ;;  %v1937_v39 = vadd.f32 %v1936_v15, %v1778_v51  ;;  %v2109_v58 = vpop.permute.xlu0 %2108 }
 0x360   : > { %2151 = vmatpush.bf16.msra.mxu2 %v2109_v58 }
 0x361   : > { %v5597_v44 = vadd.f32 %v1908_v13, %v5293_v5  ;;  %v5600_v42 = vadd.f32 %v1937_v39, %v5295_v10  ;;  %v1754_v20 = vpop.f32.mrf.mxu2  ;;  %v1783_v25 = vpop.f32.mrf.mxu3 }
 0x363   : > { %v1972_v24 = vmax.f32 %v5597_v44, %v5600_v42 }
 0x365   : > { %1973 = vmax.xlane.f32.xlu2 %v1972_v24 }
 0x366   : > { %v1909_v27 = vpop.f32.mrf.mxu0  ;;  %v1938_v29 = vpop.f32.mrf.mxu1 }
 0x367   : > { %v1910_v34 = vadd.f32 %v1909_v27, %v1751_v6  ;;  %v1939_v59 = vadd.f32 %v1938_v29, %v1780_v18  ;;  %v2125_v18 = vpop.permute.xlu2 %2124 }
 0x368   : > { %2180 = vmatpush.bf16.msra.mxu3 %v2125_v18 }
 0x369   : > { %v5605_v26 = vadd.f32 %v1910_v34, %v5293_v5  ;;  %v5608_v4 = vadd.f32 %v1939_v59, %v5295_v10  ;;  %v5612_v21 = vpop.f32.mrf.mxu2  ;;  %v5614_v56 = vpop.f32.mrf.mxu3 }
 0x36b   : > { %v1975_v14 = vmax.f32 %v5605_v26, %v5608_v4 }
 0x36d   : > { %1976 = vmax.xlane.f32.xlu0 %v1975_v14 }
 0x36e   : > { %v1912_v28 = vpop.f32.mrf.mxu0  ;;  %v1941_v62 = vpop.f32.mrf.mxu1 }
 0x36f   : > { %v1913_v9 = vadd.f32 %v1912_v28, %v1754_v20  ;;  %v1942_v31 = vadd.f32 %v1941_v62, %v1783_v25  ;;  %v2107_v27 = vpop.permute.xlu2 %2106 }
 0x370   : > { %2152 = vmatpush.bf16.msra.mxu2 %v2107_v27 }
 0x371   : > { %v5617_v36 = vadd.f32 %v1913_v9, %v5293_v5  ;;  %v5620_v51 = vadd.f32 %v1942_v31, %v5295_v10  ;;  %v1759_v32 = vpop.f32.mrf.mxu2  ;;  %v1788_v49 = vpop.f32.mrf.mxu3 }
 0x373   : > { %v1978_v35 = vmax.f32 %v5617_v36, %v5620_v51 }
 0x375   : > { %1979 = vmax.xlane.f32.xlu1 %v1978_v35 }
 0x376   : > { %v1914_v54 = vpop.f32.mrf.mxu0  ;;  %v1943_v6 = vpop.f32.mrf.mxu1 }
 0x379   : > { %v1761_v25 = vpop.f32.mrf.mxu2  ;;  %v1790_v24 = vpop.f32.mrf.mxu3 }
 0x37d   : > { %2122 = vrot.lane.b32.xlu2 %v5348_v45, %s4671_s28 }
 0x37e   : > { %v1917_v15 = vpop.f32.mrf.mxu0  ;;  %v1946_v13 = vpop.f32.mrf.mxu1 }
 0x37f   : > { %v1918_v39 = vadd.f32 %v1917_v15, %v1759_v32  ;;  %v1947_v20 = vadd.f32 %v1946_v13, %v1788_v49  ;;  %v2105_v49 = vpop.permute.xlu0 %2104 }
 0x380   : > { %2153 = vmatpush.bf16.msra.mxu2 %v2105_v49 }
 0x381   : > { %v5627_v29 = vadd.f32 %v1918_v39, %v5293_v5  ;;  %v5630_v34 = vadd.f32 %v1947_v20, %v5295_v10  ;;  %v1764_v9 = vpop.f32.mrf.mxu2  ;;  %v1793_v31 = vpop.f32.mrf.mxu3 }
 0x383   : > { %v1984_v59 = vmax.f32 %v5627_v29, %v5630_v34 }
 0x385   : > { %1985 = vmax.xlane.f32.xlu0 %v1984_v59 }
 0x386   : > { %v1919_v57 = vpop.f32.mrf.mxu0  ;;  %v1948_v23 = vpop.f32.mrf.mxu1 }
 0x387   : > { %v1920_v48 = vadd.f32 %v1919_v57, %v1761_v25  ;;  %v1949_v14 = vadd.f32 %v1948_v23, %v1790_v24  ;;  %v1915_v23 = vadd.f32 %v1914_v54, %v5612_v21 }
 0x389   : > { %v5635_v28 = vadd.f32 %v1920_v48, %v5293_v5  ;;  %v5638_v62 = vadd.f32 %v1949_v14, %v5295_v10  ;;  %v1766_v13 = vpop.f32.mrf.mxu2  ;;  %v1795_v39 = vpop.f32.mrf.mxu3  ;;  %v1944_v48 = vadd.f32 %v1943_v6, %v5614_v56 }
 0x38b   : > { %v1987_v43 = vmax.f32 %v5635_v28, %v5638_v62 }
 0x38d   : > { %1988 = vmax.xlane.f32.xlu1 %v1987_v43 }
 0x38e   : > { %v1922_v7 = vpop.f32.mrf.mxu0  ;;  %v1951_v53 = vpop.f32.mrf.mxu1 }
 0x38f   : > { %v1923_v35 = vadd.f32 %v1922_v7, %v1764_v9  ;;  %v1952_v32 = vadd.f32 %v1951_v53, %v1793_v31  ;;  %v5661_v9 = vadd.f32 %v1915_v23, %v5293_v5  ;;  %v5664_v31 = vadd.f32 %v1944_v48, %v5295_v10  ;;  %v2121_v53 = vpop.permute.xlu1 %2120 }
 0x391   : > { %v5643_v18 = vadd.f32 %v1923_v35, %v5293_v5  ;;  %v5646_v58 = vadd.f32 %v1952_v32, %v5295_v10  ;;  %v1981_v43 = vmax.f32 %v5661_v9, %v5664_v31 }
 0x393   : > { %v1990_v15 = vmax.f32 %v5643_v18, %v5646_v58 }
 0x395   : > { %1991 = vmax.xlane.f32.xlu1 %v1990_v15 }
 0x396   : > { %v1924_v20 = vpop.f32.mrf.mxu0  ;;  %v1953_v25 = vpop.f32.mrf.mxu1 }
 0x397   : > { %v1925_v24 = vadd.f32 %v1924_v20, %v1766_v13  ;;  %v1954_v27 = vadd.f32 %v1953_v25, %v1795_v39 }
 0x399   : > { %v5651_v59 = vadd.f32 %v1925_v24, %v5293_v5  ;;  %v5654_v57 = vadd.f32 %v1954_v27, %v5295_v10 }
 0x39b   : > { %v1993_v14 = vmax.f32 %v5651_v59, %v5654_v57 }
 0x39d   : > { %1994 = vmax.xlane.f32.xlu0 %v1993_v14 }
 0x3a6   : > { %1982 = vmax.xlane.f32.xlu2 %v1981_v43 }
 0x3b1   : > { %2118 = vrot.lane.b32.xlu0 %v5373_v41, %s4671_s28 }
 0x3b9   : > { %2100 = vrot.lane.b32.xlu0 %v5357_v12, %s4671_s28 }
 0x3d8   : > { %v1974_v21 = vpop.xlane.xlu2 %1973 }
 0x3d9   : > { %v1996_v56 = vsub.f32 %v5597_v44, %v1974_v21  ;;  %v1997_v54 = vsub.f32 %v5600_v42, %v1974_v21 }
 0x3db   : > { %v2012_v6 = vmul.f32 1.442695, %v1996_v56  ;;  %v2014_v7 = vmul.f32 1.442695, %v1997_v54 }
 0x3dd   : > { %4399 = vpow2.f32 %v2012_v6 }
 0x3de   : > { %4401 = vpow2.f32 %v2014_v7 }
 0x3e0   : > { %v1977_v35 = vpop.xlane.xlu0 %1976  ;;  %v2123_v15 = vpop.permute.xlu2 %2122 }
 0x3e1   : > { %v1998_v32 = vsub.f32 %v5605_v26, %v1977_v35  ;;  %v1999_v49 = vsub.f32 %v5608_v4, %v1977_v35  ;;  %2181 = vmatpush.bf16.msra.mxu3 %v2123_v15 }
 0x3e3   : > { %v5676_v13 = vpop.eup %4399  ;;  %v2016_v39 = vmul.f32 1.442695, %v1998_v32  ;;  %v2018_v20 = vmul.f32 1.442695, %v1999_v49 }
 0x3e4   : > { %v5678_v25 = vpop.eup %4401 }
 0x3e5   : > { %4403 = vpow2.f32 %v2016_v39  ;;  %v2044_v44 = vadd.f32 %v5678_v25, %v5676_v13  ;;  %2182 = vmatpush.bf16.msra.mxu3 %v2121_v53 }
 0x3e6   : > { %4405 = vpow2.f32 %v2018_v20 }
 0x3e7   : > { %2045 = vadd.xlane.f32.xlu2 %v2044_v44 }
 0x3e8   : > { %v1980_v42 = vpop.xlane.xlu1 %1979 }
 0x3e9   : > { %v2000_v26 = vsub.f32 %v5617_v36, %v1980_v42  ;;  %v2001_v4 = vsub.f32 %v5620_v51, %v1980_v42 }
 0x3eb   : > { %v5684_v24 = vpop.eup %4403  ;;  %v2020_v27 = vmul.f32 1.442695, %v2000_v26  ;;  %v2022_v23 = vmul.f32 1.442695, %v2001_v4 }
 0x3ec   : > { %v5686_v48 = vpop.eup %4405 }
 0x3ed   : > { %4407 = vpow2.f32 %v2020_v27  ;;  %v2047_v14 = vadd.f32 %v5686_v48, %v5684_v24 }
 0x3ee   : > { %4409 = vpow2.f32 %v2022_v23 }
 0x3ef   : > { %2048 = vadd.xlane.f32.xlu1 %v2047_v14 }
 0x3f3   : > { %v5690_v43 = vpop.eup %4407 }
 0x3f4   : > { %v5692_v21 = vpop.eup %4409 }
 0x3f5   : > { %v2050_v36 = vadd.f32 %v5692_v21, %v5690_v43 }
 0x3f7   : > { %2051 = vadd.xlane.f32.xlu0 %v2050_v36 }
 0x3f8   : > { %v1986_v49 = vpop.xlane.xlu0 %1985 }
 0x3ff   : > { %2102 = vrot.lane.b32.xlu2 %v5341_v19, %s4671_s28 }
 0x400   : > { %v1989_v51 = vpop.xlane.xlu1 %1988 }
 0x401   : > { %v2006_v56 = vsub.f32 %v5635_v28, %v1989_v51  ;;  %v2007_v54 = vsub.f32 %v5638_v62, %v1989_v51  ;;  %v2004_v28 = vsub.f32 %v5627_v29, %v1986_v49  ;;  %v2005_v62 = vsub.f32 %v5630_v34, %v1986_v49 }
 0x403   : > { %v2032_v6 = vmul.f32 1.442695, %v2006_v56  ;;  %v2034_v7 = vmul.f32 1.442695, %v2007_v54  ;;  %v2028_v15 = vmul.f32 1.442695, %v2004_v28 }
 0x404   : > { %v2030_v39 = vmul.f32 1.442695, %v2005_v62 }
 0x405   : > { %4411 = vpow2.f32 %v2032_v6 }
 0x406   : > { %4413 = vpow2.f32 %v2034_v7 }
 0x407   : > { %4415 = vpow2.f32 %v2028_v15 }
 0x408   : > { %2116 = vrot.lane.b32.xlu1 %v5380_v3, %s4671_s28  ;;  %4417 = vpow2.f32 %v2030_v39  ;;  %v1992_v51 = vpop.xlane.xlu1 %1991  ;;  %s4672_s28 = smov 64  }
 0x40b   : > { %v5702_v53 = vpop.eup %4411 }
 0x40c   : > { %v5704_v35 = vpop.eup %4413 }
 0x40d   : > { %v2059_v32 = vadd.f32 %v5704_v35, %v5702_v53  ;;  %v5714_v36 = vpop.eup %4415 }
 0x40e   : > { %v5716_v34 = vpop.eup %4417 }
 0x40f   : > { %2060 = vadd.xlane.f32.xlu0 %v2059_v32 }
 0x410   : > { %v1995_v20 = vpop.xlane.xlu0 %1994 }
 0x411   : > { %v2010_v42 = vsub.f32 %v5651_v59, %v1995_v20  ;;  %v2011_v26 = vsub.f32 %v5654_v57, %v1995_v20  ;;  %v2008_v59 = vsub.f32 %v5643_v18, %v1992_v51  ;;  %v2056_v57 = vadd.f32 %v5716_v34, %v5714_v36  ;;  %v6644_v20 = vld [vmem:[#allocation29_spill] sm:$0xff] }
 0x413   : > { %v2040_v23 = vmul.f32 1.442695, %v2010_v42  ;;  %v2042_v14 = vmul.f32 1.442695, %v2011_v26  ;;  %v2036_v54 = vmul.f32 1.442695, %v2008_v59 }
 0x414   : > { %v6646_v42 = vld [vmem:[#allocation20_spill] sm:$0xff] }
 0x415   : > { %4419 = vpow2.f32 %v2040_v23  ;;  %v6647_v26 = vld [vmem:[#allocation32_spill] sm:$0xff]  ;;  %v6649_v23 = vld [vmem:[#allocation35_spill] sm:$0xff] }
 0x416   : > { %4421 = vpow2.f32 %v2042_v14 }
 0x419   : > { %v1983_v44 = vpop.xlane.xlu2 %1982 }
 0x41a   : > { %v2002_v4 = vsub.f32 %v5661_v9, %v1983_v44  ;;  %v2003_v27 = vsub.f32 %v5664_v31, %v1983_v44  ;;  %v2009_v9 = vsub.f32 %v5646_v58, %v1992_v51  ;;  %v6645_v44 = vld [vmem:[#allocation25_spill] sm:$0xff]  ;;  %v5765_v51 = vld [vmem:[%s5183_s21] sm:$0xff] }
 0x41b   : > { %v5722_v31 = vpop.eup %4419 }
 0x41c   : > { %v2024_v29 = vmul.f32 1.442695, %v2002_v4  ;;  %v2026_v56 = vmul.f32 1.442695, %v2003_v27  ;;  %v5724_v6 = vpop.eup %4421  ;;  %v2038_v7 = vmul.f32 1.442695, %v2009_v9 }
 0x41d   : > { %v2065_v18 = vadd.f32 %v5724_v6, %v5722_v31  ;;  %v6648_v27 = vld [vmem:[#allocation28_spill] sm:$0xff] }
 0x41e   : > { %4423 = vpow2.f32 %v2024_v29 }
 0x41f   : > { %4425 = vpow2.f32 %v2026_v56 }
 0x420   : > { %4427 = vpow2.f32 %v2036_v54 }
 0x421   : > { %4429 = vpow2.f32 %v2038_v7 }
 0x423   : > { %2420 = vrot.lane.b32.xlu0 %v4962_v47, %s4672_s28  ;;  %v2119_v39 = vpop.permute.xlu0 %2118 }
 0x424   : > { %v5726_v32 = vpop.eup %4423  ;;  %2183 = vmatpush.bf16.msra.mxu3 %v2119_v39  ;;  %v6652_v39 = vld [vmem:[#allocation21_spill] sm:$0xff] }
 0x425   : > { %v5728_v49 = vpop.eup %4425 }
 0x426   : > { %v2053_v58 = vadd.f32 %v5728_v49, %v5726_v32  ;;  %v5736_v28 = vpop.eup %4427 }
 0x427   : > { %v5738_v62 = vpop.eup %4429 }
 0x428   : > { %2057 = vadd.xlane.f32.xlu2 %v2056_v57  ;;  %v2062_v15 = vadd.f32 %v5738_v62, %v5736_v28  ;;  %v6650_v57 = vld [vmem:[#allocation18_spill] sm:$0xff] }
 0x42b   : > { %2434 = vrot.lane.b32.xlu0 %v4989_v61, %s4672_s28  ;;  %v2101_v56 = vpop.permute.xlu0 %2100 }
 0x430   : > { %2066 = vadd.xlane.f32.xlu2 %v2065_v18  ;;  %v5777_v18 = vld [vmem:[%s5203_s19 + $0x8] sm:$0xff] }
 0x431   : > { %6651 = vst [vmem:[#allocation29_spill] sm:$0xff] %v5777_v18 }
 0x432   : > { %2054 = vadd.xlane.f32.xlu1 %v2053_v58 }
 0x433   : > { %2416 = vrot.lane.b32.xlu0 %v5013_v8, %s4672_s28 }
 0x43a   : > { %2063 = vadd.xlane.f32.xlu1 %v2062_v15  ;;  %v5784_v15 = vld [vmem:[%s5203_s19] sm:$0xff] }
 0x43b   : > { %2430 = vrot.lane.b32.xlu0 %v6644_v20, %s4672_s28 }
 0x443   : > { %2410 = vrot.lane.b32.xlu0 %v5113_v46, %s4672_s28 }
 0x448   : > { %2418 = vrot.lane.b32.xlu2 %v4987_v60, %s4672_s28 }
 0x44b   : > { %2424 = vrot.lane.b32.xlu0 %v5148_v1, %s4672_s28 }
 0x450   : > { %2432 = vrot.lane.b32.xlu2 %v6645_v44, %s4672_s28 }
 0x453   : > { %2436 = vrot.lane.b32.xlu1 %v6646_v42, %s4672_s28  ;;  %2320 = vrot.lane.b32.xlu0 %v5765_v51, %s4672_s28 }
 0x458   : > { %2412 = vrot.lane.b32.xlu2 %v6647_v26, %s4672_s28 }
 0x45a   : > { %v2046_v4 = vpop.xlane.xlu2 %2045 }
 0x45b   : > { %2414 = vrot.lane.b32.xlu1 %v6648_v27, %s4672_s28  ;;  %4431 = vrcp.f32 %v2046_v4  ;;  %2400 = vrot.lane.b32.xlu0 %v5777_v18, %s4672_s28  ;;  %v5798_v4 = vld [vmem:[%s5183_s21 + $0x10] sm:$0xff] }
 0x460   : > { %2426 = vrot.lane.b32.xlu2 %v6649_v23, %s4672_s28 }
 0x461   : > { %v4432_v59 = vpop.eup %4431 }
 0x462   : > { %v2049_v14 = vpop.xlane.xlu1 %2048  ;;  %v2103_v29 = vpop.permute.xlu2 %2102  ;;  %v2076_v54 = vmul.f32 %v4432_v59, %v5676_v13  ;;  %v5790_v13 = vld [vmem:[%s5183_s21 + $0x18] sm:$0xff] }
 0x463   : > { %4433 = vrcp.f32 %v2049_v14  ;;  %2154 = vmatpush.bf16.msra.mxu2 %v2103_v29  ;;  %2428 = vrot.lane.b32.xlu1 %v5081_v33, %s4672_s28  ;;  %6653 = vst [vmem:[#allocation25_spill] sm:$0xff] %v5790_v13  ;;  %v6654_v14 = vld [vmem:[#allocation23_spill] sm:$0xff]  ;;  %v2077_v29 = vmul.f32 %v4432_v59, %v5678_v25  ;;  %v5821_v25 = vld [vmem:[%s5203_s19 + $0x10] sm:$0xff]  ;;  %v6658_v59 = vld [vmem:[#allocation22_spill] sm:$0xff] }
 0x464   : > { %2326 = vrot.lane.b32.xlu0 %v5790_v13, %s4672_s28 }
 0x467   : > { %2155 = vmatpush.bf16.msra.mxu2 %v2101_v56 }
 0x468   : > { %2406 = vrot.lane.b32.xlu2 %v5174_v16, %s4672_s28 }
 0x469   : > { %v4434_v9 = vpop.eup %4433 }
 0x46a   : > { %v2078_v7 = vmul.f32 %v4434_v9, %v5684_v24  ;;  %v2079_v24 = vmul.f32 %v4434_v9, %v5686_v48  ;;  %v6655_v9 = vld [vmem:[#allocation19_spill] sm:$0xff] }
 0x46b   : > { %2340 = vmatpush.bf16.xpose.msrb.mxu2 %v6650_v57  ;;  %2408 = vrot.lane.b32.xlu1 %v5146_v0, %s4672_s28 }
 0x46c   : > { %v2092_v58 = vpack.c.bf16 %v2078_v7, %v2076_v54  ;;  %2712 = vrot.lane.b32.xlu0 %v5281_v50, %s4672_s28  ;;  %v5807_v54 = vld [vmem:[%s5183_s21 + $0x8] sm:$0xff]  ;;  %v2093_v48 = vpack.c.bf16 %v2079_v24, %v2077_v29  ;;  %v6656_v7 = vld [vmem:[#allocation26_spill] sm:$0xff]  ;;  %v6660_v29 = vld [vmem:[#allocation24_spill] sm:$0xff]  ;;  %s6715_s21 = sld [smem:[#allocation11_spill]] (%p4887_p6) }
 0x46d   : > { %v6659_v24 = vld [vmem:[#allocation30_spill] sm:$0xff] }
 0x46e   : > { %2156 = vmatmul.bf16.vlgmr.msra.gmra.mxu2 %v2092_v58  ;;  %v5814_v58 = vld [vmem:[%s5203_s19 + $0x18] sm:$0xff]  ;;  %s6716_s19 = sld [smem:[#allocation9_spill]] (%p4887_p6) }
 0x46f   : > { %6657 = vst [vmem:[#allocation20_spill] sm:$0xff] %v5814_v58 }
 0x470   : > { %2398 = vrot.lane.b32.xlu2 %v5784_v15, %s4672_s28 }
 0x472   : > { %s4154_s6 = sshll.u32 (%p4887_p6), %s6715_s21, 5 }
 0x473   : > { %2341 = vmatpush.bf16.xpose.msrb.mxu2 %v6652_v39  ;;  %2422 = vrot.lane.b32.xlu1 %v5176_v17, %s4672_s28 }
 0x474   : > { %2710 = vrot.lane.b32.xlu0 %v5287_v55, %s4672_s28  ;;  %v6663_v55 = vld [vmem:[#allocation36_spill] sm:$0xff] }
 0x478   : > { %2324 = vrot.lane.b32.xlu2 %v5798_v4, %s4672_s28 }
 0x47a   : > { %v2117_v56 = vpop.permute.xlu1 %2116 }
 0x47b   : > { %2342 = vmatpush.bf16.xpose.msrb.mxu2 %v6654_v14  ;;  %2184 = vmatpush.bf16.msra.mxu3 %v2117_v56  ;;  %v6661_v56 = vld [vmem:[#allocation33_spill] sm:$0xff] }
 0x47c   : > { %2322 = vrot.lane.b32.xlu1 %v5807_v54, %s4672_s28  ;;  %2724 = vrot.lane.b32.xlu0 %v5332_v40, %s4672_s28  ;;  %v6665_v40 = vld [vmem:[#allocation38_spill] sm:$0xff] }
 0x47e   : > { %2185 = vmatmul.bf16.vlgmr.msra.gmra.mxu3 %v2093_v48  ;;  %v6662_v48 = vld [vmem:[#allocation27_spill] sm:$0xff] }
 0x47f   : > { %2369 = vmatpush.bf16.xpose.msrb.mxu3 %v6655_v9 }
 0x480   : > { %2404 = vrot.lane.b32.xlu2 %v5814_v58, %s4672_s28 }
 0x483   : > { %2343 = vmatpush.bf16.xpose.msrb.mxu2 %v6656_v7 }
 0x484   : > { %2402 = vrot.lane.b32.xlu1 %v5821_v25, %s4672_s28  ;;  %2706 = vrot.lane.b32.xlu0 %v5317_v11, %s4672_s28  ;;  %v2052_v11 = vpop.xlane.xlu0 %2051 }
 0x485   : > { %4435 = vrcp.f32 %v2052_v11 }
 0x487   : > { %2370 = vmatpush.bf16.xpose.msrb.mxu3 %v6658_v59 }
 0x488   : > { %2730 = vrot.lane.b32.xlu2 %v5290_v2, %s4672_s28 }
 0x48b   : > { %2344 = vmatpush.bf16.xpose.msrb.mxu2 %v6659_v24 }
 0x48c   : > { %2714 = vrot.lane.b32.xlu1 %v5273_v38, %s4672_s28  ;;  %2722 = vrot.lane.b32.xlu0 %v5348_v45, %s4672_s28  ;;  %v4436_v38 = vpop.eup %4435  ;;  %v2061_v11 = vpop.xlane.xlu0 %2060 }
 0x48d   : > { %v2080_v45 = vmul.f32 %v4436_v38, %v5690_v43 }
 0x48f   : > { %2371 = vmatpush.bf16.xpose.msrb.mxu3 %v6660_v29  ;;  %v6667_v29 = vld [vmem:[#allocation37_spill] sm:$0xff] }
 0x490   : > { %2726 = vrot.lane.b32.xlu2 %v5322_v22, %s4672_s28  ;;  %v6664_v22 = vld [vmem:[#allocation31_spill] sm:$0xff] }
 0x493   : > { %2345 = vmatpush.bf16.xpose.msrb.mxu2 %v6661_v56 }
 0x494   : > { %2728 = vrot.lane.b32.xlu1 %v5304_v52, %s4672_s28  ;;  %v6666_v52 = vld [vmem:[#allocation34_spill] sm:$0xff] }
 0x497   : > { %2372 = vmatpush.bf16.xpose.msrb.mxu3 %v6662_v48 }
 0x498   : > { %2720 = vrot.lane.b32.xlu2 %v5360_v30, %s4672_s28 }
 0x49b   : > { %2346 = vmatpush.bf16.xpose.msrb.mxu2 %v6663_v55  ;;  %v2058_v30 = vpop.xlane.xlu2 %2057 }
 0x49c   : > { %2708 = vrot.lane.b32.xlu1 %v5301_v37, %s4672_s28 }
 0x49f   : > { %2373 = vmatpush.bf16.xpose.msrb.mxu3 %v6664_v22  ;;  %v2081_v22 = vmul.f32 %v4436_v38, %v5692_v21 }
 0x4a3   : > { %2347 = vmatpush.bf16.xpose.msrb.mxu2 %v6665_v40 }
 0x4a4   : > { %2704 = vrot.lane.b32.xlu1 %v5329_v63, %s4672_s28 }
 0x4a5   : > { %v2055_v48 = vpop.xlane.xlu1 %2054 }
 0x4a6   : > { %4437 = vrcp.f32 %v2055_v48  ;;  %v6668_v48 = vld [vmem:[#allocation39_spill] sm:$0xff] }
 0x4a7   : > { %2374 = vmatpush.bf16.xpose.msrb.mxu3 %v6666_v52  ;;  %4439 = vrcp.f32 %v2058_v30 }
 0x4a8   : > { %4441 = vrcp.f32 %v2061_v11 }
 0x4ac   : > { %v4438_v13 = vpop.eup %4437 }
 0x4ad   : > { %v2082_v37 = vmul.f32 %v4438_v13, %v5726_v32  ;;  %v2083_v58 = vmul.f32 %v4438_v13, %v5728_v49  ;;  %v4440_v52 = vpop.eup %4439  ;;  %v2064_v49 = vpop.xlane.xlu1 %2063  ;;  %v4219_v13 = vld [vmem:[%s6643_s4 + $0x18] sm:$0xff] }
 0x4ae   : > { %v2084_v43 = vmul.f32 %v4440_v52, %v5714_v36  ;;  %v2085_v32 = vmul.f32 %v4440_v52, %v5716_v34  ;;  %4443 = vrcp.f32 %v2064_v49  ;;  %2244 = vmatpush.bf16.msrb.mxu0 %v4219_v13 }
 0x4af   : > { %2375 = vmatpush.bf16.xpose.msrb.mxu3 %v6667_v29  ;;  %v2094_v18 = vpack.c.bf16 %v2082_v37, %v2080_v45  ;;  %v2095_v63 = vpack.c.bf16 %v2083_v58, %v2081_v22  ;;  %v4442_v29 = vpop.eup %4441  ;;  %v2067_v45 = vpop.xlane.xlu2 %2066  ;;  %v4218_v58 = vld [vmem:[%s6643_s4 + $0x10] sm:$0xff] }
 0x4b0   : > { %v2086_v38 = vmul.f32 %v4442_v29, %v5702_v53  ;;  %v2087_v21 = vmul.f32 %v4442_v29, %v5704_v35  ;;  %4445 = vrcp.f32 %v2067_v45 }
 0x4b1   : > { %2161 = vmatmul.bf16.gmra.mxu2 %v2094_v18  ;;  %2190 = vmatmul.bf16.gmra.mxu3 %v2095_v63 }
 0x4b2   : > { %v2096_v37 = vpack.c.bf16 %v2086_v38, %v2084_v43  ;;  %v2097_v22 = vpack.c.bf16 %v2087_v21, %v2085_v32  ;;  %2245 = vmatpush.bf16.msrb.mxu0 %v4218_v58 }
 0x4b4   : > { %v4444_v30 = vpop.eup %4443 }
 0x4b5   : > { %v2088_v18 = vmul.f32 %v4444_v30, %v5736_v28  ;;  %v2089_v36 = vmul.f32 %v4444_v30, %v5738_v62  ;;  %v2421_v62 = vpop.permute.xlu0 %2420 }
 0x4b6   : > { %v4446_v63 = vpop.eup %4445 }
 0x4b7   : > { %2376 = vmatpush.bf16.xpose.msrb.mxu3 %v6668_v48  ;;  %v2090_v52 = vmul.f32 %v4446_v63, %v5722_v31  ;;  %v2091_v53 = vmul.f32 %v4446_v63, %v5724_v6  ;;  %v2472_v6 = vsel %vm1248_vm0, %v2421_v62, 0  ;;  %v2419_v29 = vpop.permute.xlu2 %2418 }
 0x4b8   : > { %2498 = vmatpush.bf16.xpose.msra.mxu0 %v2472_v6  ;;  %v2469_v11 = vsel %vm1248_vm0, %v2419_v29, 0 }
 0x4b9   : > { %v2098_v34 = vpack.c.bf16 %v2090_v52, %v2088_v18  ;;  %v2099_v35 = vpack.c.bf16 %v2091_v53, %v2089_v36 }
 0x4bd   : > { %v2435_v43 = vpop.permute.xlu0 %2434 }
 0x4be   : > { %v2493_v32 = vsel %vm1248_vm0, %v2435_v43, 0 }
 0x4bf   : > { %v2433_v63 = vpop.permute.xlu2 %2432 }
 0x4c0   : > { %2499 = vmatpush.bf16.xpose.msra.mxu0 %v2469_v11  ;;  %v2490_v36 = vsel %vm1248_vm0, %v2433_v63, 0 }
 0x4c1   : > { %2166 = vmatmul.bf16.gmra.mxu2 %v2096_v37  ;;  %2195 = vmatmul.bf16.gmra.mxu3 %v2097_v22 }
 0x4c5   : > { %v2437_v28 = vpop.permute.xlu1 %2436  ;;  %v2417_v18 = vpop.permute.xlu0 %2416 }
 0x4c6   : > { %v2496_v31 = vsel %vm1248_vm0, %v2437_v28, 0  ;;  %v2466_v52 = vsel %vm1248_vm0, %v2417_v18, 0 }
 0x4c7   : > { %2527 = vmatpush.bf16.xpose.msra.mxu1 %v2496_v31  ;;  %v2413_v58 = vpop.permute.xlu2 %2412 }
 0x4c8   : > { %2500 = vmatpush.bf16.xpose.msra.mxu0 %v2466_v52  ;;  %v2460_v28 = vsel %vm1248_vm0, %v2413_v58, 0 }
 0x4cd   : > { %v2415_v53 = vpop.permute.xlu1 %2414 }
 0x4cf   : > { %2528 = vmatpush.bf16.xpose.msra.mxu1 %v2493_v32  ;;  %v2427_v6 = vpop.permute.xlu2 %2426 }
 0x4d0   : > { %v2481_v11 = vsel %vm1248_vm0, %v2427_v6, 0 }
 0x4d1   : > { %2171 = vmatmul.bf16.gmra.mxu2 %v2098_v34  ;;  %2200 = vmatmul.bf16.gmra.mxu3 %v2099_v35  ;;  %v2431_v34 = vpop.permute.xlu0 %2430  ;;  %v2463_v35 = vsel %vm1248_vm0, %v2415_v53, 0 }
 0x4d2   : > { %v2487_v13 = vsel %vm1248_vm0, %v2431_v34, 0  ;;  %2501 = vmatpush.bf16.xpose.msra.mxu0 %v2463_v35 }
 0x4d5   : > { %v2429_v62 = vpop.permute.xlu1 %2428 }
 0x4d6   : > { %v2484_v31 = vsel %vm1248_vm0, %v2429_v62, 0 }
 0x4d7   : > { %2529 = vmatpush.bf16.xpose.msra.mxu1 %v2490_v36  ;;  %v2407_v53 = vpop.permute.xlu2 %2406 }
 0x4d8   : > { %v2451_v35 = vsel %vm1248_vm0, %v2407_v53, 0 }
 0x4d9   : > { %v2411_v29 = vpop.permute.xlu0 %2410 }
 0x4da   : > { %2502 = vmatpush.bf16.xpose.msra.mxu0 %v2460_v28  ;;  %v2457_v43 = vsel %vm1248_vm0, %v2411_v29, 0 }
 0x4df   : > { %2530 = vmatpush.bf16.xpose.msra.mxu1 %v2487_v13  ;;  %v2399_v62 = vpop.permute.xlu2 %2398 }
 0x4e2   : > { %2503 = vmatpush.bf16.xpose.msra.mxu0 %v2457_v43 }
 0x4e7   : > { %2531 = vmatpush.bf16.xpose.msra.mxu1 %v2484_v31 }
 0x4ef   : > { %2532 = vmatpush.bf16.xpose.msra.mxu1 %v2481_v11 }
 0x4f1   : > { %v2157_v38 = vpop.f32.mrf.mxu2 }
 0x4f9   : > { %v2159_v49 = vpop.f32.mrf.mxu2 }
 0x501   : > { %v2186_v21 = vpop.f32.mrf.mxu3 }
 0x502   : > { %v2187_v22 = vadd.f32 %v2186_v21, %v2157_v38  ;;  %v2409_v21 = vpop.permute.xlu1 %2408 }
 0x509   : > { %v2188_v37 = vpop.f32.mrf.mxu3 }
 0x50a   : > { %v2189_v45 = vadd.f32 %v2188_v37, %v2159_v49  ;;  %v2454_v49 = vsel %vm1248_vm0, %v2409_v21, 0  ;;  %v2425_v37 = vpop.permute.xlu0 %2424  ;;  %v2423_v52 = vpop.permute.xlu1 %2422 }
 0x50b   : > { %2504 = vmatpush.bf16.xpose.msra.mxu0 %v2454_v49  ;;  %v2475_v34 = vsel %vm1248_vm0, %v2423_v52, 0 }
 0x50c   : > { %v2206_v30 = vpack.c.bf16 %v2189_v45, %v2187_v22  ;;  %v2478_v22 = vsel %vm1248_vm0, %v2425_v37, 0 }
 0x50d   : > { %2533 = vmatpush.bf16.xpose.msra.mxu1 %v2478_v22 }
 0x50e   : > { %4079 = vmatmul.msk.bf16.vlgmr.msrb.gmra.mxu0 %vm1248_vm0, %v2206_v30 }
 0x512   : > { %v2321_v13 = vpop.permute.xlu0 %2320 }
 0x513   : > { %4095 = vmatmul.msk.bf16.vlgmr.msrb.gmra.mxu2 %vm1248_vm0, %v2321_v13  ;;  %4099 = vmatmul.msk.bf16.vlgmr.msrb.gmra.mxu3 %vm1248_vm0, %v2321_v13 }
 0x514   : > { %2505 = vmatpush.bf16.xpose.msra.mxu0 %v2451_v35 }
 0x515   : > { %2534 = vmatpush.bf16.xpose.msra.mxu1 %v2475_v34 }
 0x51a   : > { %v2401_v21 = vpop.permute.xlu0 %2400 }
 0x51c   : > { %4107 = vmatmul.msk.bf16.vlgmr.msra.gmra.mxu1 %vm1248_vm0, %v2399_v62 }
 0x51d   : > { %2895 = vmatpush.bf16.xpose.msrb.mxu1 %v6650_v57 }
 0x525   : > { %2896 = vmatpush.bf16.xpose.msrb.mxu1 %v6652_v39 }
 0x52c   : > { %4108 = vmatmul.msk.bf16.gmra.mxu1 %vm1248_vm0, %v2401_v21 }
 0x52d   : > { %2897 = vmatpush.bf16.xpose.msrb.mxu1 %v6654_v14 }
 0x534   : > { %v2162_v32 = vpop.f32.mrf.mxu2  ;;  %v2191_v38 = vpop.f32.mrf.mxu3 }
 0x535   : > { %v2192_v63 = vadd.f32 %v2191_v38, %v2162_v32  ;;  %v2323_v32 = vpop.permute.xlu1 %2322  ;;  %2898 = vmatpush.bf16.xpose.msrb.mxu1 %v6656_v7  ;;  %v2327_v7 = vpop.permute.xlu0 %2326 }
 0x536   : > { %4096 = vmatmul.msk.bf16.gmra.mxu2 %vm1248_vm0, %v2323_v32  ;;  %4100 = vmatmul.msk.bf16.gmra.mxu3 %vm1248_vm0, %v2323_v32 }
 0x53c   : > { %v2164_v45 = vpop.f32.mrf.mxu2  ;;  %v2193_v30 = vpop.f32.mrf.mxu3 }
 0x53d   : > { %v2194_v18 = vadd.f32 %v2193_v30, %v2164_v45  ;;  %v2325_v30 = vpop.permute.xlu2 %2324  ;;  %2899 = vmatpush.bf16.xpose.msrb.mxu1 %v6659_v24  ;;  %v2403_v14 = vpop.permute.xlu1 %2402 }
 0x53e   : > { %4109 = vmatmul.msk.bf16.gmra.mxu1 %vm1248_vm0, %v2403_v14  ;;  %v5916_v24 = vpop.f32.mrf.mxu1 }
 0x53f   : > { %v2207_v36 = vpack.c.bf16 %v2194_v18, %v2192_v63 }
 0x541   : > { %4080 = vmatmul.msk.bf16.gmra.mxu0 %vm1248_vm0, %v2207_v36 }
 0x544   : > { %v2167_v58 = vpop.f32.mrf.mxu2  ;;  %v2196_v28 = vpop.f32.mrf.mxu3 }
 0x545   : > { %v2197_v29 = vadd.f32 %v2196_v28, %v2167_v58  ;;  %2900 = vmatpush.bf16.xpose.msrb.mxu1 %v6661_v56  ;;  %v2405_v63 = vpop.permute.xlu2 %2404 }
 0x546   : > { %4097 = vmatmul.msk.bf16.gmra.mxu2 %vm1248_vm0, %v2325_v30  ;;  %4101 = vmatmul.msk.bf16.gmra.mxu3 %vm1248_vm0, %v2325_v30  ;;  %v5919_v56 = vpop.f32.mrf.mxu1 }
 0x547   : > { %6669 = vst [vmem:[#allocation32_spill] sm:$0xff] %v5919_v56 }
 0x54c   : > { %v2169_v31 = vpop.f32.mrf.mxu2  ;;  %v2198_v6 = vpop.f32.mrf.mxu3 }
 0x54d   : > { %v2199_v11 = vadd.f32 %v2198_v6, %v2169_v31  ;;  %2901 = vmatpush.bf16.xpose.msrb.mxu1 %v6663_v55 }
 0x54e   : > { %4110 = vmatmul.msk.bf16.gmra.mxu1 %vm1248_vm0, %v2405_v63  ;;  %v5922_v55 = vpop.f32.mrf.mxu1 }
 0x54f   : > { %v2208_v43 = vpack.c.bf16 %v2199_v11, %v2197_v29 }
 0x551   : > { %4081 = vmatmul.msk.bf16.gmra.mxu0 %vm1248_vm0, %v2208_v43 }
 0x554   : > { %v2172_v57 = vpop.f32.mrf.mxu2  ;;  %v2201_v38 = vpop.f32.mrf.mxu3 }
 0x555   : > { %v2202_v37 = vadd.f32 %v2201_v38, %v2172_v57  ;;  %2902 = vmatpush.bf16.xpose.msrb.mxu1 %v6665_v40 }
 0x556   : > { %4098 = vmatmul.msk.bf16.gmra.mxu2 %vm1248_vm0, %v2327_v7  ;;  %4102 = vmatmul.msk.bf16.gmra.mxu3 %vm1248_vm0, %v2327_v7  ;;  %v5926_v36 = vpop.f32.mrf.mxu1 }
 0x557   : > { %6670 = vst [vmem:[#allocation28_spill] sm:$0xff] %v5926_v36 }
 0x55c   : > { %v2174_v39 = vpop.f32.mrf.mxu2  ;;  %v2203_v49 = vpop.f32.mrf.mxu3 }
 0x55d   : > { %v2204_v22 = vadd.f32 %v2203_v49, %v2174_v39 }
 0x55e   : > { %v5930_v40 = vpop.f32.mrf.mxu1 }
 0x55f   : > { %v2209_v45 = vpack.c.bf16 %v2204_v22, %v2202_v37  ;;  %6672 = vst [vmem:[#allocation18_spill] sm:$0xff] %v5930_v40 }
 0x561   : > { %4082 = vmatmul.msk.bf16.gmra.mxu0 %vm1248_vm0, %v2209_v45 }
 0x566   : > { %v5934_v34 = vpop.f32.mrf.mxu1 }
 0x567   : > { %6673 = vst [vmem:[#allocation21_spill] sm:$0xff] %v5934_v34 }
 0x56e   : > { %v5938_v13 = vpop.f32.mrf.mxu1 }
 0x56f   : > { %6675 = vst [vmem:[#allocation19_spill] sm:$0xff] %v5938_v13 }
 0x571   : > { %4103 = vmatmul.msk.bf16.vlgmr.msra.gmra.mxu0 %vm1248_vm0, %v2399_v62 }
 0x576   : > { %v5942_v28 = vpop.f32.mrf.mxu1 }
 0x577   : > { %6676 = vst [vmem:[#allocation26_spill] sm:$0xff] %v5942_v28 }
 0x581   : > { %4104 = vmatmul.msk.bf16.gmra.mxu0 %vm1248_vm0, %v2401_v21 }
 0x58b   : > { %v5924_v18 = vpop.f32.mrf.mxu0 }
 0x591   : > { %4105 = vmatmul.msk.bf16.gmra.mxu0 %vm1248_vm0, %v2403_v14 }
 0x593   : > { %v5928_v52 = vpop.f32.mrf.mxu0 }
 0x594   : > { %6671 = vst [vmem:[#allocation35_spill] sm:$0xff] %v5928_v52 }
 0x596   : > { %v2378_v31 = vpop.f32.mrf.mxu3  ;;  %v2349_v11 = vpop.f32.mrf.mxu2 }
 0x599   : > { %v2536_v6 = vpop.f32.mrf.mxu1 }
 0x59a   : > { %v2537_v21 = vadd.f32 %v2536_v6, %v2378_v31 }
 0x59c   : > { %v5951_v22 = vadd.f32 %v2537_v21, %v5295_v10 }
 0x59e   : > { %v2380_v43 = vpop.f32.mrf.mxu3  ;;  %v2351_v38 = vpop.f32.mrf.mxu2 }
 0x5a1   : > { %4106 = vmatmul.msk.bf16.gmra.mxu0 %vm1248_vm0, %v2405_v63  ;;  %v2538_v57 = vpop.f32.mrf.mxu1 }
 0x5a2   : > { %v2539_v63 = vadd.f32 %v2538_v57, %v2380_v43 }
 0x5a4   : > { %v5959_v6 = vadd.f32 %v2539_v63, %v5295_v10 }
 0x5a9   : > { %v2541_v37 = vpop.f32.mrf.mxu1 }
 0x5b1   : > { %v2543_v31 = vpop.f32.mrf.mxu1 }
 0x5b9   : > { %v2383_v39 = vpop.f32.mrf.mxu3  ;;  %v2354_v14 = vpop.f32.mrf.mxu2 }
 0x5be   : > { %v5932_v53 = vpop.f32.mrf.mxu0 }
 0x5c1   : > { %v2385_v34 = vpop.f32.mrf.mxu3 }
 0x5c2   : > { %v2544_v63 = vadd.f32 %v2543_v31, %v2385_v34 }
 0x5c6   : > { %v5936_v35 = vpop.f32.mrf.mxu0 }
 0x5c7   : > { %6674 = vst [vmem:[#allocation23_spill] sm:$0xff] %v5936_v35 }
 0x5c9   : > { %v2388_v57 = vpop.f32.mrf.mxu3 }
 0x5ce   : > { %v5940_v58 = vpop.f32.mrf.mxu0 }
 0x5d1   : > { %v2390_v34 = vpop.f32.mrf.mxu3 }
 0x5d6   : > { %v5944_v62 = vpop.f32.mrf.mxu0 }
 0x5d7   : > { %6677 = vst [vmem:[#allocation22_spill] sm:$0xff] %v5944_v62 }
 0x5de   : > { %v5946_v29 = vpop.f32.mrf.mxu0 }
 0x5df   : > { %6678 = vst [vmem:[#allocation30_spill] sm:$0xff] %v5946_v29 }
 0x5e6   : > { %v5948_v32 = vpop.f32.mrf.mxu0 }
 0x5e7   : > { %6679 = vst [vmem:[#allocation33_spill] sm:$0xff] %v5948_v32 }
 0x5ee   : > { %v2507_v49 = vpop.f32.mrf.mxu0 }
 0x5ef   : > { %v2508_v45 = vadd.f32 %v2507_v49, %v2349_v11  ;;  %v2542_v49 = vadd.f32 %v2541_v37, %v2383_v39  ;;  %v2713_v39 = vpop.permute.xlu0 %2712 }
 0x5f1   : > { %v5954_v30 = vadd.f32 %v2508_v45, %v5293_v5  ;;  %v2356_v45 = vpop.f32.mrf.mxu2  ;;  %v5967_v43 = vadd.f32 %v2542_v49, %v5295_v10  ;;  %v2731_v49 = vpop.permute.xlu2 %2730 }
 0x5f2   : > { %2777 = vmatpush.bf16.msra.mxu3 %v2731_v49 }
 0x5f3   : > { %v2572_v7 = vmax.f32 %v5954_v30, %v5951_v22 }
 0x5f5   : > { %2573 = vmax.xlane.f32.xlu1 %v2572_v7  ;;  %v2546_v7 = vpop.f32.mrf.mxu1 }
 0x5f6   : > { %v2509_v28 = vpop.f32.mrf.mxu0  ;;  %v2547_v56 = vadd.f32 %v2546_v7, %v2388_v57 }
 0x5f7   : > { %v2510_v32 = vadd.f32 %v2509_v28, %v2351_v38  ;;  %v2715_v38 = vpop.permute.xlu1 %2714 }
 0x5f8   : > { %2748 = vmatpush.bf16.msra.mxu2 %v2715_v38 }
 0x5f9   : > { %v5962_v21 = vadd.f32 %v2510_v32, %v5293_v5 }
 0x5fb   : > { %v2575_v11 = vmax.f32 %v5962_v21, %v5959_v6 }
 0x5fc   : > { %2749 = vmatpush.bf16.msra.mxu2 %v2713_v39 }
 0x5fd   : > { %2576 = vmax.xlane.f32.xlu0 %v2575_v11  ;;  %v2359_v11 = vpop.f32.mrf.mxu2  ;;  %v2548_v31 = vpop.f32.mrf.mxu1 }
 0x5fe   : > { %v2512_v62 = vpop.f32.mrf.mxu0  ;;  %v2549_v7 = vadd.f32 %v2548_v31, %v2390_v34 }
 0x5ff   : > { %v2513_v36 = vadd.f32 %v2512_v62, %v2354_v14  ;;  %v5975_v14 = vadd.f32 %v2544_v63, %v5295_v10  ;;  %v2729_v35 = vpop.permute.xlu1 %2728  ;;  %v5983_v63 = vadd.f32 %v2547_v56, %v5295_v10 }
 0x600   : > { %2778 = vmatpush.bf16.msra.mxu3 %v2729_v35 }
 0x601   : > { %v5970_v28 = vadd.f32 %v2513_v36, %v5293_v5 }
 0x603   : > { %v2578_v32 = vmax.f32 %v5970_v28, %v5967_v43 }
 0x605   : > { %2579 = vmax.xlane.f32.xlu2 %v2578_v32  ;;  %v2711_v32 = vpop.permute.xlu0 %2710  ;;  %v2361_v39 = vpop.f32.mrf.mxu2 }
 0x606   : > { %v2514_v37 = vpop.f32.mrf.mxu0  ;;  %2750 = vmatpush.bf16.msra.mxu2 %v2711_v32 }
 0x607   : > { %v2515_v62 = vadd.f32 %v2514_v37, %v2356_v45  ;;  %v2709_v49 = vpop.permute.xlu1 %2708 }
 0x609   : > { %v5978_v36 = vadd.f32 %v2515_v62, %v5293_v5  ;;  %v2727_v62 = vpop.permute.xlu2 %2726 }
 0x60a   : > { %2779 = vmatpush.bf16.msra.mxu3 %v2727_v62  ;;  %2751 = vmatpush.bf16.msra.mxu2 %v2709_v49 }
 0x60b   : > { %v2581_v38 = vmax.f32 %v5978_v36, %v5975_v14 }
 0x60d   : > { %2582 = vmax.xlane.f32.xlu1 %v2581_v38  ;;  %v2393_v38 = vpop.f32.mrf.mxu3  ;;  %v2725_v32 = vpop.permute.xlu0 %2724 }
 0x60e   : > { %v2517_v52 = vpop.f32.mrf.mxu0  ;;  %2780 = vmatpush.bf16.msra.mxu3 %v2725_v32  ;;  %v2364_v13 = vpop.f32.mrf.mxu2 }
 0x60f   : > { %v2518_v45 = vadd.f32 %v2517_v52, %v2359_v11  ;;  %v2551_v52 = vpop.f32.mrf.mxu1  ;;  %v5991_v11 = vadd.f32 %v2549_v7, %v5295_v10 }
 0x610   : > { %v2552_v49 = vadd.f32 %v2551_v52, %v2393_v38 }
 0x611   : > { %v5986_v37 = vadd.f32 %v2518_v45, %v5293_v5 }
 0x612   : > { %v5999_v29 = vadd.f32 %v2552_v49, %v5295_v10 }
 0x613   : > { %v2584_v57 = vmax.f32 %v5986_v37, %v5983_v63 }
 0x615   : > { %2585 = vmax.xlane.f32.xlu2 %v2584_v57  ;;  %v2707_v34 = vpop.permute.xlu0 %2706  ;;  %v2395_v32 = vpop.f32.mrf.mxu3 }
 0x616   : > { %v2519_v35 = vpop.f32.mrf.mxu0  ;;  %2752 = vmatpush.bf16.msra.mxu2 %v2707_v34  ;;  %v2366_v38 = vpop.f32.mrf.mxu2 }
 0x617   : > { %v2520_v56 = vadd.f32 %v2519_v35, %v2361_v39  ;;  %v2705_v39 = vpop.permute.xlu1 %2704  ;;  %v2553_v7 = vpop.f32.mrf.mxu1 }
 0x618   : > { %v2554_v40 = vadd.f32 %v2553_v7, %v2395_v32 }
 0x619   : > { %v5994_v45 = vadd.f32 %v2520_v56, %v5293_v5 }
 0x61a   : > { %2753 = vmatpush.bf16.msra.mxu2 %v2705_v39  ;;  %v2571_v49 = vadd.f32 %v2554_v40, %v5295_v10 }
 0x61b   : > { %v2587_v62 = vmax.f32 %v5994_v45, %v5991_v11 }
 0x61d   : > { %2588 = vmax.xlane.f32.xlu0 %v2587_v62  ;;  %v2723_v52 = vpop.permute.xlu0 %2722 }
 0x61e   : > { %v2522_v31 = vpop.f32.mrf.mxu0  ;;  %2781 = vmatpush.bf16.msra.mxu3 %v2723_v52 }
 0x61f   : > { %v2523_v57 = vadd.f32 %v2522_v31, %v2364_v13 }
 0x621   : > { %v6002_v35 = vadd.f32 %v2523_v57, %v5293_v5  ;;  %v2721_v57 = vpop.permute.xlu2 %2720 }
 0x622   : > { %2782 = vmatpush.bf16.msra.mxu3 %v2721_v57 }
 0x623   : > { %v2590_v56 = vmax.f32 %v6002_v35, %v5999_v29 }
 0x625   : > { %2591 = vmax.xlane.f32.xlu2 %v2590_v56 }
 0x626   : > { %v2524_v62 = vpop.f32.mrf.mxu0 }
 0x627   : > { %v2525_v13 = vadd.f32 %v2524_v62, %v2366_v38 }
 0x629   : > { %v2570_v34 = vadd.f32 %v2525_v13, %v5293_v5 }
 0x62b   : > { %v2593_v31 = vmax.f32 %v2570_v34, %v2571_v49 }
 0x62d   : > { %2594 = vmax.xlane.f32.xlu1 %v2593_v31 }
 0x646   : > { %2718 = vrot.lane.b32.xlu1 %v5373_v41, %s4672_s28 }
 0x64e   : > { %2716 = vrot.lane.b32.xlu1 %v5380_v3, %s4672_s28 }
 0x668   : > { %v2574_v39 = vpop.xlane.xlu1 %2573 }
 0x669   : > { %v2596_v32 = vsub.f32 %v5954_v30, %v2574_v39  ;;  %v2597_v7 = vsub.f32 %v5951_v22, %v2574_v39 }
 0x66b   : > { %v2612_v56 = vmul.f32 1.442695, %v2596_v32  ;;  %v2614_v38 = vmul.f32 1.442695, %v2597_v7 }
 0x66d   : > { %4447 = vpow2.f32 %v2612_v56 }
 0x66e   : > { %4449 = vpow2.f32 %v2614_v38 }
 0x670   : > { %v2577_v40 = vpop.xlane.xlu0 %2576 }
 0x671   : > { %v2598_v52 = vsub.f32 %v5962_v21, %v2577_v40  ;;  %v2599_v62 = vsub.f32 %v5959_v6, %v2577_v40 }
 0x673   : > { %v6016_v13 = vpop.eup %4447  ;;  %v2616_v31 = vmul.f32 1.442695, %v2598_v52  ;;  %v2618_v3 = vmul.f32 1.442695, %v2599_v62 }
 0x674   : > { %v6018_v10 = vpop.eup %4449 }
 0x675   : > { %4451 = vpow2.f32 %v2616_v31  ;;  %v2644_v30 = vadd.f32 %v6018_v10, %v6016_v13 }
 0x676   : > { %4453 = vpow2.f32 %v2618_v3 }
 0x677   : > { %2645 = vadd.xlane.f32.xlu0 %v2644_v30 }
 0x678   : > { %v2580_v6 = vpop.xlane.xlu2 %2579 }
 0x67b   : > { %v6022_v22 = vpop.eup %4451 }
 0x67c   : > { %v6024_v57 = vpop.eup %4453 }
 0x67d   : > { %v2647_v21 = vadd.f32 %v6024_v57, %v6022_v22 }
 0x67f   : > { %2648 = vadd.xlane.f32.xlu2 %v2647_v21 }
 0x688   : > { %v2586_v39 = vpop.xlane.xlu2 %2585 }
 0x689   : > { %v2604_v32 = vsub.f32 %v5986_v37, %v2586_v39  ;;  %v2605_v7 = vsub.f32 %v5983_v63, %v2586_v39  ;;  %v2583_v37 = vpop.xlane.xlu1 %2582 }
 0x68a   : > { %v2602_v62 = vsub.f32 %v5978_v36, %v2583_v37  ;;  %v2603_v21 = vsub.f32 %v5975_v14, %v2583_v37  ;;  %v2601_v14 = vsub.f32 %v5967_v43, %v2580_v6 }
 0x68b   : > { %v2628_v56 = vmul.f32 1.442695, %v2604_v32  ;;  %v2630_v38 = vmul.f32 1.442695, %v2605_v7  ;;  %2702 = vrot.lane.b32.xlu0 %v5341_v19, %s4672_s28 }
 0x68c   : > { %v2624_v7 = vmul.f32 1.442695, %v2602_v62 }
 0x68d   : > { %4455 = vpow2.f32 %v2628_v56  ;;  %v2626_v56 = vmul.f32 1.442695, %v2603_v21 }
 0x68e   : > { %4457 = vpow2.f32 %v2630_v38 }
 0x693   : > { %v6032_v3 = vpop.eup %4455 }
 0x694   : > { %v6034_v40 = vpop.eup %4457 }
 0x695   : > { %v2656_v52 = vadd.f32 %v6034_v40, %v6032_v3 }
 0x697   : > { %2657 = vadd.xlane.f32.xlu1 %v2656_v52  ;;  %2700 = vrot.lane.b32.xlu2 %v5357_v12, %s4672_s28 }
 0x698   : > { %v2592_v38 = vpop.xlane.xlu2 %2591 }
 0x699   : > { %v2608_v52 = vsub.f32 %v6002_v35, %v2592_v38  ;;  %v2609_v12 = vsub.f32 %v5999_v29, %v2592_v38  ;;  %v2622_v29 = vmul.f32 1.442695, %v2601_v14 }
 0x6a0   : > { %v2595_v63 = vpop.xlane.xlu1 %2594 }
 0x6a1   : > { %v2610_v31 = vsub.f32 %v2570_v34, %v2595_v63  ;;  %v2611_v30 = vsub.f32 %v2571_v49, %v2595_v63  ;;  %v2600_v49 = vsub.f32 %v5970_v28, %v2580_v6  ;;  %v2636_v34 = vmul.f32 1.442695, %v2608_v52 }
 0x6a2   : > { %v2638_v63 = vmul.f32 1.442695, %v2609_v12 }
 0x6a3   : > { %v2640_v39 = vmul.f32 1.442695, %v2610_v31  ;;  %v2642_v32 = vmul.f32 1.442695, %v2611_v30  ;;  %v2620_v31 = vmul.f32 1.442695, %v2600_v49  ;;  %v2589_v30 = vpop.xlane.xlu0 %2588 }
 0x6a4   : > { %v2606_v43 = vsub.f32 %v5994_v45, %v2589_v30  ;;  %v2607_v6 = vsub.f32 %v5991_v11, %v2589_v30 }
 0x6a5   : > { %4459 = vpow2.f32 %v2640_v39 }
 0x6a6   : > { %4461 = vpow2.f32 %v2642_v32  ;;  %v2632_v39 = vmul.f32 1.442695, %v2606_v43  ;;  %v2634_v32 = vmul.f32 1.442695, %v2607_v6 }
 0x6a7   : > { %4463 = vpow2.f32 %v2624_v7 }
 0x6a8   : > { %4465 = vpow2.f32 %v2626_v56 }
 0x6a9   : > { %4467 = vpow2.f32 %v2636_v34 }
 0x6aa   : > { %4469 = vpow2.f32 %v2638_v63  ;;  %v6696_v63 = vld [vmem:[#allocation43_spill] sm:$0xff] }
 0x6ab   : > { %v6044_v19 = vpop.eup %4459  ;;  %4471 = vpow2.f32 %v2620_v31 }
 0x6ac   : > { %v6046_v36 = vpop.eup %4461  ;;  %4473 = vpow2.f32 %v2622_v29 }
 0x6ad   : > { %v2665_v37 = vadd.f32 %v6046_v36, %v6044_v19  ;;  %v6052_v62 = vpop.eup %4463  ;;  %4475 = vpow2.f32 %v2632_v39 }
 0x6ae   : > { %v6054_v35 = vpop.eup %4465  ;;  %4477 = vpow2.f32 %v2634_v32 }
 0x6af   : > { %2666 = vadd.xlane.f32.xlu1 %v2665_v37  ;;  %v2653_v28 = vadd.f32 %v6054_v35, %v6052_v62  ;;  %v6060_v12 = vpop.eup %4467 }
 0x6b0   : > { %v6062_v21 = vpop.eup %4469 }
 0x6b1   : > { %v6064_v7 = vpop.eup %4471  ;;  %v2662_v38 = vadd.f32 %v6062_v21, %v6060_v12 }
 0x6b2   : > { %v6066_v56 = vpop.eup %4473 }
 0x6b3   : > { %v2650_v11 = vadd.f32 %v6066_v56, %v6064_v7  ;;  %v6072_v45 = vpop.eup %4475 }
 0x6b4   : > { %v6074_v52 = vpop.eup %4477 }
 0x6b5   : > { %2654 = vadd.xlane.f32.xlu0 %v2653_v28  ;;  %v2659_v49 = vadd.f32 %v6074_v52, %v6072_v45 }
 0x6b8   : > { %v2719_v14 = vpop.permute.xlu1 %2718 }
 0x6b9   : > { %2783 = vmatpush.bf16.msra.mxu3 %v2719_v14 }
 0x6bd   : > { %2663 = vadd.xlane.f32.xlu0 %v2662_v38 }
 0x6c0   : > { %2651 = vadd.xlane.f32.xlu2 %v2650_v11  ;;  %v2717_v34 = vpop.permute.xlu1 %2716  ;;  %v4221_v11 = vld [vmem:[%s6643_s4 + $0x28] sm:$0xff] }
 0x6c1   : > { %2784 = vmatpush.bf16.msra.mxu3 %v2717_v34  ;;  %2844 = vmatpush.bf16.msrb.mxu0 %v4221_v11 }
 0x6c8   : > { %2660 = vadd.xlane.f32.xlu2 %v2659_v49  ;;  %2973 = vrot.lane.b32.xlu1 %v4987_v60, %s4673_s23 }
 0x6d0   : > { %2969 = vrot.lane.b32.xlu1 %v6648_v27, %s4673_s23  ;;  %v6684_v27 = vld [vmem:[#allocation25_spill] sm:$0xff] }
 0x6d1   : > { %2991 = vrot.lane.b32.xlu0 %v6646_v42, %s4673_s23 }
 0x6d8   : > { %2983 = vrot.lane.b32.xlu1 %v5081_v33, %s4673_s23 }
 0x6d9   : > { %2989 = vrot.lane.b32.xlu0 %v4989_v61, %s4673_s23 }
 0x6e0   : > { %2975 = vrot.lane.b32.xlu2 %v4962_v47, %s4673_s23  ;;  %2963 = vrot.lane.b32.xlu1 %v5146_v0, %s4673_s23 }
 0x6e1   : > { %2987 = vrot.lane.b32.xlu0 %v6645_v44, %s4673_s23 }
 0x6e8   : > { %2971 = vrot.lane.b32.xlu2 %v5013_v8, %s4673_s23  ;;  %2977 = vrot.lane.b32.xlu1 %v5176_v17, %s4673_s23 }
 0x6e9   : > { %2967 = vrot.lane.b32.xlu0 %v6647_v26, %s4673_s23  ;;  %v6683_v26 = vld [vmem:[#allocation24_spill] sm:$0xff] }
 0x6ea   : > { %v2646_v60 = vpop.xlane.xlu0 %2645 }
 0x6eb   : > { %4479 = vrcp.f32 %v2646_v60 }
 0x6f0   : > { %2985 = vrot.lane.b32.xlu2 %v6644_v20, %s4673_s23  ;;  %2877 = vrot.lane.b32.xlu1 %v5807_v54, %s4673_s23  ;;  %v6690_v54 = vld [vmem:[#allocation46_spill] sm:$0xff] }
 0x6f1   : > { %2981 = vrot.lane.b32.xlu0 %v6649_v23, %s4673_s23  ;;  %v4480_v61 = vpop.eup %4479  ;;  %v6686_v23 = vld [vmem:[#allocation27_spill] sm:$0xff] }
 0x6f2   : > { %v2649_v47 = vpop.xlane.xlu2 %2648  ;;  %v2677_v33 = vmul.f32 %v4480_v61, %v6018_v10  ;;  %v6682_v10 = vld [vmem:[#allocation20_spill] sm:$0xff] }
 0x6f3   : > { %4481 = vrcp.f32 %v2649_v47 }
 0x6f8   : > { %2965 = vrot.lane.b32.xlu2 %v5113_v46, %s4673_s23  ;;  %2957 = vrot.lane.b32.xlu1 %v5821_v25, %s4673_s23  ;;  %v2676_v46 = vmul.f32 %v4480_v61, %v6016_v13  ;;  %v6694_v13 = vld [vmem:[#allocation50_spill] sm:$0xff] }
 0x6f9   : > { %v4482_v8 = vpop.eup %4481  ;;  %2961 = vrot.lane.b32.xlu0 %v5174_v16, %s4673_s23 }
 0x6fa   : > { %v2679_v0 = vmul.f32 %v4482_v8, %v6024_v57  ;;  %v2678_v44 = vmul.f32 %v4482_v8, %v6022_v22  ;;  %v2701_v42 = vpop.permute.xlu2 %2700  ;;  %v6695_v57 = vld [vmem:[#allocation37_spill] sm:$0xff] }
 0x6fc   : > { %v2693_v17 = vpack.c.bf16 %v2679_v0, %v2677_v33  ;;  %v2692_v16 = vpack.c.bf16 %v2678_v44, %v2676_v46 }
 0x6fd   : > { %v2703_v20 = vpop.permute.xlu0 %2702 }
 0x6fe   : > { %2754 = vmatpush.bf16.msra.mxu2 %v2703_v20  ;;  %2785 = vmatmul.bf16.vlgmr.msra.gmra.mxu3 %v2693_v17  ;;  %v4220_v17 = vld [vmem:[%s6643_s4 + $0x20] sm:$0xff] }
 0x6ff   : > { %2845 = vmatpush.bf16.msrb.mxu0 %v4220_v17 }
 0x700   : > { %2979 = vrot.lane.b32.xlu2 %v5148_v1, %s4673_s23  ;;  %3285 = vrot.lane.b32.xlu1 %v5290_v2, %s4673_s23  ;;  %v6680_v1 = vld [vmem:[#allocation29_spill] sm:$0xff]  ;;  %v6681_v2 = vld [vmem:[#allocation52_spill] sm:$0xff] }
 0x701   : > { %2953 = vrot.lane.b32.xlu0 %v5784_v15, %s4673_s23  ;;  %v6688_v15 = vld [vmem:[#allocation48_spill] sm:$0xff] }
 0x702   : > { %2755 = vmatpush.bf16.msra.mxu2 %v2701_v42 }
 0x705   : > { %2756 = vmatmul.bf16.vlgmr.msra.gmra.mxu2 %v2692_v16 }
 0x706   : > { %2924 = vmatpush.bf16.xpose.msrb.mxu2 %v6655_v9  ;;  %v6691_v9 = vld [vmem:[#allocation41_spill] sm:$0xff] }
 0x708   : > { %2875 = vrot.lane.b32.xlu2 %v5765_v51, %s4673_s23  ;;  %3267 = vrot.lane.b32.xlu1 %v5281_v50, %s4673_s23  ;;  %v6685_v50 = vld [vmem:[#allocation40_spill] sm:$0xff] }
 0x709   : > { %2879 = vrot.lane.b32.xlu0 %v5798_v4, %s4673_s23  ;;  %v6687_v51 = vld [vmem:[#allocation44_spill] sm:$0xff]  ;;  %v6689_v4 = vld [vmem:[#allocation31_spill] sm:$0xff] }
 0x70a   : > { %v2658_v38 = vpop.xlane.xlu1 %2657 }
 0x70e   : > { %2925 = vmatpush.bf16.xpose.msrb.mxu2 %v6658_v59  ;;  %v6693_v59 = vld [vmem:[#allocation45_spill] sm:$0xff] }
 0x710   : > { %2955 = vrot.lane.b32.xlu2 %v6680_v1, %s4673_s23  ;;  %3275 = vrot.lane.b32.xlu1 %v6681_v2, %s4673_s23 }
 0x711   : > { %2959 = vrot.lane.b32.xlu0 %v6682_v10, %s4673_s23 }
 0x716   : > { %2926 = vmatpush.bf16.xpose.msrb.mxu2 %v6683_v26 }
 0x718   : > { %2881 = vrot.lane.b32.xlu2 %v6684_v27, %s4673_s23  ;;  %3273 = vrot.lane.b32.xlu1 %v5373_v41, %s4673_s23  ;;  %v6692_v41 = vld [vmem:[#allocation34_spill] sm:$0xff] }
 0x719   : > { %3269 = vrot.lane.b32.xlu0 %v6685_v50, %s4673_s23 }
 0x71e   : > { %2927 = vmatpush.bf16.xpose.msrb.mxu2 %v6686_v23 }
 0x720   : > { %3283 = vrot.lane.b32.xlu2 %v6687_v51, %s4673_s23 }
 0x721   : > { %3279 = vrot.lane.b32.xlu0 %v6688_v15, %s4673_s23 }
 0x722   : > { %v2667_v47 = vpop.xlane.xlu1 %2666 }
 0x726   : > { %2928 = vmatpush.bf16.xpose.msrb.mxu2 %v6689_v4 }
 0x728   : > { %3281 = vrot.lane.b32.xlu2 %v6690_v54, %s4673_s23  ;;  %v2655_v25 = vpop.xlane.xlu0 %2654 }
 0x729   : > { %3265 = vrot.lane.b32.xlu0 %v6691_v9, %s4673_s23  ;;  %4483 = vrcp.f32 %v2655_v25 }
 0x72e   : > { %2929 = vmatpush.bf16.xpose.msrb.mxu2 %v6692_v41 }
 0x72f   : > { %v4484_v37 = vpop.eup %4483 }
 0x730   : > { %3261 = vrot.lane.b32.xlu2 %v6693_v59, %s4673_s23  ;;  %v2682_v30 = vmul.f32 %v4484_v37, %v6052_v62  ;;  %v2683_v43 = vmul.f32 %v4484_v37, %v6054_v35  ;;  %v2664_v14 = vpop.xlane.xlu0 %2663 }
 0x731   : > { %3277 = vrot.lane.b32.xlu0 %v6694_v13, %s4673_s23 }
 0x733   : > { %v2652_v22 = vpop.xlane.xlu2 %2651 }
 0x734   : > { %4485 = vrcp.f32 %v2652_v22 }
 0x736   : > { %2930 = vmatpush.bf16.xpose.msrb.mxu2 %v6695_v57 }
 0x739   : > { %3263 = vrot.lane.b32.xlu0 %v6696_v63, %s4673_s23 }
 0x73a   : > { %v4486_v31 = vpop.eup %4485 }
 0x73b   : > { %v2680_v29 = vmul.f32 %v4486_v31, %v6064_v7  ;;  %v2681_v28 = vmul.f32 %v4486_v31, %v6066_v56  ;;  %v2661_v6 = vpop.xlane.xlu2 %2660 }
 0x73c   : > { %4487 = vrcp.f32 %v2661_v6 }
 0x73d   : > { %v2694_v39 = vpack.c.bf16 %v2682_v30, %v2680_v29  ;;  %v2695_v32 = vpack.c.bf16 %v2683_v43, %v2681_v28  ;;  %4489 = vrcp.f32 %v2658_v38 }
 0x73e   : > { %2931 = vmatpush.bf16.xpose.msrb.mxu2 %v6668_v48  ;;  %4491 = vrcp.f32 %v2664_v14 }
 0x73f   : > { %2761 = vmatmul.bf16.gmra.mxu2 %v2694_v39  ;;  %2790 = vmatmul.bf16.gmra.mxu3 %v2695_v32  ;;  %4493 = vrcp.f32 %v2667_v47 }
 0x742   : > { %v4488_v62 = vpop.eup %4487 }
 0x743   : > { %v4490_v7 = vpop.eup %4489  ;;  %v2686_v56 = vmul.f32 %v4488_v62, %v6072_v45  ;;  %v2687_v35 = vmul.f32 %v4488_v62, %v6074_v52  ;;  %v2976_v20 = vpop.permute.xlu2 %2975 }
 0x744   : > { %v2684_v48 = vmul.f32 %v4490_v7, %v6032_v3  ;;  %v2685_v49 = vmul.f32 %v4490_v7, %v6034_v40  ;;  %v4492_v61 = vpop.eup %4491  ;;  %v3027_v44 = vsel %vm1248_vm0, %v2976_v20, 0  ;;  %v2992_v46 = vpop.permute.xlu0 %2991 }
 0x745   : > { %v4494_v8 = vpop.eup %4493  ;;  %v2688_v33 = vmul.f32 %v4492_v61, %v6060_v12  ;;  %v2689_v45 = vmul.f32 %v4492_v61, %v6062_v21  ;;  %3053 = vmatpush.bf16.xpose.msrb.mxu3 %v3027_v44  ;;  %v3051_v12 = vsel %vm1248_vm0, %v2992_v46, 0 }
 0x746   : > { %v2696_v34 = vpack.c.bf16 %v2686_v56, %v2684_v48  ;;  %v2697_v60 = vpack.c.bf16 %v2687_v35, %v2685_v49  ;;  %v2690_v52 = vmul.f32 %v4494_v8, %v6044_v19  ;;  %v2691_v3 = vmul.f32 %v4494_v8, %v6046_v36  ;;  %3082 = vmatpush.bf16.xpose.msra.mxu0 %v3051_v12  ;;  %v2974_v19 = vpop.permute.xlu1 %2973 }
 0x747   : > { %v3024_v36 = vsel %vm1248_vm0, %v2974_v19, 0 }
 0x748   : > { %v2698_v0 = vpack.c.bf16 %v2690_v52, %v2688_v33  ;;  %v2699_v40 = vpack.c.bf16 %v2691_v3, %v2689_v45 }
 0x74b   : > { %v2972_v16 = vpop.permute.xlu2 %2971 }
 0x74c   : > { %v2990_v21 = vpop.permute.xlu0 %2989  ;;  %v3021_v1 = vsel %vm1248_vm0, %v2972_v16, 0 }
 0x74d   : > { %3054 = vmatpush.bf16.xpose.msrb.mxu3 %v3024_v36  ;;  %v3048_v42 = vsel %vm1248_vm0, %v2990_v21, 0 }
 0x74e   : > { %3083 = vmatpush.bf16.xpose.msra.mxu0 %v3048_v42  ;;  %v2970_v26 = vpop.permute.xlu1 %2969 }
 0x74f   : > { %2766 = vmatmul.bf16.gmra.mxu2 %v2696_v34  ;;  %2795 = vmatmul.bf16.gmra.mxu3 %v2697_v60  ;;  %v3018_v27 = vsel %vm1248_vm0, %v2970_v26, 0 }
 0x753   : > { %v2986_v41 = vpop.permute.xlu2 %2985 }
 0x754   : > { %v2988_v54 = vpop.permute.xlu0 %2987  ;;  %v3042_v25 = vsel %vm1248_vm0, %v2986_v41, 0 }
 0x755   : > { %3055 = vmatpush.bf16.xpose.msrb.mxu3 %v3021_v1  ;;  %v3045_v9 = vsel %vm1248_vm0, %v2988_v54, 0 }
 0x756   : > { %3084 = vmatpush.bf16.xpose.msra.mxu0 %v3045_v9  ;;  %v2984_v22 = vpop.permute.xlu1 %2983 }
 0x757   : > { %v3039_v37 = vsel %vm1248_vm0, %v2984_v22, 0 }
 0x75b   : > { %v2966_v57 = vpop.permute.xlu2 %2965 }
 0x75c   : > { %v2968_v59 = vpop.permute.xlu0 %2967  ;;  %v3012_v63 = vsel %vm1248_vm0, %v2966_v57, 0 }
 0x75d   : > { %3056 = vmatpush.bf16.xpose.msrb.mxu3 %v3018_v27  ;;  %v3015_v13 = vsel %vm1248_vm0, %v2968_v59, 0  ;;  %v6698_v59 = vld [vmem:[#allocation30_spill] sm:$0xff] }
 0x75e   : > { %3085 = vmatpush.bf16.xpose.msra.mxu0 %v3042_v25  ;;  %v2964_v31 = vpop.permute.xlu1 %2963 }
 0x75f   : > { %2771 = vmatmul.bf16.gmra.mxu2 %v2698_v0  ;;  %2800 = vmatmul.bf16.gmra.mxu3 %v2699_v40  ;;  %v3009_v29 = vsel %vm1248_vm0, %v2964_v31, 0 }
 0x763   : > { %v2980_v32 = vpop.permute.xlu2 %2979 }
 0x764   : > { %v2982_v30 = vpop.permute.xlu0 %2981  ;;  %v3033_v11 = vsel %vm1248_vm0, %v2980_v32, 0 }
 0x765   : > { %3057 = vmatpush.bf16.xpose.msrb.mxu3 %v3015_v13  ;;  %v3036_v28 = vsel %vm1248_vm0, %v2982_v30, 0  ;;  %v6699_v13 = vld [vmem:[#allocation19_spill] sm:$0xff] }
 0x766   : > { %3086 = vmatpush.bf16.xpose.msra.mxu0 %v3039_v37  ;;  %v2978_v34 = vpop.permute.xlu1 %2977  ;;  %v2316_v22 = vadd.f32 %v6699_v13, %v6698_v59 }
 0x767   : > { %v3030_v60 = vsel %vm1248_vm0, %v2978_v34, 0 }
 0x76b   : > { %v2876_v14 = vpop.permute.xlu2 %2875 }
 0x76c   : > { %v2962_v39 = vpop.permute.xlu0 %2961  ;;  %4123 = vmatmul.msk.bf16.vlgmr.msrb.gmra.mxu1 %vm1248_vm0, %v2876_v14 }
 0x76d   : > { %3058 = vmatpush.bf16.xpose.msrb.mxu3 %v3012_v63  ;;  %v3006_v38 = vsel %vm1248_vm0, %v2962_v39, 0 }
 0x76e   : > { %3087 = vmatpush.bf16.xpose.msra.mxu0 %v3036_v28  ;;  %v2878_v0 = vpop.permute.xlu1 %2877 }
 0x76f   : > { %4127 = vmatmul.msk.bf16.vlgmr.msrb.gmra.mxu2 %vm1248_vm0, %v2876_v14 }
 0x773   : > { %v2956_v40 = vpop.permute.xlu2 %2955 }
 0x774   : > { %v2954_v48 = vpop.permute.xlu0 %2953 }
 0x775   : > { %3059 = vmatpush.bf16.xpose.msrb.mxu3 %v3009_v29 }
 0x776   : > { %3088 = vmatpush.bf16.xpose.msra.mxu0 %v3033_v11  ;;  %v2958_v21 = vpop.permute.xlu1 %2957 }
 0x77b   : > { %v2882_v16 = vpop.permute.xlu2 %2881 }
 0x77c   : > { %4124 = vmatmul.msk.bf16.gmra.mxu1 %vm1248_vm0, %v2878_v0  ;;  %v2880_v42 = vpop.permute.xlu0 %2879 }
 0x77d   : > { %3060 = vmatpush.bf16.xpose.msrb.mxu3 %v3006_v38  ;;  %v6700_v38 = vld [vmem:[#allocation42_spill] sm:$0xff] }
 0x77e   : > { %3089 = vmatpush.bf16.xpose.msra.mxu0 %v3030_v60 }
 0x77f   : > { %4128 = vmatmul.msk.bf16.gmra.mxu2 %vm1248_vm0, %v2878_v0 }
 0x781   : > { %v2786_v2 = vpop.f32.mrf.mxu3 }
 0x784   : > { %4131 = vmatmul.msk.bf16.vlgmr.msrb.gmra.mxu3 %vm1248_vm0, %v2954_v48  ;;  %v2960_v1 = vpop.permute.xlu0 %2959 }
 0x788   : > { %v2757_v10 = vpop.f32.mrf.mxu2 }
 0x789   : > { %v2788_v50 = vpop.f32.mrf.mxu3  ;;  %v2787_v51 = vadd.f32 %v2786_v2, %v2757_v10  ;;  %v2301_v2 = vadd.f32 %v5916_v24, %v5924_v18 }
 0x78c   : > { %4125 = vmatmul.msk.bf16.gmra.mxu1 %vm1248_vm0, %v2880_v42  ;;  %v3270_v29 = vpop.permute.xlu0 %3269 }
 0x78d   : > { %3303 = vmatpush.bf16.msra.mxu1 %v3270_v29 }
 0x78f   : > { %4129 = vmatmul.msk.bf16.gmra.mxu2 %vm1248_vm0, %v2880_v42 }
 0x790   : > { %v2759_v23 = vpop.f32.mrf.mxu2 }
 0x791   : > { %v2789_v15 = vadd.f32 %v2788_v50, %v2759_v23  ;;  %v2306_v50 = vadd.f32 %v5922_v55, %v5932_v53 }
 0x793   : > { %v2806_v4 = vpack.c.bf16 %v2789_v15, %v2787_v51 }
 0x794   : > { %4132 = vmatmul.msk.bf16.gmra.mxu3 %vm1248_vm0, %v2956_v40 }
 0x795   : > { %4119 = vmatmul.msk.bf16.vlgmr.msrb.gmra.mxu0 %vm1248_vm0, %v2806_v4  ;;  %v6697_v4 = vld [vmem:[#allocation18_spill] sm:$0xff] }
 0x796   : > { %v2311_v24 = vadd.f32 %v6697_v4, %v5940_v58 }
 0x79c   : > { %4126 = vmatmul.msk.bf16.gmra.mxu1 %vm1248_vm0, %v2882_v16 }
 0x79f   : > { %4130 = vmatmul.msk.bf16.gmra.mxu2 %vm1248_vm0, %v2882_v16 }
 0x7a4   : > { %4133 = vmatmul.msk.bf16.gmra.mxu3 %vm1248_vm0, %v2958_v21 }
 0x7b4   : > { %4134 = vmatmul.msk.bf16.gmra.mxu3 %vm1248_vm0, %v2960_v1 }
 0x7c2   : > { %v2762_v43 = vpop.f32.mrf.mxu2  ;;  %v2791_v6 = vpop.f32.mrf.mxu3 }
 0x7c3   : > { %v2792_v56 = vadd.f32 %v2791_v6, %v2762_v43 }
 0x7ca   : > { %v2764_v62 = vpop.f32.mrf.mxu2  ;;  %v2793_v7 = vpop.f32.mrf.mxu3 }
 0x7cb   : > { %v2794_v35 = vadd.f32 %v2793_v7, %v2764_v62  ;;  %v3280_v62 = vpop.permute.xlu0 %3279 }
 0x7cd   : > { %v2807_v49 = vpack.c.bf16 %v2794_v35, %v2792_v56 }
 0x7cf   : > { %4120 = vmatmul.msk.bf16.gmra.mxu0 %vm1248_vm0, %v2807_v49 }
 0x7d2   : > { %v2767_v47 = vpop.f32.mrf.mxu2  ;;  %v2796_v61 = vpop.f32.mrf.mxu3 }
 0x7d3   : > { %v2797_v45 = vadd.f32 %v2796_v61, %v2767_v47  ;;  %v3286_v61 = vpop.permute.xlu1 %3285 }
 0x7d4   : > { %3332 = vmatpush.bf16.msra.mxu2 %v3286_v61 }
 0x7da   : > { %v2769_v8 = vpop.f32.mrf.mxu2  ;;  %v2798_v33 = vpop.f32.mrf.mxu3 }
 0x7db   : > { %v2799_v52 = vadd.f32 %v2798_v33, %v2769_v8  ;;  %v3266_v8 = vpop.permute.xlu0 %3265 }
 0x7dd   : > { %v2808_v3 = vpack.c.bf16 %v2799_v52, %v2797_v45 }
 0x7df   : > { %4121 = vmatmul.msk.bf16.gmra.mxu0 %vm1248_vm0, %v2808_v3  ;;  %v3284_v3 = vpop.permute.xlu2 %3283 }
 0x7e0   : > { %3333 = vmatpush.bf16.msra.mxu2 %v3284_v3 }
 0x7e2   : > { %v2772_v17 = vpop.f32.mrf.mxu2  ;;  %v2801_v20 = vpop.f32.mrf.mxu3 }
 0x7e3   : > { %v2802_v12 = vadd.f32 %v2801_v20, %v2772_v17 }
 0x7e7   : > { %v3282_v42 = vpop.permute.xlu2 %3281 }
 0x7e8   : > { %3334 = vmatpush.bf16.msra.mxu2 %v3282_v42 }
 0x7e9   : > { %v2904_v41 = vpop.f32.mrf.mxu1 }
 0x7ea   : > { %v2774_v44 = vpop.f32.mrf.mxu2  ;;  %v2803_v46 = vpop.f32.mrf.mxu3 }
 0x7eb   : > { %v2804_v19 = vadd.f32 %v2803_v46, %v2774_v44  ;;  %v3268_v46 = vpop.permute.xlu1 %3267 }
 0x7ec   : > { %3304 = vmatpush.bf16.msra.mxu1 %v3268_v46  ;;  %3335 = vmatpush.bf16.msra.mxu2 %v3280_v62 }
 0x7ed   : > { %v2809_v36 = vpack.c.bf16 %v2804_v19, %v2802_v12  ;;  %v3278_v12 = vpop.permute.xlu0 %3277 }
 0x7ef   : > { %4122 = vmatmul.msk.bf16.gmra.mxu0 %vm1248_vm0, %v2809_v36 }
 0x7f0   : > { %3305 = vmatpush.bf16.msra.mxu1 %v3266_v8  ;;  %3336 = vmatpush.bf16.msra.mxu2 %v3278_v12  ;;  %v6701_v12 = vld [vmem:[#allocation53_spill] sm:$0xff] }
 0x7f1   : > { %v2906_v37 = vpop.f32.mrf.mxu1 }
 0x7f2   : > { %v2933_v53 = vpop.f32.mrf.mxu2 }
 0x7f9   : > { %v2909_v30 = vpop.f32.mrf.mxu1 }
 0x7fa   : > { %v2935_v58 = vpop.f32.mrf.mxu2 }
 0x7ff   : > { %4135 = vmatmul.msk.bf16.vlgmr.msra.gmra.mxu0 %vm1248_vm0, %v2954_v48 }
 0x801   : > { %v2911_v49 = vpop.f32.mrf.mxu1 }
 0x802   : > { %v2938_v7 = vpop.f32.mrf.mxu2 }
 0x807   : > { %v3062_v25 = vpop.f32.mrf.mxu3 }
 0x808   : > { %v3063_v28 = vadd.f32 %v3062_v25, %v2904_v41  ;;  %v3262_v25 = vpop.permute.xlu2 %3261 }
 0x809   : > { %v2914_v20 = vpop.f32.mrf.mxu1 }
 0x80a   : > { %v6241_v32 = vadd.f32 %v3063_v28, %v5293_v5  ;;  %v2940_v52 = vpop.f32.mrf.mxu2 }
 0x80f   : > { %4136 = vmatmul.msk.bf16.gmra.mxu0 %vm1248_vm0, %v2956_v40  ;;  %v3064_v31 = vpop.f32.mrf.mxu3 }
 0x810   : > { %v3065_v35 = vadd.f32 %v3064_v31, %v2906_v37 }
 0x812   : > { %v2847_v10 = vpop.f32.mrf.mxu0  ;;  %v6249_v60 = vadd.f32 %v3065_v35, %v5293_v5 }
 0x813   : > { %v6216_v26 = vadd.f32 %v2847_v10, %v2301_v2 }
 0x817   : > { %v3067_v6 = vpop.f32.mrf.mxu3 }
 0x818   : > { %v3068_v45 = vadd.f32 %v3067_v6, %v2909_v30 }
 0x81a   : > { %v6220_v27 = vpop.f32.mrf.mxu0  ;;  %v6257_v40 = vadd.f32 %v3068_v45, %v5293_v5 }
 0x81f   : > { %4137 = vmatmul.msk.bf16.gmra.mxu0 %vm1248_vm0, %v2958_v21  ;;  %v3069_v34 = vpop.f32.mrf.mxu3 }
 0x820   : > { %v3070_v21 = vadd.f32 %v3069_v34, %v2911_v49 }
 0x822   : > { %v6265_v2 = vadd.f32 %v3070_v21, %v5293_v5 }
 0x827   : > { %v3072_v19 = vpop.f32.mrf.mxu3 }
 0x82f   : > { %4138 = vmatmul.msk.bf16.gmra.mxu0 %vm1248_vm0, %v2960_v1  ;;  %v2943_v1 = vpop.f32.mrf.mxu2  ;;  %v3074_v41 = vpop.f32.mrf.mxu3 }
 0x837   : > { %v3077_v28 = vpop.f32.mrf.mxu3 }
 0x83f   : > { %v3079_v61 = vpop.f32.mrf.mxu3 }
 0x84c   : > { %v2852_v23 = vpop.f32.mrf.mxu0 }
 0x84d   : > { %v6224_v51 = vadd.f32 %v2852_v23, %v2306_v50  ;;  %v3264_v23 = vpop.permute.xlu0 %3263 }
 0x84e   : > { %3306 = vmatpush.bf16.msra.mxu1 %v3264_v23 }
 0x852   : > { %3307 = vmatpush.bf16.msra.mxu1 %v3262_v25 }
 0x854   : > { %v6226_v15 = vpop.f32.mrf.mxu0 }
 0x85c   : > { %v2857_v18 = vpop.f32.mrf.mxu0 }
 0x85d   : > { %v6230_v54 = vadd.f32 %v2857_v18, %v2311_v24  ;;  %v3073_v24 = vadd.f32 %v3072_v19, %v2914_v20  ;;  %v2916_v18 = vpop.f32.mrf.mxu1  ;;  %v6702_v19 = vld [vmem:[#allocation49_spill] sm:$0xff] }
 0x85e   : > { %v3075_v29 = vadd.f32 %v3074_v41, %v2916_v18 }
 0x85f   : > { %v6273_v13 = vadd.f32 %v3073_v24, %v5293_v5 }
 0x864   : > { %v6232_v9 = vpop.f32.mrf.mxu0 }
 0x86c   : > { %v2862_v57 = vpop.f32.mrf.mxu0 }
 0x86d   : > { %v6236_v55 = vadd.f32 %v2862_v57, %v2316_v22  ;;  %v3276_v57 = vpop.permute.xlu1 %3275 }
 0x86e   : > { %3337 = vmatpush.bf16.msra.mxu2 %v3276_v57 }
 0x874   : > { %v6238_v63 = vpop.f32.mrf.mxu0 }
 0x875   : > { %v3274_v35 = vpop.permute.xlu1 %3273 }
 0x876   : > { %3338 = vmatpush.bf16.msra.mxu2 %v3274_v35 }
 0x87c   : > { %v3091_v43 = vpop.f32.mrf.mxu0 }
 0x87d   : > { %v3092_v39 = vadd.f32 %v3091_v43, %v2933_v53  ;;  %v2945_v53 = vpop.f32.mrf.mxu2  ;;  %v6281_v43 = vadd.f32 %v3075_v29, %v5293_v5 }
 0x87f   : > { %v6244_v11 = vadd.f32 %v3092_v39, %v6700_v38 }
 0x881   : > { %v3127_v56 = vmax.f32 %v6241_v32, %v6244_v11 }
 0x883   : > { %3128 = vmax.xlane.f32.xlu1 %v3127_v56 }
 0x884   : > { %v3093_v48 = vpop.f32.mrf.mxu0 }
 0x885   : > { %v3094_v14 = vadd.f32 %v3093_v48, %v2935_v58  ;;  %v2919_v58 = vpop.f32.mrf.mxu1  ;;  %v2948_v62 = vpop.f32.mrf.mxu2 }
 0x886   : > { %v3078_v56 = vadd.f32 %v3077_v28, %v2919_v58 }
 0x887   : > { %v6252_v47 = vadd.f32 %v3094_v14, %v6700_v38 }
 0x888   : > { %v6289_v49 = vadd.f32 %v3078_v56, %v5293_v5 }
 0x889   : > { %v3130_v33 = vmax.f32 %v6249_v60, %v6252_v47 }
 0x88b   : > { %3131 = vmax.xlane.f32.xlu2 %v3130_v33 }
 0x88c   : > { %v3096_v0 = vpop.f32.mrf.mxu0 }
 0x88d   : > { %v3097_v17 = vadd.f32 %v3096_v0, %v2938_v7  ;;  %v2921_v34 = vpop.f32.mrf.mxu1 }
 0x88e   : > { %v3080_v45 = vadd.f32 %v3079_v61, %v2921_v34 }
 0x88f   : > { %v6260_v44 = vadd.f32 %v3097_v17, %v6700_v38 }
 0x890   : > { %v6297_v0 = vadd.f32 %v3080_v45, %v5293_v5 }
 0x891   : > { %v3133_v36 = vmax.f32 %v6257_v40, %v6260_v44 }
 0x893   : > { %3134 = vmax.xlane.f32.xlu0 %v3133_v36 }
 0x894   : > { %v3098_v16 = vpop.f32.mrf.mxu0 }
 0x895   : > { %v3099_v10 = vadd.f32 %v3098_v16, %v2940_v52  ;;  %v2950_v52 = vpop.f32.mrf.mxu2 }
 0x897   : > { %v6268_v50 = vadd.f32 %v3099_v10, %v6700_v38 }
 0x899   : > { %v3136_v4 = vmax.f32 %v6265_v2, %v6268_v50 }
 0x89b   : > { %3137 = vmax.xlane.f32.xlu1 %v3136_v4 }
 0x89c   : > { %v3101_v59 = vpop.f32.mrf.mxu0 }
 0x89d   : > { %v3102_v22 = vadd.f32 %v3101_v59, %v2943_v1 }
 0x89f   : > { %v6276_v37 = vadd.f32 %v3102_v22, %v6700_v38 }
 0x8a1   : > { %v3139_v31 = vmax.f32 %v6273_v13, %v6276_v37 }
 0x8a3   : > { %3140 = vmax.xlane.f32.xlu2 %v3139_v31 }
 0x8a4   : > { %v3103_v30 = vpop.f32.mrf.mxu0 }
 0x8a5   : > { %v3104_v6 = vadd.f32 %v3103_v30, %v2945_v53 }
 0x8a7   : > { %v6284_v39 = vadd.f32 %v3104_v6, %v6700_v38 }
 0x8a9   : > { %v3142_v7 = vmax.f32 %v6281_v43, %v6284_v39 }
 0x8ab   : > { %3143 = vmax.xlane.f32.xlu0 %v3142_v7  ;;  %v6704_v7 = vld [vmem:[#allocation51_spill] sm:$0xff] }
 0x8ac   : > { %v3106_v48 = vpop.f32.mrf.mxu0 }
 0x8ad   : > { %v3107_v14 = vadd.f32 %v3106_v48, %v2948_v62 }
 0x8af   : > { %v6292_v8 = vadd.f32 %v3107_v14, %v6700_v38 }
 0x8b1   : > { %v3145_v33 = vmax.f32 %v6289_v49, %v6292_v8 }
 0x8b3   : > { %3146 = vmax.xlane.f32.xlu2 %v3145_v33 }
 0x8b4   : > { %v3108_v3 = vpop.f32.mrf.mxu0 }
 0x8b5   : > { %v3109_v17 = vadd.f32 %v3108_v3, %v2950_v52 }
 0x8b7   : > { %v6300_v20 = vadd.f32 %v3109_v17, %v6700_v38 }
 0x8b9   : > { %v3148_v46 = vmax.f32 %v6297_v0, %v6300_v20 }
 0x8bb   : > { %3149 = vmax.xlane.f32.xlu1 %v3148_v46 }
 0x8cb   : > { %3271 = vrot.lane.b32.xlu2 %v6701_v12, %s4673_s23 }
 0x8d4   : > { %3257 = vrot.lane.b32.xlu1 %v6702_v19, %s4673_s23 }
 0x8f6   : > { %v3129_v36 = vpop.xlane.xlu1 %3128 }
 0x8f7   : > { %v3151_v21 = vsub.f32 %v6241_v32, %v3129_v36  ;;  %v3152_v5 = vsub.f32 %v6244_v11, %v3129_v36 }
 0x8f9   : > { %v3167_v42 = vmul.f32 1.442695, %v3151_v21  ;;  %v3169_v16 = vmul.f32 1.442695, %v3152_v5 }
 0x8fb   : > { %4495 = vpow2.f32 %v3167_v42 }
 0x8fc   : > { %4497 = vpow2.f32 %v3169_v16 }
 0x8fe   : > { %v3132_v38 = vpop.xlane.xlu2 %3131 }
 0x8ff   : > { %v3153_v1 = vsub.f32 %v6249_v60, %v3132_v38  ;;  %v3154_v10 = vsub.f32 %v6252_v47, %v3132_v38 }
 0x901   : > { %v6312_v23 = vpop.eup %4495  ;;  %v3171_v4 = vmul.f32 1.442695, %v3153_v1  ;;  %v3173_v24 = vmul.f32 1.442695, %v3154_v10 }
 0x902   : > { %v6314_v18 = vpop.eup %4497 }
 0x903   : > { %4499 = vpow2.f32 %v3171_v4  ;;  %v3199_v32 = vadd.f32 %v6314_v18, %v6312_v23 }
 0x904   : > { %4501 = vpow2.f32 %v3173_v24 }
 0x905   : > { %3200 = vadd.xlane.f32.xlu0 %v3199_v32 }
 0x906   : > { %v3135_v11 = vpop.xlane.xlu0 %3134 }
 0x907   : > { %v3155_v41 = vsub.f32 %v6257_v40, %v3135_v11  ;;  %v3156_v25 = vsub.f32 %v6260_v44, %v3135_v11  ;;  %v6703_v44 = vld [vmem:[#allocation47_spill] sm:$0xff] }
 0x909   : > { %v6320_v60 = vpop.eup %4499  ;;  %v3175_v47 = vmul.f32 1.442695, %v3155_v41  ;;  %v3177_v59 = vmul.f32 1.442695, %v3156_v25 }
 0x90a   : > { %v6322_v22 = vpop.eup %4501 }
 0x90b   : > { %4503 = vpow2.f32 %v3175_v47  ;;  %v3202_v57 = vadd.f32 %v6322_v22, %v6320_v60 }
 0x90c   : > { %4505 = vpow2.f32 %v3177_v59 }
 0x90d   : > { %3203 = vadd.xlane.f32.xlu2 %v3202_v57 }
 0x90e   : > { %v3138_v34 = vpop.xlane.xlu1 %3137 }
 0x90f   : > { %v3157_v46 = vsub.f32 %v6265_v2, %v3138_v34  ;;  %v3158_v12 = vsub.f32 %v6268_v50, %v3138_v34 }
 0x911   : > { %v6326_v53 = vpop.eup %4503  ;;  %v3181_v5 = vmul.f32 1.442695, %v3158_v12 }
 0x912   : > { %v6328_v31 = vpop.eup %4505 }
 0x913   : > { %v3205_v40 = vadd.f32 %v6328_v31, %v6326_v53 }
 0x915   : > { %3206 = vadd.xlane.f32.xlu1 %v3205_v40 }
 0x916   : > { %v3141_v29 = vpop.xlane.xlu2 %3140 }
 0x917   : > { %v3160_v61 = vsub.f32 %v6276_v37, %v3141_v29  ;;  %v3179_v37 = vmul.f32 1.442695, %v3157_v46 }
 0x919   : > { %3259 = vrot.lane.b32.xlu0 %v6703_v44, %s4673_s23  ;;  %v3185_v45 = vmul.f32 1.442695, %v3160_v61 }
 0x91e   : > { %v3144_v58 = vpop.xlane.xlu0 %3143 }
 0x91f   : > { %v3161_v30 = vsub.f32 %v6281_v43, %v3144_v58  ;;  %v3162_v28 = vsub.f32 %v6284_v39, %v3144_v58  ;;  %v3159_v39 = vsub.f32 %v6273_v13, %v3141_v29 }
 0x921   : > { %v3187_v6 = vmul.f32 1.442695, %v3161_v30  ;;  %v3189_v62 = vmul.f32 1.442695, %v3162_v28  ;;  %v3183_v33 = vmul.f32 1.442695, %v3159_v39 }
 0x923   : > { %4507 = vpow2.f32 %v3187_v6 }
 0x924   : > { %4509 = vpow2.f32 %v3189_v62 }
 0x925   : > { %3255 = vrot.lane.b32.xlu2 %v6704_v7, %s4673_s23  ;;  %4511 = vpow2.f32 %v3183_v33  ;;  %v4223_v33 = vld [vmem:[%s6643_s4 + $0x38] sm:$0xff]  ;;  %s4224_s23 = sshll.u32 (%p4887_p6), %s6714_s10, 4 }
 0x926   : > { %v3147_v56 = vpop.xlane.xlu2 %3146  ;;  %4513 = vpow2.f32 %v3185_v45  ;;  %3399 = vmatpush.bf16.msra.mxu3 %v4223_v33  ;;  %s3476_s11 = sadd.s32 (%p4887_p6), %s6716_s19, %s4224_s23 }
 0x927   : > { %v3164_v2 = vsub.f32 %v6292_v8, %v3147_v56  ;;  %s3478_s9 = sadd.s32 (%p4887_p6), %s4154_s6, %s3476_s11 }
 0x928   : > { %s4155_s29 = sshll.u32 (%p4887_p6), %s3478_s9, 2 }
 0x929   : > { %v6338_v35 = vpop.eup %4507  ;;  %v3193_v38 = vmul.f32 1.442695, %v3164_v2  ;;  %s3480_s13 = scalar_lea.vmem (%p4887_p6), %s6717_s12, %s4155_s29 }
 0x92a   : > { %v6340_v48 = vpop.eup %4509 }
 0x92b   : > { %v3214_v14 = vadd.f32 %v6340_v48, %v6338_v35  ;;  %v6350_v21 = vpop.eup %4511 }
 0x92c   : > { %v6352_v13 = vpop.eup %4513 }
 0x92d   : > { %3215 = vadd.xlane.f32.xlu1 %v3214_v14 }
 0x92e   : > { %v3272_v43 = vpop.permute.xlu2 %3271  ;;  %v3150_v52 = vpop.xlane.xlu1 %3149 }
 0x92f   : > { %3339 = vmatpush.bf16.msra.mxu2 %v3272_v43  ;;  %v3165_v3 = vsub.f32 %v6297_v0, %v3150_v52  ;;  %v3166_v17 = vsub.f32 %v6300_v20, %v3150_v52  ;;  %v3211_v0 = vadd.f32 %v6352_v13, %v6350_v21  ;;  %v3163_v20 = vsub.f32 %v6289_v49, %v3147_v56 }
 0x931   : > { %v3195_v19 = vmul.f32 1.442695, %v3165_v3  ;;  %v3197_v36 = vmul.f32 1.442695, %v3166_v17  ;;  %v3191_v16 = vmul.f32 1.442695, %v3163_v20 }
 0x933   : > { %4515 = vpow2.f32 %v3195_v19 }
 0x934   : > { %4517 = vpow2.f32 %v3197_v36 }
 0x935   : > { %4519 = vpow2.f32 %v3179_v37 }
 0x936   : > { %4521 = vpow2.f32 %v3181_v5 }
 0x937   : > { %4523 = vpow2.f32 %v3191_v16 }
 0x938   : > { %4525 = vpow2.f32 %v3193_v38 }
 0x939   : > { %v6358_v50 = vpop.eup %4515 }
 0x93a   : > { %v6360_v42 = vpop.eup %4517 }
 0x93b   : > { %v4520_v1 = vpop.eup %4519  ;;  %v3220_v4 = vadd.f32 %v6360_v42, %v6358_v50 }
 0x93c   : > { %v4522_v10 = vpop.eup %4521 }
 0x93d   : > { %v3208_v24 = vadd.f32 %v4522_v10, %v4520_v1  ;;  %v4524_v49 = vpop.eup %4523 }
 0x93e   : > { %v4526_v32 = vpop.eup %4525 }
 0x93f   : > { %v3217_v8 = vadd.f32 %v4526_v32, %v4524_v49 }
 0x943   : > { %3212 = vadd.xlane.f32.xlu0 %v3211_v0 }
 0x946   : > { %v3258_v29 = vpop.permute.xlu1 %3257 }
 0x94b   : > { %3221 = vadd.xlane.f32.xlu0 %v3220_v4 }
 0x94e   : > { %3209 = vadd.xlane.f32.xlu2 %v3208_v24 }
 0x956   : > { %3218 = vadd.xlane.f32.xlu2 %v3217_v8 }
 0x978   : > { %v3201_v11 = vpop.xlane.xlu0 %3200 }
 0x979   : > { %4527 = vrcp.f32 %v3201_v11 }
 0x97f   : > { %v4528_v25 = vpop.eup %4527 }
 0x980   : > { %v3204_v41 = vpop.xlane.xlu2 %3203  ;;  %v3232_v59 = vmul.f32 %v4528_v25, %v6314_v18  ;;  %v3231_v30 = vmul.f32 %v4528_v25, %v6312_v23 }
 0x981   : > { %4529 = vrcp.f32 %v3204_v41 }
 0x987   : > { %v4530_v47 = vpop.eup %4529 }
 0x988   : > { %v3234_v57 = vmul.f32 %v4530_v47, %v6322_v22  ;;  %v3233_v58 = vmul.f32 %v4530_v47, %v6320_v60  ;;  %v3256_v28 = vpop.permute.xlu2 %3255  ;;  %v3207_v62 = vpop.xlane.xlu1 %3206 }
 0x989   : > { %4531 = vrcp.f32 %v3207_v62 }
 0x98a   : > { %v3248_v40 = vpack.c.bf16 %v3234_v57, %v3232_v59  ;;  %v3247_v6 = vpack.c.bf16 %v3233_v58, %v3231_v30 }
 0x98b   : > { %v3260_v44 = vpop.permute.xlu0 %3259 }
 0x98c   : > { %3308 = vmatpush.bf16.msra.mxu1 %v3260_v44  ;;  %3340 = vmatmul.bf16.vlgmr.msra.gmra.mxu2 %v3248_v40 }
 0x98f   : > { %v4532_v18 = vpop.eup %4531 }
 0x990   : > { %3309 = vmatpush.bf16.msra.mxu1 %v3258_v29  ;;  %v3235_v56 = vmul.f32 %v4532_v18, %v6326_v53  ;;  %v3236_v34 = vmul.f32 %v4532_v18, %v6328_v31 }
 0x994   : > { %3310 = vmatpush.bf16.msra.mxu1 %v3256_v28 }
 0x997   : > { %3311 = vmatmul.bf16.vlgmr.msra.gmra.mxu1 %v3247_v6 }
 0x9a0   : > { %v3216_v23 = vpop.xlane.xlu1 %3215 }
 0x9b6   : > { %v3213_v39 = vpop.xlane.xlu0 %3212 }
 0x9be   : > { %v3222_v36 = vpop.xlane.xlu0 %3221 }
 0x9c1   : > { %v3210_v7 = vpop.xlane.xlu2 %3209 }
 0x9c2   : > { %4533 = vrcp.f32 %v3210_v7 }
 0x9c3   : > { %4535 = vrcp.f32 %v3213_v39  ;;  %v6706_v39 = vld [vmem:[#allocation35_spill] sm:$0xff] }
 0x9c4   : > { %4537 = vrcp.f32 %v3216_v23 }
 0x9c8   : > { %v4534_v22 = vpop.eup %4533 }
 0x9c9   : > { %v3237_v14 = vmul.f32 %v4534_v22, %v4520_v1  ;;  %v3238_v43 = vmul.f32 %v4534_v22, %v4522_v10  ;;  %v4536_v45 = vpop.eup %4535  ;;  %v3219_v46 = vpop.xlane.xlu2 %3218 }
 0x9ca   : > { %v4538_v52 = vpop.eup %4537  ;;  %v3239_v53 = vmul.f32 %v4536_v45, %v6350_v21  ;;  %v3240_v31 = vmul.f32 %v4536_v45, %v6352_v13  ;;  %4539 = vrcp.f32 %v3219_v46 }
 0x9cb   : > { %v3249_v60 = vpack.c.bf16 %v3237_v14, %v3235_v56  ;;  %v3250_v61 = vpack.c.bf16 %v3238_v43, %v3236_v34  ;;  %v3241_v3 = vmul.f32 %v4538_v52, %v6338_v35  ;;  %v3242_v17 = vmul.f32 %v4538_v52, %v6340_v48  ;;  %v4222_v48 = vld [vmem:[%s6643_s4 + $0x30] sm:$0xff]  ;;  %v4350_v56 = vld [vmem:[%s6705_s22] ss:$0 sm:$0xff] }
 0x9cc   : > { %4541 = vrcp.f32 %v3222_v36  ;;  %3400 = vmatpush.bf16.msra.mxu3 %v4222_v48 }
 0x9cd   : > { %3316 = vmatmul.bf16.gmra.mxu1 %v3249_v60  ;;  %3345 = vmatmul.bf16.gmra.mxu2 %v3250_v61  ;;  %v3251_v12 = vpack.c.bf16 %v3241_v3, %v3239_v53  ;;  %v3252_v19 = vpack.c.bf16 %v3242_v17, %v3240_v31  ;;  %v6707_v60 = vld [vmem:[#allocation32_spill] sm:$0xff] }
 0x9ce   : > { %v2303_v61 = vadd.f32 %v6707_v60, %v6706_v39 }
 0x9d0   : > { %v4540_v37 = vpop.eup %4539  ;;  %v2868_v33 = vadd.f32 %v6220_v27, %v2303_v61 }
 0x9d1   : > { %v3243_v0 = vmul.f32 %v4540_v37, %v4524_v49  ;;  %v3244_v20 = vmul.f32 %v4540_v37, %v4526_v32 }
 0x9d2   : > { %v4542_v5 = vpop.eup %4541 }
 0x9d3   : > { %v3245_v21 = vmul.f32 %v4542_v5, %v6358_v50  ;;  %v3246_v13 = vmul.f32 %v4542_v5, %v6360_v42 }
 0x9d5   : > { %v3253_v2 = vpack.c.bf16 %v3245_v21, %v3243_v0  ;;  %v3254_v35 = vpack.c.bf16 %v3246_v13, %v3244_v20 }
 0x9dd   : > { %3321 = vmatmul.bf16.gmra.mxu1 %v3251_v12  ;;  %3350 = vmatmul.bf16.gmra.mxu2 %v3252_v19  ;;  %v6708_v12 = vld [vmem:[#allocation23_spill] sm:$0xff]  ;;  %v6709_v19 = vld [vmem:[#allocation28_spill] sm:$0xff] }
 0x9de   : > { %v2308_v36 = vadd.f32 %v6709_v19, %v6708_v12 }
 0x9e0   : > { %v2870_v5 = vadd.f32 %v6226_v15, %v2308_v36 }
 0x9ed   : > { %3326 = vmatmul.bf16.gmra.mxu1 %v3253_v2  ;;  %3355 = vmatmul.bf16.gmra.mxu2 %v3254_v35 }
 0xa0f   : > { %v3341_v16 = vpop.f32.mrf.mxu2 }
 0xa14   : > { %v3312_v38 = vpop.f32.mrf.mxu1 }
 0xa15   : > { %v3342_v4 = vadd.f32 %v3341_v16, %v3312_v38  ;;  %v6710_v38 = vld [vmem:[#allocation22_spill] sm:$0xff] }
 0xa17   : > { %v3343_v1 = vpop.f32.mrf.mxu2 }
 0xa1c   : > { %v3314_v10 = vpop.f32.mrf.mxu1 }
 0xa1d   : > { %v3344_v24 = vadd.f32 %v3343_v1, %v3314_v10  ;;  %v6711_v1 = vld [vmem:[#allocation21_spill] sm:$0xff] }
 0xa1e   : > { %v2313_v10 = vadd.f32 %v6711_v1, %v6710_v38 }
 0xa1f   : > { %v3361_v49 = vpack.c.bf16 %v3344_v24, %v3342_v4 }
 0xa20   : > { %v2872_v4 = vadd.f32 %v6232_v9, %v2313_v10 }
 0xa21   : > { %4147 = vmatmul.msk.bf16.vlgmr.msra.gmra.mxu3 %vm1248_vm0, %v3361_v49 }
 0xa4a   : > { %v3317_v50 = vpop.f32.mrf.mxu1 }
 0xa50   : > { %v3346_v42 = vpop.f32.mrf.mxu2 }
 0xa51   : > { %v3347_v11 = vadd.f32 %v3346_v42, %v3317_v50 }
 0xa52   : > { %v3319_v32 = vpop.f32.mrf.mxu1 }
 0xa58   : > { %v3348_v8 = vpop.f32.mrf.mxu2 }
 0xa59   : > { %v3349_v41 = vadd.f32 %v3348_v8, %v3319_v32 }
 0xa5a   : > { %v3322_v25 = vpop.f32.mrf.mxu1 }
 0xa5b   : > { %v3362_v47 = vpack.c.bf16 %v3349_v41, %v3347_v11 }
 0xa5d   : > { %4148 = vmatmul.msk.bf16.gmra.mxu3 %vm1248_vm0, %v3362_v47  ;;  %v6713_v47 = vld [vmem:[#allocation26_spill] sm:$0xff] }
 0xa60   : > { %v3351_v59 = vpop.f32.mrf.mxu2 }
 0xa61   : > { %v3352_v44 = vadd.f32 %v3351_v59, %v3322_v25  ;;  %v6712_v25 = vld [vmem:[#allocation33_spill] sm:$0xff] }
 0xa62   : > { %v3324_v57 = vpop.f32.mrf.mxu1  ;;  %v2318_v59 = vadd.f32 %v6713_v47, %v6712_v25 }
 0xa68   : > { %v3353_v40 = vpop.f32.mrf.mxu2 }
 0xa69   : > { %v3354_v29 = vadd.f32 %v3353_v40, %v3324_v57  ;;  %v2874_v57 = vadd.f32 %v6238_v63, %v2318_v59 }
 0xa6a   : > { %v3327_v30 = vpop.f32.mrf.mxu1 }
 0xa6b   : > { %v3363_v58 = vpack.c.bf16 %v3354_v29, %v3352_v44 }
 0xa6d   : > { %4149 = vmatmul.msk.bf16.gmra.mxu3 %vm1248_vm0, %v3363_v58 }
 0xa70   : > { %v3356_v28 = vpop.f32.mrf.mxu2 }
 0xa71   : > { %v3357_v7 = vadd.f32 %v3356_v28, %v3327_v30 }
 0xa72   : > { %v3329_v6 = vpop.f32.mrf.mxu1 }
 0xa78   : > { %v3358_v62 = vpop.f32.mrf.mxu2 }
 0xa79   : > { %v3359_v18 = vadd.f32 %v3358_v62, %v3329_v6 }
 0xa7b   : > { %v3364_v22 = vpack.c.bf16 %v3359_v18, %v3357_v7 }
 0xa7d   : > { %4150 = vmatmul.msk.bf16.gmra.mxu3 %vm1248_vm0, %v3364_v22 }
 0xaa4   : > { %v3402_v14 = vpop.f32.mrf.mxu3 }
 0xaa5   : > { %v3422_v34 = vadd.f32 %v3402_v14, %v6216_v26 }
 0xaa7   : > { %v3434_v43 = vadd.f32 %v4350_v56, %v3422_v34 }
 0xaa9   : > { %v3442_v23 = vmax.f32 %v3434_v43, 0.0 }
 0xaab   : > { %v3450_v45 = vpack.c.bf16 %v3442_v23, %v3442_v23 }
 0xaac   : > { %v3404_v52 = vpop.f32.mrf.mxu3 }
 0xaad   : > { %3459 = vst.msk [vmem:[%s6394_s30] sm:$0xf] %vm3458_vm1, %v3450_v45  ;;  %v3423_v53 = vadd.f32 %v3404_v52, %v2868_v33 }
 0xaaf   : > { %v3435_v31 = vadd.f32 %v4350_v56, %v3423_v53 }
 0xab1   : > { %v3443_v26 = vmax.f32 %v3435_v31, 0.0 }
 0xab3   : > { %v3451_v3 = vpack.c.bf16 %v3443_v26, %v3443_v26 }
 0xab5   : > { %3460 = vst.msk [vmem:[%s6394_s30 + $0x4] sm:$0xf] %vm3458_vm1, %v3451_v3 }
 0xabc   : > { %v3499_v63 = vld [vmem:[%s6394_s30 + $0x4] sm:$0xf] (%p4887_p6) }
 0xabd   : > { %3500 = vst [vmem:[%s3480_s13 + $0x8] sm:$0xf] (%p4887_p6), %v3499_v63 }
 0xae0   : > { %v3407_v17 = vpop.f32.mrf.mxu3 }
 0xae1   : > { %v3424_v46 = vadd.f32 %v3407_v17, %v6224_v51 }
 0xae3   : > { %v3436_v27 = vadd.f32 %v4350_v56, %v3424_v46 }
 0xae5   : > { %v3444_v37 = vmax.f32 %v3436_v27, 0.0 }
 0xae7   : > { %v3452_v0 = vpack.c.bf16 %v3444_v37, %v3444_v37 }
 0xae8   : > { %v3409_v20 = vpop.f32.mrf.mxu3 }
 0xae9   : > { %3461 = vst.msk [vmem:[%s6394_s30 + $0x8] sm:$0xf] %vm3458_vm1, %v3452_v0  ;;  %v3425_v21 = vadd.f32 %v3409_v20, %v2870_v5 }
 0xaeb   : > { %v3437_v13 = vadd.f32 %v4350_v56, %v3425_v21 }
 0xaed   : > { %v3445_v2 = vmax.f32 %v3437_v13, 0.0 }
 0xaef   : > { %v3453_v35 = vpack.c.bf16 %v3445_v2, %v3445_v2 }
 0xaf0   : > { %v3412_v48 = vpop.f32.mrf.mxu3  ;;  %v3501_v6 = vld [vmem:[%s6394_s30 + $0x8] sm:$0xf] (%p4887_p6) }
 0xaf1   : > { %3462 = vst.msk [vmem:[%s6394_s30 + $0xc] sm:$0xf] %vm3458_vm1, %v3453_v35  ;;  %v3426_v51 = vadd.f32 %v3412_v48, %v6230_v54 }
 0xaf2   : > { %3502 = vst [vmem:[%s3480_s13 + $0x10] sm:$0xf] (%p4887_p6), %v3501_v6 }
 0xaf3   : > { %v3438_v16 = vadd.f32 %v4350_v56, %v3426_v51 }
 0xaf5   : > { %v3446_v15 = vmax.f32 %v3438_v16, 0.0 }
 0xaf7   : > { %v3454_v24 = vpack.c.bf16 %v3446_v15, %v3446_v15 }
 0xaf8   : > { %v3414_v49 = vpop.f32.mrf.mxu3  ;;  %v3503_v62 = vld [vmem:[%s6394_s30 + $0xc] sm:$0xf] (%p4887_p6) }
 0xaf9   : > { %3463 = vst.msk [vmem:[%s6394_s30 + $0x10] sm:$0xf] %vm3458_vm1, %v3454_v24  ;;  %v3427_v50 = vadd.f32 %v3414_v49, %v2872_v4 }
 0xafa   : > { %3504 = vst [vmem:[%s3480_s13 + $0x18] sm:$0xf] (%p4887_p6), %v3503_v62 }
 0xafb   : > { %v3439_v42 = vadd.f32 %v4350_v56, %v3427_v50 }
 0xafd   : > { %v3447_v32 = vmax.f32 %v3439_v42, 0.0 }
 0xaff   : > { %v3455_v8 = vpack.c.bf16 %v3447_v32, %v3447_v32 }
 0xb00   : > { %v3417_v11 = vpop.f32.mrf.mxu3  ;;  %v3505_v7 = vld [vmem:[%s6394_s30 + $0x10] sm:$0xf] (%p4887_p6) }
 0xb01   : > { %3464 = vst.msk [vmem:[%s6394_s30 + $0x14] sm:$0xf] %vm3458_vm1, %v3455_v8  ;;  %v3428_v54 = vadd.f32 %v3417_v11, %v6236_v55  ;;  %v3497_v55 = vld [vmem:[%s6394_s30] sm:$0xf] (%p4887_p6) }
 0xb02   : > { %3498 = vst [vmem:[%s3480_s13] sm:$0xf] (%p4887_p6), %v3497_v55 }
 0xb03   : > { %v3440_v41 = vadd.f32 %v4350_v56, %v3428_v54  ;;  %3506 = vst [vmem:[%s3480_s13 + $0x20] sm:$0xf] (%p4887_p6), %v3505_v7 }
 0xb05   : > { %v3448_v9 = vmax.f32 %v3440_v41, 0.0 }
 0xb07   : > { %v3456_v40 = vpack.c.bf16 %v3448_v9, %v3448_v9 }
 0xb08   : > { %v3419_v44 = vpop.f32.mrf.mxu3  ;;  %v3507_v18 = vld [vmem:[%s6394_s30 + $0x14] sm:$0xf] (%p4887_p6) }
 0xb09   : > { %3465 = vst.msk [vmem:[%s6394_s30 + $0x18] sm:$0xf] %vm3458_vm1, %v3456_v40  ;;  %v3429_v29 = vadd.f32 %v3419_v44, %v2874_v57 }
 0xb0a   : > { %3508 = vst [vmem:[%s3480_s13 + $0x28] sm:$0xf] (%p4887_p6), %v3507_v18 }
 0xb0b   : > { %v3441_v58 = vadd.f32 %v4350_v56, %v3429_v29 }
 0xb0d   : > { %v3449_v30 = vmax.f32 %v3441_v58, 0.0  ;;  %3473 = sbr.rel (!%p4887_p6) target bundleno = 2842 (0xb1a), region = 257 }
 0xb0f   : > { %v3457_v28 = vpack.c.bf16 %v3449_v30, %v3449_v30 }
 0xb10   : > { %v3509_v22 = vld [vmem:[%s6394_s30 + $0x18] sm:$0xf] (%p4887_p6) }
 0xb11   : > { %3466 = vst.msk [vmem:[%s6394_s30 + $0x1c] sm:$0xf] %vm3458_vm1, %v3457_v28 }
 0xb12   : > { %3510 = vst [vmem:[%s3480_s13 + $0x30] sm:$0xf] %v3509_v22 }
 0xb18   : > { %v3511_v56 = vld [vmem:[%s6394_s30 + $0x1c] sm:$0xf] }
 0xb19   : > { %3512 = vst [vmem:[%s3480_s13 + $0x38] sm:$0xf] %v3511_v56 }
 0xb1a PF: > { %s20_s27 = sadd.s32 1, %s4669_s27   ;;  %s6719_s7 = sld [smem:[#allocation17_spill]] }
 0xb1b   : > { %p6441_p10 = scmp.ge.s32.totalorder %s20_s27, 10   ;;  %s6720_s28 = sld [smem:[#allocation16_spill]] }
 0xb1c   : > { %s6721_s22 = sld [smem:[#allocation15_spill]]  ;;  %s6726_s13 = smov %s4617_s14 }
 0xb1d   : > { %s6722_s30 = sld [smem:[#allocation12_spill]]  ;;  %s6727_s14 = smov %s4876_s8 }
 0xb1e   : > { %s6723_s10 = sld [smem:[#allocation13_spill]]  ;;  %s6728_s15 = smov %s4625_s16 }
 0xb1f   : > { %s6724_s6 = sld [smem:[#allocation14_spill]]  ;;  %s6730_s17 = smov %s4633_s18 }
 0xb20   : > { %s6729_s16 = smov %s6719_s7  ;;  %s6732_s19 = smov %s4641_s20 }
 0xb21   : > { %s6731_s18 = smov %s6720_s28  ;;  %s6734_s21 = smov %s4657_s24 }
 0xb22   : > { %s6733_s20 = smov %s6721_s22  ;;  %s6735_s22 = smov %s4661_s25 }
 0xb23   : > { %s6736_s23 = smov %s4665_s26  ;;  %s6737_s24 = smov %s6722_s30 }
 0xb24   : > { %s6738_s25 = smov %s6723_s10  ;;  %19 = sbr.rel (!%p6441_p10) target bundleno = 17 (0x11), region = 367 }
 0xb25   : > { %s6739_s26 = smov %s6724_s6 }

</bundles_post_ra>
